<compile_context>
chip_gen: v7x
topology: tpu7x:2x2x1
jax: 0.10.0
libtpu: 0.0.40
codegen_flags: <defaults>
</compile_context>

<pallas_src>
import functools

import jax
import jax.numpy as jnp
from jax import lax
from jax.experimental import pallas as pl
from jax.experimental.pallas import tpu as pltpu

_BN_EPS = 1e-5
_LANE = 128


def _round_up(x, m):
    return (x + m - 1) // m * m


def _largest_divisor_at_most(n, cap):
    cap = max(1, min(n, cap))
    for d in range(cap, 0, -1):
        if n % d == 0:
            return d
    return 1


def _vmem_limit_bytes():
    # Generation-aware budget (v5e/v6e: 128 MiB VMEM, v7x: 64 MiB per TC).
    try:
        cap = int(pltpu.get_tpu_info().vmem_capacity_bytes)
    except Exception:
        cap = 64 * 1024 * 1024
    return min(int(cap * 0.7), 100 * 1024 * 1024)


def _pick_depth_tile(D, Lp, Cx, budget_bytes=24 * 1024 * 1024):
    """Td output planes per grid step; Td+2 input planes are double-buffered."""
    per_plane = Lp * Cx * 2 * 2          # bf16, double-buffered
    max_td = max(1, budget_bytes // max(per_plane, 1) - 2)
    return _largest_divisor_at_most(D, min(4, max_td))


# --------------------------------------------------------------------------
# Kernels
# --------------------------------------------------------------------------
def _fill_im2col(x_refs, im2col_ref, t, *, Wp, Lout, Cx):
    """Copy the 27 shifted tap slices of output plane t into the staging buf."""
    for kd in range(3):
        xr = x_refs[t + kd]
        for kh in range(3):
            for kw in range(3):
                tap = kd * 9 + kh * 3 + kw
                off = kh * Wp + kw                       # static flat offset
                im2col_ref[:, tap * Cx:(tap + 1) * Cx] = xr[off:off + Lout, :]


def _conv_bn_kernel(*refs, Td, Wp, W, Lout, Cx, K, Kpad, Cpad):
    """Pass 1 (BN path): conv for Td planes + masked per-step partial stats.

    refs = (x_0..x_{Td+1}, wk, y, stats, im2col_scratch)
      x_j     : (Lp, Cx)        bf16   padded input planes
      wk      : (Kpad, Cpad)    bf16   im2col-reshaped weights
      y       : (Td, Lout, Cpad) bf16  pre-BN conv output
      stats   : (2, Cpad)       f32    [sum, sum_sq] over the Td planes
      im2col  : (Lout, Kpad)    bf16   staging scratch
    """
    x_refs = refs[:Td + 2]
    wk_ref, y_ref, stats_ref, im2col_ref = refs[Td + 2:Td + 6]

    if Kpad > K:  # zero the K-pad tail once (weights there are zero too)
        im2col_ref[:, K:] = jnp.zeros((Lout, Kpad - K), jnp.bfloat16)

    # Rows live on an (H, W+2) grid; the 2 rightmost columns are padding
    # garbage and must be excluded from the batch statistics.
    col = lax.broadcasted_iota(jnp.int32, (Lout, 1), 0) % Wp
    mask = (col < W).astype(jnp.float32)

    s1 = jnp.zeros((1, Cpad), jnp.float32)
    s2 = jnp.zeros((1, Cpad), jnp.float32)
    for t in range(Td):
        _fill_im2col(x_refs, im2col_ref, t, Wp=Wp, Lout=Lout, Cx=Cx)
        acc = jnp.dot(im2col_ref[...], wk_ref[...],
                      preferred_element_type=jnp.float32)
        am = acc * mask
        s1 = s1 + jnp.sum(am, axis=0, keepdims=True)
        s2 = s2 + jnp.sum(am * acc, axis=0, keepdims=True)
        y_ref[t] = acc.astype(y_ref.dtype)
    stats_ref[...] = jnp.concatenate([s1, s2], axis=0)


def _conv_bias_relu_kernel(*refs, Td, Wp, W, Lout, Cx, K, Kpad, Cpad):
    """Pass 1 (no-BN path): conv + bias + ReLU, no stats output."""
    x_refs = refs[:Td + 2]
    wk_ref, b_ref, y_ref, im2col_ref = refs[Td + 2:Td + 6]

    if Kpad > K:
        im2col_ref[:, K:] = jnp.zeros((Lout, Kpad - K), jnp.bfloat16)

    for t in range(Td):
        _fill_im2col(x_refs, im2col_ref, t, Wp=Wp, Lout=Lout, Cx=Cx)
        acc = jnp.dot(im2col_ref[...], wk_ref[...],
                      preferred_element_type=jnp.float32)
        y_ref[t] = jnp.maximum(acc + b_ref[...], 0.0).astype(y_ref.dtype)


def _bn_relu_to_padded_kernel(y_ref, scale_ref, shift_ref, o_ref,
                              *, Wp, W, Lout, row0):
    """Pass 2 (BN, block 1): normalize+ReLU and write straight into the
    zero-padded plane layout consumed by the next block's conv."""
    dp = pl.program_id(1)
    o_ref[...] = jnp.zeros_like(o_ref)                 # halo rows/cols & D-pad

    @pl.when(jnp.logical_and(dp > 0, dp < pl.num_programs(1) - 1))
    def _():
        y = y_ref[...].astype(jnp.float32)
        v = jnp.maximum(y * scale_ref[...] + shift_ref[...], 0.0)
        col = lax.broadcasted_iota(jnp.int32, (Lout, 1), 0) % Wp
        v = jnp.where(col < W, v, 0.0)                 # keep pad columns zero
        o_ref[row0:row0 + Lout, :] = v.astype(o_ref.dtype)


def _bn_relu_kernel(y_ref, scale_ref, shift_ref, o_ref):
    """Pass 2 (BN, final block): y -> max(y*scale + shift, 0), big slabs."""
    y = y_ref[...].astype(jnp.float32)
    o_ref[...] = jnp.maximum(y * scale_ref[...] + shift_ref[...],
                             0.0).astype(o_ref.dtype)


# --------------------------------------------------------------------------
# Block wrapper
# --------------------------------------------------------------------------
def conv_block(xp, w, b, gamma, beta, *, dims, use_bn, emit_padded, out_dtype):
    """Conv3d(3x3x3, stride 1, pad 1) [+ BatchNorm3d(train)] + ReLU.

    xp:  (N, Dp, Lp, Cx) bf16 zero-padded input (Dp=D+2, Hp=H+3, Wp=W+2,
         Lp=Hp*Wp).  Cx may exceed the logical Cin of `w` (extra channels
         must be zero, e.g. lane padding produced by a previous block).
    w:   (27, Cin, Cout), taps ordered kd*9 + kh*3 + kw.
    Returns the padded bf16 input of the next block when emit_padded=True,
    otherwise (N, D, Lout, Cpad) in out_dtype (Lout = H*(W+2)).
    """
    N, D, H, W = dims
    Dp, Hp, Wp = D + 2, H + 3, W + 2
    Lp, Lout = Hp * Wp, H * Wp
    Cx = xp.shape[-1]
    _, Cin, Cout = w.shape
    Cpad = _round_up(max(Cout, _LANE), _LANE)
    K = 27 * Cx
    Kpad = _round_up(K, _LANE)
    Td = _pick_depth_tile(D, Lp, Cx)
    vmem_limit = _vmem_limit_bytes()

    # Weights reshaped for the fused-K matmul: (27, Cx, Cpad) -> (Kpad, Cpad).
    wfull = jnp.zeros((27, Cx, Cpad), jnp.float32).at[:, :Cin, :Cout].set(w)
    wk = jnp.zeros((Kpad, Cpad), jnp.bfloat16)
    wk = wk.at[:K, :].set(wfull.reshape(K, Cpad).astype(jnp.bfloat16))

    x_specs = [
        pl.BlockSpec((None, None, Lp, Cx),
                     (lambda n, dt, j=j: (n, dt * Td + j, 0, 0)))
        for j in range(Td + 2)
    ]
    # TODO(synk): mark the constant-index weight/bias/scale blocks as
    # single-buffered (pipeline_mode=pl.Buffered(1)); only matters for C>=512.
    w_spec = pl.BlockSpec((Kpad, Cpad), lambda n, dt: (0, 0))

    common = dict(Td=Td, Wp=Wp, W=W, Lout=Lout, Cx=Cx, K=K, Kpad=Kpad, Cpad=Cpad)
    # TODO(synk): row-chunk this staging buffer for very large H*W (v7x).
    scratch = [pltpu.VMEM((Lout, Kpad), jnp.bfloat16)]
    grid = (N, D // Td)
    cparams = pltpu.CompilerParams(
        dimension_semantics=("parallel", "parallel"),
        vmem_limit_bytes=vmem_limit)

    if not use_bn:
        bp = jnp.zeros((1, Cpad), jnp.float32).at[0, :Cout].set(b)
        y_dtype = jnp.bfloat16 if emit_padded else out_dtype
        y = pl.pallas_call(
            functools.partial(_conv_bias_relu_kernel, **common),
            out_shape=jax.ShapeDtypeStruct((N, D, Lout, Cpad), y_dtype),
            grid_spec=pltpu.PrefetchScalarGridSpec(
                num_scalar_prefetch=0, grid=grid,
                in_specs=x_specs + [
                    w_spec,
                    pl.BlockSpec((1, Cpad), lambda n, dt: (0, 0)),
                ],
                out_specs=pl.BlockSpec((None, Td, Lout, Cpad),
                                       lambda n, dt: (n, dt, 0, 0)),
                scratch_shapes=scratch),
            compiler_params=cparams,
        )(*([xp] * (Td + 2) + [wk, bp]))
        if emit_padded:
            # TODO(synk): fuse this re-padding into the conv epilogue for the
            # no-BN path too (the BN path already does it in pass 2).
            y5 = y.reshape(N, D, H, Wp, Cpad)[:, :, :, :W, :]
            yp = jnp.pad(y5, ((0, 0), (1, 1), (1, 2), (1, 1), (0, 0)))
            return yp.reshape(N, Dp, Lp, Cpad)
        return y

    # ----------------- BN path, pass 1: conv + partial batch stats ----------
    y_raw, stats = pl.pallas_call(
        functools.partial(_conv_bn_kernel, **common),
        out_shape=(jax.ShapeDtypeStruct((N, D, Lout, Cpad), jnp.bfloat16),
                   jax.ShapeDtypeStruct((N, D // Td, 2, Cpad), jnp.float32)),
        grid_spec=pltpu.PrefetchScalarGridSpec(
            num_scalar_prefetch=0, grid=grid,
            in_specs=x_specs + [w_spec],
            out_specs=[
                pl.BlockSpec((None, Td, Lout, Cpad),
                             lambda n, dt: (n, dt, 0, 0)),
                pl.BlockSpec((None, None, 2, Cpad),
                             lambda n, dt: (n, dt, 0, 0)),
            ],
            scratch_shapes=scratch),
        compiler_params=cparams,
    )(*([xp] * (Td + 2) + [wk]))

    # Exact training-mode batch statistics (the conv bias cancels under BN).
    count = float(N * D * H * W)
    s = jnp.sum(stats, axis=(0, 1))                        # (2, Cpad)
    mean = s[0] / count
    var = jnp.maximum(s[1] / count - mean * mean, 0.0)     # biased, as in BN
    inv = lax.rsqrt(var + _BN_EPS)
    gpad = jnp.zeros((Cpad,), jnp.float32).at[:Cout].set(gamma)
    bpad = jnp.zeros((Cpad,), jnp.float32).at[:Cout].set(beta)
    scale = (gpad * inv).reshape(1, Cpad)
    shift = (bpad - mean * gpad * inv).reshape(1, Cpad)

    if emit_padded:
        # Pass 2 writes directly into the next block's zero-padded layout
        # (D-boundary planes and all halo rows/cols are zeroed in-kernel).
        row0 = Wp + 1

        def y_in_map(n, dp):
            d = jnp.maximum(jnp.minimum(dp - 1, D - 1), 0)
            return (n, d, 0, 0)

        return pl.pallas_call(
            functools.partial(_bn_relu_to_padded_kernel,
                              Wp=Wp, W=W, Lout=Lout, row0=row0),
            out_shape=jax.ShapeDtypeStruct((N, Dp, Lp, Cpad), jnp.bfloat16),
            grid_spec=pltpu.PrefetchScalarGridSpec(
                num_scalar_prefetch=0, grid=(N, Dp),
                in_specs=[
                    pl.BlockSpec((None, None, Lout, Cpad), y_in_map),
                    pl.BlockSpec((1, Cpad), lambda n, dp: (0, 0)),
                    pl.BlockSpec((1, Cpad), lambda n, dp: (0, 0)),
                ],
                out_specs=pl.BlockSpec((None, None, Lp, Cpad),
                                       lambda n, dp: (n, dp, 0, 0))),
            compiler_params=pltpu.CompilerParams(
                dimension_semantics=("parallel", "parallel"),
                vmem_limit_bytes=vmem_limit),
        )(y_raw, scale, shift)

    # Final block: BN+ReLU over large lane-dense slabs (many planes per step).
    ND = N * D
    G = _largest_divisor_at_most(ND, max(1, 4096 // max(Lout, 1)))
    y2 = y_raw.reshape(ND, Lout, Cpad)
    out = pl.pallas_call(
        _bn_relu_kernel,
        out_shape=jax.ShapeDtypeStruct((ND, Lout, Cpad), out_dtype),
        grid_spec=pltpu.PrefetchScalarGridSpec(
            num_scalar_prefetch=0, grid=(ND // G,),
            in_specs=[
                pl.BlockSpec((G, Lout, Cpad), lambda i: (i, 0, 0)),
                pl.BlockSpec((1, 1, Cpad), lambda i: (0, 0, 0)),
                pl.BlockSpec((1, 1, Cpad), lambda i: (0, 0, 0)),
            ],
            out_specs=pl.BlockSpec((G, Lout, Cpad), lambda i: (i, 0, 0))),
        compiler_params=pltpu.CompilerParams(
            dimension_semantics=("parallel",), vmem_limit_bytes=vmem_limit),
    )(y2, scale.reshape(1, 1, Cpad), shift.reshape(1, 1, Cpad))
    return out.reshape(N, D, Lout, Cpad)


# --------------------------------------------------------------------------
# Module-level forward + init
# --------------------------------------------------------------------------
def init_unet_conv3d_params(key, in_size, out_size, is_batchnorm=True):
    """Mimics the PyTorch module's init:
    Conv weight: kaiming_normal_(a=0, fan_in) -> std = sqrt(2 / (Cin*27))
    Conv bias:   default uniform(-1/sqrt(fan_in), 1/sqrt(fan_in))
    BN gamma ~ N(1, 0.02), BN beta = 0."""
    n_taps = 27
    keys = jax.random.split(key, 6)

    def conv_params(k_w, k_b, cin, cout):
        fan_in = cin * n_taps
        w = jax.random.normal(k_w, (n_taps, cin, cout), jnp.float32)
        w = w * jnp.sqrt(2.0 / fan_in)
        bound = 1.0 / jnp.sqrt(float(fan_in))
        b = jax.random.uniform(k_b, (cout,), jnp.float32, -bound, bound)
        return w, b

    w1, b1 = conv_params(keys[0], keys[1], in_size, out_size)
    w2, b2 = conv_params(keys[2], keys[3], out_size, out_size)

    g1 = 1.0 + 0.02 * jax.random.normal(keys[4], (out_size,), jnp.float32)
    g2 = 1.0 + 0.02 * jax.random.normal(keys[5], (out_size,), jnp.float32)
    beta1 = jnp.zeros((out_size,), jnp.float32)
    beta2 = jnp.zeros((out_size,), jnp.float32)

    return dict(w1=w1, b1=b1, g1=g1, beta1=beta1,
                w2=w2, b2=b2, g2=g2, beta2=beta2,
                is_batchnorm=is_batchnorm)


def unet_conv3d(inputs_ncdhw, params):
    """Forward pass of UnetConv3D.  Input/output are NCDHW (PyTorch layout)."""
    use_bn = params["is_batchnorm"]
    out_size = params["w2"].shape[-1]
    N, _, D, H, W = inputs_ncdhw.shape
    dims = (N, D, H, W)
    Dp, Hp, Wp = D + 2, H + 3, W + 2

    # Single zero-padded bf16 copy of the input; H gets one extra trailing pad
    # row so every 3x3x3 tap is a static flat row offset inside a plane.
    x = jnp.transpose(inputs_ncdhw, (0, 2, 3, 4, 1))               # -> NDHWC
    xp = jnp.pad(x.astype(jnp.bfloat16),
                 ((0, 0), (1, 1), (1, 2), (1, 1), (0, 0)))
    xp = xp.reshape(N, Dp, Hp * Wp, xp.shape[-1])

    h1 = conv_block(xp, params["w1"], params["b1"], params["g1"],
                    params["beta1"], dims=dims, use_bn=use_bn,
                    emit_padded=True, out_dtype=jnp.bfloat16)
    y2 = conv_block(h1, params["w2"], params["b2"], params["g2"],
                    params["beta2"], dims=dims, use_bn=use_bn,
                    emit_padded=False, out_dtype=jnp.float32)

    Cpad2 = y2.shape[-1]
    y = y2.reshape(N, D, H, Wp, Cpad2)[:, :, :, :W, :out_size]
    return jnp.transpose(y, (0, 4, 1, 2, 3)).astype(jnp.float32)


# --------------------------------------------------------------------------
# Pure-XLA reference (matches the kernels' bf16-weight/activation precision)
# --------------------------------------------------------------------------
def _reference(x_ncdhw, params):
    use_bn = params["is_batchnorm"]

    def conv(x, w, b):
        wk = w.reshape(3, 3, 3, w.shape[1], w.shape[2])
        y = lax.conv_general_dilated(
            x, wk, window_strides=(1, 1, 1),
            padding=((1, 1), (1, 1), (1, 1)),
            dimension_numbers=("NDHWC", "DHWIO", "NDHWC"),
            precision=lax.Precision.HIGHEST)
        return y + b

    def bn_relu(y, gamma, beta):
        mean = jnp.mean(y, axis=(0, 1, 2, 3))
        var = jnp.mean(jnp.square(y - mean), axis=(0, 1, 2, 3))
        yn = (y - mean) * lax.rsqrt(var + _BN_EPS)
        return jnp.maximum(gamma * yn + beta, 0.0)

    def block(x, w, b, g, bt):
        w = w.astype(jnp.bfloat16).astype(jnp.float32)
        y = conv(x, w, b)
        return bn_relu(y, g, bt) if use_bn else jnp.maximum(y, 0.0)

    x = jnp.transpose(x_ncdhw, (0, 2, 3, 4, 1))
    x = x.astype(jnp.bfloat16).astype(jnp.float32)
    h = block(x, params["w1"], params["b1"], params["g1"], params["beta1"])
    h = h.astype(jnp.bfloat16).astype(jnp.float32)
    y = block(h, params["w2"], params["b2"], params["g2"], params["beta2"])
    return jnp.transpose(y, (0, 4, 1, 2, 3))


if __name__ == "__main__":
    key = jax.random.PRNGKey(0)
    k_x, k_p = jax.random.split(key)

    N, in_size, out_size, D, H, W = 2, 4, 8, 8, 8, 8
    x = jax.random.normal(k_x, (N, in_size, D, H, W), jnp.float32)
    params = init_unet_conv3d_params(k_p, in_size, out_size, is_batchnorm=True)

    y = jax.block_until_ready(unet_conv3d(x, params))
    assert y.shape == (N, out_size, D, H, W), y.shape
    assert y.dtype == jnp.float32
    assert bool(jnp.all(jnp.isfinite(y)))

    y_ref = jax.block_until_ready(_reference(x, params))
    err = float(jnp.max(jnp.abs(y - y_ref)))
    assert err < 0.15, f"max abs err vs reference: {err}"

    print("KERNEL_OK")
</pallas_src>

<mosaic_0001>
module attributes {stable_mosaic.version = 11 : i64} {
  func.func @_conv_bn_kernel(%arg0: i32, %arg1: i32, %arg2: memref<1x1x110x4xbf16, #tpu.memory_space<vmem>>, %arg3: memref<1x1x110x4xbf16, #tpu.memory_space<vmem>>, %arg4: memref<1x1x110x4xbf16, #tpu.memory_space<vmem>>, %arg5: memref<1x1x110x4xbf16, #tpu.memory_space<vmem>>, %arg6: memref<1x1x110x4xbf16, #tpu.memory_space<vmem>>, %arg7: memref<1x1x110x4xbf16, #tpu.memory_space<vmem>>, %arg8: memref<128x128xbf16, #tpu.memory_space<vmem>>, %arg9: memref<1x4x80x128xbf16, #tpu.memory_space<vmem>>, %arg10: memref<1x1x2x128xf32, #tpu.memory_space<vmem>>, %arg11: memref<80x128xbf16, #tpu.memory_space<vmem>>) attributes {dimension_semantics = [#tpu.dimension_semantics<parallel>, #tpu.dimension_semantics<parallel>], iteration_bounds = array<i64: 2, 2>, scalar_prefetch = 0 : i64, scratch_operands = 1 : i64, tpu.core_type = #tpu.core_type<tc>, window_params = [{transform_indices = @transform_0, window_bounds = array<i64: 1, 1, 110, 4>}, {transform_indices = @transform_1, window_bounds = array<i64: 1, 1, 110, 4>}, {transform_indices = @transform_2, window_bounds = array<i64: 1, 1, 110, 4>}, {transform_indices = @transform_3, window_bounds = array<i64: 1, 1, 110, 4>}, {transform_indices = @transform_4, window_bounds = array<i64: 1, 1, 110, 4>}, {transform_indices = @transform_5, window_bounds = array<i64: 1, 1, 110, 4>}, {pipeline_mode = #tpu.pipeline_mode<synchronous>, transform_indices = @transform_6, window_bounds = array<i64: 128, 128>}, {transform_indices = @transform_7, window_bounds = array<i64: 1, 4, 80, 128>}, {transform_indices = @transform_8, window_bounds = array<i64: 1, 1, 2, 128>}]} {
    %cst = arith.constant 0.000000e+00 : bf16
    %0 = vector.broadcast %cst : bf16 to vector<80x20xbf16>
    %c0 = arith.constant 0 : index
    %c108 = arith.constant 108 : index
    %1 = vector.load %arg11[%c0, %c108] : memref<80x128xbf16, #tpu.memory_space<vmem>>, vector<80x20xbf16>
    tpu.vector_store %arg11[%c0, %c108], %0 {strides = array<i32>} : memref<80x128xbf16, #tpu.memory_space<vmem>>, vector<80x20xbf16>,
    %2 = tpu.iota {dimensions = array<i32: 0>} : vector<80x1xi32>
    %c10_i32 = arith.constant 10 : i32
    %c0_i32 = arith.constant 0 : i32
    %3 = arith.cmpi eq, %c10_i32, %c0_i32 : i32
    %c1_i32 = arith.constant 1 : i32
    %4 = arith.select %3, %c1_i32, %c10_i32 : i32
    %5 = vector.broadcast %4 : i32 to vector<80x1xi32>
    %6 = arith.remsi %2, %5 : vector<80x1xi32>
    %c0_i32_0 = arith.constant 0 : i32
    %7 = vector.broadcast %c0_i32_0 : i32 to vector<80x1xi32>
    %8 = arith.cmpi ne, %6, %7 : vector<80x1xi32>
    %c0_i32_1 = arith.constant 0 : i32
    %9 = vector.broadcast %c0_i32_1 : i32 to vector<80x1xi32>
    %10 = arith.cmpi slt, %6, %9 : vector<80x1xi32>
    %c0_i32_2 = arith.constant 0 : i32
    %11 = arith.cmpi slt, %4, %c0_i32_2 : i32
    %12 = vector.broadcast %11 : i1 to vector<80x1xi1>
    %13 = vector.broadcast %12 : vector<80x1xi1> to vector<80x1xi1>
    %14 = arith.xori %10, %13 : vector<80x1xi1>
    %15 = arith.andi %14, %8 : vector<80x1xi1>
    %16 = vector.broadcast %4 : i32 to vector<80x1xi32>
    %17 = arith.addi %6, %16 : vector<80x1xi32>
    %18 = arith.select %15, %17, %6 : vector<80x1xi1>, vector<80x1xi32>
    %c8_i32 = arith.constant 8 : i32
    %19 = vector.broadcast %c8_i32 : i32 to vector<80x1xi32>
    %20 = arith.cmpi slt, %18, %19 : vector<80x1xi32>
    %21 = arith.extui %20 : vector<80x1xi1> to vector<80x1xi32>
    %22 = arith.sitofp %21 : vector<80x1xi32> to vector<80x1xf32>
    %cst_3 = arith.constant 0.000000e+00 : f32
    %23 = vector.broadcast %cst_3 : f32 to vector<1x128xf32>
    %cst_4 = arith.constant 0.000000e+00 : f32
    %24 = vector.broadcast %cst_4 : f32 to vector<1x128xf32>
    %c0_5 = arith.constant 0 : index
    %c0_6 = arith.constant 0 : index
    %c0_7 = arith.constant 0 : index
    %c0_8 = arith.constant 0 : index
    %25 = vector.load %arg2[%c0_5, %c0_6, %c0_7, %c0_8] : memref<1x1x110x4xbf16, #tpu.memory_space<vmem>>, vector<1x1x80x4xbf16>
    %26 = vector.shape_cast %25 : vector<1x1x80x4xbf16> to vector<80x4xbf16>
    %c0_9 = arith.constant 0 : index
    %c0_10 = arith.constant 0 : index
    %27 = vector.load %arg11[%c0_9, %c0_10] : memref<80x128xbf16, #tpu.memory_space<vmem>>, vector<80x4xbf16>
    tpu.vector_store %arg11[%c0_9, %c0_10], %26 {strides = array<i32>} : memref<80x128xbf16, #tpu.memory_space<vmem>>, vector<80x4xbf16>,
    %c0_11 = arith.constant 0 : index
    %c0_12 = arith.constant 0 : index
    %c1 = arith.constant 1 : index
    %c0_13 = arith.constant 0 : index
    %28 = vector.load %arg2[%c0_11, %c0_12, %c1, %c0_13] : memref<1x1x110x4xbf16, #tpu.memory_space<vmem>>, vector<1x1x80x4xbf16>
    %29 = vector.shape_cast %28 : vector<1x1x80x4xbf16> to vector<80x4xbf16>
    %c0_14 = arith.constant 0 : index
    %c4 = arith.constant 4 : index
    %30 = vector.load %arg11[%c0_14, %c4] : memref<80x128xbf16, #tpu.memory_space<vmem>>, vector<80x4xbf16>
    tpu.vector_store %arg11[%c0_14, %c4], %29 {strides = array<i32>} : memref<80x128xbf16, #tpu.memory_space<vmem>>, vector<80x4xbf16>,
    %c0_15 = arith.constant 0 : index
    %c0_16 = arith.constant 0 : index
    %c2 = arith.constant 2 : index
    %c0_17 = arith.constant 0 : index
    %31 = vector.load %arg2[%c0_15, %c0_16, %c2, %c0_17] : memref<1x1x110x4xbf16, #tpu.memory_space<vmem>>, vector<1x1x80x4xbf16>
    %32 = vector.shape_cast %31 : vector<1x1x80x4xbf16> to vector<80x4xbf16>
    %c0_18 = arith.constant 0 : index
    %c8 = arith.constant 8 : index
    %33 = vector.load %arg11[%c0_18, %c8] : memref<80x128xbf16, #tpu.memory_space<vmem>>, vector<80x4xbf16>
    tpu.vector_store %arg11[%c0_18, %c8], %32 {strides = array<i32>} : memref<80x128xbf16, #tpu.memory_space<vmem>>, vector<80x4xbf16>,
    %c0_19 = arith.constant 0 : index
    %c0_20 = arith.constant 0 : index
    %c10 = arith.constant 10 : index
    %c0_21 = arith.constant 0 : index
    %34 = vector.load %arg2[%c0_19, %c0_20, %c10, %c0_21] : memref<1x1x110x4xbf16, #tpu.memory_space<vmem>>, vector<1x1x80x4xbf16>
    %35 = vector.shape_cast %34 : vector<1x1x80x4xbf16> to vector<80x4xbf16>
    %c0_22 = arith.constant 0 : index
    %c12 = arith.constant 12 : index
    %36 = vector.load %arg11[%c0_22, %c12] : memref<80x128xbf16, #tpu.memory_space<vmem>>, vector<80x4xbf16>
    tpu.vector_store %arg11[%c0_22, %c12], %35 {strides = array<i32>} : memref<80x128xbf16, #tpu.memory_space<vmem>>, vector<80x4xbf16>,
    %c0_23 = arith.constant 0 : index
    %c0_24 = arith.constant 0 : index
    %c11 = arith.constant 11 : index
    %c0_25 = arith.constant 0 : index
    %37 = vector.load %arg2[%c0_23, %c0_24, %c11, %c0_25] : memref<1x1x110x4xbf16, #tpu.memory_space<vmem>>, vector<1x1x80x4xbf16>
    %38 = vector.shape_cast %37 : vector<1x1x80x4xbf16> to vector<80x4xbf16>
    %c0_26 = arith.constant 0 : index
    %c16 = arith.constant 16 : index
    %39 = vector.load %arg11[%c0_26, %c16] : memref<80x128xbf16, #tpu.memory_space<vmem>>, vector<80x4xbf16>
    tpu.vector_store %arg11[%c0_26, %c16], %38 {strides = array<i32>} : memref<80x128xbf16, #tpu.memory_space<vmem>>, vector<80x4xbf16>,
    %c0_27 = arith.constant 0 : index
    %c0_28 = arith.constant 0 : index
    %c12_29 = arith.constant 12 : index
    %c0_30 = arith.constant 0 : index
    %40 = vector.load %arg2[%c0_27, %c0_28, %c12_29, %c0_30] : memref<1x1x110x4xbf16, #tpu.memory_space<vmem>>, vector<1x1x80x4xbf16>
    %41 = vector.shape_cast %40 : vector<1x1x80x4xbf16> to vector<80x4xbf16>
    %c0_31 = arith.constant 0 : index
    %c20 = arith.constant 20 : index
    %42 = vector.load %arg11[%c0_31, %c20] : memref<80x128xbf16, #tpu.memory_space<vmem>>, vector<80x4xbf16>
    tpu.vector_store %arg11[%c0_31, %c20], %41 {strides = array<i32>} : memref<80x128xbf16, #tpu.memory_space<vmem>>, vector<80x4xbf16>,
    %c0_32 = arith.constant 0 : index
    %c0_33 = arith.constant 0 : index
    %c20_34 = arith.constant 20 : index
    %c0_35 = arith.constant 0 : index
    %43 = vector.load %arg2[%c0_32, %c0_33, %c20_34, %c0_35] : memref<1x1x110x4xbf16, #tpu.memory_space<vmem>>, vector<1x1x80x4xbf16>
    %44 = vector.shape_cast %43 : vector<1x1x80x4xbf16> to vector<80x4xbf16>
    %c0_36 = arith.constant 0 : index
    %c24 = arith.constant 24 : index
    %45 = vector.load %arg11[%c0_36, %c24] : memref<80x128xbf16, #tpu.memory_space<vmem>>, vector<80x4xbf16>
    tpu.vector_store %arg11[%c0_36, %c24], %44 {strides = array<i32>} : memref<80x128xbf16, #tpu.memory_space<vmem>>, vector<80x4xbf16>,
    %c0_37 = arith.constant 0 : index
    %c0_38 = arith.constant 0 : index
    %c21 = arith.constant 21 : index
    %c0_39 = arith.constant 0 : index
    %46 = vector.load %arg2[%c0_37, %c0_38, %c21, %c0_39] : memref<1x1x110x4xbf16, #tpu.memory_space<vmem>>, vector<1x1x80x4xbf16>
    %47 = vector.shape_cast %46 : vector<1x1x80x4xbf16> to vector<80x4xbf16>
    %c0_40 = arith.constant 0 : index
    %c28 = arith.constant 28 : index
    %48 = vector.load %arg11[%c0_40, %c28] : memref<80x128xbf16, #tpu.memory_space<vmem>>, vector<80x4xbf16>
    tpu.vector_store %arg11[%c0_40, %c28], %47 {strides = array<i32>} : memref<80x128xbf16, #tpu.memory_space<vmem>>, vector<80x4xbf16>,
    %c0_41 = arith.constant 0 : index
    %c0_42 = arith.constant 0 : index
    %c22 = arith.constant 22 : index
    %c0_43 = arith.constant 0 : index
    %49 = vector.load %arg2[%c0_41, %c0_42, %c22, %c0_43] : memref<1x1x110x4xbf16, #tpu.memory_space<vmem>>, vector<1x1x80x4xbf16>
    %50 = vector.shape_cast %49 : vector<1x1x80x4xbf16> to vector<80x4xbf16>
    %c0_44 = arith.constant 0 : index
    %c32 = arith.constant 32 : index
    %51 = vector.load %arg11[%c0_44, %c32] : memref<80x128xbf16, #tpu.memory_space<vmem>>, vector<80x4xbf16>
    tpu.vector_store %arg11[%c0_44, %c32], %50 {strides = array<i32>} : memref<80x128xbf16, #tpu.memory_space<vmem>>, vector<80x4xbf16>,
    %c0_45 = arith.constant 0 : index
    %c0_46 = arith.constant 0 : index
    %c0_47 = arith.constant 0 : index
    %c0_48 = arith.constant 0 : index
    %52 = vector.load %arg3[%c0_45, %c0_46, %c0_47, %c0_48] : memref<1x1x110x4xbf16, #tpu.memory_space<vmem>>, vector<1x1x80x4xbf16>
    %53 = vector.shape_cast %52 : vector<1x1x80x4xbf16> to vector<80x4xbf16>
    %c0_49 = arith.constant 0 : index
    %c36 = arith.constant 36 : index
    %54 = vector.load %arg11[%c0_49, %c36] : memref<80x128xbf16, #tpu.memory_space<vmem>>, vector<80x4xbf16>
    tpu.vector_store %arg11[%c0_49, %c36], %53 {strides = array<i32>} : memref<80x128xbf16, #tpu.memory_space<vmem>>, vector<80x4xbf16>,
    %c0_50 = arith.constant 0 : index
    %c0_51 = arith.constant 0 : index
    %c1_52 = arith.constant 1 : index
    %c0_53 = arith.constant 0 : index
    %55 = vector.load %arg3[%c0_50, %c0_51, %c1_52, %c0_53] : memref<1x1x110x4xbf16, #tpu.memory_space<vmem>>, vector<1x1x80x4xbf16>
    %56 = vector.shape_cast %55 : vector<1x1x80x4xbf16> to vector<80x4xbf16>
    %c0_54 = arith.constant 0 : index
    %c40 = arith.constant 40 : index
    %57 = vector.load %arg11[%c0_54, %c40] : memref<80x128xbf16, #tpu.memory_space<vmem>>, vector<80x4xbf16>
    tpu.vector_store %arg11[%c0_54, %c40], %56 {strides = array<i32>} : memref<80x128xbf16, #tpu.memory_space<vmem>>, vector<80x4xbf16>,
    %c0_55 = arith.constant 0 : index
    %c0_56 = arith.constant 0 : index
    %c2_57 = arith.constant 2 : index
    %c0_58 = arith.constant 0 : index
    %58 = vector.load %arg3[%c0_55, %c0_56, %c2_57, %c0_58] : memref<1x1x110x4xbf16, #tpu.memory_space<vmem>>, vector<1x1x80x4xbf16>
    %59 = vector.shape_cast %58 : vector<1x1x80x4xbf16> to vector<80x4xbf16>
    %c0_59 = arith.constant 0 : index
    %c44 = arith.constant 44 : index
    %60 = vector.load %arg11[%c0_59, %c44] : memref<80x128xbf16, #tpu.memory_space<vmem>>, vector<80x4xbf16>
    tpu.vector_store %arg11[%c0_59, %c44], %59 {strides = array<i32>} : memref<80x128xbf16, #tpu.memory_space<vmem>>, vector<80x4xbf16>,
    %c0_60 = arith.constant 0 : index
    %c0_61 = arith.constant 0 : index
    %c10_62 = arith.constant 10 : index
    %c0_63 = arith.constant 0 : index
    %61 = vector.load %arg3[%c0_60, %c0_61, %c10_62, %c0_63] : memref<1x1x110x4xbf16, #tpu.memory_space<vmem>>, vector<1x1x80x4xbf16>
    %62 = vector.shape_cast %61 : vector<1x1x80x4xbf16> to vector<80x4xbf16>
    %c0_64 = arith.constant 0 : index
    %c48 = arith.constant 48 : index
    %63 = vector.load %arg11[%c0_64, %c48] : memref<80x128xbf16, #tpu.memory_space<vmem>>, vector<80x4xbf16>
    tpu.vector_store %arg11[%c0_64, %c48], %62 {strides = array<i32>} : memref<80x128xbf16, #tpu.memory_space<vmem>>, vector<80x4xbf16>,
    %c0_65 = arith.constant 0 : index
    %c0_66 = arith.constant 0 : index
    %c11_67 = arith.constant 11 : index
    %c0_68 = arith.constant 0 : index
    %64 = vector.load %arg3[%c0_65, %c0_66, %c11_67, %c0_68] : memref<1x1x110x4xbf16, #tpu.memory_space<vmem>>, vector<1x1x80x4xbf16>
    %65 = vector.shape_cast %64 : vector<1x1x80x4xbf16> to vector<80x4xbf16>
    %c0_69 = arith.constant 0 : index
    %c52 = arith.constant 52 : index
    %66 = vector.load %arg11[%c0_69, %c52] : memref<80x128xbf16, #tpu.memory_space<vmem>>, vector<80x4xbf16>
    tpu.vector_store %arg11[%c0_69, %c52], %65 {strides = array<i32>} : memref<80x128xbf16, #tpu.memory_space<vmem>>, vector<80x4xbf16>,
    %c0_70 = arith.constant 0 : index
    %c0_71 = arith.constant 0 : index
    %c12_72 = arith.constant 12 : index
    %c0_73 = arith.constant 0 : index
    %67 = vector.load %arg3[%c0_70, %c0_71, %c12_72, %c0_73] : memref<1x1x110x4xbf16, #tpu.memory_space<vmem>>, vector<1x1x80x4xbf16>
    %68 = vector.shape_cast %67 : vector<1x1x80x4xbf16> to vector<80x4xbf16>
    %c0_74 = arith.constant 0 : index
    %c56 = arith.constant 56 : index
    %69 = vector.load %arg11[%c0_74, %c56] : memref<80x128xbf16, #tpu.memory_space<vmem>>, vector<80x4xbf16>
    tpu.vector_store %arg11[%c0_74, %c56], %68 {strides = array<i32>} : memref<80x128xbf16, #tpu.memory_space<vmem>>, vector<80x4xbf16>,
    %c0_75 = arith.constant 0 : index
    %c0_76 = arith.constant 0 : index
    %c20_77 = arith.constant 20 : index
    %c0_78 = arith.constant 0 : index
    %70 = vector.load %arg3[%c0_75, %c0_76, %c20_77, %c0_78] : memref<1x1x110x4xbf16, #tpu.memory_space<vmem>>, vector<1x1x80x4xbf16>
    %71 = vector.shape_cast %70 : vector<1x1x80x4xbf16> to vector<80x4xbf16>
    %c0_79 = arith.constant 0 : index
    %c60 = arith.constant 60 : index
    %72 = vector.load %arg11[%c0_79, %c60] : memref<80x128xbf16, #tpu.memory_space<vmem>>, vector<80x4xbf16>
    tpu.vector_store %arg11[%c0_79, %c60], %71 {strides = array<i32>} : memref<80x128xbf16, #tpu.memory_space<vmem>>, vector<80x4xbf16>,
    %c0_80 = arith.constant 0 : index
    %c0_81 = arith.constant 0 : index
    %c21_82 = arith.constant 21 : index
    %c0_83 = arith.constant 0 : index
    %73 = vector.load %arg3[%c0_80, %c0_81, %c21_82, %c0_83] : memref<1x1x110x4xbf16, #tpu.memory_space<vmem>>, vector<1x1x80x4xbf16>
    %74 = vector.shape_cast %73 : vector<1x1x80x4xbf16> to vector<80x4xbf16>
    %c0_84 = arith.constant 0 : index
    %c64 = arith.constant 64 : index
    %75 = vector.load %arg11[%c0_84, %c64] : memref<80x128xbf16, #tpu.memory_space<vmem>>, vector<80x4xbf16>
    tpu.vector_store %arg11[%c0_84, %c64], %74 {strides = array<i32>} : memref<80x128xbf16, #tpu.memory_space<vmem>>, vector<80x4xbf16>,
    %c0_85 = arith.constant 0 : index
    %c0_86 = arith.constant 0 : index
    %c22_87 = arith.constant 22 : index
    %c0_88 = arith.constant 0 : index
    %76 = vector.load %arg3[%c0_85, %c0_86, %c22_87, %c0_88] : memref<1x1x110x4xbf16, #tpu.memory_space<vmem>>, vector<1x1x80x4xbf16>
    %77 = vector.shape_cast %76 : vector<1x1x80x4xbf16> to vector<80x4xbf16>
    %c0_89 = arith.constant 0 : index
    %c68 = arith.constant 68 : index
    %78 = vector.load %arg11[%c0_89, %c68] : memref<80x128xbf16, #tpu.memory_space<vmem>>, vector<80x4xbf16>
    tpu.vector_store %arg11[%c0_89, %c68], %77 {strides = array<i32>} : memref<80x128xbf16, #tpu.memory_space<vmem>>, vector<80x4xbf16>,
    %c0_90 = arith.constant 0 : index
    %c0_91 = arith.constant 0 : index
    %c0_92 = arith.constant 0 : index
    %c0_93 = arith.constant 0 : index
    %79 = vector.load %arg4[%c0_90, %c0_91, %c0_92, %c0_93] : memref<1x1x110x4xbf16, #tpu.memory_space<vmem>>, vector<1x1x80x4xbf16>
    %80 = vector.shape_cast %79 : vector<1x1x80x4xbf16> to vector<80x4xbf16>
    %c0_94 = arith.constant 0 : index
    %c72 = arith.constant 72 : index
    %81 = vector.load %arg11[%c0_94, %c72] : memref<80x128xbf16, #tpu.memory_space<vmem>>, vector<80x4xbf16>
    tpu.vector_store %arg11[%c0_94, %c72], %80 {strides = array<i32>} : memref<80x128xbf16, #tpu.memory_space<vmem>>, vector<80x4xbf16>,
    %c0_95 = arith.constant 0 : index
    %c0_96 = arith.constant 0 : index
    %c1_97 = arith.constant 1 : index
    %c0_98 = arith.constant 0 : index
    %82 = vector.load %arg4[%c0_95, %c0_96, %c1_97, %c0_98] : memref<1x1x110x4xbf16, #tpu.memory_space<vmem>>, vector<1x1x80x4xbf16>
    %83 = vector.shape_cast %82 : vector<1x1x80x4xbf16> to vector<80x4xbf16>
    %c0_99 = arith.constant 0 : index
    %c76 = arith.constant 76 : index
    %84 = vector.load %arg11[%c0_99, %c76] : memref<80x128xbf16, #tpu.memory_space<vmem>>, vector<80x4xbf16>
    tpu.vector_store %arg11[%c0_99, %c76], %83 {strides = array<i32>} : memref<80x128xbf16, #tpu.memory_space<vmem>>, vector<80x4xbf16>,
    %c0_100 = arith.constant 0 : index
    %c0_101 = arith.constant 0 : index
    %c2_102 = arith.constant 2 : index
    %c0_103 = arith.constant 0 : index
    %85 = vector.load %arg4[%c0_100, %c0_101, %c2_102, %c0_103] : memref<1x1x110x4xbf16, #tpu.memory_space<vmem>>, vector<1x1x80x4xbf16>
    %86 = vector.shape_cast %85 : vector<1x1x80x4xbf16> to vector<80x4xbf16>
    %c0_104 = arith.constant 0 : index
    %c80 = arith.constant 80 : index
    %87 = vector.load %arg11[%c0_104, %c80] : memref<80x128xbf16, #tpu.memory_space<vmem>>, vector<80x4xbf16>
    tpu.vector_store %arg11[%c0_104, %c80], %86 {strides = array<i32>} : memref<80x128xbf16, #tpu.memory_space<vmem>>, vector<80x4xbf16>,
    %c0_105 = arith.constant 0 : index
    %c0_106 = arith.constant 0 : index
    %c10_107 = arith.constant 10 : index
    %c0_108 = arith.constant 0 : index
    %88 = vector.load %arg4[%c0_105, %c0_106, %c10_107, %c0_108] : memref<1x1x110x4xbf16, #tpu.memory_space<vmem>>, vector<1x1x80x4xbf16>
    %89 = vector.shape_cast %88 : vector<1x1x80x4xbf16> to vector<80x4xbf16>
    %c0_109 = arith.constant 0 : index
    %c84 = arith.constant 84 : index
    %90 = vector.load %arg11[%c0_109, %c84] : memref<80x128xbf16, #tpu.memory_space<vmem>>, vector<80x4xbf16>
    tpu.vector_store %arg11[%c0_109, %c84], %89 {strides = array<i32>} : memref<80x128xbf16, #tpu.memory_space<vmem>>, vector<80x4xbf16>,
    %c0_110 = arith.constant 0 : index
    %c0_111 = arith.constant 0 : index
    %c11_112 = arith.constant 11 : index
    %c0_113 = arith.constant 0 : index
    %91 = vector.load %arg4[%c0_110, %c0_111, %c11_112, %c0_113] : memref<1x1x110x4xbf16, #tpu.memory_space<vmem>>, vector<1x1x80x4xbf16>
    %92 = vector.shape_cast %91 : vector<1x1x80x4xbf16> to vector<80x4xbf16>
    %c0_114 = arith.constant 0 : index
    %c88 = arith.constant 88 : index
    %93 = vector.load %arg11[%c0_114, %c88] : memref<80x128xbf16, #tpu.memory_space<vmem>>, vector<80x4xbf16>
    tpu.vector_store %arg11[%c0_114, %c88], %92 {strides = array<i32>} : memref<80x128xbf16, #tpu.memory_space<vmem>>, vector<80x4xbf16>,
    %c0_115 = arith.constant 0 : index
    %c0_116 = arith.constant 0 : index
    %c12_117 = arith.constant 12 : index
    %c0_118 = arith.constant 0 : index
    %94 = vector.load %arg4[%c0_115, %c0_116, %c12_117, %c0_118] : memref<1x1x110x4xbf16, #tpu.memory_space<vmem>>, vector<1x1x80x4xbf16>
    %95 = vector.shape_cast %94 : vector<1x1x80x4xbf16> to vector<80x4xbf16>
    %c0_119 = arith.constant 0 : index
    %c92 = arith.constant 92 : index
    %96 = vector.load %arg11[%c0_119, %c92] : memref<80x128xbf16, #tpu.memory_space<vmem>>, vector<80x4xbf16>
    tpu.vector_store %arg11[%c0_119, %c92], %95 {strides = array<i32>} : memref<80x128xbf16, #tpu.memory_space<vmem>>, vector<80x4xbf16>,
    %c0_120 = arith.constant 0 : index
    %c0_121 = arith.constant 0 : index
    %c20_122 = arith.constant 20 : index
    %c0_123 = arith.constant 0 : index
    %97 = vector.load %arg4[%c0_120, %c0_121, %c20_122, %c0_123] : memref<1x1x110x4xbf16, #tpu.memory_space<vmem>>, vector<1x1x80x4xbf16>
    %98 = vector.shape_cast %97 : vector<1x1x80x4xbf16> to vector<80x4xbf16>
    %c0_124 = arith.constant 0 : index
    %c96 = arith.constant 96 : index
    %99 = vector.load %arg11[%c0_124, %c96] : memref<80x128xbf16, #tpu.memory_space<vmem>>, vector<80x4xbf16>
    tpu.vector_store %arg11[%c0_124, %c96], %98 {strides = array<i32>} : memref<80x128xbf16, #tpu.memory_space<vmem>>, vector<80x4xbf16>,
    %c0_125 = arith.constant 0 : index
    %c0_126 = arith.constant 0 : index
    %c21_127 = arith.constant 21 : index
    %c0_128 = arith.constant 0 : index
    %100 = vector.load %arg4[%c0_125, %c0_126, %c21_127, %c0_128] : memref<1x1x110x4xbf16, #tpu.memory_space<vmem>>, vector<1x1x80x4xbf16>
    %101 = vector.shape_cast %100 : vector<1x1x80x4xbf16> to vector<80x4xbf16>
    %c0_129 = arith.constant 0 : index
    %c100 = arith.constant 100 : index
    %102 = vector.load %arg11[%c0_129, %c100] : memref<80x128xbf16, #tpu.memory_space<vmem>>, vector<80x4xbf16>
    tpu.vector_store %arg11[%c0_129, %c100], %101 {strides = array<i32>} : memref<80x128xbf16, #tpu.memory_space<vmem>>, vector<80x4xbf16>,
    %c0_130 = arith.constant 0 : index
    %c0_131 = arith.constant 0 : index
    %c22_132 = arith.constant 22 : index
    %c0_133 = arith.constant 0 : index
    %103 = vector.load %arg4[%c0_130, %c0_131, %c22_132, %c0_133] : memref<1x1x110x4xbf16, #tpu.memory_space<vmem>>, vector<1x1x80x4xbf16>
    %104 = vector.shape_cast %103 : vector<1x1x80x4xbf16> to vector<80x4xbf16>
    %c0_134 = arith.constant 0 : index
    %c104 = arith.constant 104 : index
    %105 = vector.load %arg11[%c0_134, %c104] : memref<80x128xbf16, #tpu.memory_space<vmem>>, vector<80x4xbf16>
    tpu.vector_store %arg11[%c0_134, %c104], %104 {strides = array<i32>} : memref<80x128xbf16, #tpu.memory_space<vmem>>, vector<80x4xbf16>,
    %c0_135 = arith.constant 0 : index
    %c0_136 = arith.constant 0 : index
    %106 = vector.load %arg11[%c0_135, %c0_136] : memref<80x128xbf16, #tpu.memory_space<vmem>>, vector<80x128xbf16>
    %c0_137 = arith.constant 0 : index
    %c0_138 = arith.constant 0 : index
    %107 = vector.load %arg8[%c0_137, %c0_138] : memref<128x128xbf16, #tpu.memory_space<vmem>>, vector<128x128xbf16>
    %cst_139 = arith.constant dense<0.000000e+00> : vector<80x128xf32>
    %108 = tpu.matmul %106, %107, %cst_139 {dimension_numbers = #tpu.dot_dimension_numbers<[1], [0], [0], [1], [0, 0, 1, 1], [], []>} : vector<80x128xbf16>, vector<128x128xbf16>, vector<80x128xf32> -> vector<80x128xf32>
    %109 = vector.broadcast %22 : vector<80x1xf32> to vector<80x128xf32>
    %110 = arith.mulf %108, %109 : vector<80x128xf32>
    %cst_140 = arith.constant dense<0.000000e+00> : vector<128xf32>
    %111 = vector.multi_reduction <add>, %110, %cst_140 [0] : vector<80x128xf32> to vector<128xf32>
    %112 = vector.shape_cast %111 : vector<128xf32> to vector<1x128xf32>
    %113 = arith.addf %23, %112 : vector<1x128xf32>
    %114 = arith.mulf %110, %108 : vector<80x128xf32>
    %cst_141 = arith.constant dense<0.000000e+00> : vector<128xf32>
    %115 = vector.multi_reduction <add>, %114, %cst_141 [0] : vector<80x128xf32> to vector<128xf32>
    %116 = vector.shape_cast %115 : vector<128xf32> to vector<1x128xf32>
    %117 = arith.addf %24, %116 : vector<1x128xf32>
    %118 = arith.truncf %108 : vector<80x128xf32> to vector<80x128xbf16>
    %c0_142 = arith.constant 0 : index
    %c0_143 = arith.constant 0 : index
    %c0_144 = arith.constant 0 : index
    %c0_145 = arith.constant 0 : index
    %119 = vector.load %arg9[%c0_142, %c0_143, %c0_144, %c0_145] : memref<1x4x80x128xbf16, #tpu.memory_space<vmem>>, vector<1x1x80x128xbf16>
    %120 = vector.shape_cast %119 : vector<1x1x80x128xbf16> to vector<80x128xbf16>
    %121 = vector.shape_cast %118 : vector<80x128xbf16> to vector<1x1x80x128xbf16>
    tpu.vector_store %arg9[%c0_142, %c0_143, %c0_144, %c0_145], %121 {strides = array<i32>} : memref<1x4x80x128xbf16, #tpu.memory_space<vmem>>, vector<1x1x80x128xbf16>,
    %c0_146 = arith.constant 0 : index
    %c0_147 = arith.constant 0 : index
    %c0_148 = arith.constant 0 : index
    %c0_149 = arith.constant 0 : index
    %122 = vector.load %arg3[%c0_146, %c0_147, %c0_148, %c0_149] : memref<1x1x110x4xbf16, #tpu.memory_space<vmem>>, vector<1x1x80x4xbf16>
    %123 = vector.shape_cast %122 : vector<1x1x80x4xbf16> to vector<80x4xbf16>
    %c0_150 = arith.constant 0 : index
    %c0_151 = arith.constant 0 : index
    %124 = vector.load %arg11[%c0_150, %c0_151] : memref<80x128xbf16, #tpu.memory_space<vmem>>, vector<80x4xbf16>
    tpu.vector_store %arg11[%c0_150, %c0_151], %123 {strides = array<i32>} : memref<80x128xbf16, #tpu.memory_space<vmem>>, vector<80x4xbf16>,
    %c0_152 = arith.constant 0 : index
    %c0_153 = arith.constant 0 : index
    %c1_154 = arith.constant 1 : index
    %c0_155 = arith.constant 0 : index
    %125 = vector.load %arg3[%c0_152, %c0_153, %c1_154, %c0_155] : memref<1x1x110x4xbf16, #tpu.memory_space<vmem>>, vector<1x1x80x4xbf16>
    %126 = vector.shape_cast %125 : vector<1x1x80x4xbf16> to vector<80x4xbf16>
    %c0_156 = arith.constant 0 : index
    %c4_157 = arith.constant 4 : index
    %127 = vector.load %arg11[%c0_156, %c4_157] : memref<80x128xbf16, #tpu.memory_space<vmem>>, vector<80x4xbf16>
    tpu.vector_store %arg11[%c0_156, %c4_157], %126 {strides = array<i32>} : memref<80x128xbf16, #tpu.memory_space<vmem>>, vector<80x4xbf16>,
    %c0_158 = arith.constant 0 : index
    %c0_159 = arith.constant 0 : index
    %c2_160 = arith.constant 2 : index
    %c0_161 = arith.constant 0 : index
    %128 = vector.load %arg3[%c0_158, %c0_159, %c2_160, %c0_161] : memref<1x1x110x4xbf16, #tpu.memory_space<vmem>>, vector<1x1x80x4xbf16>
    %129 = vector.shape_cast %128 : vector<1x1x80x4xbf16> to vector<80x4xbf16>
    %c0_162 = arith.constant 0 : index
    %c8_163 = arith.constant 8 : index
    %130 = vector.load %arg11[%c0_162, %c8_163] : memref<80x128xbf16, #tpu.memory_space<vmem>>, vector<80x4xbf16>
    tpu.vector_store %arg11[%c0_162, %c8_163], %129 {strides = array<i32>} : memref<80x128xbf16, #tpu.memory_space<vmem>>, vector<80x4xbf16>,
    %c0_164 = arith.constant 0 : index
    %c0_165 = arith.constant 0 : index
    %c10_166 = arith.constant 10 : index
    %c0_167 = arith.constant 0 : index
    %131 = vector.load %arg3[%c0_164, %c0_165, %c10_166, %c0_167] : memref<1x1x110x4xbf16, #tpu.memory_space<vmem>>, vector<1x1x80x4xbf16>
    %132 = vector.shape_cast %131 : vector<1x1x80x4xbf16> to vector<80x4xbf16>
    %c0_168 = arith.constant 0 : index
    %c12_169 = arith.constant 12 : index
    %133 = vector.load %arg11[%c0_168, %c12_169] : memref<80x128xbf16, #tpu.memory_space<vmem>>, vector<80x4xbf16>
    tpu.vector_store %arg11[%c0_168, %c12_169], %132 {strides = array<i32>} : memref<80x128xbf16, #tpu.memory_space<vmem>>, vector<80x4xbf16>,
    %c0_170 = arith.constant 0 : index
    %c0_171 = arith.constant 0 : index
    %c11_172 = arith.constant 11 : index
    %c0_173 = arith.constant 0 : index
    %134 = vector.load %arg3[%c0_170, %c0_171, %c11_172, %c0_173] : memref<1x1x110x4xbf16, #tpu.memory_space<vmem>>, vector<1x1x80x4xbf16>
    %135 = vector.shape_cast %134 : vector<1x1x80x4xbf16> to vector<80x4xbf16>
    %c0_174 = arith.constant 0 : index
    %c16_175 = arith.constant 16 : index
    %136 = vector.load %arg11[%c0_174, %c16_175] : memref<80x128xbf16, #tpu.memory_space<vmem>>, vector<80x4xbf16>
    tpu.vector_store %arg11[%c0_174, %c16_175], %135 {strides = array<i32>} : memref<80x128xbf16, #tpu.memory_space<vmem>>, vector<80x4xbf16>,
    %c0_176 = arith.constant 0 : index
    %c0_177 = arith.constant 0 : index
    %c12_178 = arith.constant 12 : index
    %c0_179 = arith.constant 0 : index
    %137 = vector.load %arg3[%c0_176, %c0_177, %c12_178, %c0_179] : memref<1x1x110x4xbf16, #tpu.memory_space<vmem>>, vector<1x1x80x4xbf16>
    %138 = vector.shape_cast %137 : vector<1x1x80x4xbf16> to vector<80x4xbf16>
    %c0_180 = arith.constant 0 : index
    %c20_181 = arith.constant 20 : index
    %139 = vector.load %arg11[%c0_180, %c20_181] : memref<80x128xbf16, #tpu.memory_space<vmem>>, vector<80x4xbf16>
    tpu.vector_store %arg11[%c0_180, %c20_181], %138 {strides = array<i32>} : memref<80x128xbf16, #tpu.memory_space<vmem>>, vector<80x4xbf16>,
    %c0_182 = arith.constant 0 : index
    %c0_183 = arith.constant 0 : index
    %c20_184 = arith.constant 20 : index
    %c0_185 = arith.constant 0 : index
    %140 = vector.load %arg3[%c0_182, %c0_183, %c20_184, %c0_185] : memref<1x1x110x4xbf16, #tpu.memory_space<vmem>>, vector<1x1x80x4xbf16>
    %141 = vector.shape_cast %140 : vector<1x1x80x4xbf16> to vector<80x4xbf16>
    %c0_186 = arith.constant 0 : index
    %c24_187 = arith.constant 24 : index
    %142 = vector.load %arg11[%c0_186, %c24_187] : memref<80x128xbf16, #tpu.memory_space<vmem>>, vector<80x4xbf16>
    tpu.vector_store %arg11[%c0_186, %c24_187], %141 {strides = array<i32>} : memref<80x128xbf16, #tpu.memory_space<vmem>>, vector<80x4xbf16>,
    %c0_188 = arith.constant 0 : index
    %c0_189 = arith.constant 0 : index
    %c21_190 = arith.constant 21 : index
    %c0_191 = arith.constant 0 : index
    %143 = vector.load %arg3[%c0_188, %c0_189, %c21_190, %c0_191] : memref<1x1x110x4xbf16, #tpu.memory_space<vmem>>, vector<1x1x80x4xbf16>
    %144 = vector.shape_cast %143 : vector<1x1x80x4xbf16> to vector<80x4xbf16>
    %c0_192 = arith.constant 0 : index
    %c28_193 = arith.constant 28 : index
    %145 = vector.load %arg11[%c0_192, %c28_193] : memref<80x128xbf16, #tpu.memory_space<vmem>>, vector<80x4xbf16>
    tpu.vector_store %arg11[%c0_192, %c28_193], %144 {strides = array<i32>} : memref<80x128xbf16, #tpu.memory_space<vmem>>, vector<80x4xbf16>,
    %c0_194 = arith.constant 0 : index
    %c0_195 = arith.constant 0 : index
    %c22_196 = arith.constant 22 : index
    %c0_197 = arith.constant 0 : index
    %146 = vector.load %arg3[%c0_194, %c0_195, %c22_196, %c0_197] : memref<1x1x110x4xbf16, #tpu.memory_space<vmem>>, vector<1x1x80x4xbf16>
    %147 = vector.shape_cast %146 : vector<1x1x80x4xbf16> to vector<80x4xbf16>
    %c0_198 = arith.constant 0 : index
    %c32_199 = arith.constant 32 : index
    %148 = vector.load %arg11[%c0_198, %c32_199] : memref<80x128xbf16, #tpu.memory_space<vmem>>, vector<80x4xbf16>
    tpu.vector_store %arg11[%c0_198, %c32_199], %147 {strides = array<i32>} : memref<80x128xbf16, #tpu.memory_space<vmem>>, vector<80x4xbf16>,
    %c0_200 = arith.constant 0 : index
    %c0_201 = arith.constant 0 : index
    %c0_202 = arith.constant 0 : index
    %c0_203 = arith.constant 0 : index
    %149 = vector.load %arg4[%c0_200, %c0_201, %c0_202, %c0_203] : memref<1x1x110x4xbf16, #tpu.memory_space<vmem>>, vector<1x1x80x4xbf16>
    %150 = vector.shape_cast %149 : vector<1x1x80x4xbf16> to vector<80x4xbf16>
    %c0_204 = arith.constant 0 : index
    %c36_205 = arith.constant 36 : index
    %151 = vector.load %arg11[%c0_204, %c36_205] : memref<80x128xbf16, #tpu.memory_space<vmem>>, vector<80x4xbf16>
    tpu.vector_store %arg11[%c0_204, %c36_205], %150 {strides = array<i32>} : memref<80x128xbf16, #tpu.memory_space<vmem>>, vector<80x4xbf16>,
    %c0_206 = arith.constant 0 : index
    %c0_207 = arith.constant 0 : index
    %c1_208 = arith.constant 1 : index
    %c0_209 = arith.constant 0 : index
    %152 = vector.load %arg4[%c0_206, %c0_207, %c1_208, %c0_209] : memref<1x1x110x4xbf16, #tpu.memory_space<vmem>>, vector<1x1x80x4xbf16>
    %153 = vector.shape_cast %152 : vector<1x1x80x4xbf16> to vector<80x4xbf16>
    %c0_210 = arith.constant 0 : index
    %c40_211 = arith.constant 40 : index
    %154 = vector.load %arg11[%c0_210, %c40_211] : memref<80x128xbf16, #tpu.memory_space<vmem>>, vector<80x4xbf16>
    tpu.vector_store %arg11[%c0_210, %c40_211], %153 {strides = array<i32>} : memref<80x128xbf16, #tpu.memory_space<vmem>>, vector<80x4xbf16>,
    %c0_212 = arith.constant 0 : index
    %c0_213 = arith.constant 0 : index
    %c2_214 = arith.constant 2 : index
    %c0_215 = arith.constant 0 : index
    %155 = vector.load %arg4[%c0_212, %c0_213, %c2_214, %c0_215] : memref<1x1x110x4xbf16, #tpu.memory_space<vmem>>, vector<1x1x80x4xbf16>
    %156 = vector.shape_cast %155 : vector<1x1x80x4xbf16> to vector<80x4xbf16>
    %c0_216 = arith.constant 0 : index
    %c44_217 = arith.constant 44 : index
    %157 = vector.load %arg11[%c0_216, %c44_217] : memref<80x128xbf16, #tpu.memory_space<vmem>>, vector<80x4xbf16>
    tpu.vector_store %arg11[%c0_216, %c44_217], %156 {strides = array<i32>} : memref<80x128xbf16, #tpu.memory_space<vmem>>, vector<80x4xbf16>,
    %c0_218 = arith.constant 0 : index
    %c0_219 = arith.constant 0 : index
    %c10_220 = arith.constant 10 : index
    %c0_221 = arith.constant 0 : index
    %158 = vector.load %arg4[%c0_218, %c0_219, %c10_220, %c0_221] : memref<1x1x110x4xbf16, #tpu.memory_space<vmem>>, vector<1x1x80x4xbf16>
    %159 = vector.shape_cast %158 : vector<1x1x80x4xbf16> to vector<80x4xbf16>
    %c0_222 = arith.constant 0 : index
    %c48_223 = arith.constant 48 : index
    %160 = vector.load %arg11[%c0_222, %c48_223] : memref<80x128xbf16, #tpu.memory_space<vmem>>, vector<80x4xbf16>
    tpu.vector_store %arg11[%c0_222, %c48_223], %159 {strides = array<i32>} : memref<80x128xbf16, #tpu.memory_space<vmem>>, vector<80x4xbf16>,
    %c0_224 = arith.constant 0 : index
    %c0_225 = arith.constant 0 : index
    %c11_226 = arith.constant 11 : index
    %c0_227 = arith.constant 0 : index
    %161 = vector.load %arg4[%c0_224, %c0_225, %c11_226, %c0_227] : memref<1x1x110x4xbf16, #tpu.memory_space<vmem>>, vector<1x1x80x4xbf16>
    %162 = vector.shape_cast %161 : vector<1x1x80x4xbf16> to vector<80x4xbf16>
    %c0_228 = arith.constant 0 : index
    %c52_229 = arith.constant 52 : index
    %163 = vector.load %arg11[%c0_228, %c52_229] : memref<80x128xbf16, #tpu.memory_space<vmem>>, vector<80x4xbf16>
    tpu.vector_store %arg11[%c0_228, %c52_229], %162 {strides = array<i32>} : memref<80x128xbf16, #tpu.memory_space<vmem>>, vector<80x4xbf16>,
    %c0_230 = arith.constant 0 : index
    %c0_231 = arith.constant 0 : index
    %c12_232 = arith.constant 12 : index
    %c0_233 = arith.constant 0 : index
    %164 = vector.load %arg4[%c0_230, %c0_231, %c12_232, %c0_233] : memref<1x1x110x4xbf16, #tpu.memory_space<vmem>>, vector<1x1x80x4xbf16>
    %165 = vector.shape_cast %164 : vector<1x1x80x4xbf16> to vector<80x4xbf16>
    %c0_234 = arith.constant 0 : index
    %c56_235 = arith.constant 56 : index
    %166 = vector.load %arg11[%c0_234, %c56_235] : memref<80x128xbf16, #tpu.memory_space<vmem>>, vector<80x4xbf16>
    tpu.vector_store %arg11[%c0_234, %c56_235], %165 {strides = array<i32>} : memref<80x128xbf16, #tpu.memory_space<vmem>>, vector<80x4xbf16>,
    %c0_236 = arith.constant 0 : index
    %c0_237 = arith.constant 0 : index
    %c20_238 = arith.constant 20 : index
    %c0_239 = arith.constant 0 : index
    %167 = vector.load %arg4[%c0_236, %c0_237, %c20_238, %c0_239] : memref<1x1x110x4xbf16, #tpu.memory_space<vmem>>, vector<1x1x80x4xbf16>
    %168 = vector.shape_cast %167 : vector<1x1x80x4xbf16> to vector<80x4xbf16>
    %c0_240 = arith.constant 0 : index
    %c60_241 = arith.constant 60 : index
    %169 = vector.load %arg11[%c0_240, %c60_241] : memref<80x128xbf16, #tpu.memory_space<vmem>>, vector<80x4xbf16>
    tpu.vector_store %arg11[%c0_240, %c60_241], %168 {strides = array<i32>} : memref<80x128xbf16, #tpu.memory_space<vmem>>, vector<80x4xbf16>,
    %c0_242 = arith.constant 0 : index
    %c0_243 = arith.constant 0 : index
    %c21_244 = arith.constant 21 : index
    %c0_245 = arith.constant 0 : index
    %170 = vector.load %arg4[%c0_242, %c0_243, %c21_244, %c0_245] : memref<1x1x110x4xbf16, #tpu.memory_space<vmem>>, vector<1x1x80x4xbf16>
    %171 = vector.shape_cast %170 : vector<1x1x80x4xbf16> to vector<80x4xbf16>
    %c0_246 = arith.constant 0 : index
    %c64_247 = arith.constant 64 : index
    %172 = vector.load %arg11[%c0_246, %c64_247] : memref<80x128xbf16, #tpu.memory_space<vmem>>, vector<80x4xbf16>
    tpu.vector_store %arg11[%c0_246, %c64_247], %171 {strides = array<i32>} : memref<80x128xbf16, #tpu.memory_space<vmem>>, vector<80x4xbf16>,
    %c0_248 = arith.constant 0 : index
    %c0_249 = arith.constant 0 : index
    %c22_250 = arith.constant 22 : index
    %c0_251 = arith.constant 0 : index
    %173 = vector.load %arg4[%c0_248, %c0_249, %c22_250, %c0_251] : memref<1x1x110x4xbf16, #tpu.memory_space<vmem>>, vector<1x1x80x4xbf16>
    %174 = vector.shape_cast %173 : vector<1x1x80x4xbf16> to vector<80x4xbf16>
    %c0_252 = arith.constant 0 : index
    %c68_253 = arith.constant 68 : index
    %175 = vector.load %arg11[%c0_252, %c68_253] : memref<80x128xbf16, #tpu.memory_space<vmem>>, vector<80x4xbf16>
    tpu.vector_store %arg11[%c0_252, %c68_253], %174 {strides = array<i32>} : memref<80x128xbf16, #tpu.memory_space<vmem>>, vector<80x4xbf16>,
    %c0_254 = arith.constant 0 : index
    %c0_255 = arith.constant 0 : index
    %c0_256 = arith.constant 0 : index
    %c0_257 = arith.constant 0 : index
    %176 = vector.load %arg5[%c0_254, %c0_255, %c0_256, %c0_257] : memref<1x1x110x4xbf16, #tpu.memory_space<vmem>>, vector<1x1x80x4xbf16>
    %177 = vector.shape_cast %176 : vector<1x1x80x4xbf16> to vector<80x4xbf16>
    %c0_258 = arith.constant 0 : index
    %c72_259 = arith.constant 72 : index
    %178 = vector.load %arg11[%c0_258, %c72_259] : memref<80x128xbf16, #tpu.memory_space<vmem>>, vector<80x4xbf16>
    tpu.vector_store %arg11[%c0_258, %c72_259], %177 {strides = array<i32>} : memref<80x128xbf16, #tpu.memory_space<vmem>>, vector<80x4xbf16>,
    %c0_260 = arith.constant 0 : index
    %c0_261 = arith.constant 0 : index
    %c1_262 = arith.constant 1 : index
    %c0_263 = arith.constant 0 : index
    %179 = vector.load %arg5[%c0_260, %c0_261, %c1_262, %c0_263] : memref<1x1x110x4xbf16, #tpu.memory_space<vmem>>, vector<1x1x80x4xbf16>
    %180 = vector.shape_cast %179 : vector<1x1x80x4xbf16> to vector<80x4xbf16>
    %c0_264 = arith.constant 0 : index
    %c76_265 = arith.constant 76 : index
    %181 = vector.load %arg11[%c0_264, %c76_265] : memref<80x128xbf16, #tpu.memory_space<vmem>>, vector<80x4xbf16>
    tpu.vector_store %arg11[%c0_264, %c76_265], %180 {strides = array<i32>} : memref<80x128xbf16, #tpu.memory_space<vmem>>, vector<80x4xbf16>,
    %c0_266 = arith.constant 0 : index
    %c0_267 = arith.constant 0 : index
    %c2_268 = arith.constant 2 : index
    %c0_269 = arith.constant 0 : index
    %182 = vector.load %arg5[%c0_266, %c0_267, %c2_268, %c0_269] : memref<1x1x110x4xbf16, #tpu.memory_space<vmem>>, vector<1x1x80x4xbf16>
    %183 = vector.shape_cast %182 : vector<1x1x80x4xbf16> to vector<80x4xbf16>
    %c0_270 = arith.constant 0 : index
    %c80_271 = arith.constant 80 : index
    %184 = vector.load %arg11[%c0_270, %c80_271] : memref<80x128xbf16, #tpu.memory_space<vmem>>, vector<80x4xbf16>
    tpu.vector_store %arg11[%c0_270, %c80_271], %183 {strides = array<i32>} : memref<80x128xbf16, #tpu.memory_space<vmem>>, vector<80x4xbf16>,
    %c0_272 = arith.constant 0 : index
    %c0_273 = arith.constant 0 : index
    %c10_274 = arith.constant 10 : index
    %c0_275 = arith.constant 0 : index
    %185 = vector.load %arg5[%c0_272, %c0_273, %c10_274, %c0_275] : memref<1x1x110x4xbf16, #tpu.memory_space<vmem>>, vector<1x1x80x4xbf16>
    %186 = vector.shape_cast %185 : vector<1x1x80x4xbf16> to vector<80x4xbf16>
    %c0_276 = arith.constant 0 : index
    %c84_277 = arith.constant 84 : index
    %187 = vector.load %arg11[%c0_276, %c84_277] : memref<80x128xbf16, #tpu.memory_space<vmem>>, vector<80x4xbf16>
    tpu.vector_store %arg11[%c0_276, %c84_277], %186 {strides = array<i32>} : memref<80x128xbf16, #tpu.memory_space<vmem>>, vector<80x4xbf16>,
    %c0_278 = arith.constant 0 : index
    %c0_279 = arith.constant 0 : index
    %c11_280 = arith.constant 11 : index
    %c0_281 = arith.constant 0 : index
    %188 = vector.load %arg5[%c0_278, %c0_279, %c11_280, %c0_281] : memref<1x1x110x4xbf16, #tpu.memory_space<vmem>>, vector<1x1x80x4xbf16>
    %189 = vector.shape_cast %188 : vector<1x1x80x4xbf16> to vector<80x4xbf16>
    %c0_282 = arith.constant 0 : index
    %c88_283 = arith.constant 88 : index
    %190 = vector.load %arg11[%c0_282, %c88_283] : memref<80x128xbf16, #tpu.memory_space<vmem>>, vector<80x4xbf16>
    tpu.vector_store %arg11[%c0_282, %c88_283], %189 {strides = array<i32>} : memref<80x128xbf16, #tpu.memory_space<vmem>>, vector<80x4xbf16>,
    %c0_284 = arith.constant 0 : index
    %c0_285 = arith.constant 0 : index
    %c12_286 = arith.constant 12 : index
    %c0_287 = arith.constant 0 : index
    %191 = vector.load %arg5[%c0_284, %c0_285, %c12_286, %c0_287] : memref<1x1x110x4xbf16, #tpu.memory_space<vmem>>, vector<1x1x80x4xbf16>
    %192 = vector.shape_cast %191 : vector<1x1x80x4xbf16> to vector<80x4xbf16>
    %c0_288 = arith.constant 0 : index
    %c92_289 = arith.constant 92 : index
    %193 = vector.load %arg11[%c0_288, %c92_289] : memref<80x128xbf16, #tpu.memory_space<vmem>>, vector<80x4xbf16>
    tpu.vector_store %arg11[%c0_288, %c92_289], %192 {strides = array<i32>} : memref<80x128xbf16, #tpu.memory_space<vmem>>, vector<80x4xbf16>,
    %c0_290 = arith.constant 0 : index
    %c0_291 = arith.constant 0 : index
    %c20_292 = arith.constant 20 : index
    %c0_293 = arith.constant 0 : index
    %194 = vector.load %arg5[%c0_290, %c0_291, %c20_292, %c0_293] : memref<1x1x110x4xbf16, #tpu.memory_space<vmem>>, vector<1x1x80x4xbf16>
    %195 = vector.shape_cast %194 : vector<1x1x80x4xbf16> to vector<80x4xbf16>
    %c0_294 = arith.constant 0 : index
    %c96_295 = arith.constant 96 : index
    %196 = vector.load %arg11[%c0_294, %c96_295] : memref<80x128xbf16, #tpu.memory_space<vmem>>, vector<80x4xbf16>
    tpu.vector_store %arg11[%c0_294, %c96_295], %195 {strides = array<i32>} : memref<80x128xbf16, #tpu.memory_space<vmem>>, vector<80x4xbf16>,
    %c0_296 = arith.constant 0 : index
    %c0_297 = arith.constant 0 : index
    %c21_298 = arith.constant 21 : index
    %c0_299 = arith.constant 0 : index
    %197 = vector.load %arg5[%c0_296, %c0_297, %c21_298, %c0_299] : memref<1x1x110x4xbf16, #tpu.memory_space<vmem>>, vector<1x1x80x4xbf16>
    %198 = vector.shape_cast %197 : vector<1x1x80x4xbf16> to vector<80x4xbf16>
    %c0_300 = arith.constant 0 : index
    %c100_301 = arith.constant 100 : index
    %199 = vector.load %arg11[%c0_300, %c100_301] : memref<80x128xbf16, #tpu.memory_space<vmem>>, vector<80x4xbf16>
    tpu.vector_store %arg11[%c0_300, %c100_301], %198 {strides = array<i32>} : memref<80x128xbf16, #tpu.memory_space<vmem>>, vector<80x4xbf16>,
    %c0_302 = arith.constant 0 : index
    %c0_303 = arith.constant 0 : index
    %c22_304 = arith.constant 22 : index
    %c0_305 = arith.constant 0 : index
    %200 = vector.load %arg5[%c0_302, %c0_303, %c22_304, %c0_305] : memref<1x1x110x4xbf16, #tpu.memory_space<vmem>>, vector<1x1x80x4xbf16>
    %201 = vector.shape_cast %200 : vector<1x1x80x4xbf16> to vector<80x4xbf16>
    %c0_306 = arith.constant 0 : index
    %c104_307 = arith.constant 104 : index
    %202 = vector.load %arg11[%c0_306, %c104_307] : memref<80x128xbf16, #tpu.memory_space<vmem>>, vector<80x4xbf16>
    tpu.vector_store %arg11[%c0_306, %c104_307], %201 {strides = array<i32>} : memref<80x128xbf16, #tpu.memory_space<vmem>>, vector<80x4xbf16>,
    %c0_308 = arith.constant 0 : index
    %c0_309 = arith.constant 0 : index
    %203 = vector.load %arg11[%c0_308, %c0_309] : memref<80x128xbf16, #tpu.memory_space<vmem>>, vector<80x128xbf16>
    %c0_310 = arith.constant 0 : index
    %c0_311 = arith.constant 0 : index
    %204 = vector.load %arg8[%c0_310, %c0_311] : memref<128x128xbf16, #tpu.memory_space<vmem>>, vector<128x128xbf16>
    %cst_312 = arith.constant dense<0.000000e+00> : vector<80x128xf32>
    %205 = tpu.matmul %203, %204, %cst_312 {dimension_numbers = #tpu.dot_dimension_numbers<[1], [0], [0], [1], [0, 0, 1, 1], [], []>} : vector<80x128xbf16>, vector<128x128xbf16>, vector<80x128xf32> -> vector<80x128xf32>
    %206 = vector.broadcast %22 : vector<80x1xf32> to vector<80x128xf32>
    %207 = arith.mulf %205, %206 : vector<80x128xf32>
    %cst_313 = arith.constant dense<0.000000e+00> : vector<128xf32>
    %208 = vector.multi_reduction <add>, %207, %cst_313 [0] : vector<80x128xf32> to vector<128xf32>
    %209 = vector.shape_cast %208 : vector<128xf32> to vector<1x128xf32>
    %210 = arith.addf %113, %209 : vector<1x128xf32>
    %211 = arith.mulf %207, %205 : vector<80x128xf32>
    %cst_314 = arith.constant dense<0.000000e+00> : vector<128xf32>
    %212 = vector.multi_reduction <add>, %211, %cst_314 [0] : vector<80x128xf32> to vector<128xf32>
    %213 = vector.shape_cast %212 : vector<128xf32> to vector<1x128xf32>
    %214 = arith.addf %117, %213 : vector<1x128xf32>
    %215 = arith.truncf %205 : vector<80x128xf32> to vector<80x128xbf16>
    %c0_315 = arith.constant 0 : index
    %c1_316 = arith.constant 1 : index
    %c0_317 = arith.constant 0 : index
    %c0_318 = arith.constant 0 : index
    %216 = vector.load %arg9[%c0_315, %c1_316, %c0_317, %c0_318] : memref<1x4x80x128xbf16, #tpu.memory_space<vmem>>, vector<1x1x80x128xbf16>
    %217 = vector.shape_cast %216 : vector<1x1x80x128xbf16> to vector<80x128xbf16>
    %218 = vector.shape_cast %215 : vector<80x128xbf16> to vector<1x1x80x128xbf16>
    tpu.vector_store %arg9[%c0_315, %c1_316, %c0_317, %c0_318], %218 {strides = array<i32>} : memref<1x4x80x128xbf16, #tpu.memory_space<vmem>>, vector<1x1x80x128xbf16>,
    %c0_319 = arith.constant 0 : index
    %c0_320 = arith.constant 0 : index
    %c0_321 = arith.constant 0 : index
    %c0_322 = arith.constant 0 : index
    %219 = vector.load %arg4[%c0_319, %c0_320, %c0_321, %c0_322] : memref<1x1x110x4xbf16, #tpu.memory_space<vmem>>, vector<1x1x80x4xbf16>
    %220 = vector.shape_cast %219 : vector<1x1x80x4xbf16> to vector<80x4xbf16>
    %c0_323 = arith.constant 0 : index
    %c0_324 = arith.constant 0 : index
    %221 = vector.load %arg11[%c0_323, %c0_324] : memref<80x128xbf16, #tpu.memory_space<vmem>>, vector<80x4xbf16>
    tpu.vector_store %arg11[%c0_323, %c0_324], %220 {strides = array<i32>} : memref<80x128xbf16, #tpu.memory_space<vmem>>, vector<80x4xbf16>,
    %c0_325 = arith.constant 0 : index
    %c0_326 = arith.constant 0 : index
    %c1_327 = arith.constant 1 : index
    %c0_328 = arith.constant 0 : index
    %222 = vector.load %arg4[%c0_325, %c0_326, %c1_327, %c0_328] : memref<1x1x110x4xbf16, #tpu.memory_space<vmem>>, vector<1x1x80x4xbf16>
    %223 = vector.shape_cast %222 : vector<1x1x80x4xbf16> to vector<80x4xbf16>
    %c0_329 = arith.constant 0 : index
    %c4_330 = arith.constant 4 : index
    %224 = vector.load %arg11[%c0_329, %c4_330] : memref<80x128xbf16, #tpu.memory_space<vmem>>, vector<80x4xbf16>
    tpu.vector_store %arg11[%c0_329, %c4_330], %223 {strides = array<i32>} : memref<80x128xbf16, #tpu.memory_space<vmem>>, vector<80x4xbf16>,
    %c0_331 = arith.constant 0 : index
    %c0_332 = arith.constant 0 : index
    %c2_333 = arith.constant 2 : index
    %c0_334 = arith.constant 0 : index
    %225 = vector.load %arg4[%c0_331, %c0_332, %c2_333, %c0_334] : memref<1x1x110x4xbf16, #tpu.memory_space<vmem>>, vector<1x1x80x4xbf16>
    %226 = vector.shape_cast %225 : vector<1x1x80x4xbf16> to vector<80x4xbf16>
    %c0_335 = arith.constant 0 : index
    %c8_336 = arith.constant 8 : index
    %227 = vector.load %arg11[%c0_335, %c8_336] : memref<80x128xbf16, #tpu.memory_space<vmem>>, vector<80x4xbf16>
    tpu.vector_store %arg11[%c0_335, %c8_336], %226 {strides = array<i32>} : memref<80x128xbf16, #tpu.memory_space<vmem>>, vector<80x4xbf16>,
    %c0_337 = arith.constant 0 : index
    %c0_338 = arith.constant 0 : index
    %c10_339 = arith.constant 10 : index
    %c0_340 = arith.constant 0 : index
    %228 = vector.load %arg4[%c0_337, %c0_338, %c10_339, %c0_340] : memref<1x1x110x4xbf16, #tpu.memory_space<vmem>>, vector<1x1x80x4xbf16>
    %229 = vector.shape_cast %228 : vector<1x1x80x4xbf16> to vector<80x4xbf16>
    %c0_341 = arith.constant 0 : index
    %c12_342 = arith.constant 12 : index
    %230 = vector.load %arg11[%c0_341, %c12_342] : memref<80x128xbf16, #tpu.memory_space<vmem>>, vector<80x4xbf16>
    tpu.vector_store %arg11[%c0_341, %c12_342], %229 {strides = array<i32>} : memref<80x128xbf16, #tpu.memory_space<vmem>>, vector<80x4xbf16>,
    %c0_343 = arith.constant 0 : index
    %c0_344 = arith.constant 0 : index
    %c11_345 = arith.constant 11 : index
    %c0_346 = arith.constant 0 : index
    %231 = vector.load %arg4[%c0_343, %c0_344, %c11_345, %c0_346] : memref<1x1x110x4xbf16, #tpu.memory_space<vmem>>, vector<1x1x80x4xbf16>
    %232 = vector.shape_cast %231 : vector<1x1x80x4xbf16> to vector<80x4xbf16>
    %c0_347 = arith.constant 0 : index
    %c16_348 = arith.constant 16 : index
    %233 = vector.load %arg11[%c0_347, %c16_348] : memref<80x128xbf16, #tpu.memory_space<vmem>>, vector<80x4xbf16>
    tpu.vector_store %arg11[%c0_347, %c16_348], %232 {strides = array<i32>} : memref<80x128xbf16, #tpu.memory_space<vmem>>, vector<80x4xbf16>,
    %c0_349 = arith.constant 0 : index
    %c0_350 = arith.constant 0 : index
    %c12_351 = arith.constant 12 : index
    %c0_352 = arith.constant 0 : index
    %234 = vector.load %arg4[%c0_349, %c0_350, %c12_351, %c0_352] : memref<1x1x110x4xbf16, #tpu.memory_space<vmem>>, vector<1x1x80x4xbf16>
    %235 = vector.shape_cast %234 : vector<1x1x80x4xbf16> to vector<80x4xbf16>
    %c0_353 = arith.constant 0 : index
    %c20_354 = arith.constant 20 : index
    %236 = vector.load %arg11[%c0_353, %c20_354] : memref<80x128xbf16, #tpu.memory_space<vmem>>, vector<80x4xbf16>
    tpu.vector_store %arg11[%c0_353, %c20_354], %235 {strides = array<i32>} : memref<80x128xbf16, #tpu.memory_space<vmem>>, vector<80x4xbf16>,
    %c0_355 = arith.constant 0 : index
    %c0_356 = arith.constant 0 : index
    %c20_357 = arith.constant 20 : index
    %c0_358 = arith.constant 0 : index
    %237 = vector.load %arg4[%c0_355, %c0_356, %c20_357, %c0_358] : memref<1x1x110x4xbf16, #tpu.memory_space<vmem>>, vector<1x1x80x4xbf16>
    %238 = vector.shape_cast %237 : vector<1x1x80x4xbf16> to vector<80x4xbf16>
    %c0_359 = arith.constant 0 : index
    %c24_360 = arith.constant 24 : index
    %239 = vector.load %arg11[%c0_359, %c24_360] : memref<80x128xbf16, #tpu.memory_space<vmem>>, vector<80x4xbf16>
    tpu.vector_store %arg11[%c0_359, %c24_360], %238 {strides = array<i32>} : memref<80x128xbf16, #tpu.memory_space<vmem>>, vector<80x4xbf16>,
    %c0_361 = arith.constant 0 : index
    %c0_362 = arith.constant 0 : index
    %c21_363 = arith.constant 21 : index
    %c0_364 = arith.constant 0 : index
    %240 = vector.load %arg4[%c0_361, %c0_362, %c21_363, %c0_364] : memref<1x1x110x4xbf16, #tpu.memory_space<vmem>>, vector<1x1x80x4xbf16>
    %241 = vector.shape_cast %240 : vector<1x1x80x4xbf16> to vector<80x4xbf16>
    %c0_365 = arith.constant 0 : index
    %c28_366 = arith.constant 28 : index
    %242 = vector.load %arg11[%c0_365, %c28_366] : memref<80x128xbf16, #tpu.memory_space<vmem>>, vector<80x4xbf16>
    tpu.vector_store %arg11[%c0_365, %c28_366], %241 {strides = array<i32>} : memref<80x128xbf16, #tpu.memory_space<vmem>>, vector<80x4xbf16>,
    %c0_367 = arith.constant 0 : index
    %c0_368 = arith.constant 0 : index
    %c22_369 = arith.constant 22 : index
    %c0_370 = arith.constant 0 : index
    %243 = vector.load %arg4[%c0_367, %c0_368, %c22_369, %c0_370] : memref<1x1x110x4xbf16, #tpu.memory_space<vmem>>, vector<1x1x80x4xbf16>
    %244 = vector.shape_cast %243 : vector<1x1x80x4xbf16> to vector<80x4xbf16>
    %c0_371 = arith.constant 0 : index
    %c32_372 = arith.constant 32 : index
    %245 = vector.load %arg11[%c0_371, %c32_372] : memref<80x128xbf16, #tpu.memory_space<vmem>>, vector<80x4xbf16>
    tpu.vector_store %arg11[%c0_371, %c32_372], %244 {strides = array<i32>} : memref<80x128xbf16, #tpu.memory_space<vmem>>, vector<80x4xbf16>,
    %c0_373 = arith.constant 0 : index
    %c0_374 = arith.constant 0 : index
    %c0_375 = arith.constant 0 : index
    %c0_376 = arith.constant 0 : index
    %246 = vector.load %arg5[%c0_373, %c0_374, %c0_375, %c0_376] : memref<1x1x110x4xbf16, #tpu.memory_space<vmem>>, vector<1x1x80x4xbf16>
    %247 = vector.shape_cast %246 : vector<1x1x80x4xbf16> to vector<80x4xbf16>
    %c0_377 = arith.constant 0 : index
    %c36_378 = arith.constant 36 : index
    %248 = vector.load %arg11[%c0_377, %c36_378] : memref<80x128xbf16, #tpu.memory_space<vmem>>, vector<80x4xbf16>
    tpu.vector_store %arg11[%c0_377, %c36_378], %247 {strides = array<i32>} : memref<80x128xbf16, #tpu.memory_space<vmem>>, vector<80x4xbf16>,
    %c0_379 = arith.constant 0 : index
    %c0_380 = arith.constant 0 : index
    %c1_381 = arith.constant 1 : index
    %c0_382 = arith.constant 0 : index
    %249 = vector.load %arg5[%c0_379, %c0_380, %c1_381, %c0_382] : memref<1x1x110x4xbf16, #tpu.memory_space<vmem>>, vector<1x1x80x4xbf16>
    %250 = vector.shape_cast %249 : vector<1x1x80x4xbf16> to vector<80x4xbf16>
    %c0_383 = arith.constant 0 : index
    %c40_384 = arith.constant 40 : index
    %251 = vector.load %arg11[%c0_383, %c40_384] : memref<80x128xbf16, #tpu.memory_space<vmem>>, vector<80x4xbf16>
    tpu.vector_store %arg11[%c0_383, %c40_384], %250 {strides = array<i32>} : memref<80x128xbf16, #tpu.memory_space<vmem>>, vector<80x4xbf16>,
    %c0_385 = arith.constant 0 : index
    %c0_386 = arith.constant 0 : index
    %c2_387 = arith.constant 2 : index
    %c0_388 = arith.constant 0 : index
    %252 = vector.load %arg5[%c0_385, %c0_386, %c2_387, %c0_388] : memref<1x1x110x4xbf16, #tpu.memory_space<vmem>>, vector<1x1x80x4xbf16>
    %253 = vector.shape_cast %252 : vector<1x1x80x4xbf16> to vector<80x4xbf16>
    %c0_389 = arith.constant 0 : index
    %c44_390 = arith.constant 44 : index
    %254 = vector.load %arg11[%c0_389, %c44_390] : memref<80x128xbf16, #tpu.memory_space<vmem>>, vector<80x4xbf16>
    tpu.vector_store %arg11[%c0_389, %c44_390], %253 {strides = array<i32>} : memref<80x128xbf16, #tpu.memory_space<vmem>>, vector<80x4xbf16>,
    %c0_391 = arith.constant 0 : index
    %c0_392 = arith.constant 0 : index
    %c10_393 = arith.constant 10 : index
    %c0_394 = arith.constant 0 : index
    %255 = vector.load %arg5[%c0_391, %c0_392, %c10_393, %c0_394] : memref<1x1x110x4xbf16, #tpu.memory_space<vmem>>, vector<1x1x80x4xbf16>
    %256 = vector.shape_cast %255 : vector<1x1x80x4xbf16> to vector<80x4xbf16>
    %c0_395 = arith.constant 0 : index
    %c48_396 = arith.constant 48 : index
    %257 = vector.load %arg11[%c0_395, %c48_396] : memref<80x128xbf16, #tpu.memory_space<vmem>>, vector<80x4xbf16>
    tpu.vector_store %arg11[%c0_395, %c48_396], %256 {strides = array<i32>} : memref<80x128xbf16, #tpu.memory_space<vmem>>, vector<80x4xbf16>,
    %c0_397 = arith.constant 0 : index
    %c0_398 = arith.constant 0 : index
    %c11_399 = arith.constant 11 : index
    %c0_400 = arith.constant 0 : index
    %258 = vector.load %arg5[%c0_397, %c0_398, %c11_399, %c0_400] : memref<1x1x110x4xbf16, #tpu.memory_space<vmem>>, vector<1x1x80x4xbf16>
    %259 = vector.shape_cast %258 : vector<1x1x80x4xbf16> to vector<80x4xbf16>
    %c0_401 = arith.constant 0 : index
    %c52_402 = arith.constant 52 : index
    %260 = vector.load %arg11[%c0_401, %c52_402] : memref<80x128xbf16, #tpu.memory_space<vmem>>, vector<80x4xbf16>
    tpu.vector_store %arg11[%c0_401, %c52_402], %259 {strides = array<i32>} : memref<80x128xbf16, #tpu.memory_space<vmem>>, vector<80x4xbf16>,
    %c0_403 = arith.constant 0 : index
    %c0_404 = arith.constant 0 : index
    %c12_405 = arith.constant 12 : index
    %c0_406 = arith.constant 0 : index
    %261 = vector.load %arg5[%c0_403, %c0_404, %c12_405, %c0_406] : memref<1x1x110x4xbf16, #tpu.memory_space<vmem>>, vector<1x1x80x4xbf16>
    %262 = vector.shape_cast %261 : vector<1x1x80x4xbf16> to vector<80x4xbf16>
    %c0_407 = arith.constant 0 : index
    %c56_408 = arith.constant 56 : index
    %263 = vector.load %arg11[%c0_407, %c56_408] : memref<80x128xbf16, #tpu.memory_space<vmem>>, vector<80x4xbf16>
    tpu.vector_store %arg11[%c0_407, %c56_408], %262 {strides = array<i32>} : memref<80x128xbf16, #tpu.memory_space<vmem>>, vector<80x4xbf16>,
    %c0_409 = arith.constant 0 : index
    %c0_410 = arith.constant 0 : index
    %c20_411 = arith.constant 20 : index
    %c0_412 = arith.constant 0 : index
    %264 = vector.load %arg5[%c0_409, %c0_410, %c20_411, %c0_412] : memref<1x1x110x4xbf16, #tpu.memory_space<vmem>>, vector<1x1x80x4xbf16>
    %265 = vector.shape_cast %264 : vector<1x1x80x4xbf16> to vector<80x4xbf16>
    %c0_413 = arith.constant 0 : index
    %c60_414 = arith.constant 60 : index
    %266 = vector.load %arg11[%c0_413, %c60_414] : memref<80x128xbf16, #tpu.memory_space<vmem>>, vector<80x4xbf16>
    tpu.vector_store %arg11[%c0_413, %c60_414], %265 {strides = array<i32>} : memref<80x128xbf16, #tpu.memory_space<vmem>>, vector<80x4xbf16>,
    %c0_415 = arith.constant 0 : index
    %c0_416 = arith.constant 0 : index
    %c21_417 = arith.constant 21 : index
    %c0_418 = arith.constant 0 : index
    %267 = vector.load %arg5[%c0_415, %c0_416, %c21_417, %c0_418] : memref<1x1x110x4xbf16, #tpu.memory_space<vmem>>, vector<1x1x80x4xbf16>
    %268 = vector.shape_cast %267 : vector<1x1x80x4xbf16> to vector<80x4xbf16>
    %c0_419 = arith.constant 0 : index
    %c64_420 = arith.constant 64 : index
    %269 = vector.load %arg11[%c0_419, %c64_420] : memref<80x128xbf16, #tpu.memory_space<vmem>>, vector<80x4xbf16>
    tpu.vector_store %arg11[%c0_419, %c64_420], %268 {strides = array<i32>} : memref<80x128xbf16, #tpu.memory_space<vmem>>, vector<80x4xbf16>,
    %c0_421 = arith.constant 0 : index
    %c0_422 = arith.constant 0 : index
    %c22_423 = arith.constant 22 : index
    %c0_424 = arith.constant 0 : index
    %270 = vector.load %arg5[%c0_421, %c0_422, %c22_423, %c0_424] : memref<1x1x110x4xbf16, #tpu.memory_space<vmem>>, vector<1x1x80x4xbf16>
    %271 = vector.shape_cast %270 : vector<1x1x80x4xbf16> to vector<80x4xbf16>
    %c0_425 = arith.constant 0 : index
    %c68_426 = arith.constant 68 : index
    %272 = vector.load %arg11[%c0_425, %c68_426] : memref<80x128xbf16, #tpu.memory_space<vmem>>, vector<80x4xbf16>
    tpu.vector_store %arg11[%c0_425, %c68_426], %271 {strides = array<i32>} : memref<80x128xbf16, #tpu.memory_space<vmem>>, vector<80x4xbf16>,
    %c0_427 = arith.constant 0 : index
    %c0_428 = arith.constant 0 : index
    %c0_429 = arith.constant 0 : index
    %c0_430 = arith.constant 0 : index
    %273 = vector.load %arg6[%c0_427, %c0_428, %c0_429, %c0_430] : memref<1x1x110x4xbf16, #tpu.memory_space<vmem>>, vector<1x1x80x4xbf16>
    %274 = vector.shape_cast %273 : vector<1x1x80x4xbf16> to vector<80x4xbf16>
    %c0_431 = arith.constant 0 : index
    %c72_432 = arith.constant 72 : index
    %275 = vector.load %arg11[%c0_431, %c72_432] : memref<80x128xbf16, #tpu.memory_space<vmem>>, vector<80x4xbf16>
    tpu.vector_store %arg11[%c0_431, %c72_432], %274 {strides = array<i32>} : memref<80x128xbf16, #tpu.memory_space<vmem>>, vector<80x4xbf16>,
    %c0_433 = arith.constant 0 : index
    %c0_434 = arith.constant 0 : index
    %c1_435 = arith.constant 1 : index
    %c0_436 = arith.constant 0 : index
    %276 = vector.load %arg6[%c0_433, %c0_434, %c1_435, %c0_436] : memref<1x1x110x4xbf16, #tpu.memory_space<vmem>>, vector<1x1x80x4xbf16>
    %277 = vector.shape_cast %276 : vector<1x1x80x4xbf16> to vector<80x4xbf16>
    %c0_437 = arith.constant 0 : index
    %c76_438 = arith.constant 76 : index
    %278 = vector.load %arg11[%c0_437, %c76_438] : memref<80x128xbf16, #tpu.memory_space<vmem>>, vector<80x4xbf16>
    tpu.vector_store %arg11[%c0_437, %c76_438], %277 {strides = array<i32>} : memref<80x128xbf16, #tpu.memory_space<vmem>>, vector<80x4xbf16>,
    %c0_439 = arith.constant 0 : index
    %c0_440 = arith.constant 0 : index
    %c2_441 = arith.constant 2 : index
    %c0_442 = arith.constant 0 : index
    %279 = vector.load %arg6[%c0_439, %c0_440, %c2_441, %c0_442] : memref<1x1x110x4xbf16, #tpu.memory_space<vmem>>, vector<1x1x80x4xbf16>
    %280 = vector.shape_cast %279 : vector<1x1x80x4xbf16> to vector<80x4xbf16>
    %c0_443 = arith.constant 0 : index
    %c80_444 = arith.constant 80 : index
    %281 = vector.load %arg11[%c0_443, %c80_444] : memref<80x128xbf16, #tpu.memory_space<vmem>>, vector<80x4xbf16>
    tpu.vector_store %arg11[%c0_443, %c80_444], %280 {strides = array<i32>} : memref<80x128xbf16, #tpu.memory_space<vmem>>, vector<80x4xbf16>,
    %c0_445 = arith.constant 0 : index
    %c0_446 = arith.constant 0 : index
    %c10_447 = arith.constant 10 : index
    %c0_448 = arith.constant 0 : index
    %282 = vector.load %arg6[%c0_445, %c0_446, %c10_447, %c0_448] : memref<1x1x110x4xbf16, #tpu.memory_space<vmem>>, vector<1x1x80x4xbf16>
    %283 = vector.shape_cast %282 : vector<1x1x80x4xbf16> to vector<80x4xbf16>
    %c0_449 = arith.constant 0 : index
    %c84_450 = arith.constant 84 : index
    %284 = vector.load %arg11[%c0_449, %c84_450] : memref<80x128xbf16, #tpu.memory_space<vmem>>, vector<80x4xbf16>
    tpu.vector_store %arg11[%c0_449, %c84_450], %283 {strides = array<i32>} : memref<80x128xbf16, #tpu.memory_space<vmem>>, vector<80x4xbf16>,
    %c0_451 = arith.constant 0 : index
    %c0_452 = arith.constant 0 : index
    %c11_453 = arith.constant 11 : index
    %c0_454 = arith.constant 0 : index
    %285 = vector.load %arg6[%c0_451, %c0_452, %c11_453, %c0_454] : memref<1x1x110x4xbf16, #tpu.memory_space<vmem>>, vector<1x1x80x4xbf16>
    %286 = vector.shape_cast %285 : vector<1x1x80x4xbf16> to vector<80x4xbf16>
    %c0_455 = arith.constant 0 : index
    %c88_456 = arith.constant 88 : index
    %287 = vector.load %arg11[%c0_455, %c88_456] : memref<80x128xbf16, #tpu.memory_space<vmem>>, vector<80x4xbf16>
    tpu.vector_store %arg11[%c0_455, %c88_456], %286 {strides = array<i32>} : memref<80x128xbf16, #tpu.memory_space<vmem>>, vector<80x4xbf16>,
    %c0_457 = arith.constant 0 : index
    %c0_458 = arith.constant 0 : index
    %c12_459 = arith.constant 12 : index
    %c0_460 = arith.constant 0 : index
    %288 = vector.load %arg6[%c0_457, %c0_458, %c12_459, %c0_460] : memref<1x1x110x4xbf16, #tpu.memory_space<vmem>>, vector<1x1x80x4xbf16>
    %289 = vector.shape_cast %288 : vector<1x1x80x4xbf16> to vector<80x4xbf16>
    %c0_461 = arith.constant 0 : index
    %c92_462 = arith.constant 92 : index
    %290 = vector.load %arg11[%c0_461, %c92_462] : memref<80x128xbf16, #tpu.memory_space<vmem>>, vector<80x4xbf16>
    tpu.vector_store %arg11[%c0_461, %c92_462], %289 {strides = array<i32>} : memref<80x128xbf16, #tpu.memory_space<vmem>>, vector<80x4xbf16>,
    %c0_463 = arith.constant 0 : index
    %c0_464 = arith.constant 0 : index
    %c20_465 = arith.constant 20 : index
    %c0_466 = arith.constant 0 : index
    %291 = vector.load %arg6[%c0_463, %c0_464, %c20_465, %c0_466] : memref<1x1x110x4xbf16, #tpu.memory_space<vmem>>, vector<1x1x80x4xbf16>
    %292 = vector.shape_cast %291 : vector<1x1x80x4xbf16> to vector<80x4xbf16>
    %c0_467 = arith.constant 0 : index
    %c96_468 = arith.constant 96 : index
    %293 = vector.load %arg11[%c0_467, %c96_468] : memref<80x128xbf16, #tpu.memory_space<vmem>>, vector<80x4xbf16>
    tpu.vector_store %arg11[%c0_467, %c96_468], %292 {strides = array<i32>} : memref<80x128xbf16, #tpu.memory_space<vmem>>, vector<80x4xbf16>,
    %c0_469 = arith.constant 0 : index
    %c0_470 = arith.constant 0 : index
    %c21_471 = arith.constant 21 : index
    %c0_472 = arith.constant 0 : index
    %294 = vector.load %arg6[%c0_469, %c0_470, %c21_471, %c0_472] : memref<1x1x110x4xbf16, #tpu.memory_space<vmem>>, vector<1x1x80x4xbf16>
    %295 = vector.shape_cast %294 : vector<1x1x80x4xbf16> to vector<80x4xbf16>
    %c0_473 = arith.constant 0 : index
    %c100_474 = arith.constant 100 : index
    %296 = vector.load %arg11[%c0_473, %c100_474] : memref<80x128xbf16, #tpu.memory_space<vmem>>, vector<80x4xbf16>
    tpu.vector_store %arg11[%c0_473, %c100_474], %295 {strides = array<i32>} : memref<80x128xbf16, #tpu.memory_space<vmem>>, vector<80x4xbf16>,
    %c0_475 = arith.constant 0 : index
    %c0_476 = arith.constant 0 : index
    %c22_477 = arith.constant 22 : index
    %c0_478 = arith.constant 0 : index
    %297 = vector.load %arg6[%c0_475, %c0_476, %c22_477, %c0_478] : memref<1x1x110x4xbf16, #tpu.memory_space<vmem>>, vector<1x1x80x4xbf16>
    %298 = vector.shape_cast %297 : vector<1x1x80x4xbf16> to vector<80x4xbf16>
    %c0_479 = arith.constant 0 : index
    %c104_480 = arith.constant 104 : index
    %299 = vector.load %arg11[%c0_479, %c104_480] : memref<80x128xbf16, #tpu.memory_space<vmem>>, vector<80x4xbf16>
    tpu.vector_store %arg11[%c0_479, %c104_480], %298 {strides = array<i32>} : memref<80x128xbf16, #tpu.memory_space<vmem>>, vector<80x4xbf16>,
    %c0_481 = arith.constant 0 : index
    %c0_482 = arith.constant 0 : index
    %300 = vector.load %arg11[%c0_481, %c0_482] : memref<80x128xbf16, #tpu.memory_space<vmem>>, vector<80x128xbf16>
    %c0_483 = arith.constant 0 : index
    %c0_484 = arith.constant 0 : index
    %301 = vector.load %arg8[%c0_483, %c0_484] : memref<128x128xbf16, #tpu.memory_space<vmem>>, vector<128x128xbf16>
    %cst_485 = arith.constant dense<0.000000e+00> : vector<80x128xf32>
    %302 = tpu.matmul %300, %301, %cst_485 {dimension_numbers = #tpu.dot_dimension_numbers<[1], [0], [0], [1], [0, 0, 1, 1], [], []>} : vector<80x128xbf16>, vector<128x128xbf16>, vector<80x128xf32> -> vector<80x128xf32>
    %303 = vector.broadcast %22 : vector<80x1xf32> to vector<80x128xf32>
    %304 = arith.mulf %302, %303 : vector<80x128xf32>
    %cst_486 = arith.constant dense<0.000000e+00> : vector<128xf32>
    %305 = vector.multi_reduction <add>, %304, %cst_486 [0] : vector<80x128xf32> to vector<128xf32>
    %306 = vector.shape_cast %305 : vector<128xf32> to vector<1x128xf32>
    %307 = arith.addf %210, %306 : vector<1x128xf32>
    %308 = arith.mulf %304, %302 : vector<80x128xf32>
    %cst_487 = arith.constant dense<0.000000e+00> : vector<128xf32>
    %309 = vector.multi_reduction <add>, %308, %cst_487 [0] : vector<80x128xf32> to vector<128xf32>
    %310 = vector.shape_cast %309 : vector<128xf32> to vector<1x128xf32>
    %311 = arith.addf %214, %310 : vector<1x128xf32>
    %312 = arith.truncf %302 : vector<80x128xf32> to vector<80x128xbf16>
    %c0_488 = arith.constant 0 : index
    %c2_489 = arith.constant 2 : index
    %c0_490 = arith.constant 0 : index
    %c0_491 = arith.constant 0 : index
    %313 = vector.load %arg9[%c0_488, %c2_489, %c0_490, %c0_491] : memref<1x4x80x128xbf16, #tpu.memory_space<vmem>>, vector<1x1x80x128xbf16>
    %314 = vector.shape_cast %313 : vector<1x1x80x128xbf16> to vector<80x128xbf16>
    %315 = vector.shape_cast %312 : vector<80x128xbf16> to vector<1x1x80x128xbf16>
    tpu.vector_store %arg9[%c0_488, %c2_489, %c0_490, %c0_491], %315 {strides = array<i32>} : memref<1x4x80x128xbf16, #tpu.memory_space<vmem>>, vector<1x1x80x128xbf16>,
    %c0_492 = arith.constant 0 : index
    %c0_493 = arith.constant 0 : index
    %c0_494 = arith.constant 0 : index
    %c0_495 = arith.constant 0 : index
    %316 = vector.load %arg5[%c0_492, %c0_493, %c0_494, %c0_495] : memref<1x1x110x4xbf16, #tpu.memory_space<vmem>>, vector<1x1x80x4xbf16>
    %317 = vector.shape_cast %316 : vector<1x1x80x4xbf16> to vector<80x4xbf16>
    %c0_496 = arith.constant 0 : index
    %c0_497 = arith.constant 0 : index
    %318 = vector.load %arg11[%c0_496, %c0_497] : memref<80x128xbf16, #tpu.memory_space<vmem>>, vector<80x4xbf16>
    tpu.vector_store %arg11[%c0_496, %c0_497], %317 {strides = array<i32>} : memref<80x128xbf16, #tpu.memory_space<vmem>>, vector<80x4xbf16>,
    %c0_498 = arith.constant 0 : index
    %c0_499 = arith.constant 0 : index
    %c1_500 = arith.constant 1 : index
    %c0_501 = arith.constant 0 : index
    %319 = vector.load %arg5[%c0_498, %c0_499, %c1_500, %c0_501] : memref<1x1x110x4xbf16, #tpu.memory_space<vmem>>, vector<1x1x80x4xbf16>
    %320 = vector.shape_cast %319 : vector<1x1x80x4xbf16> to vector<80x4xbf16>
    %c0_502 = arith.constant 0 : index
    %c4_503 = arith.constant 4 : index
    %321 = vector.load %arg11[%c0_502, %c4_503] : memref<80x128xbf16, #tpu.memory_space<vmem>>, vector<80x4xbf16>
    tpu.vector_store %arg11[%c0_502, %c4_503], %320 {strides = array<i32>} : memref<80x128xbf16, #tpu.memory_space<vmem>>, vector<80x4xbf16>,
    %c0_504 = arith.constant 0 : index
    %c0_505 = arith.constant 0 : index
    %c2_506 = arith.constant 2 : index
    %c0_507 = arith.constant 0 : index
    %322 = vector.load %arg5[%c0_504, %c0_505, %c2_506, %c0_507] : memref<1x1x110x4xbf16, #tpu.memory_space<vmem>>, vector<1x1x80x4xbf16>
    %323 = vector.shape_cast %322 : vector<1x1x80x4xbf16> to vector<80x4xbf16>
    %c0_508 = arith.constant 0 : index
    %c8_509 = arith.constant 8 : index
    %324 = vector.load %arg11[%c0_508, %c8_509] : memref<80x128xbf16, #tpu.memory_space<vmem>>, vector<80x4xbf16>
    tpu.vector_store %arg11[%c0_508, %c8_509], %323 {strides = array<i32>} : memref<80x128xbf16, #tpu.memory_space<vmem>>, vector<80x4xbf16>,
    %c0_510 = arith.constant 0 : index
    %c0_511 = arith.constant 0 : index
    %c10_512 = arith.constant 10 : index
    %c0_513 = arith.constant 0 : index
    %325 = vector.load %arg5[%c0_510, %c0_511, %c10_512, %c0_513] : memref<1x1x110x4xbf16, #tpu.memory_space<vmem>>, vector<1x1x80x4xbf16>
    %326 = vector.shape_cast %325 : vector<1x1x80x4xbf16> to vector<80x4xbf16>
    %c0_514 = arith.constant 0 : index
    %c12_515 = arith.constant 12 : index
    %327 = vector.load %arg11[%c0_514, %c12_515] : memref<80x128xbf16, #tpu.memory_space<vmem>>, vector<80x4xbf16>
    tpu.vector_store %arg11[%c0_514, %c12_515], %326 {strides = array<i32>} : memref<80x128xbf16, #tpu.memory_space<vmem>>, vector<80x4xbf16>,
    %c0_516 = arith.constant 0 : index
    %c0_517 = arith.constant 0 : index
    %c11_518 = arith.constant 11 : index
    %c0_519 = arith.constant 0 : index
    %328 = vector.load %arg5[%c0_516, %c0_517, %c11_518, %c0_519] : memref<1x1x110x4xbf16, #tpu.memory_space<vmem>>, vector<1x1x80x4xbf16>
    %329 = vector.shape_cast %328 : vector<1x1x80x4xbf16> to vector<80x4xbf16>
    %c0_520 = arith.constant 0 : index
    %c16_521 = arith.constant 16 : index
    %330 = vector.load %arg11[%c0_520, %c16_521] : memref<80x128xbf16, #tpu.memory_space<vmem>>, vector<80x4xbf16>
    tpu.vector_store %arg11[%c0_520, %c16_521], %329 {strides = array<i32>} : memref<80x128xbf16, #tpu.memory_space<vmem>>, vector<80x4xbf16>,
    %c0_522 = arith.constant 0 : index
    %c0_523 = arith.constant 0 : index
    %c12_524 = arith.constant 12 : index
    %c0_525 = arith.constant 0 : index
    %331 = vector.load %arg5[%c0_522, %c0_523, %c12_524, %c0_525] : memref<1x1x110x4xbf16, #tpu.memory_space<vmem>>, vector<1x1x80x4xbf16>
    %332 = vector.shape_cast %331 : vector<1x1x80x4xbf16> to vector<80x4xbf16>
    %c0_526 = arith.constant 0 : index
    %c20_527 = arith.constant 20 : index
    %333 = vector.load %arg11[%c0_526, %c20_527] : memref<80x128xbf16, #tpu.memory_space<vmem>>, vector<80x4xbf16>
    tpu.vector_store %arg11[%c0_526, %c20_527], %332 {strides = array<i32>} : memref<80x128xbf16, #tpu.memory_space<vmem>>, vector<80x4xbf16>,
    %c0_528 = arith.constant 0 : index
    %c0_529 = arith.constant 0 : index
    %c20_530 = arith.constant 20 : index
    %c0_531 = arith.constant 0 : index
    %334 = vector.load %arg5[%c0_528, %c0_529, %c20_530, %c0_531] : memref<1x1x110x4xbf16, #tpu.memory_space<vmem>>, vector<1x1x80x4xbf16>
    %335 = vector.shape_cast %334 : vector<1x1x80x4xbf16> to vector<80x4xbf16>
    %c0_532 = arith.constant 0 : index
    %c24_533 = arith.constant 24 : index
    %336 = vector.load %arg11[%c0_532, %c24_533] : memref<80x128xbf16, #tpu.memory_space<vmem>>, vector<80x4xbf16>
    tpu.vector_store %arg11[%c0_532, %c24_533], %335 {strides = array<i32>} : memref<80x128xbf16, #tpu.memory_space<vmem>>, vector<80x4xbf16>,
    %c0_534 = arith.constant 0 : index
    %c0_535 = arith.constant 0 : index
    %c21_536 = arith.constant 21 : index
    %c0_537 = arith.constant 0 : index
    %337 = vector.load %arg5[%c0_534, %c0_535, %c21_536, %c0_537] : memref<1x1x110x4xbf16, #tpu.memory_space<vmem>>, vector<1x1x80x4xbf16>
    %338 = vector.shape_cast %337 : vector<1x1x80x4xbf16> to vector<80x4xbf16>
    %c0_538 = arith.constant 0 : index
    %c28_539 = arith.constant 28 : index
    %339 = vector.load %arg11[%c0_538, %c28_539] : memref<80x128xbf16, #tpu.memory_space<vmem>>, vector<80x4xbf16>
    tpu.vector_store %arg11[%c0_538, %c28_539], %338 {strides = array<i32>} : memref<80x128xbf16, #tpu.memory_space<vmem>>, vector<80x4xbf16>,
    %c0_540 = arith.constant 0 : index
    %c0_541 = arith.constant 0 : index
    %c22_542 = arith.constant 22 : index
    %c0_543 = arith.constant 0 : index
    %340 = vector.load %arg5[%c0_540, %c0_541, %c22_542, %c0_543] : memref<1x1x110x4xbf16, #tpu.memory_space<vmem>>, vector<1x1x80x4xbf16>
    %341 = vector.shape_cast %340 : vector<1x1x80x4xbf16> to vector<80x4xbf16>
    %c0_544 = arith.constant 0 : index
    %c32_545 = arith.constant 32 : index
    %342 = vector.load %arg11[%c0_544, %c32_545] : memref<80x128xbf16, #tpu.memory_space<vmem>>, vector<80x4xbf16>
    tpu.vector_store %arg11[%c0_544, %c32_545], %341 {strides = array<i32>} : memref<80x128xbf16, #tpu.memory_space<vmem>>, vector<80x4xbf16>,
    %c0_546 = arith.constant 0 : index
    %c0_547 = arith.constant 0 : index
    %c0_548 = arith.constant 0 : index
    %c0_549 = arith.constant 0 : index
    %343 = vector.load %arg6[%c0_546, %c0_547, %c0_548, %c0_549] : memref<1x1x110x4xbf16, #tpu.memory_space<vmem>>, vector<1x1x80x4xbf16>
    %344 = vector.shape_cast %343 : vector<1x1x80x4xbf16> to vector<80x4xbf16>
    %c0_550 = arith.constant 0 : index
    %c36_551 = arith.constant 36 : index
    %345 = vector.load %arg11[%c0_550, %c36_551] : memref<80x128xbf16, #tpu.memory_space<vmem>>, vector<80x4xbf16>
    tpu.vector_store %arg11[%c0_550, %c36_551], %344 {strides = array<i32>} : memref<80x128xbf16, #tpu.memory_space<vmem>>, vector<80x4xbf16>,
    %c0_552 = arith.constant 0 : index
    %c0_553 = arith.constant 0 : index
    %c1_554 = arith.constant 1 : index
    %c0_555 = arith.constant 0 : index
    %346 = vector.load %arg6[%c0_552, %c0_553, %c1_554, %c0_555] : memref<1x1x110x4xbf16, #tpu.memory_space<vmem>>, vector<1x1x80x4xbf16>
    %347 = vector.shape_cast %346 : vector<1x1x80x4xbf16> to vector<80x4xbf16>
    %c0_556 = arith.constant 0 : index
    %c40_557 = arith.constant 40 : index
    %348 = vector.load %arg11[%c0_556, %c40_557] : memref<80x128xbf16, #tpu.memory_space<vmem>>, vector<80x4xbf16>
    tpu.vector_store %arg11[%c0_556, %c40_557], %347 {strides = array<i32>} : memref<80x128xbf16, #tpu.memory_space<vmem>>, vector<80x4xbf16>,
    %c0_558 = arith.constant 0 : index
    %c0_559 = arith.constant 0 : index
    %c2_560 = arith.constant 2 : index
    %c0_561 = arith.constant 0 : index
    %349 = vector.load %arg6[%c0_558, %c0_559, %c2_560, %c0_561] : memref<1x1x110x4xbf16, #tpu.memory_space<vmem>>, vector<1x1x80x4xbf16>
    %350 = vector.shape_cast %349 : vector<1x1x80x4xbf16> to vector<80x4xbf16>
    %c0_562 = arith.constant 0 : index
    %c44_563 = arith.constant 44 : index
    %351 = vector.load %arg11[%c0_562, %c44_563] : memref<80x128xbf16, #tpu.memory_space<vmem>>, vector<80x4xbf16>
    tpu.vector_store %arg11[%c0_562, %c44_563], %350 {strides = array<i32>} : memref<80x128xbf16, #tpu.memory_space<vmem>>, vector<80x4xbf16>,
    %c0_564 = arith.constant 0 : index
    %c0_565 = arith.constant 0 : index
    %c10_566 = arith.constant 10 : index
    %c0_567 = arith.constant 0 : index
    %352 = vector.load %arg6[%c0_564, %c0_565, %c10_566, %c0_567] : memref<1x1x110x4xbf16, #tpu.memory_space<vmem>>, vector<1x1x80x4xbf16>
    %353 = vector.shape_cast %352 : vector<1x1x80x4xbf16> to vector<80x4xbf16>
    %c0_568 = arith.constant 0 : index
    %c48_569 = arith.constant 48 : index
    %354 = vector.load %arg11[%c0_568, %c48_569] : memref<80x128xbf16, #tpu.memory_space<vmem>>, vector<80x4xbf16>
    tpu.vector_store %arg11[%c0_568, %c48_569], %353 {strides = array<i32>} : memref<80x128xbf16, #tpu.memory_space<vmem>>, vector<80x4xbf16>,
    %c0_570 = arith.constant 0 : index
    %c0_571 = arith.constant 0 : index
    %c11_572 = arith.constant 11 : index
    %c0_573 = arith.constant 0 : index
    %355 = vector.load %arg6[%c0_570, %c0_571, %c11_572, %c0_573] : memref<1x1x110x4xbf16, #tpu.memory_space<vmem>>, vector<1x1x80x4xbf16>
    %356 = vector.shape_cast %355 : vector<1x1x80x4xbf16> to vector<80x4xbf16>
    %c0_574 = arith.constant 0 : index
    %c52_575 = arith.constant 52 : index
    %357 = vector.load %arg11[%c0_574, %c52_575] : memref<80x128xbf16, #tpu.memory_space<vmem>>, vector<80x4xbf16>
    tpu.vector_store %arg11[%c0_574, %c52_575], %356 {strides = array<i32>} : memref<80x128xbf16, #tpu.memory_space<vmem>>, vector<80x4xbf16>,
    %c0_576 = arith.constant 0 : index
    %c0_577 = arith.constant 0 : index
    %c12_578 = arith.constant 12 : index
    %c0_579 = arith.constant 0 : index
    %358 = vector.load %arg6[%c0_576, %c0_577, %c12_578, %c0_579] : memref<1x1x110x4xbf16, #tpu.memory_space<vmem>>, vector<1x1x80x4xbf16>
    %359 = vector.shape_cast %358 : vector<1x1x80x4xbf16> to vector<80x4xbf16>
    %c0_580 = arith.constant 0 : index
    %c56_581 = arith.constant 56 : index
    %360 = vector.load %arg11[%c0_580, %c56_581] : memref<80x128xbf16, #tpu.memory_space<vmem>>, vector<80x4xbf16>
    tpu.vector_store %arg11[%c0_580, %c56_581], %359 {strides = array<i32>} : memref<80x128xbf16, #tpu.memory_space<vmem>>, vector<80x4xbf16>,
    %c0_582 = arith.constant 0 : index
    %c0_583 = arith.constant 0 : index
    %c20_584 = arith.constant 20 : index
    %c0_585 = arith.constant 0 : index
    %361 = vector.load %arg6[%c0_582, %c0_583, %c20_584, %c0_585] : memref<1x1x110x4xbf16, #tpu.memory_space<vmem>>, vector<1x1x80x4xbf16>
    %362 = vector.shape_cast %361 : vector<1x1x80x4xbf16> to vector<80x4xbf16>
    %c0_586 = arith.constant 0 : index
    %c60_587 = arith.constant 60 : index
    %363 = vector.load %arg11[%c0_586, %c60_587] : memref<80x128xbf16, #tpu.memory_space<vmem>>, vector<80x4xbf16>
    tpu.vector_store %arg11[%c0_586, %c60_587], %362 {strides = array<i32>} : memref<80x128xbf16, #tpu.memory_space<vmem>>, vector<80x4xbf16>,
    %c0_588 = arith.constant 0 : index
    %c0_589 = arith.constant 0 : index
    %c21_590 = arith.constant 21 : index
    %c0_591 = arith.constant 0 : index
    %364 = vector.load %arg6[%c0_588, %c0_589, %c21_590, %c0_591] : memref<1x1x110x4xbf16, #tpu.memory_space<vmem>>, vector<1x1x80x4xbf16>
    %365 = vector.shape_cast %364 : vector<1x1x80x4xbf16> to vector<80x4xbf16>
    %c0_592 = arith.constant 0 : index
    %c64_593 = arith.constant 64 : index
    %366 = vector.load %arg11[%c0_592, %c64_593] : memref<80x128xbf16, #tpu.memory_space<vmem>>, vector<80x4xbf16>
    tpu.vector_store %arg11[%c0_592, %c64_593], %365 {strides = array<i32>} : memref<80x128xbf16, #tpu.memory_space<vmem>>, vector<80x4xbf16>,
    %c0_594 = arith.constant 0 : index
    %c0_595 = arith.constant 0 : index
    %c22_596 = arith.constant 22 : index
    %c0_597 = arith.constant 0 : index
    %367 = vector.load %arg6[%c0_594, %c0_595, %c22_596, %c0_597] : memref<1x1x110x4xbf16, #tpu.memory_space<vmem>>, vector<1x1x80x4xbf16>
    %368 = vector.shape_cast %367 : vector<1x1x80x4xbf16> to vector<80x4xbf16>
    %c0_598 = arith.constant 0 : index
    %c68_599 = arith.constant 68 : index
    %369 = vector.load %arg11[%c0_598, %c68_599] : memref<80x128xbf16, #tpu.memory_space<vmem>>, vector<80x4xbf16>
    tpu.vector_store %arg11[%c0_598, %c68_599], %368 {strides = array<i32>} : memref<80x128xbf16, #tpu.memory_space<vmem>>, vector<80x4xbf16>,
    %c0_600 = arith.constant 0 : index
    %c0_601 = arith.constant 0 : index
    %c0_602 = arith.constant 0 : index
    %c0_603 = arith.constant 0 : index
    %370 = vector.load %arg7[%c0_600, %c0_601, %c0_602, %c0_603] : memref<1x1x110x4xbf16, #tpu.memory_space<vmem>>, vector<1x1x80x4xbf16>
    %371 = vector.shape_cast %370 : vector<1x1x80x4xbf16> to vector<80x4xbf16>
    %c0_604 = arith.constant 0 : index
    %c72_605 = arith.constant 72 : index
    %372 = vector.load %arg11[%c0_604, %c72_605] : memref<80x128xbf16, #tpu.memory_space<vmem>>, vector<80x4xbf16>
    tpu.vector_store %arg11[%c0_604, %c72_605], %371 {strides = array<i32>} : memref<80x128xbf16, #tpu.memory_space<vmem>>, vector<80x4xbf16>,
    %c0_606 = arith.constant 0 : index
    %c0_607 = arith.constant 0 : index
    %c1_608 = arith.constant 1 : index
    %c0_609 = arith.constant 0 : index
    %373 = vector.load %arg7[%c0_606, %c0_607, %c1_608, %c0_609] : memref<1x1x110x4xbf16, #tpu.memory_space<vmem>>, vector<1x1x80x4xbf16>
    %374 = vector.shape_cast %373 : vector<1x1x80x4xbf16> to vector<80x4xbf16>
    %c0_610 = arith.constant 0 : index
    %c76_611 = arith.constant 76 : index
    %375 = vector.load %arg11[%c0_610, %c76_611] : memref<80x128xbf16, #tpu.memory_space<vmem>>, vector<80x4xbf16>
    tpu.vector_store %arg11[%c0_610, %c76_611], %374 {strides = array<i32>} : memref<80x128xbf16, #tpu.memory_space<vmem>>, vector<80x4xbf16>,
    %c0_612 = arith.constant 0 : index
    %c0_613 = arith.constant 0 : index
    %c2_614 = arith.constant 2 : index
    %c0_615 = arith.constant 0 : index
    %376 = vector.load %arg7[%c0_612, %c0_613, %c2_614, %c0_615] : memref<1x1x110x4xbf16, #tpu.memory_space<vmem>>, vector<1x1x80x4xbf16>
    %377 = vector.shape_cast %376 : vector<1x1x80x4xbf16> to vector<80x4xbf16>
    %c0_616 = arith.constant 0 : index
    %c80_617 = arith.constant 80 : index
    %378 = vector.load %arg11[%c0_616, %c80_617] : memref<80x128xbf16, #tpu.memory_space<vmem>>, vector<80x4xbf16>
    tpu.vector_store %arg11[%c0_616, %c80_617], %377 {strides = array<i32>} : memref<80x128xbf16, #tpu.memory_space<vmem>>, vector<80x4xbf16>,
    %c0_618 = arith.constant 0 : index
    %c0_619 = arith.constant 0 : index
    %c10_620 = arith.constant 10 : index
    %c0_621 = arith.constant 0 : index
    %379 = vector.load %arg7[%c0_618, %c0_619, %c10_620, %c0_621] : memref<1x1x110x4xbf16, #tpu.memory_space<vmem>>, vector<1x1x80x4xbf16>
    %380 = vector.shape_cast %379 : vector<1x1x80x4xbf16> to vector<80x4xbf16>
    %c0_622 = arith.constant 0 : index
    %c84_623 = arith.constant 84 : index
    %381 = vector.load %arg11[%c0_622, %c84_623] : memref<80x128xbf16, #tpu.memory_space<vmem>>, vector<80x4xbf16>
    tpu.vector_store %arg11[%c0_622, %c84_623], %380 {strides = array<i32>} : memref<80x128xbf16, #tpu.memory_space<vmem>>, vector<80x4xbf16>,
    %c0_624 = arith.constant 0 : index
    %c0_625 = arith.constant 0 : index
    %c11_626 = arith.constant 11 : index
    %c0_627 = arith.constant 0 : index
    %382 = vector.load %arg7[%c0_624, %c0_625, %c11_626, %c0_627] : memref<1x1x110x4xbf16, #tpu.memory_space<vmem>>, vector<1x1x80x4xbf16>
    %383 = vector.shape_cast %382 : vector<1x1x80x4xbf16> to vector<80x4xbf16>
    %c0_628 = arith.constant 0 : index
    %c88_629 = arith.constant 88 : index
    %384 = vector.load %arg11[%c0_628, %c88_629] : memref<80x128xbf16, #tpu.memory_space<vmem>>, vector<80x4xbf16>
    tpu.vector_store %arg11[%c0_628, %c88_629], %383 {strides = array<i32>} : memref<80x128xbf16, #tpu.memory_space<vmem>>, vector<80x4xbf16>,
    %c0_630 = arith.constant 0 : index
    %c0_631 = arith.constant 0 : index
    %c12_632 = arith.constant 12 : index
    %c0_633 = arith.constant 0 : index
    %385 = vector.load %arg7[%c0_630, %c0_631, %c12_632, %c0_633] : memref<1x1x110x4xbf16, #tpu.memory_space<vmem>>, vector<1x1x80x4xbf16>
    %386 = vector.shape_cast %385 : vector<1x1x80x4xbf16> to vector<80x4xbf16>
    %c0_634 = arith.constant 0 : index
    %c92_635 = arith.constant 92 : index
    %387 = vector.load %arg11[%c0_634, %c92_635] : memref<80x128xbf16, #tpu.memory_space<vmem>>, vector<80x4xbf16>
    tpu.vector_store %arg11[%c0_634, %c92_635], %386 {strides = array<i32>} : memref<80x128xbf16, #tpu.memory_space<vmem>>, vector<80x4xbf16>,
    %c0_636 = arith.constant 0 : index
    %c0_637 = arith.constant 0 : index
    %c20_638 = arith.constant 20 : index
    %c0_639 = arith.constant 0 : index
    %388 = vector.load %arg7[%c0_636, %c0_637, %c20_638, %c0_639] : memref<1x1x110x4xbf16, #tpu.memory_space<vmem>>, vector<1x1x80x4xbf16>
    %389 = vector.shape_cast %388 : vector<1x1x80x4xbf16> to vector<80x4xbf16>
    %c0_640 = arith.constant 0 : index
    %c96_641 = arith.constant 96 : index
    %390 = vector.load %arg11[%c0_640, %c96_641] : memref<80x128xbf16, #tpu.memory_space<vmem>>, vector<80x4xbf16>
    tpu.vector_store %arg11[%c0_640, %c96_641], %389 {strides = array<i32>} : memref<80x128xbf16, #tpu.memory_space<vmem>>, vector<80x4xbf16>,
    %c0_642 = arith.constant 0 : index
    %c0_643 = arith.constant 0 : index
    %c21_644 = arith.constant 21 : index
    %c0_645 = arith.constant 0 : index
    %391 = vector.load %arg7[%c0_642, %c0_643, %c21_644, %c0_645] : memref<1x1x110x4xbf16, #tpu.memory_space<vmem>>, vector<1x1x80x4xbf16>
    %392 = vector.shape_cast %391 : vector<1x1x80x4xbf16> to vector<80x4xbf16>
    %c0_646 = arith.constant 0 : index
    %c100_647 = arith.constant 100 : index
    %393 = vector.load %arg11[%c0_646, %c100_647] : memref<80x128xbf16, #tpu.memory_space<vmem>>, vector<80x4xbf16>
    tpu.vector_store %arg11[%c0_646, %c100_647], %392 {strides = array<i32>} : memref<80x128xbf16, #tpu.memory_space<vmem>>, vector<80x4xbf16>,
    %c0_648 = arith.constant 0 : index
    %c0_649 = arith.constant 0 : index
    %c22_650 = arith.constant 22 : index
    %c0_651 = arith.constant 0 : index
    %394 = vector.load %arg7[%c0_648, %c0_649, %c22_650, %c0_651] : memref<1x1x110x4xbf16, #tpu.memory_space<vmem>>, vector<1x1x80x4xbf16>
    %395 = vector.shape_cast %394 : vector<1x1x80x4xbf16> to vector<80x4xbf16>
    %c0_652 = arith.constant 0 : index
    %c104_653 = arith.constant 104 : index
    %396 = vector.load %arg11[%c0_652, %c104_653] : memref<80x128xbf16, #tpu.memory_space<vmem>>, vector<80x4xbf16>
    tpu.vector_store %arg11[%c0_652, %c104_653], %395 {strides = array<i32>} : memref<80x128xbf16, #tpu.memory_space<vmem>>, vector<80x4xbf16>,
    %c0_654 = arith.constant 0 : index
    %c0_655 = arith.constant 0 : index
    %397 = vector.load %arg11[%c0_654, %c0_655] : memref<80x128xbf16, #tpu.memory_space<vmem>>, vector<80x128xbf16>
    %c0_656 = arith.constant 0 : index
    %c0_657 = arith.constant 0 : index
    %398 = vector.load %arg8[%c0_656, %c0_657] : memref<128x128xbf16, #tpu.memory_space<vmem>>, vector<128x128xbf16>
    %cst_658 = arith.constant dense<0.000000e+00> : vector<80x128xf32>
    %399 = tpu.matmul %397, %398, %cst_658 {dimension_numbers = #tpu.dot_dimension_numbers<[1], [0], [0], [1], [0, 0, 1, 1], [], []>} : vector<80x128xbf16>, vector<128x128xbf16>, vector<80x128xf32> -> vector<80x128xf32>
    %400 = vector.broadcast %22 : vector<80x1xf32> to vector<80x128xf32>
    %401 = arith.mulf %399, %400 : vector<80x128xf32>
    %cst_659 = arith.constant dense<0.000000e+00> : vector<128xf32>
    %402 = vector.multi_reduction <add>, %401, %cst_659 [0] : vector<80x128xf32> to vector<128xf32>
    %403 = vector.shape_cast %402 : vector<128xf32> to vector<1x128xf32>
    %404 = arith.addf %307, %403 : vector<1x128xf32>
    %405 = arith.mulf %401, %399 : vector<80x128xf32>
    %cst_660 = arith.constant dense<0.000000e+00> : vector<128xf32>
    %406 = vector.multi_reduction <add>, %405, %cst_660 [0] : vector<80x128xf32> to vector<128xf32>
    %407 = vector.shape_cast %406 : vector<128xf32> to vector<1x128xf32>
    %408 = arith.addf %311, %407 : vector<1x128xf32>
    %409 = arith.truncf %399 : vector<80x128xf32> to vector<80x128xbf16>
    %c0_661 = arith.constant 0 : index
    %c3 = arith.constant 3 : index
    %c0_662 = arith.constant 0 : index
    %c0_663 = arith.constant 0 : index
    %410 = vector.load %arg9[%c0_661, %c3, %c0_662, %c0_663] : memref<1x4x80x128xbf16, #tpu.memory_space<vmem>>, vector<1x1x80x128xbf16>
    %411 = vector.shape_cast %410 : vector<1x1x80x128xbf16> to vector<80x128xbf16>
    %412 = vector.shape_cast %409 : vector<80x128xbf16> to vector<1x1x80x128xbf16>
    tpu.vector_store %arg9[%c0_661, %c3, %c0_662, %c0_663], %412 {strides = array<i32>} : memref<1x4x80x128xbf16, #tpu.memory_space<vmem>>, vector<1x1x80x128xbf16>,
    %413 = tpu.concatenate %404, %408 in 0 : vector<1x128xf32>, vector<1x128xf32> -> vector<2x128xf32>
    %c0_664 = arith.constant 0 : index
    %c0_665 = arith.constant 0 : index
    %c0_666 = arith.constant 0 : index
    %c0_667 = arith.constant 0 : index
    %414 = vector.load %arg10[%c0_664, %c0_665, %c0_666, %c0_667] : memref<1x1x2x128xf32, #tpu.memory_space<vmem>>, vector<1x1x2x128xf32>
    %415 = vector.shape_cast %414 : vector<1x1x2x128xf32> to vector<2x128xf32>
    %416 = vector.shape_cast %413 : vector<2x128xf32> to vector<1x1x2x128xf32>
    tpu.vector_store %arg10[%c0_664, %c0_665, %c0_666, %c0_667], %416 {strides = array<i32>} : memref<1x1x2x128xf32, #tpu.memory_space<vmem>>, vector<1x1x2x128xf32>,
    return
  }
  func.func @transform_0(%arg0: i32, %arg1: i32) -> (i32, i32, i32, i32) {
    %c4_i32 = arith.constant 4 : i32
    %0 = arith.muli %arg1, %c4_i32 : i32
    %c0_i32 = arith.constant 0 : i32
    %1 = arith.addi %0, %c0_i32 : i32
    %c0_i32_0 = arith.constant 0 : i32
    %c0_i32_1 = arith.constant 0 : i32
    %c0_i32_2 = arith.constant 0 : i32
    return %arg0, %1, %c0_i32_0, %c0_i32_1 : i32, i32, i32, i32
  }
  func.func @transform_1(%arg0: i32, %arg1: i32) -> (i32, i32, i32, i32) {
    %c4_i32 = arith.constant 4 : i32
    %0 = arith.muli %arg1, %c4_i32 : i32
    %c1_i32 = arith.constant 1 : i32
    %1 = arith.addi %0, %c1_i32 : i32
    %c0_i32 = arith.constant 0 : i32
    %c0_i32_0 = arith.constant 0 : i32
    %c0_i32_1 = arith.constant 0 : i32
    return %arg0, %1, %c0_i32, %c0_i32_0 : i32, i32, i32, i32
  }
  func.func @transform_2(%arg0: i32, %arg1: i32) -> (i32, i32, i32, i32) {
    %c4_i32 = arith.constant 4 : i32
    %0 = arith.muli %arg1, %c4_i32 : i32
    %c2_i32 = arith.constant 2 : i32
    %1 = arith.addi %0, %c2_i32 : i32
    %c0_i32 = arith.constant 0 : i32
    %c0_i32_0 = arith.constant 0 : i32
    %c0_i32_1 = arith.constant 0 : i32
    return %arg0, %1, %c0_i32, %c0_i32_0 : i32, i32, i32, i32
  }
  func.func @transform_3(%arg0: i32, %arg1: i32) -> (i32, i32, i32, i32) {
    %c4_i32 = arith.constant 4 : i32
    %0 = arith.muli %arg1, %c4_i32 : i32
    %c3_i32 = arith.constant 3 : i32
    %1 = arith.addi %0, %c3_i32 : i32
    %c0_i32 = arith.constant 0 : i32
    %c0_i32_0 = arith.constant 0 : i32
    %c0_i32_1 = arith.constant 0 : i32
    return %arg0, %1, %c0_i32, %c0_i32_0 : i32, i32, i32, i32
  }
  func.func @transform_4(%arg0: i32, %arg1: i32) -> (i32, i32, i32, i32) {
    %c4_i32 = arith.constant 4 : i32
    %0 = arith.muli %arg1, %c4_i32 : i32
    %c4_i32_0 = arith.constant 4 : i32
    %1 = arith.addi %0, %c4_i32_0 : i32
    %c0_i32 = arith.constant 0 : i32
    %c0_i32_1 = arith.constant 0 : i32
    %c0_i32_2 = arith.constant 0 : i32
    return %arg0, %1, %c0_i32, %c0_i32_1 : i32, i32, i32, i32
  }
  func.func @transform_5(%arg0: i32, %arg1: i32) -> (i32, i32, i32, i32) {
    %c4_i32 = arith.constant 4 : i32
    %0 = arith.muli %arg1, %c4_i32 : i32
    %c5_i32 = arith.constant 5 : i32
    %1 = arith.addi %0, %c5_i32 : i32
    %c0_i32 = arith.constant 0 : i32
    %c0_i32_0 = arith.constant 0 : i32
    %c0_i32_1 = arith.constant 0 : i32
    return %arg0, %1, %c0_i32, %c0_i32_0 : i32, i32, i32, i32
  }
  func.func @transform_6(%arg0: i32, %arg1: i32) -> (i32, i32) {
    %c0_i32 = arith.constant 0 : i32
    %c0_i32_0 = arith.constant 0 : i32
    %c0_i32_1 = arith.constant 0 : i32
    return %c0_i32, %c0_i32_0 : i32, i32
  }
  func.func @transform_7(%arg0: i32, %arg1: i32) -> (i32, i32, i32, i32) {
    %c0_i32 = arith.constant 0 : i32
    %c0_i32_0 = arith.constant 0 : i32
    %c0_i32_1 = arith.constant 0 : i32
    return %arg0, %arg1, %c0_i32, %c0_i32_0 : i32, i32, i32, i32
  }
  func.func @transform_8(%arg0: i32, %arg1: i32) -> (i32, i32, i32, i32) {
    %c0_i32 = arith.constant 0 : i32
    %c0_i32_0 = arith.constant 0 : i32
    %c0_i32_1 = arith.constant 0 : i32
    return %arg0, %arg1, %c0_i32, %c0_i32_0 : i32, i32, i32, i32
  }
}

</mosaic_0001>

<bundles_post_ra>
// kernel: tpu_custom_call.1
= control target key start
LH: loop header
LB: loop body
LE: loop exit
PB: predicated region body
PF: predicated region fallthrough
CT: control target
= control target key end

     0   :  { %s17489_s0 = inlined_call_operand.vmem [shape: bf16[2,10,110,4], index: 0, kind: input, shape index: {}]   ;;  %s17490_s1 = inlined_call_operand.vmem [shape: bf16[2,10,110,4], index: 1, kind: input, shape index: {}]   ;;  %s17491_s2 = inlined_call_operand.vmem [shape: bf16[2,10,110,4], index: 2, kind: input, shape index: {}]   ;;  %s17492_s3 = inlined_call_operand.vmem [shape: bf16[2,10,110,4], index: 3, kind: input, shape index: {}]   ;;  %s17493_s4 = inlined_call_operand.vmem [shape: bf16[2,10,110,4], index: 4, kind: input, shape index: {}]   ;;  %s17494_s5 = inlined_call_operand.vmem [shape: bf16[2,10,110,4], index: 5, kind: input, shape index: {}]   ;;  %s17495_s6 = inlined_call_operand.vmem [shape: bf16[128,128], index: 6, kind: input, shape index: {}]   ;;  %s17496_s7 = inlined_call_operand.hbm [shape: bf16[2,8,80,128], index: 7, kind: output, shape index: {0}]   ;;  %s17497_s8 = inlined_call_operand.hbm [shape: f32[2,2,2,128], index: 8, kind: output, shape index: {1}]  }
   0x1   :  { %17654 = sst [smem:[#allocation28_spill]] %s17489_s0 }
   0x2   :  { %17655 = sst [smem:[#allocation29_spill]] %s17490_s1 }
   0x3   :  { %17656 = sst [smem:[#allocation30_spill]] %s17491_s2 }
   0x4   :  { %17657 = sst [smem:[#allocation31_spill]] %s17492_s3 }
   0x5   :  { %17658 = sst [smem:[#allocation32_spill]] %s17493_s4 }
   0x6   :  { %17659 = sst [smem:[#allocation33_spill]] %s17494_s5 }
   0x7   :  { %17660 = sst [smem:[#allocation34_spill]] %s17495_s6 }
   0x8   :  { %17661 = sst [smem:[#allocation35_spill]] %s17496_s7 }
   0x9   :  { %17662 = sst [smem:[#allocation36_spill]] %s17497_s8 }
   0xa   :  { %14 = vsyncpa [#allocation4], 0 }
   0xb   :  { %16 = vsyncpa [#allocation4 + $0x1], 0 }
   0xc   :  { %17 = vsyncpa [#allocation6], 0 }
   0xd   :  { %19 = vsyncpa [#allocation6 + $0x1], 0  ;;  %s12969_s27 = smov 0   ;;  %s12971_s28 = smov 0  }
   0xe   :  { %s12973_s29 = smov 0   ;;  %s12975_s30 = smov 0  }
   0xf   :  { %s12977_s9 = smov 0   ;;  %s12979_s10 = smov 0  }
  0x10   :  { %s12981_s11 = smov 0   ;;  %s12983_s12 = smov 0  }
  0x11 LB: > { %17663 = sst [smem:[#allocation9_spill]] %s12863_s27  ;;  %s10821_s13 = sadd.s32 4294967295, %s12891_s12   ;;  %s12891_s12 = sphi %s12983_s12, %s25_s12   ;;  %s12887_s11 = sphi %s12981_s11, %s18223_s11   ;;  %s12883_s10 = sphi %s12979_s10, %s18222_s10   ;;  %s12879_s9 = sphi %s12977_s9, %s18221_s9   ;;  %s12875_s30 = sphi %s12975_s30, %s18220_s30   ;;  %s12871_s29 = sphi %s12973_s29, %s18219_s29   ;;  %s12867_s28 = sphi %s12971_s28, %s18218_s28   ;;  %s12863_s27 = sphi %s12969_s27, %s18217_s27  }
  0x12   : > { %17664 = sst [smem:[#allocation10_spill]] %s12867_s28  ;;  %s10822_s14 = sadd.s32 4294967294, %s12891_s12  }
  0x13   : > { %17665 = sst [smem:[#allocation11_spill]] %s12871_s29  ;;  %s34_s15 = sadd.s32 1, %s12883_s10 }
  0x14   : > { %17666 = sst [smem:[#allocation12_spill]] %s12875_s30  ;;  %p35_p0 = scmp.ge.s32.totalorder %s34_s15, 2 }
  0x15   : > { %17667 = sst [smem:[#allocation13_spill]] %s12879_s9  ;;  %s37_s16 = sadd.s32 1, %s12887_s11 }
  0x16   : > { %17668 = sst [smem:[#allocation14_spill]] %s12883_s10  ;;  %p267_p1 = scmp.ne.s32.totalorder %s12871_s29, %s12867_s28 }
  0x17   : > { %17669 = sst [smem:[#allocation15_spill]] %s12887_s11  ;;  %p268_p2 = scmp.eq.s32.totalorder %s10821_s13, 3 }
  0x18   : > { %17670 = sst [smem:[#allocation16_spill]] %s12891_s12  ;;  %s18225_s15 = smov (%p35_p0, %s34_s15), 0 }
  0x19   : > { %17671 = sst [smem:[#allocation17_spill]] %s18225_s15  ;;  %s18227_s16 = smov (!%p35_p0, %s37_s16), %s12887_s11 }
  0x1a   : > { %s253_s17 = ssub.s32 %s12883_s10, %s18225_s15  ;;  %p13020_p3 = por %p268_p2, %p267_p1 }
  0x1b   : > { %p39_p4 = scmp.ge.s32.totalorder %s18227_s16, 2  ;;  %p273_p5 = scmp.ne.s32.totalorder %s12867_s28, %s12863_s27 }
  0x1c   : > { %s17672_s18 = scalar_select %p13020_p3, 1, 0 }
  0x1d   : > { %p274_p6 = scmp.eq.s32.totalorder %s10822_s14, 3  ;;  %p10837_p7 = scmp.ge.s32.totalorder %s12891_s12, 1 }
  0x1e   : > { %17673 = sst [smem:[#allocation18_spill]] %s17672_s18  ;;  %s18229_s16 = smov (%p39_p4, %s18227_s16), 0 }
  0x1f   : > { %17674 = sst [smem:[#allocation19_spill]] %s18229_s16  ;;  %p13029_p8 = por %p274_p6, %p273_p5 }
  0x20   : > { %p417_p9 = scmp.lt.s32.totalorder %s12891_s12, 5  ;;  %s252_s20 = ssub.s32 %s12887_s11, %s18229_s16 }
  0x21   : > { %s17675_s19 = scalar_select %p13029_p8, 1, 0 }
  0x22   : > { %s257_s21 = sadd.s32 1, %s12871_s29  ;;  %s254_s22 = sor.u32 %s253_s17, %s252_s20 }
  0x23   : > { %17676 = sst [smem:[#allocation20_spill]] %s17675_s19  ;;  %p418_p10 = pnand %p10837_p7, %p417_p9 }
  0x24   : > { %p255_p11 = scmp.eq.s32.totalorder %s254_s22, 0 }
  0x25   : > { %421 = sbr.rel (%p418_p10) target bundleno = 1480 (0x5c8), region = 48 }
  0x26   : > { %s13038_s23 = scalar_select %p255_p11, %s12871_s29, %s257_s21  }
  0x28   : > { %17677 = sst [smem:[#allocation21_spill]] %s13038_s23 }
  0x2c   : > { %s13041_s24 = sshll.u32 %s12875_s30, 2  ;;  %p517_p12 = scmp.lt.s32.totalorder %s12879_s9, 1  ;;  %vm991_vm0 = vcmask 1046528   ;;  %vm886_vm1 = vsmask.f32 7424  ;;  %vm17597_vm3 = vcmask 1045504  }
  0x2d   : > { %p519_p13 = scmp.lt.s32.totalorder %s13041_s24, 9  ;;  %s17679_s0 = sld [smem:[#allocation28_spill]]  ;;  %vm17598_vm2 = vsmask.f32 6400  ;;  %vm1391_vm4 = vsmask.f32 5376 }
  0x2e   : > { %s518_s25 = scalar_select %p517_p12, %s12879_s9, 1  ;;  %vm1505_vm5 = vcmask 1044480   ;;  %vm594_vm6 = vcmask 1048416   ;;  %vm841_vm7 = vcmask 31744   ;;  %vm17596_vm8 = vcmask 64544  }
  0x2f   : > { %s520_s26 = scalar_select %p519_p13, %s13041_s24, 9  ;;  %vm17595_vm9 = vcmask 97344   ;;  %vm17575_vm10 = vcmask 130144   ;;  %vm17574_vm11 = vcmask 162944   ;;  %vm17577_vm12 = vcmask 195744  }
  0x30   : > { %s13047_s13 = smul.u32 140, %s518_s25  ;;  %s17503_s25 = smov 8   ;;  %vm17553_vm13 = vcmask 228544   ;;  %vm17533_vm14 = vcmask 261344   ;;  %vm17527_vm15 = vcmask 294144  }
  0x31   : > { %s11963_s14 = smul.u32 14, %s520_s26  ;;  %s17501_s26 = smov 12  }
  0x32   : > { %17678 = sst [smem:[#allocation22_spill]] %s13047_s13  ;;  %s17517_s22 = smov 20  }
  0x33   : > { %s523_s17 = sadd.s32 %s13047_s13, %s11963_s14  ;;  %s17555_s14 = smov 4  }
  0x34   : > { %s10840_s20 = sshll.u32 %s523_s17, 2  ;;  %s528_s17 = sadd.s32 1, %s13041_s24 }
  0x35   : > { %s13053_s16 = scalar_lea.vmem %s17679_s0, %s10840_s20  ;;  %p531_p0 = scmp.lt.s32.totalorder %s528_s17, 9 }
  0x36   : > { %v12097_v0 = vld [vmem:[%s13053_s16 + $0x8] sm:$0xff]   ;;  %v12098_v1 = vld [vmem:[%s13053_s16 + $0x10] sm:$0xff]   ;;  %v12100_v3 = vld [vmem:[%s13053_s16 + $0x18] sm:$0xff]   ;;  %s17499_s20 = smov 16   ;;  %s17680_s1 = sld [smem:[#allocation29_spill]] }
  0x37   : > { %v993_v2 = vrot.slane %v12097_v0, 1  ;;  %v12099_v4 = vld [vmem:[%s13053_s16] sm:$0xfe]   ;;  %v995_v6 = vrot.slane %v12098_v1, 1  ;;  %v997_v8 = vrot.slane %v12100_v3, 1  ;;  %v12103_v14 = vld [vmem:[%s13053_s16 + $0xc] sm:$0xff]  }
  0x38   : > { %v12101_v5 = vld [vmem:[%s13053_s16 + $0x20] sm:$0xff]   ;;  %v992_v7 = vrot.slane %v12099_v4, 1  ;;  %v12104_v16 = vld [vmem:[%s13053_s16 + $0x28] ss:$0 sps:$4 sm:$0x11]   ;;  %v1064_v18 = vrot.slane %v12103_v14, 1 }
  0x39   : > { %v996_v9 = vsel %vm991_vm0, %v993_v2, %v995_v6  ;;  %v999_v10 = vrot.slane %v12101_v5, 1  ;;  %v12102_v13 = vld [vmem:[%s13053_s16 + $0x4] sm:$0xfe]   ;;  %v998_v15 = vsel %vm991_vm0, %v995_v6, %v997_v8  ;;  %v13070_v19 = vld [vmem:[%s13053_s16 + $0x14] sm:$0xff]   ;;  %v1001_v20 = vrot.slane %v12104_v16, 1  ;;  %v12112_v53 = vld [vmem:[%s13053_s16 + $0x1c] sm:$0xff]  }
  0x3a   : > { %1005 = vrot.lane.b32.xlu0 %v996_v9, %s17503_s25  ;;  %v994_v11 = vsel %vm991_vm0, %v992_v7, %v993_v2  ;;  %v1063_v17 = vrot.slane %v12102_v13, 1  ;;  %v1066_v22 = vrot.slane %v13070_v19, 1  ;;  %v12106_v23 = vld [vmem:[%s13053_s16] sm:$0xff]   ;;  %v12107_v25 = vld [vmem:[%s13053_s16 + $0x8] sm:$0xff]   ;;  %v12108_v26 = vld [vmem:[%s13053_s16 + $0x10] sm:$0xff]   ;;  %v1068_v59 = vrot.slane %v12112_v53, 1 }
  0x3b   : > { %1003 = vrot.lane.b32.xlu1 %v994_v11, %s17503_s25  ;;  %v1000_v12 = vsel %vm991_vm0, %v997_v8, %v999_v10  ;;  %v1002_v24 = vsel %vm991_vm0, %v999_v10, %v1001_v20  ;;  %v888_v27 = vshrl.u32 %v12106_v23, 16  ;;  %v890_v28 = vshll.u32 %v12106_v23, 16  ;;  %v12109_v30 = vld [vmem:[%s13053_s16 + $0x18] sm:$0xff]   ;;  %v12110_v36 = vld [vmem:[%s13053_s16 + $0x20] sm:$0xff]   ;;  %v12115_v58 = vld [vmem:[%s13053_s16 + $0xc] sm:$0xff]   ;;  %s18231_s17 = smov (!%p531_p0, %s528_s17), 9 }
  0x3c   : > { %v1065_v21 = vsel %vm991_vm0, %v1063_v17, %v1064_v18  ;;  %v895_v29 = vshll.u32 %v12107_v25, 16  ;;  %v903_v31 = vshll.u32 %v12108_v26, 16  ;;  %v907_v32 = vshrl.u32 %v12108_v26, 16  ;;  %v12111_v43 = vld [vmem:[%s13053_s16 + $0x28] ss:$0 sps:$4 sm:$0x11]  }
  0x3d   : > { %v1067_v33 = vsel %vm991_vm0, %v1064_v18, %v1066_v22  ;;  %v892_v34 = vrot.slane %v890_v28, 1  ;;  %v899_v35 = vshrl.u32 %v12107_v25, 16  ;;  %v911_v39 = vshll.u32 %v12109_v30, 16  ;;  %v12113_v54 = vld [vmem:[%s13053_s16 + $0x24] sm:$0xff]   ;;  %v12117_v4 = vld [vmem:[%s13053_s16 + $0x14] sm:$0xff]   ;;  %v12118_v10 = vld [vmem:[%s13053_s16 + $0x1c] sm:$0xff]  }
  0x3e   : > { %1009 = vrot.lane.b32.xlu0 %v1000_v12, %s17503_s25  ;;  %v897_v37 = vrot.slane %v895_v29, 1  ;;  %v905_v38 = vrot.slane %v903_v31, 1  ;;  %v915_v40 = vshrl.u32 %v12109_v30, 16  ;;  %v919_v42 = vshll.u32 %v12110_v36, 16  ;;  %v12114_v61 = vld [vmem:[%s13053_s16 + $0x4] sm:$0xfe]  }
  0x3f   : > { %1007 = vrot.lane.b32.xlu1 %v998_v15, %s17503_s25  ;;  %v893_v41 = vor.u32 %v892_v34, %v888_v27  ;;  %v913_v45 = vrot.slane %v911_v39, 1  ;;  %v923_v47 = vshrl.u32 %v12110_v36, 16  ;;  %v927_v50 = vshll.u32 %v12111_v43, 16  ;;  %v12116_v3 = vld [vmem:[%s13053_s16 + $0x2c] ss:$0 sps:$4 sm:$0x11]  }
  0x40   : > { %v909_v44 = vor.u32 %v907_v32, %v905_v38  ;;  %v901_v46 = vor.u32 %v899_v35, %v897_v37  ;;  %v921_v49 = vrot.slane %v919_v42, 1  ;;  %v1070_v60 = vrot.slane %v12113_v54, 1  ;;  %v12119_v18 = vld [vmem:[%s13053_s16 + $0x24] sm:$0xff]   ;;  %v12120_v25 = vld [vmem:[%s13053_s16 + $0x2c] ss:$0 sps:$4 sm:$0x33]  }
  0x41   : > { %v898_v48 = vsel %vm886_vm1, %v893_v41, %v897_v37  ;;  %v917_v52 = vor.u32 %v915_v40, %v913_v45  ;;  %v929_v57 = vrot.slane %v927_v50, 1  ;;  %v1144_v62 = vshrl.u32 %v12115_v58, 16  ;;  %v12122_v39 = vld [vmem:[%s13053_s16 + $0x14] sm:$0xff]   ;;  %v12123_v43 = vld [vmem:[%s13053_s16 + $0x4] sm:$0xfc]   ;;  %s11965_s21 = smul.u32 14, %s18231_s17 }
  0x42   : > { %1074 = vrot.lane.b32.xlu0 %v1065_v21, %s17501_s26  ;;  %v914_v51 = vsel %vm886_vm1, %v909_v44, %v913_v45  ;;  %v906_v55 = vsel %vm886_vm1, %v901_v46, %v905_v38  ;;  %v925_v56 = vor.u32 %v923_v47, %v921_v49  ;;  %v1147_v63 = vshll.u32 %v12115_v58, 16  ;;  %v12121_v38 = vld [vmem:[%s13053_s16 + $0xc] sm:$0xff]   ;;  %v12124_v45 = vld [vmem:[%s13053_s16 + $0x1c] sm:$0xff]   ;;  %v12125_v46 = vld [vmem:[%s13053_s16 + $0x24] sm:$0xff]   ;;  %s17682_s2 = sld [smem:[#allocation30_spill]]  ;;  %s17683_s6 = sld [smem:[#allocation34_spill]] }
  0x43   : > { %1011 = vrot.lane.b32.xlu1 %v1002_v24, %s17503_s25  ;;  %v922_v0 = vsel %vm886_vm1, %v917_v52, %v921_v49  ;;  %v1136_v1 = vshrl.u32 %v12114_v61, 16  ;;  %v1139_v2 = vshll.u32 %v12114_v61, 16  ;;  %v1146_v6 = vrot.slane %v1144_v62, 1  ;;  %v12127_v52 = vld [vmem:[%s13053_s16 + $0x10] sm:$0xff]   ;;  %v12126_v53 = vld [vmem:[%s13053_s16 + $0x8] sm:$0xfc]   ;;  %s13151_s17 = sadd.s32 %s11965_s21, %s13047_s13 }
  0x44   : > { %v930_v5 = vsel %vm886_vm1, %v925_v56, %v929_v57  ;;  %v1149_v7 = vrot.slane %v1147_v63, 2  ;;  %v1071_v11 = vsel %vm991_vm0, %v1068_v59, %v1070_v60  ;;  %v1153_v12 = vshrl.u32 %v12117_v4, 16  ;;  %v12133_v54 = vld [vmem:[%s13053_s16 + $0x10] sm:$0xff]   ;;  %v12130_v62 = vld [vmem:[%s13053_s16 + $0x20] sm:$0xff]   ;;  %s17509_s21 = smov 24   ;;  %s17689_s3 = sld [smem:[#allocation31_spill]] }
  0x45   : > { %v1138_v8 = vrot.slane %v1136_v1, 1  ;;  %v1141_v9 = vrot.slane %v1139_v2, 2  ;;  %v1156_v13 = vshll.u32 %v12117_v4, 16  ;;  %v1162_v16 = vshrl.u32 %v12118_v10, 16  ;;  %v12131_v1 = vld [vmem:[%s13053_s16 + $0x28] sm:$0xff]   ;;  %v12134_v2 = vld [vmem:[%s13053_s16 + $0x18] sm:$0xff]  }
  0x46   : > { %931 = vrot.lane.b32.xlu0 %v898_v48, %s17555_s14  ;;  %v1150_v15 = vor.u32 %v1149_v7, %v1146_v6  ;;  %v1165_v17 = vshll.u32 %v12118_v10, 16  ;;  %v1069_v20 = vsel %vm991_vm0, %v1066_v22, %v1068_v59  ;;  %v1072_v21 = vrot.slane %v12116_v3, 1  ;;  %v12128_v59 = vld [vmem:[%s13053_s16 + $0x2c] ss:$0 sps:$4 sm:$0x33]   ;;  %s17694_s15 = smov 44  }
  0x47   : > { %1076 = vrot.lane.b32.xlu1 %v1067_v33, %s17501_s26  ;;  %v1142_v14 = vor.u32 %v1141_v9, %v1138_v8  ;;  %v1155_v23 = vrot.slane %v1153_v12, 1  ;;  %v1158_v24 = vrot.slane %v1156_v13, 2  ;;  %v1164_v26 = vrot.slane %v1162_v16, 1  ;;  %v12132_v63 = vld [vmem:[%s13053_s16 + $0x30] ss:$0 sps:$4 sm:$0x33]  }
  0x48   : > { %v1167_v27 = vrot.slane %v1165_v17, 2  ;;  %v1171_v28 = vshrl.u32 %v12119_v18, 16  ;;  %v1174_v29 = vshll.u32 %v12119_v18, 16  ;;  %v1180_v30 = vshrl.u32 %v12120_v25, 16  ;;  %v12136_v9 = vld [vmem:[%s13053_s16 + $0x20] sm:$0xff]   ;;  %v12137_v10 = vld [vmem:[%s13053_s16 + $0x28] sm:$0xff]  }
  0x49   : > { %v1183_v31 = vshll.u32 %v12120_v25, 16  ;;  %v1151_v19 = vsel %vm17598_vm2, %v1142_v14, %v1150_v15  ;;  %v1159_v22 = vor.u32 %v1158_v24, %v1155_v23  ;;  %v1073_v34 = vsel %vm991_vm0, %v1070_v60, %v1072_v21  ;;  %v12129_v60 = vld [vmem:[%s13053_s16 + $0x18] sm:$0xff]   ;;  %s17695_s11 = smov 48   ;;  %s17697_s10 = smov 56  }
  0x4a   : > { %933 = vrot.lane.b32.xlu0 %v906_v55, %s17555_s14  ;;  %v1168_v32 = vor.u32 %v1167_v27, %v1164_v26  ;;  %v1173_v33 = vrot.slane %v1171_v28, 1  ;;  %v1176_v35 = vrot.slane %v1174_v29, 2  ;;  %v1182_v36 = vrot.slane %v1180_v30, 1  ;;  %v12140_v29 = vld [vmem:[%s13053_s16 + $0x30] ss:$0 sps:$4 sm:$0x77]  }
  0x4b   : > { %935 = vrot.lane.b32.xlu1 %v914_v51, %s17555_s14  ;;  %v1185_v37 = vrot.slane %v1183_v31, 2  ;;  %v1160_v44 = vsel %vm17598_vm2, %v1150_v15, %v1159_v22  ;;  %v1250_v48 = vrot.slane %v12121_v38, 2  ;;  %v1252_v49 = vrot.slane %v12122_v39, 2  ;;  %s17698_s23 = smov 60   ;;  %s17699_s29 = smov 64  }
  0x4c   : > { %v1169_v40 = vsel %vm17598_vm2, %v1159_v22, %v1168_v32  ;;  %v1177_v41 = vor.u32 %v1176_v35, %v1173_v33  ;;  %v1249_v51 = vrot.slane %v12123_v43, 2  ;;  %v1254_v56 = vrot.slane %v12124_v45, 2  ;;  %v12138_v45 = vld [vmem:[%s13053_s16 + $0x8] sm:$0xf8]   ;;  %s17700_s19 = smov 68   ;;  %s17703_s27 = smov 72  }
  0x4d   : > { %v1186_v42 = vor.u32 %v1185_v37, %v1182_v36  ;;  %v1253_v55 = vsel %vm17597_vm3, %v1250_v48, %v1252_v49  ;;  %v1256_v57 = vrot.slane %v12125_v46, 2  ;;  %v1321_v61 = vrot.slane %v12127_v52, 2  ;;  %s17709_s12 = smov 76   ;;  %s17714_s8 = smov 80  }
  0x4e   : > { %939 = vrot.lane.b32.xlu0 %v930_v5, %s17555_s14  ;;  %v1178_v50 = vsel %vm17598_vm2, %v1168_v32, %v1177_v41  ;;  %v1251_v58 = vsel %vm17597_vm3, %v1249_v51, %v1250_v48  ;;  %v1401_v3 = vshrl.u32 %v12133_v54, 16  ;;  %v12135_v5 = vld [vmem:[%s13053_s16 + $0x8] sm:$0xfc]   ;;  %v1255_v6 = vsel %vm17597_vm3, %v1252_v49, %v1254_v56  ;;  %v12139_v49 = vld [vmem:[%s13053_s16 + $0x10] sm:$0xff]   ;;  %s17720_s7 = smov 84   ;;  %s17724_s18 = smov 88  }
  0x4f   : > { %937 = vrot.lane.b32.xlu1 %v922_v0, %s17555_s14  ;;  %v1187_v47 = vsel %vm17598_vm2, %v1177_v41, %v1186_v42  ;;  %v1320_v0 = vrot.slane %v12126_v53, 2  ;;  %v1257_v4 = vsel %vm17597_vm3, %v1254_v56, %v1256_v57  ;;  %v1258_v7 = vrot.slane %v12128_v59, 2  ;;  %v12141_v56 = vld [vmem:[%s13053_s16 + $0x18] sm:$0xff]   ;;  %s17590_s5 = sadd.s32 4, %s13041_s24  ;;  %s17736_s30 = sadd.s32 4, %s13041_s24 }
  0x50   : > { %v1404_v8 = vshll.u32 %v12133_v54, 16  ;;  %v1323_v12 = vrot.slane %v12129_v60, 2  ;;  %v1325_v13 = vrot.slane %v12130_v62, 2  ;;  %v1327_v14 = vrot.slane %v12131_v1, 2  ;;  %v12143_v60 = vld [vmem:[%s13053_s16 + $0x28] sm:$0xff]   ;;  %p14320_p4 = scmp.lt.s32.totalorder %s17590_s5, 9 }
  0x51   : > { %v1329_v15 = vrot.slane %v12132_v63, 2  ;;  %v1403_v16 = vrot.slane %v1401_v3, 2  ;;  %v1410_v17 = vshrl.u32 %v12134_v2, 16  ;;  %v1413_v18 = vshll.u32 %v12134_v2, 16  ;;  %s17735_s5 = smov 96   ;;  %s17742_s9 = smov 100  }
  0x52   : > { %1078 = vrot.lane.b32.xlu0 %v1069_v20, %s17501_s26  ;;  %v1259_v20 = vsel %vm17597_vm3, %v1256_v57, %v1258_v7  ;;  %v1393_v21 = vshrl.u32 %v12135_v5, 16  ;;  %v1396_v23 = vshll.u32 %v12135_v5, 16  ;;  %v1406_v24 = vrot.slane %v1404_v8, 3  ;;  %v12142_v57 = vld [vmem:[%s13053_s16 + $0x20] sm:$0xff]   ;;  %s18237_s30 = smov (!%p14320_p4, %s17736_s30), 9  ;;  %s17750_s4 = sld [smem:[#allocation32_spill]] }
  0x53   : > { %1080 = vrot.lane.b32.xlu1 %v1071_v11, %s17501_s26  ;;  %v1322_v11 = vsel %vm17597_vm3, %v1320_v0, %v1321_v61  ;;  %v1419_v25 = vshrl.u32 %v12136_v9, 16  ;;  %v1422_v26 = vshll.u32 %v12136_v9, 16  ;;  %v1428_v27 = vshrl.u32 %v12137_v10, 16 }
  0x54   : > { %v1431_v28 = vshll.u32 %v12137_v10, 16  ;;  %v1326_v30 = vsel %vm17597_vm3, %v1323_v12, %v1325_v13  ;;  %v1412_v31 = vrot.slane %v1410_v17, 2  ;;  %v1324_v22 = vsel %vm17597_vm3, %v1321_v61, %v1323_v12  ;;  %v12144_v61 = vld [vmem:[%s13053_s16 + $0x30] ss:$0 sps:$4 sm:$0x77]  }
  0x55   : > { %v1395_v32 = vrot.slane %v1393_v21, 2  ;;  %v1398_v33 = vrot.slane %v1396_v23, 3  ;;  %v1421_v35 = vrot.slane %v1419_v25, 2  ;;  %v1424_v36 = vrot.slane %v1422_v26, 3 }
  0x56   : > { %1082 = vrot.lane.b32.xlu0 %v1073_v34, %s17501_s26  ;;  %v1330_v34 = vsel %vm17597_vm3, %v1327_v14, %v1329_v15  ;;  %v1430_v37 = vrot.slane %v1428_v27, 2  ;;  %v1433_v38 = vrot.slane %v1431_v28, 3  ;;  %v1407_v39 = vor.u32 %v1406_v24, %v1403_v16  ;;  %s17505_s26 = smov 28  }
  0x57   : > { %1188 = vrot.lane.b32.xlu1 %v1151_v19, %s17499_s20  ;;  %v1415_v19 = vrot.slane %v1413_v18, 3  ;;  %v1437_v41 = vshrl.u32 %v12140_v29, 16  ;;  %v1440_v42 = vshll.u32 %v12140_v29, 16  ;;  %v1328_v43 = vsel %vm17597_vm3, %v1325_v13, %v1327_v14 }
  0x58   : > { %v1434_v48 = vor.u32 %v1433_v38, %v1430_v37  ;;  %v1506_v54 = vrot.slane %v12138_v45, 3  ;;  %v1509_v63 = vrot.slane %v12141_v56, 3  ;;  %v1511_v0 = vrot.slane %v12142_v57, 3  ;;  %v12178_v56 = vld [vmem:[%s13053_s16 + $0x8] sm:$0xff]  }
  0x59   : > { %v1439_v51 = vrot.slane %v1437_v41, 2  ;;  %v1442_v52 = vrot.slane %v1440_v42, 3  ;;  %v1513_v2 = vrot.slane %v12143_v60, 3  ;;  %v1515_v3 = vrot.slane %v12144_v61, 3 }
  0x5a   : > { %1190 = vrot.lane.b32.xlu0 %v1160_v44, %s17499_s20  ;;  %v1399_v44 = vor.u32 %v1398_v33, %v1395_v32  ;;  %v1512_v5 = vsel %vm1505_vm5, %v1509_v63, %v1511_v0  ;;  %v12173_v32 = vld [vmem:[%s13053_s16] sm:$0xff]   ;;  %v12902_v38 = vmov 0  }
  0x5b   : > { %1192 = vrot.lane.b32.xlu1 %v1169_v40, %s17499_s20  ;;  %v1416_v40 = vor.u32 %v1415_v19, %v1412_v31  ;;  %v1443_v59 = vor.u32 %v1442_v52, %v1439_v51  ;;  %v1516_v10 = vsel %vm1505_vm5, %v1513_v2, %v1515_v3  ;;  %595 = vst.msk [vmem:[#allocation2] sm:$0xff] %vm594_vm6, %v12902_v38  ;;  %596 = vst.msk [vmem:[#allocation2 + $0x8] sm:$0xff] %vm594_vm6, %v12902_v38  ;;  %v12177_v52 = vld [vmem:[%s13053_s16 + $0x10] sm:$0xff]   ;;  %v12182_v3 = vld [vmem:[%s13053_s16 + $0x20] sm:$0xff]  }
  0x5c   : > { %597 = vst.msk [vmem:[#allocation2 + $0x10] sm:$0xff] %vm594_vm6, %v12902_v38  ;;  %598 = vst.msk [vmem:[#allocation2 + $0x18] sm:$0xff] %vm594_vm6, %v12902_v38 }
  0x5d   : > { %v1417_v46 = vsel %vm1391_vm4, %v1407_v39, %v1416_v40  ;;  %v1444_v1 = vsel %vm1391_vm4, %v1434_v48, %v1443_v59  ;;  %599 = vst.msk [vmem:[#allocation2 + $0x20] sm:$0xff] %vm594_vm6, %v12902_v38  ;;  %vm17532_vm6 = vcmask 326944  }
  0x5e   : > { %1194 = vrot.lane.b32.xlu0 %v1178_v50, %s17499_s20  ;;  %v1408_v50 = vsel %vm1391_vm4, %v1399_v44, %v1407_v39  ;;  %842 = vst.msk [vmem:[#allocation2] sm:$0xff] %vm841_vm7, %v12173_v32  ;;  %844 = vst.msk [vmem:[#allocation2 + $0x10] sm:$0xff] %vm841_vm7, %v12177_v52 }
  0x5f   : > { %1196 = vrot.lane.b32.xlu1 %v1187_v47, %s17499_s20  ;;  %s10842_s20 = sshll.u32 %s13151_s17, 2  ;;  %v1425_v47 = vor.u32 %v1424_v36, %v1421_v35  ;;  %s541_s17 = sadd.s32 2, %s13041_s24  ;;  %843 = vst.msk [vmem:[#allocation2 + $0x8] sm:$0xff] %vm841_vm7, %v12178_v56  ;;  %846 = vst.msk [vmem:[#allocation2 + $0x20] sm:$0xff] %vm841_vm7, %v12182_v3 }
  0x60   : > { %s13169_s25 = scalar_lea.vmem %s17680_s1, %s10842_s20  ;;  %s17507_s20 = smov 32  }
  0x61   : > { %v1435_v53 = vsel %vm1391_vm4, %v1425_v47, %v1434_v48  ;;  %v12150_v7 = vld [vmem:[%s13169_s25 + $0x8] sm:$0xff]   ;;  %v12152_v9 = vld [vmem:[%s13169_s25 + $0x10] sm:$0xff]   ;;  %v12153_v15 = vld [vmem:[%s13169_s25 + $0x18] sm:$0xff]   ;;  %p13218_p1 = scmp.lt.s32.totalorder %s541_s17, 9  ;;  %s17690_s1 = smov 28  }
  0x62   : > { %1260 = vrot.lane.b32.xlu0 %v1251_v58, %s17517_s22  ;;  %v1426_v58 = vsel %vm1391_vm4, %v1416_v40, %v1425_v47  ;;  %v12145_v12 = vld [vmem:[%s13169_s25 + $0x8] sm:$0xff]   ;;  %v1641_v14 = vshll.u32 %v12150_v7, 16  ;;  %v1649_v17 = vshll.u32 %v12152_v9, 16  ;;  %v12146_v18 = vld [vmem:[%s13169_s25] sm:$0xff]   ;;  %v12147_v21 = vld [vmem:[%s13169_s25 + $0x18] sm:$0xff]   ;;  %v1653_v25 = vshrl.u32 %v12152_v9, 16 }
  0x63   : > { %1262 = vrot.lane.b32.xlu1 %v1253_v55, %s17517_s22  ;;  %v1507_v55 = vrot.slane %v12139_v49, 3  ;;  %v12148_v23 = vld [vmem:[%s13169_s25 + $0x10] sm:$0xff]   ;;  %v1657_v28 = vshll.u32 %v12153_v15, 16  ;;  %v12155_v29 = vld [vmem:[%s13169_s25 + $0x28] ss:$0 sps:$4 sm:$0x11]  }
  0x64   : > { %v1643_v24 = vrot.slane %v1641_v14, 1  ;;  %v1651_v27 = vrot.slane %v1649_v17, 1  ;;  %v1645_v31 = vshrl.u32 %v12150_v7, 16  ;;  %v12151_v33 = vld [vmem:[%s13169_s25 + $0x20] sm:$0xff]   ;;  %v1673_v37 = vshll.u32 %v12155_v29, 16  ;;  %v12156_v41 = vld [vmem:[%s13169_s25 + $0x8] sm:$0xff]  }
  0x65   : > { %v1508_v62 = vsel %vm1505_vm5, %v1506_v54, %v1507_v55  ;;  %v1661_v40 = vshrl.u32 %v12153_v15, 16  ;;  %v12157_v42 = vld [vmem:[%s13169_s25 + $0x10] sm:$0xff]   ;;  %s18233_s17 = smov (!%p13218_p1, %s541_s17), 9  ;;  %v12159_v47 = vld [vmem:[%s13169_s25 + $0x18] sm:$0xff]   ;;  %v12160_v51 = vld [vmem:[%s13169_s25 + $0x20] sm:$0xff]  }
  0x66   : > { %1264 = vrot.lane.b32.xlu0 %v1255_v6, %s17517_s22  ;;  %v1510_v6 = vsel %vm1505_vm5, %v1507_v55, %v1509_v63  ;;  %v1647_v39 = vor.u32 %v1645_v31, %v1643_v24  ;;  %v13250_v54 = vld [vmem:[%s13169_s25 + $0xc] sm:$0xff]   ;;  %v12163_v60 = vld [vmem:[%s13169_s25 + $0x28] ss:$0 sps:$4 sm:$0x11]   ;;  %v12164_v61 = vld [vmem:[%s13169_s25 + $0x14] sm:$0xff]  }
  0x67   : > { %1266 = vrot.lane.b32.xlu1 %v1257_v4, %s17517_s22  ;;  %v12149_v4 = vld [vmem:[%s13169_s25] sm:$0xff]   ;;  %v12181_v63 = vld [vmem:[%s13053_s16 + $0x18] sm:$0xff]   ;;  %v1746_v7 = vrot.slane %v12163_v60, 1  ;;  %s17515_s16 = smov 44   ;;  %v12175_v56 = vld [vmem:[%s13169_s25 + $0xc] sm:$0xff]  }
  0x68   : > { %v1636_v8 = vshll.u32 %v12149_v4, 16  ;;  %v1634_v13 = vshrl.u32 %v12149_v4, 16  ;;  %v1652_v48 = vsel %vm886_vm1, %v1647_v39, %v1651_v27  ;;  %845 = vst.msk [vmem:[#allocation2 + $0x18] sm:$0xff] %vm841_vm7, %v12181_v63  ;;  %v12169_v9 = vld [vmem:[%s13169_s25 + $0x14] sm:$0xff]   ;;  %v12170_v17 = vld [vmem:[%s13169_s25 + $0x4] sm:$0xfe]  }
  0x69   : > { %v1883_v31 = vshll.u32 %v12170_v17, 16  ;;  %v12176_v38 = vld [vmem:[%s13169_s25 + $0x2c] ss:$0 sps:$4 sm:$0x33]   ;;  %v12174_v60 = vld [vmem:[%s13169_s25 + $0x4] sm:$0xfc]  }
  0x6a   : > { %1268 = vrot.lane.b32.xlu0 %v1259_v20, %s17517_s22  ;;  %v1638_v16 = vrot.slane %v1636_v8, 1  ;;  %v12154_v20 = vld [vmem:[%s13169_s25 + $0x20] sm:$0xff]   ;;  %v1811_v8 = vrot.slane %v12164_v61, 1  ;;  %s17547_s22 = smov 52  }
  0x6b   : > { %1331 = vrot.lane.b32.xlu1 %v1322_v11, %s17509_s21  ;;  %v1514_v11 = vsel %vm1505_vm5, %v1511_v0, %v1513_v2  ;;  %v1669_v36 = vshrl.u32 %v12154_v20, 16  ;;  %v1744_v0 = vrot.slane %v12160_v51, 1  ;;  %v12168_v2 = vld [vmem:[%s13169_s25 + $0xc] sm:$0xff]   ;;  %v1927_v51 = vshll.u32 %v12176_v38, 16 }
  0x6c   : > { %v1639_v26 = vor.u32 %v1638_v16, %v1634_v13  ;;  %v1888_v14 = vshrl.u32 %v12168_v2, 16  ;;  %v1891_v15 = vshll.u32 %v12168_v2, 16  ;;  %v12180_v2 = vld [vmem:[%s13169_s25 + $0x1c] sm:$0xff]  }
  0x6e   : > { %1333 = vrot.lane.b32.xlu0 %v1324_v22, %s17509_s21  ;;  %v1644_v19 = vsel %vm886_vm1, %v1639_v26, %v1643_v24  ;;  %v1659_v22 = vrot.slane %v1657_v28, 1  ;;  %v1890_v29 = vrot.slane %v1888_v14, 1 }
  0x6f   : > { %1335 = vrot.lane.b32.xlu1 %v1326_v30, %s17509_s21  ;;  %v1665_v30 = vshll.u32 %v12154_v20, 16  ;;  %v1900_v20 = vshll.u32 %v12169_v9, 16 }
  0x70   : > { %v1663_v49 = vor.u32 %v1661_v40, %v1659_v22 }
  0x71   : > { %v1667_v35 = vrot.slane %v1665_v30, 1  ;;  %v1880_v30 = vshrl.u32 %v12170_v17, 16  ;;  %v1902_v32 = vrot.slane %v1900_v20, 2 }
  0x72   : > { %1337 = vrot.lane.b32.xlu0 %v1328_v43, %s17509_s21  ;;  %v12158_v43 = vld [vmem:[%s13169_s25] sm:$0xfe]  }
  0x73   : > { %1339 = vrot.lane.b32.xlu1 %v1330_v34, %s17509_s21  ;;  %v1655_v34 = vor.u32 %v1653_v25, %v1651_v27  ;;  %s17511_s21 = smov 40   ;;  %v1671_v45 = vor.u32 %v1669_v36, %v1667_v35  ;;  %v1737_v55 = vrot.slane %v12158_v43, 1  ;;  %v1668_v59 = vsel %vm886_vm1, %v1663_v49, %v1667_v35 }
  0x74   : > { %v1747_v25 = vsel %vm991_vm0, %v1744_v0, %v1746_v7  ;;  %v1882_v40 = vrot.slane %v1880_v30, 1  ;;  %v12193_v30 = vld [vmem:[%s13169_s25 + $0x18] sm:$0xff]  }
  0x75   : > { %v1660_v44 = vsel %vm886_vm1, %v1655_v34, %v1659_v22 }
  0x76   : > { %1445 = vrot.lane.b32.xlu0 %v1408_v50, %s17505_s26  ;;  %v1738_v50 = vrot.slane %v12156_v41, 1  ;;  %v1885_v41 = vrot.slane %v1883_v31, 2 }
  0x77   : > { %1447 = vrot.lane.b32.xlu1 %v1417_v46, %s17505_s26  ;;  %v1675_v46 = vrot.slane %v1673_v37, 1 }
  0x79   : > { %v1676_v57 = vsel %vm886_vm1, %v1671_v45, %v1675_v46 }
  0x7a   : > { %1449 = vrot.lane.b32.xlu0 %v1426_v58, %s17505_s26  ;;  %v12161_v58 = vld [vmem:[%s13169_s25 + $0x4] sm:$0xfe]  }
  0x7b   : > { %1451 = vrot.lane.b32.xlu1 %v1435_v53, %s17505_s26  ;;  %v1740_v53 = vrot.slane %v12157_v42, 1 }
  0x7d   : > { %v1741_v4 = vsel %vm991_vm0, %v1738_v50, %v1740_v53 }
  0x7e   : > { %1453 = vrot.lane.b32.xlu0 %v1444_v1, %s17505_s26  ;;  %s17513_s26 = smov 36   ;;  %v1809_v1 = vrot.slane %v13250_v54, 1  ;;  %v1886_v54 = vor.u32 %v1885_v41, %v1882_v40 }
  0x7f   : > { %1517 = vrot.lane.b32.xlu1 %v1508_v62, %s17507_s20  ;;  %v1742_v62 = vrot.slane %v12159_v47, 1 }
  0x80   : > { %v1812_v39 = vsel %vm991_vm0, %v1809_v1, %v1811_v8 }
  0x81   : > { %v1745_v13 = vsel %vm991_vm0, %v1742_v62, %v1744_v0  ;;  %v1743_v16 = vsel %vm991_vm0, %v1740_v53, %v1742_v62  ;;  %v1929_v62 = vrot.slane %v1927_v51, 2  ;;  %v12196_v51 = vld [vmem:[%s13169_s25 + $0x30] ss:$0 sps:$4 sm:$0x77]  }
  0x82   : > { %1519 = vrot.lane.b32.xlu0 %v1510_v6, %s17507_s20  ;;  %v1808_v6 = vrot.slane %v12161_v58, 1 }
  0x83   : > { %1521 = vrot.lane.b32.xlu1 %v1512_v5, %s17507_s20  ;;  %v1739_v5 = vsel %vm991_vm0, %v1737_v55, %v1738_v50  ;;  %v1924_v50 = vshrl.u32 %v12176_v38, 16 }
  0x84   : > { %v1810_v24 = vsel %vm991_vm0, %v1808_v6, %v1809_v1  ;;  %v12179_v1 = vld [vmem:[%s13169_s25 + $0x14] sm:$0xff]   ;;  %v1993_v6 = vrot.slane %v12175_v56, 2 }
  0x85   : > { %v1926_v61 = vrot.slane %v1924_v50, 1 }
  0x86   : > { %1523 = vrot.lane.b32.xlu0 %v1514_v11, %s17507_s20  ;;  %v12166_v11 = vld [vmem:[%s13169_s25 + $0x24] sm:$0xff]  }
  0x87   : > { %1525 = vrot.lane.b32.xlu1 %v1516_v10, %s17507_s20  ;;  %v12165_v10 = vld [vmem:[%s13169_s25 + $0x1c] sm:$0xff]   ;;  %s11966_s20 = smul.u32 14, %s18233_s17  ;;  %v1815_v27 = vrot.slane %v12166_v11, 1  ;;  %v12184_v11 = vld [vmem:[%s13169_s25 + $0x2c] ss:$0 sps:$4 sm:$0x33]  }
  0x88   : > { %v1813_v26 = vrot.slane %v12165_v10, 1  ;;  %v1995_v10 = vrot.slane %v12179_v1, 2  ;;  %s17521_s17 = smov 60  }
  0x8a   : > { %1573 = vrot.lane.b32.xlu0 %v12146_v18, %s17513_s26  ;;  %v1897_v18 = vshrl.u32 %v12169_v9, 16  ;;  %v1814_v36 = vsel %vm991_vm0, %v1811_v8, %v1813_v26  ;;  %v1816_v53 = vsel %vm991_vm0, %v1813_v26, %v1815_v27  ;;  %v1930_v9 = vor.u32 %v1929_v62, %v1926_v61 }
  0x8b   : > { %1575 = vrot.lane.b32.xlu1 %v12145_v12, %s17513_s26  ;;  %v12167_v12 = vld [vmem:[%s13169_s25 + $0x2c] ss:$0 sps:$4 sm:$0x11]  }
  0x8c   : > { %v1817_v28 = vrot.slane %v12167_v12, 1  ;;  %v1899_v22 = vrot.slane %v1897_v18, 1  ;;  %v1997_v12 = vrot.slane %v12180_v2, 2 }
  0x8e   : > { %1577 = vrot.lane.b32.xlu0 %v12148_v23, %s17513_s26  ;;  %v12172_v23 = vld [vmem:[%s13169_s25 + $0x24] sm:$0xff]   ;;  %v1818_v42 = vsel %vm991_vm0, %v1815_v27, %v1817_v28  ;;  %v1998_v26 = vsel %vm17597_vm3, %v1995_v10, %v1997_v12  ;;  %v2001_v27 = vrot.slane %v12184_v11, 2 }
  0x8f   : > { %1579 = vrot.lane.b32.xlu1 %v12147_v21, %s17513_s26  ;;  %v12171_v21 = vld [vmem:[%s13169_s25 + $0x1c] sm:$0xff]   ;;  %v1915_v35 = vshrl.u32 %v12172_v23, 16  ;;  %v1918_v37 = vshll.u32 %v12172_v23, 16  ;;  %v12187_v23 = vld [vmem:[%s13169_s25 + $0x8] sm:$0xfc]  }
  0x90   : > { %v1909_v34 = vshll.u32 %v12171_v21, 16 }
  0x91   : > { %v1920_v49 = vrot.slane %v1918_v37, 2  ;;  %v13352_v37 = vld [vmem:[%s13169_s25 + $0x28] sm:$0xff]  }
  0x92   : > { %1581 = vrot.lane.b32.xlu0 %v12151_v33, %s17513_s26  ;;  %v1906_v33 = vshrl.u32 %v12171_v21, 16  ;;  %v1911_v46 = vrot.slane %v1909_v34, 2  ;;  %s548_s26 = sadd.s32 %s11966_s20, %s13047_s13  ;;  %v13334_v21 = vld [vmem:[%s13169_s25 + $0x18] sm:$0xff]  }
  0x93   : > { %1677 = vrot.lane.b32.xlu1 %v1644_v19, %s17511_s21  ;;  %v1893_v19 = vrot.slane %v1891_v15, 2  ;;  %v13329_v15 = vld [vmem:[%s13169_s25 + $0x10] sm:$0xff]   ;;  %v2066_v34 = vrot.slane %v13334_v21, 2 }
  0x94   : > { %v1908_v45 = vrot.slane %v1906_v33, 1  ;;  %v2064_v33 = vrot.slane %v13329_v15, 2 }
  0x95   : > { %v1894_v43 = vor.u32 %v1893_v19, %v1890_v29  ;;  %v1996_v19 = vsel %vm17597_vm3, %v1993_v6, %v1995_v10 }
  0x96   : > { %1679 = vrot.lane.b32.xlu0 %v1652_v48, %s17511_s21  ;;  %v1917_v48 = vrot.slane %v1915_v35, 1  ;;  %v1912_v58 = vor.u32 %v1911_v46, %v1908_v45  ;;  %v2063_v35 = vrot.slane %v12187_v23, 2  ;;  %v2152_v45 = vshrl.u32 %v12193_v30, 16 }
  0x97   : > { %1681 = vrot.lane.b32.xlu1 %v1660_v44, %s17511_s21  ;;  %v1903_v44 = vor.u32 %v1902_v32, %v1899_v22  ;;  %v1895_v0 = vsel %vm17598_vm2, %v1886_v54, %v1894_v43  ;;  %v12194_v22 = vld [vmem:[%s13169_s25 + $0x20] sm:$0xff]   ;;  %v2155_v46 = vshll.u32 %v12193_v30, 16  ;;  %v12192_v54 = vld [vmem:[%s13169_s25 + $0x30] ss:$0 sps:$4 sm:$0x33]  }
  0x98   : > { %v2154_v61 = vrot.slane %v2152_v45, 2  ;;  %v2072_v10 = vrot.slane %v12192_v54, 2  ;;  %v12203_v45 = vld [vmem:[%s13169_s25 + $0x30] ss:$0 sps:$4 sm:$0x77]  }
  0x99   : > { %v1904_v55 = vsel %vm17598_vm2, %v1894_v43, %v1903_v44  ;;  %v1913_v8 = vsel %vm17598_vm2, %v1903_v44, %v1912_v58  ;;  %v2157_v62 = vrot.slane %v2155_v46, 3 }
  0x9a   : > { %1683 = vrot.lane.b32.xlu0 %v1668_v59, %s17511_s21  ;;  %v1921_v59 = vor.u32 %v1920_v49, %v1917_v48  ;;  %v2161_v48 = vshrl.u32 %v12194_v22, 16  ;;  %v12195_v49 = vld [vmem:[%s13169_s25 + $0x28] sm:$0xff]  }
  0x9b   : > { %1685 = vrot.lane.b32.xlu1 %v1676_v57, %s17511_s21  ;;  %s17549_s21 = smov 48   ;;  %v2158_v15 = vor.u32 %v2157_v62, %v2154_v61 }
  0x9c   : > { %v1931_v18 = vsel %vm17598_vm2, %v1921_v59, %v1930_v9 }
  0x9e   : > { %1748 = vrot.lane.b32.xlu0 %v1739_v5, %s17515_s16  ;;  %v1992_v5 = vrot.slane %v12174_v60, 2 }
  0x9f   : > { %1750 = vrot.lane.b32.xlu1 %v1741_v4, %s17515_s16  ;;  %v1922_v4 = vsel %vm17598_vm2, %v1912_v58, %v1921_v59  ;;  %v2070_v58 = vrot.slane %v13352_v37, 2 }
  0xa0   : > { %v1994_v14 = vsel %vm17597_vm3, %v1992_v5, %v1993_v6  ;;  %v2179_v6 = vshrl.u32 %v12196_v51, 16 }
  0xa1   : > { %v2073_v21 = vsel %vm17597_vm3, %v2070_v58, %v2072_v10 }
  0xa2   : > { %1752 = vrot.lane.b32.xlu0 %v1743_v16, %s17515_s16  ;;  %v12190_v16 = vld [vmem:[%s13169_s25 + $0x8] sm:$0xfc]  }
  0xa3   : > { %1754 = vrot.lane.b32.xlu1 %v1745_v13, %s17515_s16  ;;  %v12183_v13 = vld [vmem:[%s13169_s25 + $0x24] sm:$0xff]   ;;  %v2135_v28 = vshrl.u32 %v12190_v16, 16  ;;  %v2138_v29 = vshll.u32 %v12190_v16, 16 }
  0xa5   : > { %v2137_v41 = vrot.slane %v2135_v28, 2  ;;  %v12198_v28 = vld [vmem:[%s13169_s25 + $0x18] sm:$0xff]  }
  0xa6   : > { %1756 = vrot.lane.b32.xlu0 %v1747_v25, %s17515_s16  ;;  %s10844_s16 = sshll.u32 %s548_s26, 2  ;;  %v12191_v25 = vld [vmem:[%s13169_s25 + $0x10] sm:$0xff]   ;;  %s17519_s26 = smov 64  }
  0xa7   : > { %1819 = vrot.lane.b32.xlu1 %v1810_v24, %s17549_s21  ;;  %s13313_s20 = scalar_lea.vmem %s17682_s2, %s10844_s16  ;;  %s17544_s16 = smov 56   ;;  %v1999_v24 = vrot.slane %v12183_v13, 2  ;;  %v2143_v38 = vshrl.u32 %v12191_v25, 16 }
  0xa8   : > { %v12202_v54 = vld [vmem:[%s13313_s20] sm:$0xff]   ;;  %v12207_v10 = vld [vmem:[%s13313_s20 + $0x18] sm:$0xff]  }
  0xa9   : > { %v2002_v40 = vsel %vm17597_vm3, %v1999_v24, %v2001_v27  ;;  %v2000_v44 = vsel %vm17597_vm3, %v1997_v12, %v1999_v24  ;;  %v12197_v24 = vld [vmem:[%s13169_s25 + $0x10] sm:$0xff]  }
  0xaa   : > { %1821 = vrot.lane.b32.xlu0 %v1812_v39, %s17549_s21  ;;  %v2146_v39 = vshll.u32 %v12191_v25, 16 }
  0xab   : > { %1823 = vrot.lane.b32.xlu1 %v1814_v36, %s17549_s21  ;;  %v12188_v36 = vld [vmem:[%s13169_s25 + $0x20] sm:$0xff]  }
  0xac   : > { %v13299_v47 = vpop.permute.xlu0 %1005  ;;  %v2068_v56 = vrot.slane %v12188_v36, 2 }
  0xad   : > { %v1004_v52 = vpop.permute.xlu1 %1003 }
  0xae   : > { %1825 = vrot.lane.b32.xlu0 %v1816_v53, %s17549_s21  ;;  %v2148_v53 = vrot.slane %v2146_v39, 3  ;;  %v2071_v5 = vsel %vm17597_vm3, %v2068_v56, %v2070_v58  ;;  %v2069_v9 = vsel %vm17597_vm3, %v2066_v34, %v2068_v56  ;;  %v12211_v58 = vld [vmem:[%s13313_s20 + $0x18] sm:$0xff]  }
  0xaf   : > { %1827 = vrot.lane.b32.xlu1 %v1818_v42, %s17549_s21  ;;  %v2140_v42 = vrot.slane %v2138_v29, 3  ;;  %s554_s21 = sadd.s32 3, %s13041_s24 }
  0xb0   : > { %v13306_v57 = vpop.permute.xlu0 %1009  ;;  %p557_p2 = scmp.lt.s32.totalorder %s554_s21, 9 }
  0xb1   : > { %v1008_v63 = vpop.permute.xlu1 %1007  ;;  %v2141_v1 = vor.u32 %v2140_v42, %v2137_v41 }
  0xb2   : > { %1932 = vrot.lane.b32.xlu0 %v1895_v0, %s17547_s22  ;;  %s18235_s21 = smov (!%p557_p2, %s554_s21), 9 }
  0xb3   : > { %1934 = vrot.lane.b32.xlu1 %v1904_v55, %s17547_s22  ;;  %v2067_v55 = vsel %vm17597_vm3, %v2064_v33, %v2066_v34  ;;  %v12200_v34 = vld [vmem:[%s13169_s25 + $0x20] sm:$0xff]  }
  0xb4   : > { %v1075_v3 = vpop.permute.xlu0 %1074  ;;  %v2252_v41 = vrot.slane %v12200_v34, 3 }
  0xb5   : > { %v13320_v7 = vpop.permute.xlu1 %1011 }
  0xb6   : > { %1936 = vrot.lane.b32.xlu0 %v1913_v8, %s17547_s22 }
  0xb7   : > { %1938 = vrot.lane.b32.xlu1 %v1922_v4, %s17547_s22  ;;  %v2173_v4 = vshll.u32 %v12195_v49, 16 }
  0xb8   : > { %v932_v20 = vpop.permute.xlu0 %931 }
  0xb9   : > { %v1077_v17 = vpop.permute.xlu1 %1076  ;;  %947 = vst.msk [vmem:[#allocation2] sm:$0xff] %vm17596_vm8, %v932_v20 }
  0xba   : > { %1019 = vst.msk [vmem:[#allocation2] sm:$0xff] %vm17595_vm9, %v1004_v52  ;;  %1940 = vrot.lane.b32.xlu0 %v1931_v18, %s17547_s22  ;;  %v2145_v52 = vrot.slane %v2143_v38, 2  ;;  %s17558_s22 = smov 104  }
  0xbb   : > { %2003 = vrot.lane.b32.xlu1 %v1994_v14, %s17544_s16  ;;  %1090 = vst.msk [vmem:[#allocation2] sm:$0xff] %vm17575_vm10, %v1075_v3  ;;  %v2170_v3 = vshrl.u32 %v12195_v49, 16  ;;  %v2175_v14 = vrot.slane %v2173_v4, 3  ;;  %v2398_v4 = vshll.u32 %v12211_v58, 16 }
  0xbc   : > { %v934_v32 = vpop.permute.xlu0 %933  ;;  %v2149_v2 = vor.u32 %v2148_v53, %v2145_v52  ;;  %v12210_v52 = vld [vmem:[%s13313_s20] sm:$0xff]  }
  0xbd   : > { %v936_v31 = vpop.permute.xlu1 %935  ;;  %948 = vst.msk [vmem:[#allocation2 + $0x8] sm:$0xff] %vm17596_vm8, %v934_v32  ;;  %v2172_v13 = vrot.slane %v2170_v3, 2  ;;  %v2248_v32 = vrot.slane %v12197_v24, 3  ;;  %v2377_v61 = vshll.u32 %v12210_v52, 16  ;;  %v12212_v3 = vld [vmem:[%s13313_s20 + $0x20] sm:$0xff]  }
  0xbe   : > { %949 = vst.msk [vmem:[#allocation2 + $0x10] sm:$0xff] %vm17596_vm8, %v936_v31  ;;  %2005 = vrot.lane.b32.xlu0 %v1996_v19, %s17544_s16  ;;  %v2150_v12 = vsel %vm1391_vm4, %v2141_v1, %v2149_v2  ;;  %v2159_v30 = vsel %vm1391_vm4, %v2149_v2, %v2158_v15  ;;  %v12199_v31 = vld [vmem:[%s13169_s25 + $0x8] sm:$0xf8]  }
  0xbf   : > { %1021 = vst.msk [vmem:[#allocation2 + $0x10] sm:$0xff] %vm17595_vm9, %v1008_v63  ;;  %2007 = vrot.lane.b32.xlu1 %v1998_v26, %s17544_s16  ;;  %1020 = vst.msk [vmem:[#allocation2 + $0x8] sm:$0xff] %vm17595_vm9, %v13299_v47  ;;  %v2164_v47 = vshll.u32 %v12194_v22, 16  ;;  %v2163_v63 = vrot.slane %v2161_v48, 2  ;;  %v2176_v26 = vor.u32 %v2175_v14, %v2172_v13  ;;  %v2247_v38 = vrot.slane %v12199_v31, 3  ;;  %v12208_v48 = vld [vmem:[%s13313_s20 + $0x8] sm:$0xff]  }
  0xc0   : > { %1091 = vst.msk [vmem:[#allocation2 + $0x8] sm:$0xff] %vm17575_vm10, %v1077_v17  ;;  %v940_v50 = vpop.permute.xlu0 %939  ;;  %v2181_v17 = vrot.slane %v2179_v6, 2  ;;  %v2382_v56 = vshll.u32 %v12208_v48, 16  ;;  %v2375_v6 = vshrl.u32 %v12210_v52, 16  ;;  %v2400_v14 = vrot.slane %v2398_v4, 1 }
  0xc1   : > { %v938_v43 = vpop.permute.xlu1 %937  ;;  %951 = vst.msk [vmem:[#allocation2 + $0x20] sm:$0xff] %vm17596_vm8, %v940_v50  ;;  %v2166_v0 = vrot.slane %v2164_v47, 3  ;;  %v2410_v31 = vshrl.u32 %v12212_v3, 16 }
  0xc2   : > { %950 = vst.msk [vmem:[#allocation2 + $0x18] sm:$0xff] %vm17596_vm8, %v938_v43  ;;  %2009 = vrot.lane.b32.xlu0 %v2000_v44, %s17544_s16  ;;  %v2249_v44 = vsel %vm1505_vm5, %v2247_v38, %v2248_v32  ;;  %v2384_v1 = vrot.slane %v2382_v56, 1  ;;  %v12225_v56 = vld [vmem:[%s13313_s20 + $0x4] sm:$0xfe]  }
  0xc3   : > { %1022 = vst.msk [vmem:[#allocation2 + $0x18] sm:$0xff] %vm17595_vm9, %v13306_v57  ;;  %2011 = vrot.lane.b32.xlu1 %v2002_v40, %s17544_s16  ;;  %1023 = vst.msk [vmem:[#allocation2 + $0x20] sm:$0xff] %vm17595_vm9, %v13320_v7  ;;  %v2065_v57 = vsel %vm17597_vm3, %v2063_v35, %v2064_v33  ;;  %v2182_v7 = vshll.u32 %v12196_v51, 16  ;;  %v2167_v16 = vor.u32 %v2166_v0, %v2163_v63  ;;  %v2250_v33 = vrot.slane %v12198_v28, 3  ;;  %v12201_v35 = vld [vmem:[%s13169_s25 + $0x28] sm:$0xff]   ;;  %s17684_s16 = smov 8  }
  0xc4   : > { %v1079_v60 = vpop.permute.xlu0 %1078  ;;  %v2254_v42 = vrot.slane %v12201_v35, 3  ;;  %v2256_v51 = vrot.slane %v12203_v45, 3  ;;  %v12205_v63 = vld [vmem:[%s13313_s20 + $0x8] sm:$0xff]   ;;  %v2386_v0 = vshrl.u32 %v12208_v48, 16  ;;  %v2621_v4 = vshrl.u32 %v12225_v56, 16 }
  0xc5   : > { %v1081_v59 = vpop.permute.xlu1 %1080  ;;  %1092 = vst.msk [vmem:[#allocation2 + $0x10] sm:$0xff] %vm17575_vm10, %v1079_v60  ;;  %v2184_v18 = vrot.slane %v2182_v7, 3  ;;  %v2168_v25 = vsel %vm1391_vm4, %v2158_v15, %v2167_v16  ;;  %v2177_v37 = vsel %vm1391_vm4, %v2167_v16, %v2176_v26  ;;  %v2251_v40 = vsel %vm1505_vm5, %v2248_v32, %v2250_v33  ;;  %v12204_v60 = vld [vmem:[%s13313_s20 + $0x10] sm:$0xff]   ;;  %v12219_v45 = vld [vmem:[%s13313_s20 + $0x28] ss:$0 sps:$4 sm:$0x11]  }
  0xc6   : > { %1093 = vst.msk [vmem:[#allocation2 + $0x18] sm:$0xff] %vm17575_vm10, %v1081_v59  ;;  %2074 = vrot.lane.b32.xlu0 %v2065_v57, %s17521_s17  ;;  %v2255_v49 = vsel %vm1505_vm5, %v2252_v41, %v2254_v42  ;;  %v2253_v47 = vsel %vm1505_vm5, %v2250_v33, %v2252_v41  ;;  %v2257_v57 = vsel %vm1505_vm5, %v2254_v42, %v2256_v51  ;;  %v2379_v7 = vrot.slane %v2377_v61, 1  ;;  %v12216_v32 = vld [vmem:[%s13313_s20 + $0x10] sm:$0xff]   ;;  %v12217_v33 = vld [vmem:[%s13313_s20 + $0x18] sm:$0xff]   ;;  %v12218_v42 = vld [vmem:[%s13313_s20 + $0x20] sm:$0xff]  }
  0xc7   : > { %2076 = vrot.lane.b32.xlu1 %v2067_v55, %s17521_s17  ;;  %v2185_v27 = vor.u32 %v2184_v18, %v2181_v17  ;;  %v12209_v55 = vld [vmem:[%s13313_s20 + $0x10] sm:$0xff]   ;;  %v2388_v13 = vor.u32 %v2386_v0, %v2384_v1  ;;  %v2406_v15 = vshll.u32 %v12212_v3, 16 }
  0xc8   : > { %v1083_v11 = vpop.permute.xlu0 %1082  ;;  %v2390_v2 = vshll.u32 %v12209_v55, 16  ;;  %v2380_v17 = vor.u32 %v2379_v7, %v2375_v6  ;;  %v2394_v18 = vshrl.u32 %v12209_v55, 16  ;;  %v12226_v51 = vld [vmem:[%s13313_s20 + $0xc] sm:$0xff]   ;;  %v13475_v55 = vld [vmem:[%s13313_s20 + $0x1c] sm:$0xff]  }
  0xc9   : > { %v1189_v8 = vpop.permute.xlu1 %1188  ;;  %1094 = vst.msk [vmem:[#allocation2 + $0x20] sm:$0xff] %vm17575_vm10, %v1083_v11  ;;  %v2186_v22 = vsel %vm1391_vm4, %v2176_v26, %v2185_v27  ;;  %v12213_v26 = vld [vmem:[%s13313_s20] sm:$0xfe]   ;;  %v12214_v27 = vld [vmem:[%s13313_s20 + $0x8] sm:$0xff]  }
  0xca   : > { %1204 = vst.msk [vmem:[#allocation2] sm:$0xff] %vm17574_vm11, %v1189_v8  ;;  %2078 = vrot.lane.b32.xlu0 %v2069_v9, %s17521_s17  ;;  %v12206_v9 = vld [vmem:[%s13313_s20 + $0x20] sm:$0xff]   ;;  %v2392_v11 = vrot.slane %v2390_v2, 1  ;;  %v2478_v35 = vrot.slane %v12213_v26, 1 }
  0xcb   : > { %2080 = vrot.lane.b32.xlu1 %v2071_v5, %s17521_s17 }
  0xcc   : > { %v1191_v23 = vpop.permute.xlu0 %1190 }
  0xcd   : > { %v1193_v20 = vpop.permute.xlu1 %1192  ;;  %1205 = vst.msk [vmem:[#allocation2 + $0x8] sm:$0xff] %vm17574_vm11, %v1191_v23  ;;  %v2393_v23 = vsel %vm886_vm1, %v2388_v13, %v2392_v11 }
  0xce   : > { %1206 = vst.msk [vmem:[#allocation2 + $0x10] sm:$0xff] %vm17574_vm11, %v1193_v20  ;;  %2082 = vrot.lane.b32.xlu0 %v2073_v21, %s17521_s17  ;;  %s17523_s17 = smov 72   ;;  %v12215_v20 = vld [vmem:[%s13313_s20 + $0x28] ss:$0 sps:$4 sm:$0x11]  }
  0xcf   : > { %2187 = vrot.lane.b32.xlu1 %v2150_v12, %s17519_s26  ;;  %v2402_v12 = vshrl.u32 %v12211_v58, 16 }
  0xd0   : > { %v1195_v19 = vpop.permute.xlu0 %1194 }
  0xd1   : > { %v1197_v29 = vpop.permute.xlu1 %1196  ;;  %1207 = vst.msk [vmem:[#allocation2 + $0x18] sm:$0xff] %vm17574_vm11, %v1195_v19  ;;  %v2404_v24 = vor.u32 %v2402_v12, %v2400_v14  ;;  %v2414_v19 = vshll.u32 %v12215_v20, 16  ;;  %v12230_v20 = vld [vmem:[%s13313_s20 + $0x24] sm:$0xff]  }
  0xd2   : > { %1208 = vst.msk [vmem:[#allocation2 + $0x20] sm:$0xff] %vm17574_vm11, %v1197_v29  ;;  %2189 = vrot.lane.b32.xlu0 %v2159_v30, %s17519_s26  ;;  %v2385_v29 = vsel %vm886_vm1, %v2380_v17, %v2384_v1  ;;  %v2396_v30 = vor.u32 %v2394_v18, %v2392_v11  ;;  %v2632_v1 = vshll.u32 %v12226_v51, 16 }
  0xd3   : > { %2191 = vrot.lane.b32.xlu1 %v2168_v25, %s17519_s26  ;;  %v2408_v25 = vrot.slane %v2406_v15, 1 }
  0xd4   : > { %v1261_v39 = vpop.permute.xlu0 %1260  ;;  %v2401_v38 = vsel %vm886_vm1, %v2396_v30, %v2400_v14  ;;  %v2634_v18 = vrot.slane %v2632_v1, 2 }
  0xd5   : > { %v1263_v36 = vpop.permute.xlu1 %1262  ;;  %1276 = vst.msk [vmem:[#allocation2] sm:$0xff] %vm17577_vm12, %v1261_v39  ;;  %v2409_v34 = vsel %vm886_vm1, %v2404_v24, %v2408_v25  ;;  %v2412_v39 = vor.u32 %v2410_v31, %v2408_v25  ;;  %v12227_v24 = vld [vmem:[%s13313_s20 + $0x2c] ss:$0 sps:$4 sm:$0x11]  }
  0xd6   : > { %1277 = vst.msk [vmem:[#allocation2 + $0x8] sm:$0xff] %vm17577_vm12, %v1263_v36  ;;  %2193 = vrot.lane.b32.xlu0 %v2177_v37, %s17519_s26  ;;  %v2479_v36 = vrot.slane %v12214_v27, 1 }
  0xd7   : > { %2195 = vrot.lane.b32.xlu1 %v2186_v22, %s17519_s26  ;;  %s17525_s26 = smov 68  }
  0xd8   : > { %v1265_v46 = vpop.permute.xlu0 %1264 }
  0xd9   : > { %v1267_v43 = vpop.permute.xlu1 %1266  ;;  %1278 = vst.msk [vmem:[#allocation2 + $0x10] sm:$0xff] %vm17577_vm12, %v1265_v46  ;;  %v2480_v46 = vsel %vm991_vm0, %v2478_v35, %v2479_v36 }
  0xda   : > { %1279 = vst.msk [vmem:[#allocation2 + $0x18] sm:$0xff] %vm17577_vm12, %v1267_v43  ;;  %2258 = vrot.lane.b32.xlu0 %v2249_v44, %s17525_s26  ;;  %v2481_v43 = vrot.slane %v12216_v32, 1  ;;  %v2483_v44 = vrot.slane %v12217_v33, 1  ;;  %v2659_v32 = vshll.u32 %v12230_v20, 16 }
  0xdb   : > { %2260 = vrot.lane.b32.xlu1 %v2251_v40, %s17525_s26  ;;  %v2416_v40 = vrot.slane %v2414_v19, 1 }
  0xdc   : > { %v1269_v53 = vpop.permute.xlu0 %1268  ;;  %v2484_v58 = vsel %vm991_vm0, %v2481_v43, %v2483_v44  ;;  %v2482_v61 = vsel %vm991_vm0, %v2479_v36, %v2481_v43 }
  0xdd   : > { %v1332_v50 = vpop.permute.xlu1 %1331  ;;  %1280 = vst.msk [vmem:[#allocation2 + $0x20] sm:$0xff] %vm17577_vm12, %v1269_v53  ;;  %v2485_v53 = vrot.slane %v12218_v42, 1  ;;  %v2558_v42 = vrot.slane %v12227_v24, 1  ;;  %v12245_v24 = vld [vmem:[%s13313_s20 + $0x18] sm:$0xff]  }
  0xde   : > { %1347 = vst.msk [vmem:[#allocation2] sm:$0xff] %vm17553_vm13, %v1332_v50  ;;  %2262 = vrot.lane.b32.xlu0 %v2253_v47, %s17525_s26  ;;  %v12220_v50 = vld [vmem:[%s13313_s20 + $0xc] sm:$0xff]   ;;  %v13469_v47 = vld [vmem:[%s13313_s20 + $0x14] sm:$0xff]  }
  0xdf   : > { %2264 = vrot.lane.b32.xlu1 %v2255_v49, %s17525_s26  ;;  %v2417_v49 = vsel %vm886_vm1, %v2412_v39, %v2416_v40  ;;  %v2550_v2 = vrot.slane %v12220_v50, 1  ;;  %v2552_v3 = vrot.slane %v13469_v47, 1  ;;  %v2486_v12 = vsel %vm991_vm0, %v2483_v44, %v2485_v53 }
  0xe0   : > { %v1334_v62 = vpop.permute.xlu0 %1333 }
  0xe1   : > { %v1336_v59 = vpop.permute.xlu1 %1335  ;;  %1348 = vst.msk [vmem:[#allocation2 + $0x8] sm:$0xff] %vm17553_vm13, %v1334_v62  ;;  %v2629_v62 = vshrl.u32 %v12226_v51, 16  ;;  %v2553_v25 = vsel %vm991_vm0, %v2550_v2, %v2552_v3 }
  0xe2   : > { %1349 = vst.msk [vmem:[#allocation2 + $0x10] sm:$0xff] %vm17553_vm13, %v1336_v59  ;;  %2266 = vrot.lane.b32.xlu0 %v2257_v57, %s17525_s26  ;;  %s17530_s26 = smov 80   ;;  %v2487_v59 = vrot.slane %v12219_v45, 1  ;;  %v13483_v57 = vld [vmem:[%s13313_s20 + $0x24] sm:$0xff]   ;;  %v2661_v45 = vrot.slane %v2659_v32, 2 }
  0xe3   : > { %2314 = vrot.lane.b32.xlu1 %v12202_v54, %s17523_s17  ;;  %v12222_v54 = vld [vmem:[%s13313_s20 + $0x4] sm:$0xfe]   ;;  %v2631_v13 = vrot.slane %v2629_v62, 1 }
  0xe4   : > { %v1338_v8 = vpop.permute.xlu0 %1337  ;;  %v2488_v6 = vsel %vm991_vm0, %v2485_v53, %v2487_v59  ;;  %v2549_v7 = vrot.slane %v12222_v54, 1  ;;  %v12232_v54 = vld [vmem:[%s13313_s20 + $0xc] sm:$0xff]   ;;  %v12233_v59 = vld [vmem:[%s13313_s20 + $0x14] sm:$0xff]  }
  0xe5   : > { %v1340_v5 = vpop.permute.xlu1 %1339  ;;  %1350 = vst.msk [vmem:[#allocation2 + $0x18] sm:$0xff] %vm17553_vm13, %v1338_v8  ;;  %v2554_v8 = vrot.slane %v13475_v55, 1  ;;  %v12246_v32 = vld [vmem:[%s13313_s20 + $0x8] sm:$0xfc]  }
  0xe6   : > { %1351 = vst.msk [vmem:[#allocation2 + $0x20] sm:$0xff] %vm17553_vm13, %v1340_v5  ;;  %2316 = vrot.lane.b32.xlu0 %v12205_v63, %s17523_s17  ;;  %v12228_v63 = vld [vmem:[%s13313_s20 + $0x14] sm:$0xff]   ;;  %v2624_v5 = vshll.u32 %v12225_v56, 16  ;;  %vm17557_vm13 = vcmask 589344  }
  0xe7   : > { %2318 = vrot.lane.b32.xlu1 %v12204_v60, %s17523_s17  ;;  %v2638_v14 = vshrl.u32 %v12228_v63, 16  ;;  %v2641_v15 = vshll.u32 %v12228_v63, 16  ;;  %v12235_v63 = vld [vmem:[%s13313_s20 + $0x1c] sm:$0xff]  }
  0xe8   : > { %v1446_v21 = vpop.permute.xlu0 %1445 }
  0xe9   : > { %v1448_v16 = vpop.permute.xlu1 %1447  ;;  %1461 = vst.msk [vmem:[#allocation2] sm:$0xff] %vm17533_vm14, %v1446_v21  ;;  %v2623_v21 = vrot.slane %v2621_v4, 1  ;;  %v2640_v30 = vrot.slane %v2638_v14, 1  ;;  %v2643_v31 = vrot.slane %v2641_v15, 2  ;;  %v12244_v15 = vld [vmem:[%s13313_s20 + $0x10] sm:$0xff]  }
  0xea   : > { %1462 = vst.msk [vmem:[#allocation2 + $0x8] sm:$0xff] %vm17533_vm14, %v1448_v16  ;;  %2320 = vrot.lane.b32.xlu0 %v12207_v10, %s17523_s17  ;;  %v12229_v10 = vld [vmem:[%s13313_s20 + $0x1c] sm:$0xff]   ;;  %v12231_v16 = vld [vmem:[%s13313_s20 + $0x2c] ss:$0 sps:$4 sm:$0x33]  }
  0xeb   : > { %2322 = vrot.lane.b32.xlu1 %v12206_v9, %s17523_s17  ;;  %s17528_s17 = smov 76   ;;  %v2556_v9 = vrot.slane %v13483_v57, 1  ;;  %v2647_v26 = vshrl.u32 %v12229_v10, 16  ;;  %v2650_v27 = vshll.u32 %v12229_v10, 16  ;;  %v2668_v35 = vshll.u32 %v12231_v16, 16  ;;  %v13538_v10 = vld [vmem:[%s13313_s20 + $0x10] sm:$0xff]  }
  0xec   : > { %v1450_v22 = vpop.permute.xlu0 %1449  ;;  %v2644_v50 = vor.u32 %v2643_v31, %v2640_v30  ;;  %v12239_v14 = vld [vmem:[%s13313_s20 + $0x2c] ss:$0 sps:$4 sm:$0x33]  }
  0xed   : > { %v1452_v28 = vpop.permute.xlu1 %1451  ;;  %1463 = vst.msk [vmem:[#allocation2 + $0x10] sm:$0xff] %vm17533_vm14, %v1450_v22  ;;  %v2656_v22 = vshrl.u32 %v12230_v20, 16  ;;  %v2557_v33 = vsel %vm991_vm0, %v2554_v8, %v2556_v9  ;;  %v2652_v39 = vrot.slane %v2650_v27, 2 }
  0xee   : > { %1464 = vst.msk [vmem:[#allocation2 + $0x18] sm:$0xff] %vm17533_vm14, %v1452_v28  ;;  %2418 = vrot.lane.b32.xlu0 %v2385_v29, %s17528_s17  ;;  %v2551_v29 = vsel %vm991_vm0, %v2549_v7, %v2550_v2  ;;  %v2734_v2 = vrot.slane %v12232_v54, 2 }
  0xef   : > { %2420 = vrot.lane.b32.xlu1 %v2393_v23, %s17528_s17  ;;  %v2626_v23 = vrot.slane %v2624_v5, 2  ;;  %v2658_v44 = vrot.slane %v2656_v22, 1 }
  0xf0   : > { %v1454_v41 = vpop.permute.xlu0 %1453 }
  0xf1   : > { %v1518_v37 = vpop.permute.xlu1 %1517  ;;  %1465 = vst.msk [vmem:[#allocation2 + $0x20] sm:$0xff] %vm17533_vm14, %v1454_v41  ;;  %v2627_v36 = vor.u32 %v2626_v23, %v2623_v21  ;;  %v2555_v41 = vsel %vm991_vm0, %v2552_v3, %v2554_v8  ;;  %v2662_v56 = vor.u32 %v2661_v45, %v2658_v44  ;;  %v2736_v3 = vrot.slane %v12233_v59, 2  ;;  %v12243_v23 = vld [vmem:[%s13313_s20 + $0x30] ss:$0 sps:$4 sm:$0x33]  }
  0xf2   : > { %1533 = vst.msk [vmem:[#allocation2] sm:$0xff] %vm17527_vm15, %v1518_v37  ;;  %2422 = vrot.lane.b32.xlu0 %v2401_v38, %s17528_s17  ;;  %v2635_v37 = vor.u32 %v2634_v18, %v2631_v13  ;;  %v2649_v38 = vrot.slane %v2647_v26, 1  ;;  %vm17541_vm14 = vcmask 425344   ;;  %v2738_v8 = vrot.slane %v12235_v63, 2  ;;  %v13551_v18 = vld [vmem:[%s13313_s20 + $0x20] sm:$0xff]   ;;  %v13560_v26 = vld [vmem:[%s13313_s20 + $0x28] sm:$0xff]  }
  0xf3   : > { %2424 = vrot.lane.b32.xlu1 %v2409_v34, %s17528_s17  ;;  %v2665_v34 = vshrl.u32 %v12231_v16, 16  ;;  %v2737_v13 = vsel %vm17597_vm3, %v2734_v2, %v2736_v3  ;;  %v2805_v21 = vrot.slane %v13538_v10, 2  ;;  %v2809_v22 = vrot.slane %v13551_v18, 2 }
  0xf4   : > { %v1520_v52 = vpop.permute.xlu0 %1519  ;;  %v2653_v47 = vor.u32 %v2652_v39, %v2649_v38  ;;  %v2739_v31 = vsel %vm17597_vm3, %v2736_v3, %v2738_v8  ;;  %v2811_v38 = vrot.slane %v13560_v26, 2  ;;  %v12248_v39 = vld [vmem:[%s13313_s20 + $0x28] sm:$0xff]   ;;  %v2876_v45 = vshrl.u32 %v12246_v32, 16 }
  0xf5   : > { %v1522_v48 = vpop.permute.xlu1 %1521  ;;  %1534 = vst.msk [vmem:[#allocation2 + $0x8] sm:$0xff] %vm17527_vm15, %v1520_v52  ;;  %v2559_v52 = vsel %vm991_vm0, %v2556_v9, %v2558_v42  ;;  %v12237_v9 = vld [vmem:[%s13313_s20 + $0x8] sm:$0xfc]  }
  0xf6   : > { %1535 = vst.msk [vmem:[#allocation2 + $0x10] sm:$0xff] %vm17527_vm15, %v1522_v48  ;;  %2426 = vrot.lane.b32.xlu0 %v2417_v49, %s17528_s17  ;;  %s17536_s17 = smov 84   ;;  %v2670_v48 = vrot.slane %v2668_v35, 2  ;;  %v2636_v49 = vsel %vm17598_vm2, %v2627_v36, %v2635_v37  ;;  %v2654_v55 = vsel %vm17598_vm2, %v2644_v50, %v2653_v47  ;;  %v2663_v5 = vsel %vm17598_vm2, %v2653_v47, %v2662_v56 }
  0xf7   : > { %2489 = vrot.lane.b32.xlu1 %v2480_v46, %s17530_s26  ;;  %v2667_v46 = vrot.slane %v2665_v34, 1  ;;  %v2887_v34 = vshll.u32 %v12244_v15, 16  ;;  %v2893_v35 = vshrl.u32 %v12245_v24, 16  ;;  %v2896_v36 = vshll.u32 %v12245_v24, 16 }
  0xf8   : > { %v1524_v0 = vpop.permute.xlu0 %1523 }
  0xf9   : > { %v1526_v60 = vpop.permute.xlu1 %1525  ;;  %1536 = vst.msk [vmem:[#allocation2 + $0x18] sm:$0xff] %vm17527_vm15, %v1524_v0  ;;  %v12236_v0 = vld [vmem:[%s13313_s20 + $0x24] sm:$0xff]   ;;  %v2898_v47 = vrot.slane %v2896_v36, 3 }
  0xfa   : > { %1537 = vst.msk [vmem:[#allocation2 + $0x20] sm:$0xff] %vm17527_vm15, %v1526_v60  ;;  %2491 = vrot.lane.b32.xlu0 %v2482_v61, %s17530_s26  ;;  %vm17546_vm15 = vcmask 359744   ;;  %v2645_v60 = vsel %vm17598_vm2, %v2635_v37, %v2644_v50  ;;  %v12234_v61 = vld [vmem:[%s13313_s20 + $0x4] sm:$0xfc]   ;;  %v2895_v50 = vrot.slane %v2893_v35, 2  ;;  %v13623_v35 = vld [vmem:[%s13169_s25 + $0x10] sm:$0xff]  }
  0xfb   : > { %2493 = vrot.lane.b32.xlu1 %v2484_v58, %s17530_s26  ;;  %v2671_v58 = vor.u32 %v2670_v48, %v2667_v46  ;;  %v12247_v37 = vld [vmem:[%s13313_s20 + $0x20] sm:$0xff]   ;;  %v2879_v46 = vshll.u32 %v12246_v32, 16 }
  0xfc   : > { %v1574_v17 = vpop.permute.xlu0 %1573 }
  0xfd   : > { %v1576_v11 = vpop.permute.xlu1 %1575  ;;  %1589 = vst.msk [vmem:[#allocation2] sm:$0xff] %vm17532_vm6, %v1574_v17  ;;  %v2672_v1 = vsel %vm17598_vm2, %v2662_v56, %v2671_v58  ;;  %v12251_v56 = vld [vmem:[%s13313_s20 + $0x30] ss:$0 sps:$4 sm:$0x77]  }
  0xfe   : > { %1590 = vst.msk [vmem:[#allocation2 + $0x8] sm:$0xff] %vm17532_vm6, %v1576_v11  ;;  %2495 = vrot.lane.b32.xlu0 %v2486_v12, %s17530_s26  ;;  %v2740_v11 = vrot.slane %v12236_v0, 2  ;;  %v13543_v12 = vld [vmem:[%s13313_s20 + $0x18] sm:$0xff]   ;;  %v2899_v0 = vor.u32 %v2898_v47, %v2895_v50  ;;  %v3364_v47 = vshll.u32 %v13623_v35, 16 }
  0xff   : > { %2497 = vrot.lane.b32.xlu1 %v2488_v6, %s17530_s26  ;;  %s17534_s26 = smov 88   ;;  %v2733_v6 = vrot.slane %v12234_v61, 2 }
 0x100   : > { %v1578_v19 = vpop.permute.xlu0 %1577  ;;  %v2741_v27 = vsel %vm17597_vm3, %v2738_v8, %v2740_v11  ;;  %v2920_v8 = vshrl.u32 %v12251_v56, 16 }
 0x101   : > { %v1580_v28 = vpop.permute.xlu1 %1579  ;;  %1591 = vst.msk [vmem:[#allocation2 + $0x10] sm:$0xff] %vm17532_vm6, %v1578_v19  ;;  %v2735_v17 = vsel %vm17597_vm3, %v2733_v6, %v2734_v2  ;;  %v2807_v19 = vrot.slane %v13543_v12, 2  ;;  %v2812_v6 = vsel %vm17597_vm3, %v2809_v22, %v2811_v38 }
 0x102   : > { %1592 = vst.msk [vmem:[#allocation2 + $0x18] sm:$0xff] %vm17532_vm6, %v1580_v28  ;;  %2560 = vrot.lane.b32.xlu0 %v2551_v29, %s17536_s17  ;;  %v2742_v28 = vrot.slane %v12239_v14, 2  ;;  %v2884_v29 = vshrl.u32 %v12244_v15, 16  ;;  %v12249_v15 = vld [vmem:[%s13313_s20 + $0x8] sm:$0xf8]   ;;  %v2922_v18 = vrot.slane %v2920_v8, 2 }
 0x103   : > { %2562 = vrot.lane.b32.xlu1 %v2553_v25, %s17536_s17  ;;  %v2804_v25 = vrot.slane %v12237_v9, 2  ;;  %v2810_v54 = vsel %vm17597_vm3, %v2807_v19, %v2809_v22  ;;  %v2808_v59 = vsel %vm17597_vm3, %v2805_v21, %v2807_v19  ;;  %v2923_v9 = vshll.u32 %v12251_v56, 16  ;;  %v13615_v19 = vld [vmem:[%s13313_s20 + $0x28] sm:$0xff]   ;;  %v13618_v22 = vld [vmem:[%s13169_s25] sm:$0xff]  }
 0x104   : > { %v1582_v43 = vpop.permute.xlu0 %1581  ;;  %v2886_v42 = vrot.slane %v2884_v29, 2  ;;  %v2743_v44 = vsel %vm17597_vm3, %v2740_v11, %v2742_v28  ;;  %v13594_v11 = vld [vmem:[%s13313_s20 + $0x10] sm:$0xff]  }
 0x105   : > { %v1678_v40 = vpop.permute.xlu1 %1677  ;;  %1593 = vst.msk [vmem:[#allocation2 + $0x20] sm:$0xff] %vm17532_vm6, %v1582_v43  ;;  %vm17538_vm6 = vcmask 392544   ;;  %v2989_v28 = vrot.slane %v13594_v11, 3  ;;  %v12261_v11 = vld [vmem:[%s13169_s25] sm:$0xfe]  }
 0x106   : > { %1693 = vst.msk [vmem:[#allocation2] sm:$0xff] %vm17546_vm15, %v1678_v40  ;;  %2564 = vrot.lane.b32.xlu0 %v2555_v41, %s17536_s17  ;;  %v2806_v40 = vsel %vm17597_vm3, %v2804_v25, %v2805_v21  ;;  %v2813_v41 = vrot.slane %v12243_v23, 2  ;;  %v12252_v21 = vld [vmem:[%s13313_s20 + $0x18] sm:$0xff]   ;;  %v13602_v23 = vld [vmem:[%s13169_s25 + $0x8] sm:$0xff]   ;;  %v13608_v25 = vld [vmem:[%s13313_s20 + $0x20] sm:$0xff]  }
 0x107   : > { %2566 = vrot.lane.b32.xlu1 %v2557_v33, %s17536_s17  ;;  %v3356_v36 = vshll.u32 %v13602_v23, 16  ;;  %v3360_v50 = vshrl.u32 %v13602_v23, 16 }
 0x108   : > { %v1680_v53 = vpop.permute.xlu0 %1679 }
 0x109   : > { %v1682_v51 = vpop.permute.xlu1 %1681  ;;  %1694 = vst.msk [vmem:[#allocation2 + $0x8] sm:$0xff] %vm17546_vm15, %v1680_v53  ;;  %v2911_v53 = vshrl.u32 %v12248_v39, 16 }
 0x10a   : > { %1695 = vst.msk [vmem:[#allocation2 + $0x10] sm:$0xff] %vm17546_vm15, %v1682_v51  ;;  %2568 = vrot.lane.b32.xlu0 %v2559_v52, %s17536_s17  ;;  %v2902_v51 = vshrl.u32 %v12247_v37, 16  ;;  %s17539_s17 = smov 96   ;;  %v2905_v52 = vshll.u32 %v12247_v37, 16  ;;  %v17610_v37 = vmov 0.0  }
 0x10b   : > { %2673 = vrot.lane.b32.xlu1 %v2636_v49, %s17534_s26  ;;  %v2889_v49 = vrot.slane %v2887_v34, 3  ;;  %v2913_v3 = vrot.slane %v2911_v53, 2  ;;  %v12255_v34 = vld [vmem:[%s13313_s20 + $0x30] ss:$0 sps:$4 sm:$0x77]   ;;  %11818 = vmatprep.subr.bf16.mxu0 %v17610_v37  ;;  %v13656_v53 = vld [vmem:[%s13169_s25 + $0x20] sm:$0xff]  }
 0x10c   : > { %v1684_v62 = vpop.permute.xlu0 %1683  ;;  %v2907_v2 = vrot.slane %v2905_v52, 3  ;;  %11854 = vmatprep.subr.bf16.mxu1 %v17610_v37  ;;  %v2997_v52 = vrot.slane %v12255_v34, 3 }
 0x10d   : > { %v1686_v57 = vpop.permute.xlu1 %1685  ;;  %1696 = vst.msk [vmem:[#allocation2 + $0x18] sm:$0xff] %vm17546_vm15, %v1684_v62  ;;  %v2814_v62 = vsel %vm17597_vm3, %v2811_v38, %v2813_v41  ;;  %v2890_v63 = vor.u32 %v2889_v49, %v2886_v42  ;;  %v12304_v38 = vld [vmem:[%s17683_s6] sm:$0xff]   ;;  %v12307_v42 = vld [vmem:[%s17683_s6 + $0x8] sm:$0xff]   ;;  %v3358_v49 = vrot.slane %v3356_v36, 1 }
 0x10e   : > { %1697 = vst.msk [vmem:[#allocation2 + $0x20] sm:$0xff] %vm17546_vm15, %v1686_v57  ;;  %2675 = vrot.lane.b32.xlu0 %v2645_v60, %s17534_s26  ;;  %v2878_v57 = vrot.slane %v2876_v45, 2  ;;  %v2881_v60 = vrot.slane %v2879_v46, 3  ;;  %vm17554_vm15 = vcmask 523744   ;;  %11819 = vmatpush3.bf16.msra.mxu0 %v12304_v38  ;;  %v2995_v45 = vrot.slane %v13615_v19, 3  ;;  %v12320_v19 = vld [vmem:[%s17683_s6 + $0x28] sm:$0xff]  }
 0x10f   : > { %2677 = vrot.lane.b32.xlu1 %v2654_v55, %s17534_s26  ;;  %v2914_v55 = vshll.u32 %v12248_v39, 16  ;;  %v2900_v12 = vsel %vm1391_vm4, %v2890_v63, %v2899_v0  ;;  %v2993_v39 = vrot.slane %v13608_v25, 3  ;;  %v3351_v46 = vshll.u32 %v13618_v22, 16  ;;  %11820 = vmatprep.subr.bf16.mxu0 %v17610_v37  ;;  %v13700_v25 = vld [vmem:[%s13169_s25 + $0x18] sm:$0xff]  }
 0x110   : > { %v1749_v7 = vpop.permute.xlu0 %1748  ;;  %v3456_v36 = vrot.slane %v13700_v25, 1  ;;  %v13722_v38 = vld [vmem:[%s13169_s25 + $0x14] sm:$0xff]  }
 0x111   : > { %v1751_v4 = vpop.permute.xlu1 %1750  ;;  %1764 = vst.msk [vmem:[#allocation2] sm:$0xff] %vm17538_vm6, %v1749_v7  ;;  %v2882_v7 = vor.u32 %v2881_v60, %v2878_v57  ;;  %v3353_v57 = vrot.slane %v3351_v46, 1  ;;  %v2996_v8 = vsel %vm1505_vm5, %v2993_v39, %v2995_v45  ;;  %v12270_v46 = vld [vmem:[%s13169_s25 + $0x4] sm:$0xfe]  }
 0x112   : > { %1765 = vst.msk [vmem:[#allocation2 + $0x8] sm:$0xff] %vm17538_vm6, %v1751_v4  ;;  %2679 = vrot.lane.b32.xlu0 %v2663_v5, %s17534_s26  ;;  %v2916_v4 = vrot.slane %v2914_v55, 3  ;;  %11821 = vmatpush3.bf16.msra.mxu0 %v12307_v42  ;;  %v12310_v55 = vld [vmem:[%s17683_s6 + $0x10] sm:$0xff]  }
 0x113   : > { %2681 = vrot.lane.b32.xlu1 %v2672_v1, %s17534_s26  ;;  %s17542_s26 = smov 92   ;;  %v2904_v1 = vrot.slane %v2902_v51, 2  ;;  %11822 = vmatprep.subr.bf16.mxu0 %v17610_v37 }
 0x114   : > { %v1753_v20 = vpop.permute.xlu0 %1752  ;;  %v2917_v14 = vor.u32 %v2916_v4, %v2913_v3  ;;  %v3380_v4 = vshll.u32 %v13656_v53, 16 }
 0x115   : > { %v1755_v16 = vpop.permute.xlu1 %1754  ;;  %1766 = vst.msk [vmem:[#allocation2 + $0x10] sm:$0xff] %vm17538_vm6, %v1753_v20  ;;  %v2925_v20 = vrot.slane %v2923_v9, 3 }
 0x116   : > { %1767 = vst.msk [vmem:[#allocation2 + $0x18] sm:$0xff] %vm17538_vm6, %v1755_v16  ;;  %2744 = vrot.lane.b32.xlu0 %v2735_v17, %s17542_s26  ;;  %v2891_v17 = vsel %vm1391_vm4, %v2882_v7, %v2890_v63  ;;  %v3368_v63 = vshrl.u32 %v13623_v35, 16  ;;  %11823 = vmatpush3.bf16.msra.mxu0 %v12310_v55 }
 0x117   : > { %2746 = vrot.lane.b32.xlu1 %v2737_v13, %s17542_s26  ;;  %v2908_v13 = vor.u32 %v2907_v2, %v2904_v1  ;;  %v3362_v1 = vor.u32 %v3360_v50, %v3358_v49  ;;  %v2998_v2 = vsel %vm1505_vm5, %v2995_v45, %v2997_v52  ;;  %11824 = vmatprep.subr.bf16.mxu0 %v17610_v37 }
 0x118   : > { %v1757_v33 = vpop.permute.xlu0 %1756 }
 0x119   : > { %v1820_v30 = vpop.permute.xlu1 %1819  ;;  %1768 = vst.msk [vmem:[#allocation2 + $0x20] sm:$0xff] %vm17538_vm6, %v1757_v33  ;;  %vm17551_vm6 = vcmask 458144   ;;  %v2918_v26 = vsel %vm1391_vm4, %v2908_v13, %v2917_v14  ;;  %v2991_v33 = vrot.slane %v12252_v21, 3 }
 0x11a   : > { %1835 = vst.msk [vmem:[#allocation2] sm:$0xff] %vm17541_vm14, %v1820_v30  ;;  %2748 = vrot.lane.b32.xlu0 %v2739_v31, %s17542_s26  ;;  %v2909_v30 = vsel %vm1391_vm4, %v2899_v0, %v2908_v13  ;;  %v2926_v31 = vor.u32 %v2925_v20, %v2922_v18  ;;  %v13671_v0 = vld [vmem:[%s13169_s25 + $0x8] sm:$0xff]   ;;  %v13690_v13 = vld [vmem:[%s13169_s25 + $0x10] sm:$0xff]   ;;  %v12317_v18 = vld [vmem:[%s17683_s6 + $0x20] sm:$0xff]  }
 0x11b   : > { %2750 = vrot.lane.b32.xlu1 %v2741_v27, %s17542_s26  ;;  %v2988_v27 = vrot.slane %v12249_v15, 3  ;;  %v2994_v51 = vsel %vm1505_vm5, %v2991_v33, %v2993_v39  ;;  %v3382_v15 = vrot.slane %v3380_v4, 1  ;;  %v12274_v39 = vld [vmem:[%s13169_s25 + $0xc] sm:$0xff]  }
 0x11c   : > { %v1822_v48 = vpop.permute.xlu0 %1821 }
 0x11d   : > { %v1824_v43 = vpop.permute.xlu1 %1823  ;;  %1836 = vst.msk [vmem:[#allocation2 + $0x8] sm:$0xff] %vm17541_vm14, %v1822_v48  ;;  %v2990_v41 = vsel %vm1505_vm5, %v2988_v27, %v2989_v28  ;;  %v3451_v27 = vrot.slane %v12261_v11, 1 }
 0x11e   : > { %1837 = vst.msk [vmem:[#allocation2 + $0x10] sm:$0xff] %vm17541_vm14, %v1824_v43  ;;  %2752 = vrot.lane.b32.xlu0 %v2743_v44, %s17542_s26  ;;  %v2927_v44 = vsel %vm1391_vm4, %v2917_v14, %v2926_v31  ;;  %v13712_v31 = vld [vmem:[%s13169_s25 + $0xc] sm:$0xff]   ;;  %s17685_s26 = smov 12  }
 0x11f   : > { %2815 = vrot.lane.b32.xlu1 %v2806_v40, %s17539_s17  ;;  %v13635_v40 = vld [vmem:[%s13169_s25 + $0x18] sm:$0xff]   ;;  %v3522_v45 = vrot.slane %v13712_v31, 1 }
 0x120   : > { %v1826_v61 = vpop.permute.xlu0 %1825 }
 0x121   : > { %v1828_v58 = vpop.permute.xlu1 %1827  ;;  %1838 = vst.msk [vmem:[#allocation2 + $0x18] sm:$0xff] %vm17541_vm14, %v1826_v61  ;;  %v3366_v61 = vrot.slane %v3364_v47, 1  ;;  %v3524_v47 = vrot.slane %v13722_v38, 1 }
 0x122   : > { %1839 = vst.msk [vmem:[#allocation2 + $0x20] sm:$0xff] %vm17541_vm14, %v1828_v58  ;;  %2817 = vrot.lane.b32.xlu0 %v2808_v59, %s17539_s17  ;;  %vm17552_vm14 = vcmask 490944   ;;  %v2992_v58 = vsel %vm1505_vm5, %v2989_v28, %v2991_v33  ;;  %v3349_v59 = vshrl.u32 %v13618_v22, 16  ;;  %v13705_v28 = vld [vmem:[%s13169_s25 + $0x20] sm:$0xff]  }
 0x123   : > { %2819 = vrot.lane.b32.xlu1 %v2810_v54, %s17539_s17  ;;  %v3372_v54 = vshll.u32 %v13635_v40, 16  ;;  %v3370_v23 = vor.u32 %v3368_v63, %v3366_v61  ;;  %v3521_v63 = vrot.slane %v12270_v46, 1 }
 0x124   : > { %v1933_v10 = vpop.permute.xlu0 %1932  ;;  %v3354_v9 = vor.u32 %v3353_v57, %v3349_v59  ;;  %v12327_v57 = vld [vmem:[%s17683_s6 + $0x38] sm:$0xff]  }
 0x125   : > { %v1935_v5 = vpop.permute.xlu1 %1934  ;;  %1948 = vst.msk [vmem:[#allocation2] sm:$0xff] %vm17551_vm6, %v1933_v10  ;;  %v3374_v3 = vrot.slane %v3372_v54, 1  ;;  %v3603_v54 = vshll.u32 %v12274_v39, 16 }
 0x126   : > { %1949 = vst.msk [vmem:[#allocation2 + $0x8] sm:$0xff] %vm17551_vm6, %v1935_v5  ;;  %2821 = vrot.lane.b32.xlu0 %v2812_v6, %s17539_s17  ;;  %v12263_v5 = vld [vmem:[%s13169_s25 + $0x28] ss:$0 sps:$4 sm:$0x11]   ;;  %v12314_v6 = vld [vmem:[%s17683_s6 + $0x18] sm:$0xff]   ;;  %v3359_v21 = vsel %vm886_vm1, %v3354_v9, %v3358_v49 }
 0x127   : > { %2823 = vrot.lane.b32.xlu1 %v2814_v62, %s17539_s17  ;;  %s17561_s17 = smov 100   ;;  %v3376_v62 = vshrl.u32 %v13635_v40, 16  ;;  %11825 = vmatpush3.bf16.msra.mxu0 %v12314_v6  ;;  %v3375_v33 = vsel %vm886_vm1, %v3370_v23, %v3374_v3  ;;  %v3605_v4 = vrot.slane %v3603_v54, 2  ;;  %v3523_v23 = vsel %vm991_vm0, %v3521_v63, %v3522_v45  ;;  %v12282_v54 = vld [vmem:[%s13169_s25 + $0x4] sm:$0xfc]  }
 0x128   : > { %v1937_v24 = vpop.permute.xlu0 %1936  ;;  %11826 = vmatprep.subr.bf16.mxu0 %v17610_v37 }
 0x129   : > { %v1939_v16 = vpop.permute.xlu1 %1938  ;;  %1950 = vst.msk [vmem:[#allocation2 + $0x10] sm:$0xff] %vm17551_vm6, %v1937_v24  ;;  %v3378_v14 = vor.u32 %v3376_v62, %v3374_v3  ;;  %v3388_v24 = vshll.u32 %v12263_v5, 16  ;;  %v12277_v5 = vld [vmem:[%s13169_s25 + $0x1c] sm:$0xff]  }
 0x12a   : > { %1951 = vst.msk [vmem:[#allocation2 + $0x18] sm:$0xff] %vm17551_vm6, %v1939_v16  ;;  %2928 = vrot.lane.b32.xlu0 %v2891_v17, %s17561_s17  ;;  %v3452_v16 = vrot.slane %v13671_v0, 1  ;;  %v3384_v17 = vshrl.u32 %v13656_v53, 16  ;;  %v3600_v53 = vshrl.u32 %v12274_v39, 16 }
 0x12b   : > { %2930 = vrot.lane.b32.xlu1 %v2900_v12, %s17561_s17  ;;  %v3367_v12 = vsel %vm886_vm1, %v3362_v1, %v3366_v61  ;;  %v3383_v22 = vsel %vm886_vm1, %v3378_v14, %v3382_v15  ;;  %11827 = vmatpush3.bf16.msra.mxu0 %v12317_v18  ;;  %v3390_v35 = vrot.slane %v3388_v24, 1  ;;  %v13761_v1 = vld [vmem:[%s13169_s25 + $0x24] sm:$0xff]   ;;  %v12279_v14 = vld [vmem:[%s13169_s25 + $0x2c] ss:$0 sps:$4 sm:$0x33]  }
 0x12c   : > { %v1941_v32 = vpop.permute.xlu0 %1940  ;;  %v3386_v34 = vor.u32 %v3384_v17, %v3382_v15  ;;  %11828 = vmatprep.subr.bf16.mxu0 %v17610_v37  ;;  %v3602_v3 = vrot.slane %v3600_v53, 1  ;;  %v3618_v15 = vshrl.u32 %v12277_v5, 16  ;;  %v3525_v17 = vsel %vm991_vm0, %v3522_v45, %v3524_v47  ;;  %v12281_v53 = vld [vmem:[%s13169_s25 + $0x14] sm:$0xff]  }
 0x12d   : > { %v2004_v29 = vpop.permute.xlu1 %2003  ;;  %1952 = vst.msk [vmem:[#allocation2 + $0x20] sm:$0xff] %vm17551_vm6, %v1941_v32  ;;  %vm17599_vm6 = vmmov 0   ;;  %v3528_v18 = vrot.slane %v13761_v1, 1 }
 0x12e   : > { %2019 = vst.msk [vmem:[#allocation2] sm:$0xff] %vm17552_vm14, %v2004_v29  ;;  %2932 = vrot.lane.b32.xlu0 %v2909_v30, %s17561_s17  ;;  %11834 = vmatprep.mubr.msk.bf16.mxu0 %vm17599_vm6, %v17610_v37  ;;  %v3454_v29 = vrot.slane %v13690_v13, 1  ;;  %v12267_v30 = vld [vmem:[%s13169_s25 + $0x28] ss:$0 sps:$4 sm:$0x11]   ;;  %v3391_v50 = vsel %vm886_vm1, %v3386_v34, %v3390_v35  ;;  %v3620_v31 = vrot.slane %v3618_v15, 1 }
 0x12f   : > { %2934 = vrot.lane.b32.xlu1 %v2918_v26, %s17561_s17  ;;  %11870 = vmatprep.mubr.msk.bf16.mxu1 %vm17599_vm6, %v17610_v37  ;;  %v3460_v42 = vrot.slane %v12267_v30, 1  ;;  %v12278_v13 = vld [vmem:[%s13169_s25 + $0x24] sm:$0xff]  }
 0x130   : > { %v2006_v48 = vpop.permute.xlu0 %2005  ;;  %11829 = vmatpush3.bf16.msra.mxu0 %v12320_v19  ;;  %v3455_v61 = vsel %vm991_vm0, %v3452_v16, %v3454_v29  ;;  %v3630_v30 = vshll.u32 %v12278_v13, 16 }
 0x131   : > { %v2008_v43 = vpop.permute.xlu1 %2007  ;;  %2020 = vst.msk [vmem:[#allocation2 + $0x8] sm:$0xff] %vm17552_vm14, %v2006_v48  ;;  %v12324_v48 = vld [vmem:[%s17683_s6 + $0x30] sm:$0xff]   ;;  %11830 = vmatprep.subr.bf16.mxu0 %v17610_v37 }
 0x132   : > { %2021 = vst.msk [vmem:[#allocation2 + $0x10] sm:$0xff] %vm17552_vm14, %v2008_v43  ;;  %2936 = vrot.lane.b32.xlu0 %v2927_v44, %s17561_s17  ;;  %v12273_v43 = vld [vmem:[%s13169_s25 + $0x4] sm:$0xfe]   ;;  %v3453_v44 = vsel %vm991_vm0, %v3451_v27, %v3452_v16  ;;  %v3621_v16 = vshll.u32 %v12277_v5, 16  ;;  %v3632_v38 = vrot.slane %v3630_v30, 2  ;;  %s17687_s17 = smov 20  }
 0x133   : > { %2999 = vrot.lane.b32.xlu1 %v2990_v41, %s17558_s22  ;;  %v3458_v41 = vrot.slane %v13705_v28, 1  ;;  %v3592_v55 = vshrl.u32 %v12273_v43, 16  ;;  %v3595_v59 = vshll.u32 %v12273_v43, 16  ;;  %v3606_v28 = vor.u32 %v3605_v4, %v3602_v3  ;;  %v13821_v3 = vld [vmem:[%s13169_s25 + $0x10] sm:$0xff]  }
 0x134   : > { %v2010_v60 = vpop.permute.xlu0 %2009  ;;  %11831 = vmatpush3.bf16.msra.mxu0 %v12324_v48  ;;  %v3623_v19 = vrot.slane %v3621_v16, 2  ;;  %v3774_v15 = vrot.slane %v13821_v3, 2  ;;  %v13838_v16 = vld [vmem:[%s13169_s25 + $0x20] sm:$0xff]  }
 0x135   : > { %v2012_v56 = vpop.permute.xlu1 %2011  ;;  %2022 = vst.msk [vmem:[#allocation2 + $0x18] sm:$0xff] %vm17552_vm14, %v2010_v60  ;;  %11832 = vmatprep.subr.bf16.mxu0 %v17610_v37  ;;  %v3461_v0 = vsel %vm991_vm0, %v3458_v41, %v3460_v42  ;;  %v3594_v6 = vrot.slane %v3592_v55, 1  ;;  %v3459_v11 = vsel %vm991_vm0, %v3456_v36, %v3458_v41 }
 0x136   : > { %2023 = vst.msk [vmem:[#allocation2 + $0x20] sm:$0xff] %vm17552_vm14, %v2012_v56  ;;  %3001 = vrot.lane.b32.xlu0 %v2992_v58, %s17558_s22  ;;  %vm17594_vm14 = vcmask 556544   ;;  %v12276_v56 = vld [vmem:[%s13169_s25 + $0x14] sm:$0xff]   ;;  %v3457_v58 = vsel %vm991_vm0, %v3454_v29, %v3456_v36  ;;  %v3627_v29 = vshrl.u32 %v12278_v13, 16  ;;  %v3624_v43 = vor.u32 %v3623_v19, %v3620_v31 }
 0x137   : > { %3003 = vrot.lane.b32.xlu1 %v2994_v51, %s17558_s22  ;;  %v13743_v51 = vld [vmem:[%s13169_s25 + $0x1c] sm:$0xff]   ;;  %v3612_v9 = vshll.u32 %v12276_v56, 16 }
 0x138   : > { %v2075_v10 = vpop.permute.xlu0 %2074  ;;  %11833 = vmatpush3.bf16.msra.mxu0 %v12327_v57  ;;  %v3629_v42 = vrot.slane %v3627_v29, 1  ;;  %v13814_v57 = vld [vmem:[%s13169_s25 + $0x24] sm:$0xff]   ;;  %v12293_v13 = vld [vmem:[%s13169_s25 + $0x18] sm:$0xff]  }
 0x139   : > { %v2077_v7 = vpop.permute.xlu1 %2076  ;;  %2090 = vst.msk [vmem:[#allocation2] sm:$0xff] %vm17554_vm15, %v2075_v10  ;;  %11890 = vmatprep.subr.bf16.mxu0 %v17610_v37  ;;  %v3614_v25 = vrot.slane %v3612_v9, 2  ;;  %v3710_v5 = vrot.slane %v13814_v57, 2  ;;  %v12292_v9 = vld [vmem:[%s13169_s25 + $0x10] sm:$0xff]   ;;  %v3861_v29 = vshrl.u32 %v12293_v13, 16  ;;  %v3864_v31 = vshll.u32 %v12293_v13, 16 }
 0x13a   : > { %2091 = vst.msk [vmem:[#allocation2 + $0x8] sm:$0xff] %vm17554_vm15, %v2077_v7  ;;  %3005 = vrot.lane.b32.xlu0 %v2996_v8, %s17558_s22  ;;  %v3597_v7 = vrot.slane %v3595_v59, 2  ;;  %v3609_v8 = vshrl.u32 %v12276_v56, 16  ;;  %v12283_v59 = vld [vmem:[%s13169_s25 + $0x1c] sm:$0xff]  }
 0x13b   : > { %3007 = vrot.lane.b32.xlu1 %v2998_v2, %s17558_s22  ;;  %v3526_v2 = vrot.slane %v13743_v51, 1  ;;  %v3633_v51 = vor.u32 %v3632_v38, %v3629_v42  ;;  %s11967_s22 = smul.u32 14, %s18235_s21  ;;  %v3708_v4 = vrot.slane %v12283_v59, 2  ;;  %v3863_v38 = vrot.slane %v3861_v29, 2  ;;  %v12302_v29 = vld [vmem:[%s13169_s25 + $0x28] sm:$0xff]   ;;  %s17692_s21 = smov 36  }
 0x13c   : > { %v2079_v26 = vpop.permute.xlu0 %2078  ;;  %v3611_v24 = vrot.slane %v3609_v8, 1  ;;  %v3598_v27 = vor.u32 %v3597_v7, %v3594_v6  ;;  %v12285_v6 = vld [vmem:[%s13169_s25 + $0x8] sm:$0xfc]  }
 0x13d   : > { %v2081_v20 = vpop.permute.xlu1 %2080  ;;  %2092 = vst.msk [vmem:[#allocation2 + $0x10] sm:$0xff] %vm17554_vm15, %v2079_v26  ;;  %v3527_v35 = vsel %vm991_vm0, %v3524_v47, %v3526_v2  ;;  %v3634_v1 = vsel %vm17598_vm2, %v3624_v43, %v3633_v51  ;;  %v12287_v8 = vld [vmem:[%s13169_s25 + $0x2c] ss:$0 sps:$4 sm:$0x33]   ;;  %s13847_s0 = sadd.s32 %s11967_s22, %s13047_s13 }
 0x13e   : > { %2093 = vst.msk [vmem:[#allocation2 + $0x18] sm:$0xff] %vm17554_vm15, %v2081_v20  ;;  %3392 = vrot.lane.b32.xlu0 %v3359_v21, %s17555_s14  ;;  %v12275_v20 = vld [vmem:[%s13169_s25 + $0x2c] ss:$0 sps:$4 sm:$0x11]   ;;  %v3615_v41 = vor.u32 %v3614_v25, %v3611_v24  ;;  %v3852_v24 = vshrl.u32 %v12292_v9, 16  ;;  %v3855_v25 = vshll.u32 %v12292_v9, 16 }
 0x13f   : > { %3394 = vrot.lane.b32.xlu1 %v3367_v12, %s17555_s14  ;;  %v3530_v36 = vrot.slane %v12275_v20, 1  ;;  %v12291_v20 = vld [vmem:[%s13169_s25 + $0x30] ss:$0 sps:$4 sm:$0x33]   ;;  %s10846_s22 = sshll.u32 %s13847_s0, 2  ;;  %s17688_s0 = smov 24  }
 0x140   : > { %v2083_v40 = vpop.permute.xlu0 %2082  ;;  %v3625_v47 = vsel %vm17598_vm2, %v3615_v41, %v3624_v43  ;;  %v3616_v56 = vsel %vm17598_vm2, %v3606_v28, %v3615_v41  ;;  %v3857_v41 = vrot.slane %v3855_v25, 3  ;;  %s13869_s2 = scalar_lea.vmem %s17689_s3, %s10846_s22  ;;  %s17691_s22 = smov 32  }
 0x141   : > { %v2188_v32 = vpop.permute.xlu1 %2187  ;;  %2094 = vst.msk [vmem:[#allocation2 + $0x20] sm:$0xff] %vm17554_vm15, %v2083_v40  ;;  %vm17560_vm15 = vcmask 622144   ;;  %v3607_v40 = vsel %vm17598_vm2, %v3598_v27, %v3606_v28  ;;  %v3531_v48 = vsel %vm991_vm0, %v3528_v18, %v3530_v36  ;;  %v3712_v28 = vrot.slane %v12287_v8, 2  ;;  %s17693_s3 = smov 40  }
 0x142   : > { %2203 = vst.msk [vmem:[#allocation2] sm:$0xff] %vm17594_vm14, %v2188_v32  ;;  %3396 = vrot.lane.b32.xlu0 %v3375_v33, %s17555_s14  ;;  %v3639_v32 = vshll.u32 %v12279_v14, 16  ;;  %v3529_v33 = vsel %vm991_vm0, %v3526_v2, %v3528_v18  ;;  %v3703_v2 = vrot.slane %v12282_v54, 2  ;;  %v3773_v18 = vrot.slane %v12285_v6, 2 }
 0x143   : > { %3398 = vrot.lane.b32.xlu1 %v3383_v22, %s17555_s14  ;;  %v3636_v22 = vshrl.u32 %v12279_v14, 16  ;;  %v3713_v43 = vsel %vm17597_vm3, %v3710_v5, %v3712_v28 }
 0x144   : > { %v2190_v52 = vpop.permute.xlu0 %2189  ;;  %v3641_v45 = vrot.slane %v3639_v32, 2  ;;  %v3775_v32 = vsel %vm17597_vm3, %v3773_v18, %v3774_v15 }
 0x145   : > { %v2192_v49 = vpop.permute.xlu1 %2191  ;;  %2204 = vst.msk [vmem:[#allocation2 + $0x8] sm:$0xff] %vm17594_vm14, %v2190_v52 }
 0x146   : > { %2205 = vst.msk [vmem:[#allocation2 + $0x10] sm:$0xff] %vm17594_vm14, %v2192_v49  ;;  %3400 = vrot.lane.b32.xlu0 %v3391_v50, %s17555_s14  ;;  %s17686_s14 = smov 16   ;;  %v12280_v50 = vld [vmem:[%s13169_s25 + $0xc] sm:$0xff]  }
 0x147   : > { %3462 = vrot.lane.b32.xlu1 %v3453_v44, %s17684_s16  ;;  %v3638_v44 = vrot.slane %v3636_v22, 1  ;;  %v12295_v22 = vld [vmem:[%s13169_s25 + $0x20] sm:$0xff]  }
 0x148   : > { %v2194_v62 = vpop.permute.xlu0 %2193 }
 0x149   : > { %v2196_v60 = vpop.permute.xlu1 %2195  ;;  %2206 = vst.msk [vmem:[#allocation2 + $0x18] sm:$0xff] %vm17594_vm14, %v2194_v62  ;;  %v3642_v52 = vor.u32 %v3641_v45, %v3638_v44  ;;  %v3706_v62 = vrot.slane %v12281_v53, 2 }
 0x14a   : > { %2207 = vst.msk [vmem:[#allocation2 + $0x20] sm:$0xff] %vm17594_vm14, %v2196_v60  ;;  %3464 = vrot.lane.b32.xlu0 %v3455_v61, %s17684_s16  ;;  %v3704_v61 = vrot.slane %v12280_v50, 2  ;;  %v3873_v50 = vshll.u32 %v12295_v22, 16 }
 0x14b   : > { %3466 = vrot.lane.b32.xlu1 %v3457_v58, %s17684_s16  ;;  %v3643_v60 = vsel %vm17598_vm2, %v3633_v51, %v3642_v52  ;;  %v3709_v27 = vsel %vm17597_vm3, %v3706_v62, %v3708_v4 }
 0x14c   : > { %v2259_v12 = vpop.permute.xlu0 %2258  ;;  %v3707_v7 = vsel %vm17597_vm3, %v3704_v61, %v3706_v62 }
 0x14d   : > { %v2261_v10 = vpop.permute.xlu1 %2260  ;;  %2274 = vst.msk [vmem:[#allocation2] sm:$0xff] %vm17557_vm13, %v2259_v12  ;;  %v12288_v12 = vld [vmem:[%s13169_s25 + $0x18] sm:$0xff]  }
 0x14e   : > { %2275 = vst.msk [vmem:[#allocation2 + $0x8] sm:$0xff] %vm17557_vm13, %v2261_v10  ;;  %3468 = vrot.lane.b32.xlu0 %v3459_v11, %s17684_s16  ;;  %v3705_v11 = vsel %vm17597_vm3, %v3703_v2, %v3704_v61 }
 0x14f   : > { %3470 = vrot.lane.b32.xlu1 %v3461_v0, %s17684_s16 }
 0x150   : > { %v2263_v26 = vpop.permute.xlu0 %2262 }
 0x151   : > { %v2265_v21 = vpop.permute.xlu1 %2264  ;;  %2276 = vst.msk [vmem:[#allocation2 + $0x10] sm:$0xff] %vm17557_vm13, %v2263_v26 }
 0x152   : > { %2277 = vst.msk [vmem:[#allocation2 + $0x18] sm:$0xff] %vm17557_vm13, %v2265_v21  ;;  %3532 = vrot.lane.b32.xlu0 %v3523_v23, %s17685_s26  ;;  %v3711_v21 = vsel %vm17597_vm3, %v3708_v4, %v3710_v5  ;;  %v12290_v23 = vld [vmem:[%s13169_s25 + $0x28] sm:$0xff]  }
 0x153   : > { %3534 = vrot.lane.b32.xlu1 %v3525_v17, %s17685_s26  ;;  %v12294_v17 = vld [vmem:[%s13169_s25 + $0x8] sm:$0xfc]   ;;  %v3780_v36 = vrot.slane %v12290_v23, 2  ;;  %v12301_v23 = vld [vmem:[%s13169_s25 + $0x20] sm:$0xff]  }
 0x154   : > { %v2267_v39 = vpop.permute.xlu0 %2266  ;;  %v3844_v19 = vshrl.u32 %v12294_v17, 16  ;;  %v3847_v44 = vshll.u32 %v12294_v17, 16  ;;  %v12300_v17 = vld [vmem:[%s13169_s25 + $0x18] sm:$0xff]  }
 0x155   : > { %v2315_v34 = vpop.permute.xlu1 %2314  ;;  %2278 = vst.msk [vmem:[#allocation2 + $0x20] sm:$0xff] %vm17557_vm13, %v2267_v39  ;;  %vm17563_vm13 = vcmask 654944   ;;  %v3782_v39 = vrot.slane %v12291_v20, 2  ;;  %v3958_v28 = vrot.slane %v12300_v17, 3 }
 0x156   : > { %2330 = vst.msk [vmem:[#allocation2] sm:$0xff] %vm17560_vm15, %v2315_v34  ;;  %3536 = vrot.lane.b32.xlu0 %v3527_v35, %s17685_s26  ;;  %v3778_v34 = vrot.slane %v13838_v16, 2  ;;  %v12296_v35 = vld [vmem:[%s13169_s25 + $0x28] sm:$0xff]  }
 0x157   : > { %3538 = vrot.lane.b32.xlu1 %v3529_v33, %s17685_s26  ;;  %v3776_v33 = vrot.slane %v12288_v12, 2  ;;  %v3882_v51 = vshll.u32 %v12296_v35, 16  ;;  %v3783_v59 = vsel %vm17597_vm3, %v3780_v36, %v3782_v39  ;;  %v12311_v39 = vld [vmem:[%s13313_s20] sm:$0xff]  }
 0x158   : > { %v2317_v49 = vpop.permute.xlu0 %2316  ;;  %v3781_v3 = vsel %vm17597_vm3, %v3778_v34, %v3780_v36 }
 0x159   : > { %v2319_v46 = vpop.permute.xlu1 %2318  ;;  %2331 = vst.msk [vmem:[#allocation2 + $0x8] sm:$0xff] %vm17560_vm15, %v2317_v49  ;;  %v3870_v49 = vshrl.u32 %v12295_v22, 16  ;;  %v3779_v52 = vsel %vm17597_vm3, %v3776_v33, %v3778_v34  ;;  %v3777_v54 = vsel %vm17597_vm3, %v3774_v15, %v3776_v33 }
 0x15a   : > { %2332 = vst.msk [vmem:[#allocation2 + $0x10] sm:$0xff] %vm17560_vm15, %v2319_v46  ;;  %3540 = vrot.lane.b32.xlu0 %v3531_v48, %s17685_s26  ;;  %v3866_v46 = vrot.slane %v3864_v31, 3  ;;  %v3846_v48 = vrot.slane %v3844_v19, 2  ;;  %v3960_v31 = vrot.slane %v12301_v23, 3 }
 0x15b   : > { %3644 = vrot.lane.b32.xlu1 %v3607_v40, %s17686_s14  ;;  %v3854_v40 = vrot.slane %v3852_v24, 2  ;;  %v3872_v57 = vrot.slane %v3870_v49, 2  ;;  %v12303_v19 = vld [vmem:[%s13169_s25 + $0x30] ss:$0 sps:$4 sm:$0x77]   ;;  %v12305_v49 = vld [vmem:[%s13313_s20 + $0x8] sm:$0xff]  }
 0x15c   : > { %v2321_v58 = vpop.permute.xlu0 %2320  ;;  %v3867_v62 = vor.u32 %v3866_v46, %v3863_v38  ;;  %v3961_v34 = vsel %vm1505_vm5, %v3958_v28, %v3960_v31  ;;  %v3964_v36 = vrot.slane %v12303_v19, 3  ;;  %v12326_v19 = vld [vmem:[%s13313_s20 + $0x20] sm:$0xff]  }
 0x15d   : > { %v2323_v55 = vpop.permute.xlu1 %2322  ;;  %2333 = vst.msk [vmem:[#allocation2 + $0x18] sm:$0xff] %vm17560_vm15, %v2321_v58  ;;  %v3858_v61 = vor.u32 %v3857_v41, %v3854_v40 }
 0x15e   : > { %2334 = vst.msk [vmem:[#allocation2 + $0x20] sm:$0xff] %vm17560_vm15, %v2323_v55  ;;  %3646 = vrot.lane.b32.xlu0 %v3616_v56, %s17686_s14  ;;  %vm17564_vm15 = vcmask 687744   ;;  %v3849_v55 = vrot.slane %v3847_v44, 3  ;;  %v12299_v56 = vld [vmem:[%s13169_s25 + $0x30] ss:$0 sps:$4 sm:$0x77]  }
 0x15f   : > { %3648 = vrot.lane.b32.xlu1 %v3625_v47, %s17686_s14  ;;  %v3879_v47 = vshrl.u32 %v12296_v35, 16  ;;  %v3888_v4 = vshrl.u32 %v12299_v56, 16  ;;  %v3891_v5 = vshll.u32 %v12299_v56, 16  ;;  %v3868_v8 = vsel %vm1391_vm4, %v3858_v61, %v3867_v62  ;;  %v12318_v56 = vld [vmem:[%s13313_s20 + $0x20] sm:$0xff]  }
 0x160   : > { %v2419_v0 = vpop.permute.xlu0 %2418  ;;  %v3962_v35 = vrot.slane %v12302_v29, 3  ;;  %v4083_v44 = vshll.u32 %v12311_v39, 16 }
 0x161   : > { %v2421_v63 = vpop.permute.xlu1 %2420  ;;  %2434 = vst.msk [vmem:[#allocation2] sm:$0xff] %vm17563_vm13, %v2419_v0  ;;  %v3850_v0 = vor.u32 %v3849_v55, %v3846_v48  ;;  %v3893_v15 = vrot.slane %v3891_v5, 3 }
 0x162   : > { %2435 = vst.msk [vmem:[#allocation2 + $0x8] sm:$0xff] %vm17563_vm13, %v2421_v63  ;;  %3650 = vrot.lane.b32.xlu0 %v3634_v1, %s17686_s14  ;;  %v3881_v63 = vrot.slane %v3879_v47, 2  ;;  %v3884_v1 = vrot.slane %v3882_v51, 3  ;;  %v3965_v38 = vsel %vm1505_vm5, %v3962_v35, %v3964_v36  ;;  %v3963_v48 = vsel %vm1505_vm5, %v3960_v31, %v3962_v35  ;;  %v12306_v47 = vld [vmem:[%s13313_s20] sm:$0xff]   ;;  %v12325_v31 = vld [vmem:[%s13313_s20 + $0x18] sm:$0xff]  }
 0x163   : > { %3652 = vrot.lane.b32.xlu1 %v3643_v60, %s17686_s14  ;;  %v3875_v60 = vrot.slane %v3873_v50, 3  ;;  %v3859_v13 = vsel %vm1391_vm4, %v3850_v0, %v3858_v61  ;;  %v4112_v0 = vshll.u32 %v12318_v56, 16 }
 0x164   : > { %v2423_v14 = vpop.permute.xlu0 %2422 }
 0x165   : > { %v2425_v10 = vpop.permute.xlu1 %2424  ;;  %2436 = vst.msk [vmem:[#allocation2 + $0x10] sm:$0xff] %vm17563_vm13, %v2423_v14  ;;  %v3876_v9 = vor.u32 %v3875_v60, %v3872_v57  ;;  %v3890_v14 = vrot.slane %v3888_v4, 2  ;;  %v12308_v57 = vld [vmem:[%s13313_s20 + $0x18] sm:$0xff]   ;;  %v12319_v60 = vld [vmem:[%s13313_s20 + $0x28] ss:$0 sps:$4 sm:$0x11]  }
 0x166   : > { %2437 = vst.msk [vmem:[#allocation2 + $0x18] sm:$0xff] %vm17563_vm13, %v2425_v10  ;;  %3714 = vrot.lane.b32.xlu0 %v3705_v11, %s17687_s17  ;;  %v3885_v10 = vor.u32 %v3884_v1, %v3881_v63  ;;  %v12297_v11 = vld [vmem:[%s13169_s25 + $0x8] sm:$0xf8]   ;;  %v12309_v63 = vld [vmem:[%s13313_s20 + $0x10] sm:$0xff]  }
 0x167   : > { %3716 = vrot.lane.b32.xlu1 %v3707_v7, %s17687_s17  ;;  %v12298_v7 = vld [vmem:[%s13169_s25 + $0x10] sm:$0xff]   ;;  %v3955_v20 = vrot.slane %v12297_v11, 3  ;;  %v3877_v25 = vsel %vm1391_vm4, %v3867_v62, %v3876_v9 }
 0x168   : > { %v2427_v30 = vpop.permute.xlu0 %2426  ;;  %v3886_v18 = vsel %vm1391_vm4, %v3876_v9, %v3885_v10  ;;  %v4116_v9 = vshrl.u32 %v12318_v56, 16  ;;  %v12341_v56 = vld [vmem:[%s13313_s20 + $0x4] sm:$0xfe]  }
 0x169   : > { %v2490_v26 = vpop.permute.xlu1 %2489  ;;  %2438 = vst.msk [vmem:[#allocation2 + $0x20] sm:$0xff] %vm17563_vm13, %v2427_v30  ;;  %vm17565_vm13 = vcmask 720544  }
 0x16a   : > { %2505 = vst.msk [vmem:[#allocation2] sm:$0xff] %vm17564_vm15, %v2490_v26  ;;  %3718 = vrot.lane.b32.xlu0 %v3709_v27, %s17687_s17  ;;  %v3894_v26 = vor.u32 %v3893_v15, %v3890_v14  ;;  %v4120_v14 = vshll.u32 %v12319_v60, 16 }
 0x16b   : > { %3720 = vrot.lane.b32.xlu1 %v3711_v21, %s17687_s17  ;;  %v3956_v21 = vrot.slane %v12298_v7, 3  ;;  %v12313_v7 = vld [vmem:[%s13313_s20 + $0x20] sm:$0xff]  }
 0x16c   : > { %v2492_v45 = vpop.permute.xlu0 %2491 }
 0x16d   : > { %v2494_v42 = vpop.permute.xlu1 %2493  ;;  %2506 = vst.msk [vmem:[#allocation2 + $0x8] sm:$0xff] %vm17564_vm15, %v2492_v45  ;;  %v3957_v30 = vsel %vm1505_vm5, %v3955_v20, %v3956_v21  ;;  %v3959_v41 = vsel %vm1505_vm5, %v3956_v21, %v3958_v28  ;;  %v12315_v45 = vld [vmem:[%s13313_s20 + $0x10] sm:$0xff]  }
 0x16e   : > { %2507 = vst.msk [vmem:[#allocation2 + $0x10] sm:$0xff] %vm17564_vm15, %v2494_v42  ;;  %3722 = vrot.lane.b32.xlu0 %v3713_v43, %s17687_s17  ;;  %v12312_v43 = vld [vmem:[%s13313_s20 + $0x8] sm:$0xff]   ;;  %v4096_v55 = vshll.u32 %v12315_v45, 16 }
 0x16f   : > { %3784 = vrot.lane.b32.xlu1 %v3775_v32, %s17688_s0  ;;  %v3895_v32 = vsel %vm1391_vm4, %v3885_v10, %v3894_v26  ;;  %v4088_v51 = vshll.u32 %v12312_v43, 16  ;;  %v4092_v5 = vshrl.u32 %v12312_v43, 16  ;;  %v12321_v10 = vld [vmem:[%s13313_s20 + $0x8] sm:$0xff]   ;;  %v12323_v26 = vld [vmem:[%s13313_s20] sm:$0xfe]   ;;  %v4188_v43 = vrot.slane %v12325_v31, 1 }
 0x170   : > { %v2496_v58 = vpop.permute.xlu0 %2495 }
 0x171   : > { %v2498_v53 = vpop.permute.xlu1 %2497  ;;  %2508 = vst.msk [vmem:[#allocation2 + $0x18] sm:$0xff] %vm17564_vm15, %v2496_v58  ;;  %v4090_v61 = vrot.slane %v4088_v51, 1 }
 0x172   : > { %2509 = vst.msk [vmem:[#allocation2 + $0x20] sm:$0xff] %vm17564_vm15, %v2498_v53  ;;  %3786 = vrot.lane.b32.xlu0 %v3777_v54, %s17688_s0  ;;  %vm17566_vm15 = vcmask 753344   ;;  %v4081_v53 = vshrl.u32 %v12311_v39, 16  ;;  %v4085_v54 = vrot.slane %v4083_v44, 1 }
 0x173   : > { %3788 = vrot.lane.b32.xlu1 %v3779_v52, %s17688_s0  ;;  %v12316_v52 = vld [vmem:[%s13313_s20 + $0x18] sm:$0xff]  }
 0x174   : > { %v2561_v6 = vpop.permute.xlu0 %2560  ;;  %v4104_v62 = vshll.u32 %v12316_v52, 16  ;;  %v4086_v1 = vor.u32 %v4085_v54, %v4081_v53  ;;  %v4108_v17 = vshrl.u32 %v12316_v52, 16  ;;  %v12339_v52 = vld [vmem:[%s13313_s20 + $0xc] sm:$0xff]  }
 0x175   : > { %v2563_v2 = vpop.permute.xlu1 %2562  ;;  %2576 = vst.msk [vmem:[#allocation2] sm:$0xff] %vm17565_vm13, %v2561_v6 }
 0x176   : > { %2577 = vst.msk [vmem:[#allocation2 + $0x8] sm:$0xff] %vm17565_vm13, %v2563_v2  ;;  %3790 = vrot.lane.b32.xlu0 %v3781_v3, %s17688_s0  ;;  %v4098_v2 = vrot.slane %v4096_v55, 1  ;;  %v4100_v3 = vshrl.u32 %v12315_v45, 16  ;;  %v4091_v11 = vsel %vm886_vm1, %v4086_v1, %v4090_v61  ;;  %v13970_v45 = vld [vmem:[%s13313_s20 + $0x1c] sm:$0xff]   ;;  %v12340_v55 = vld [vmem:[%s13313_s20 + $0x14] sm:$0xff]  }
 0x177   : > { %3792 = vrot.lane.b32.xlu1 %v3783_v59, %s17688_s0  ;;  %v4258_v54 = vrot.slane %v13970_v45, 1  ;;  %v12345_v45 = vld [vmem:[%s13313_s20 + $0x4] sm:$0xfc]  }
 0x178   : > { %v2565_v16 = vpop.permute.xlu0 %2564 }
 0x179   : > { %v2567_v12 = vpop.permute.xlu1 %2566  ;;  %2578 = vst.msk [vmem:[#allocation2 + $0x10] sm:$0xff] %vm17565_vm13, %v2565_v16  ;;  %v4094_v16 = vor.u32 %v4092_v5, %v4090_v61  ;;  %v4324_v5 = vshrl.u32 %v12341_v56, 16 }
 0x17a   : > { %2579 = vst.msk [vmem:[#allocation2 + $0x18] sm:$0xff] %vm17565_vm13, %v2567_v12  ;;  %3896 = vrot.lane.b32.xlu0 %v3859_v13, %s17690_s1  ;;  %v4102_v12 = vor.u32 %v4100_v3, %v4098_v2  ;;  %v4114_v13 = vrot.slane %v4112_v0, 1  ;;  %v4344_v3 = vshll.u32 %v12340_v55, 16  ;;  %v12343_v0 = vld [vmem:[%s13313_s20 + $0x1c] sm:$0xff]  }
 0x17b   : > { %3898 = vrot.lane.b32.xlu1 %v3868_v8, %s17690_s1  ;;  %v4106_v8 = vrot.slane %v4104_v62, 1  ;;  %v4099_v28 = vsel %vm886_vm1, %v4094_v16, %v4098_v2  ;;  %v4332_v62 = vshrl.u32 %v12339_v52, 16  ;;  %v4341_v2 = vshrl.u32 %v12340_v55, 16 }
 0x17c   : > { %v2569_v27 = vpop.permute.xlu0 %2568  ;;  %v4118_v23 = vor.u32 %v4116_v9, %v4114_v13 }
 0x17d   : > { %v2674_v24 = vpop.permute.xlu1 %2673  ;;  %2580 = vst.msk [vmem:[#allocation2 + $0x20] sm:$0xff] %vm17565_vm13, %v2569_v27  ;;  %vm17567_vm13 = vcmask 786144   ;;  %v4107_v21 = vsel %vm886_vm1, %v4102_v12, %v4106_v8  ;;  %v4110_v29 = vor.u32 %v4108_v17, %v4106_v8  ;;  %v4343_v17 = vrot.slane %v4341_v2, 1  ;;  %v12349_v2 = vld [vmem:[%s13313_s20 + $0x1c] sm:$0xff]  }
 0x17e   : > { %2689 = vst.msk [vmem:[#allocation2] sm:$0xff] %vm17566_vm15, %v2674_v24  ;;  %3900 = vrot.lane.b32.xlu0 %v3877_v25, %s17690_s1  ;;  %v4122_v24 = vrot.slane %v4120_v14, 1  ;;  %v4184_v25 = vrot.slane %v12321_v10, 1 }
 0x17f   : > { %3902 = vrot.lane.b32.xlu1 %v3886_v18, %s17690_s1  ;;  %v12322_v18 = vld [vmem:[%s13313_s20 + $0x10] sm:$0xff]   ;;  %v4115_v39 = vsel %vm886_vm1, %v4110_v29, %v4114_v13 }
 0x180   : > { %v2676_v33 = vpop.permute.xlu0 %2675  ;;  %v4123_v35 = vsel %vm886_vm1, %v4118_v23, %v4122_v24  ;;  %v4326_v23 = vrot.slane %v4324_v5, 1 }
 0x181   : > { %v2678_v22 = vpop.permute.xlu1 %2677  ;;  %2690 = vst.msk [vmem:[#allocation2 + $0x8] sm:$0xff] %vm17566_vm15, %v2676_v33  ;;  %v13957_v33 = vld [vmem:[%s13313_s20 + $0xc] sm:$0xff]  }
 0x182   : > { %2691 = vst.msk [vmem:[#allocation2 + $0x10] sm:$0xff] %vm17566_vm15, %v2678_v22  ;;  %3904 = vrot.lane.b32.xlu0 %v3895_v32, %s17690_s1  ;;  %v12328_v32 = vld [vmem:[%s13313_s20 + $0x4] sm:$0xfe]  }
 0x183   : > { %3966 = vrot.lane.b32.xlu1 %v3957_v30, %s17691_s22  ;;  %v4186_v30 = vrot.slane %v12322_v18, 1  ;;  %v4253_v44 = vrot.slane %v12328_v32, 1  ;;  %v4346_v18 = vrot.slane %v4344_v3, 2 }
 0x184   : > { %v2680_v42 = vpop.permute.xlu0 %2679 }
 0x185   : > { %v2682_v40 = vpop.permute.xlu1 %2681  ;;  %2692 = vst.msk [vmem:[#allocation2 + $0x18] sm:$0xff] %vm17566_vm15, %v2680_v42  ;;  %v4189_v61 = vsel %vm991_vm0, %v4186_v30, %v4188_v43 }
 0x186   : > { %2693 = vst.msk [vmem:[#allocation2 + $0x20] sm:$0xff] %vm17566_vm15, %v2682_v40  ;;  %3968 = vrot.lane.b32.xlu0 %v3959_v41, %s17691_s22  ;;  %vm17568_vm15 = vcmask 818944   ;;  %v4183_v40 = vrot.slane %v12323_v26, 1  ;;  %v13964_v41 = vld [vmem:[%s13313_s20 + $0x14] sm:$0xff]  }
 0x187   : > { %3970 = vrot.lane.b32.xlu1 %v3961_v34, %s17691_s22  ;;  %v12330_v34 = vld [vmem:[%s13313_s20 + $0x28] ss:$0 sps:$4 sm:$0x11]   ;;  %v4256_v51 = vrot.slane %v13964_v41, 1 }
 0x188   : > { %v2745_v50 = vpop.permute.xlu0 %2744 }
 0x189   : > { %v2747_v46 = vpop.permute.xlu1 %2746  ;;  %2760 = vst.msk [vmem:[#allocation2] sm:$0xff] %vm17567_vm13, %v2745_v50  ;;  %v4254_v50 = vrot.slane %v13957_v33, 1  ;;  %v4259_v10 = vsel %vm991_vm0, %v4256_v51, %v4258_v54 }
 0x18a   : > { %2761 = vst.msk [vmem:[#allocation2 + $0x8] sm:$0xff] %vm17567_vm13, %v2747_v46  ;;  %3972 = vrot.lane.b32.xlu0 %v3963_v48, %s17691_s22  ;;  %v4187_v46 = vsel %vm991_vm0, %v4184_v25, %v4186_v30  ;;  %v12347_v30 = vld [vmem:[%s13313_s20 + $0x2c] ss:$0 sps:$4 sm:$0x33]  }
 0x18b   : > { %3974 = vrot.lane.b32.xlu1 %v3965_v38, %s17691_s22  ;;  %v4190_v38 = vrot.slane %v12326_v19, 1  ;;  %v4257_v29 = vsel %vm991_vm0, %v4254_v50, %v4256_v51  ;;  %v12338_v19 = vld [vmem:[%s13169_s25 + $0x10] sm:$0xff]  }
 0x18c   : > { %v2749_v59 = vpop.permute.xlu0 %2748  ;;  %v14031_v51 = vld [vmem:[%s13313_s20 + $0xc] sm:$0xff]  }
 0x18d   : > { %v2751_v58 = vpop.permute.xlu1 %2750  ;;  %2762 = vst.msk [vmem:[#allocation2 + $0x10] sm:$0xff] %vm17567_vm13, %v2749_v59  ;;  %v13987_v59 = vld [vmem:[%s13313_s20 + $0x24] sm:$0xff]  }
 0x18e   : > { %2763 = vst.msk [vmem:[#allocation2 + $0x18] sm:$0xff] %vm17567_vm13, %v2751_v58  ;;  %4021 = vrot.lane.b32.xlu0 %v12306_v47, %s17692_s21  ;;  %v4192_v47 = vrot.slane %v12330_v34, 1  ;;  %v4191_v58 = vsel %vm991_vm0, %v4188_v43, %v4190_v38  ;;  %v4260_v13 = vrot.slane %v13987_v59, 1 }
 0x18f   : > { %4023 = vrot.lane.b32.xlu1 %v12305_v49, %s17692_s21  ;;  %v4185_v49 = vsel %vm991_vm0, %v4183_v40, %v4184_v25 }
 0x190   : > { %v2753_v6 = vpop.permute.xlu0 %2752  ;;  %v4193_v9 = vsel %vm991_vm0, %v4190_v38, %v4192_v47  ;;  %v12337_v47 = vld [vmem:[%s13169_s25 + $0x18] sm:$0xff]  }
 0x191   : > { %v2816_v4 = vpop.permute.xlu1 %2815  ;;  %2764 = vst.msk [vmem:[#allocation2 + $0x20] sm:$0xff] %vm17567_vm13, %v2753_v6  ;;  %vm2943_vm13 = vcmask 851744   ;;  %v4327_v6 = vshll.u32 %v12341_v56, 16 }
 0x192   : > { %2831 = vst.msk [vmem:[#allocation2] sm:$0xff] %vm17568_vm15, %v2816_v4  ;;  %4025 = vrot.lane.b32.xlu0 %v12309_v63, %s17692_s21  ;;  %v4335_v63 = vshll.u32 %v12339_v52, 16  ;;  %v4255_v4 = vsel %vm991_vm0, %v4253_v44, %v4254_v50  ;;  %v12342_v44 = vld [vmem:[%s13169_s25 + $0x20] sm:$0xff]  }
 0x193   : > { %4027 = vrot.lane.b32.xlu1 %v12308_v57, %s17692_s21  ;;  %v12336_v57 = vld [vmem:[%s13313_s20 + $0x2c] ss:$0 sps:$4 sm:$0x11]   ;;  %v4329_v24 = vrot.slane %v4327_v6, 2 }
 0x194   : > { %v2818_v20 = vpop.permute.xlu0 %2817  ;;  %v4262_v14 = vrot.slane %v12336_v57, 1  ;;  %v4337_v16 = vrot.slane %v4335_v63, 2  ;;  %v4435_v63 = vrot.slane %v12345_v45, 2 }
 0x195   : > { %v2820_v15 = vpop.permute.xlu1 %2819  ;;  %2832 = vst.msk [vmem:[#allocation2 + $0x8] sm:$0xff] %vm17568_vm15, %v2818_v20  ;;  %v4350_v20 = vshrl.u32 %v12343_v0, 16  ;;  %v4330_v38 = vor.u32 %v4329_v24, %v4326_v23  ;;  %v12358_v24 = vld [vmem:[%s13313_s20 + $0x10] sm:$0xff]  }
 0x196   : > { %2833 = vst.msk [vmem:[#allocation2 + $0x10] sm:$0xff] %vm17568_vm15, %v2820_v15  ;;  %4029 = vrot.lane.b32.xlu0 %v12313_v7, %s17692_s21  ;;  %v12344_v7 = vld [vmem:[%s13313_s20 + $0x24] sm:$0xff]   ;;  %v4334_v15 = vrot.slane %v4332_v62, 1  ;;  %v4263_v32 = vsel %vm991_vm0, %v4260_v13, %v4262_v14  ;;  %v14066_v14 = vld [vmem:[%s13313_s20 + $0x18] sm:$0xff]  }
 0x197   : > { %4124 = vrot.lane.b32.xlu1 %v4091_v11, %s17693_s3  ;;  %v12334_v11 = vld [vmem:[%s13169_s25] sm:$0xff]   ;;  %v4359_v25 = vshrl.u32 %v12344_v7, 16  ;;  %v4362_v26 = vshll.u32 %v12344_v7, 16  ;;  %v4352_v33 = vrot.slane %v4350_v20, 1 }
 0x198   : > { %v2822_v22 = vpop.permute.xlu0 %2821  ;;  %v12350_v7 = vld [vmem:[%s13313_s20 + $0x24] sm:$0xff]  }
 0x199   : > { %v2824_v27 = vpop.permute.xlu1 %2823  ;;  %2834 = vst.msk [vmem:[#allocation2 + $0x18] sm:$0xff] %vm17568_vm15, %v2822_v22  ;;  %v12333_v22 = vld [vmem:[%s13169_s25 + $0x8] sm:$0xff]   ;;  %v4364_v40 = vrot.slane %v4362_v26, 2  ;;  %s17696_s25 = smov 52   ;;  %v4442_v23 = vrot.slane %v12350_v7, 2 }
 0x19a   : > { %2835 = vst.msk [vmem:[#allocation2 + $0x20] sm:$0xff] %vm17568_vm15, %v2824_v27  ;;  %4126 = vrot.lane.b32.xlu0 %v4099_v28, %s17693_s3  ;;  %vm3014_vm15 = vcmask 884544  }
 0x19b   : > { %4128 = vrot.lane.b32.xlu1 %v4107_v21, %s17693_s3  ;;  %v4353_v21 = vshll.u32 %v12343_v0, 16 }
 0x19c   : > { %v2929_v42 = vpop.permute.xlu0 %2928 }
 0x19d   : > { %v2931_v36 = vpop.permute.xlu1 %2930  ;;  %2944 = vst.msk [vmem:[#allocation2] sm:$0xff] %vm2943_vm13, %v2929_v42  ;;  %v4355_v34 = vrot.slane %v4353_v21, 2  ;;  %v4261_v42 = vsel %vm991_vm0, %v4258_v54, %v4260_v13  ;;  %v4440_v13 = vrot.slane %v12349_v2, 2  ;;  %v14075_v21 = vld [vmem:[%s13313_s20 + $0x28] sm:$0xff]  }
 0x19e   : > { %2945 = vst.msk [vmem:[#allocation2 + $0x8] sm:$0xff] %vm2943_vm13, %v2931_v36  ;;  %4130 = vrot.lane.b32.xlu0 %v4115_v39, %s17693_s3  ;;  %v4347_v36 = vor.u32 %v4346_v18, %v4343_v17  ;;  %v4361_v39 = vrot.slane %v4359_v25, 1  ;;  %v12354_v17 = vld [vmem:[%s13313_s20 + $0x8] sm:$0xfc]   ;;  %v14071_v18 = vld [vmem:[%s13313_s20 + $0x20] sm:$0xff]  }
 0x19f   : > { %4132 = vrot.lane.b32.xlu1 %v4123_v35, %s17693_s3  ;;  %v4338_v35 = vor.u32 %v4337_v16, %v4334_v15 }
 0x1a0   : > { %v2933_v53 = vpop.permute.xlu0 %2932  ;;  %v4365_v54 = vor.u32 %v4364_v40, %v4361_v39 }
 0x1a1   : > { %v2935_v48 = vpop.permute.xlu1 %2934  ;;  %2946 = vst.msk [vmem:[#allocation2 + $0x10] sm:$0xff] %vm2943_vm13, %v2933_v53  ;;  %v4348_v52 = vsel %vm17598_vm2, %v4338_v35, %v4347_v36  ;;  %v4356_v53 = vor.u32 %v4355_v34, %v4352_v33  ;;  %v4339_v56 = vsel %vm17598_vm2, %v4330_v38, %v4338_v35  ;;  %v12361_v33 = vld [vmem:[%s13313_s20 + $0x20] sm:$0xff]   ;;  %v4510_v35 = vrot.slane %v14071_v18, 2 }
 0x1a2   : > { %2947 = vst.msk [vmem:[#allocation2 + $0x18] sm:$0xff] %vm2943_vm13, %v2935_v48  ;;  %4194 = vrot.lane.b32.xlu0 %v4185_v49, %s17694_s15  ;;  %v4371_v48 = vshll.u32 %v12347_v30, 16  ;;  %v4443_v38 = vsel %vm17597_vm3, %v4440_v13, %v4442_v23 }
 0x1a3   : > { %4196 = vrot.lane.b32.xlu1 %v4187_v46, %s17694_s15  ;;  %v4368_v46 = vshrl.u32 %v12347_v30, 16  ;;  %v4366_v3 = vsel %vm17598_vm2, %v4356_v53, %v4365_v54  ;;  %v4508_v30 = vrot.slane %v14066_v14, 2 }
 0x1a4   : > { %v2937_v1 = vpop.permute.xlu0 %2936  ;;  %v4373_v57 = vrot.slane %v4371_v48, 2 }
 0x1a5   : > { %v3000_v60 = vpop.permute.xlu1 %2999  ;;  %2948 = vst.msk [vmem:[#allocation2 + $0x20] sm:$0xff] %vm2943_vm13, %v2937_v1  ;;  %v4370_v59 = vrot.slane %v4368_v46, 1  ;;  %v4436_v1 = vrot.slane %v14031_v51, 2 }
 0x1a6   : > { %3015 = vst.msk [vmem:[#allocation2] sm:$0xff] %vm3014_vm15, %v3000_v60  ;;  %4198 = vrot.lane.b32.xlu0 %v4189_v61, %s17694_s15  ;;  %v12348_v60 = vld [vmem:[%s13313_s20 + $0x14] sm:$0xff]  }
 0x1a7   : > { %4200 = vrot.lane.b32.xlu1 %v4191_v58, %s17694_s15  ;;  %v4374_v5 = vor.u32 %v4373_v57, %v4370_v59  ;;  %v4438_v6 = vrot.slane %v12348_v60, 2 }
 0x1a8   : > { %v3002_v12 = vpop.permute.xlu0 %3001 }
 0x1a9   : > { %v3004_v8 = vpop.permute.xlu1 %3003  ;;  %3016 = vst.msk [vmem:[#allocation2 + $0x8] sm:$0xff] %vm3014_vm15, %v3002_v12  ;;  %v4437_v12 = vsel %vm17597_vm3, %v4435_v63, %v4436_v1  ;;  %v4375_v16 = vsel %vm17598_vm2, %v4365_v54, %v4374_v5  ;;  %v12363_v54 = vld [vmem:[%s13313_s20 + $0x30] ss:$0 sps:$4 sm:$0x77]  }
 0x1aa   : > { %3017 = vst.msk [vmem:[#allocation2 + $0x10] sm:$0xff] %vm3014_vm15, %v3004_v8  ;;  %4202 = vrot.lane.b32.xlu0 %v4193_v9, %s17694_s15  ;;  %v12351_v9 = vld [vmem:[%s13313_s20 + $0x2c] ss:$0 sps:$4 sm:$0x33]  }
 0x1ab   : > { %4264 = vrot.lane.b32.xlu1 %v4255_v4, %s17695_s11  ;;  %v4357_v4 = vsel %vm17598_vm2, %v4347_v36, %v4356_v53  ;;  %v4512_v36 = vrot.slane %v14075_v21, 2  ;;  %v12362_v53 = vld [vmem:[%s13313_s20 + $0x28] sm:$0xff]  }
 0x1ac   : > { %v3006_v31 = vpop.permute.xlu0 %3005  ;;  %v4614_v2 = vshll.u32 %v12362_v53, 16 }
 0x1ad   : > { %v3008_v27 = vpop.permute.xlu1 %3007  ;;  %v3020_v28 = vld [vmem:[#allocation2] sm:$0xff]  ;;  %3018 = vst.msk [vmem:[#allocation2 + $0x18] sm:$0xff] %vm3014_vm15, %v3006_v31  ;;  %v12360_v31 = vld [vmem:[%s13313_s20 + $0x18] sm:$0xff]  }
 0x1ae   : > { %3019 = vst.msk [vmem:[#allocation2 + $0x20] sm:$0xff] %vm3014_vm15, %v3008_v27  ;;  %11835 = vmatmul.mubr.bf16.vlgmr.msra.gmra.mrb[0].mxu0 %v3020_v28  ;;  %4266 = vrot.lane.b32.xlu0 %v4257_v29, %s17695_s11  ;;  %v4441_v27 = vsel %vm17597_vm3, %v4438_v6, %v4440_v13  ;;  %v4444_v28 = vrot.slane %v12351_v9, 2  ;;  %v4593_v46 = vshrl.u32 %v12360_v31, 16  ;;  %v4596_v48 = vshll.u32 %v12360_v31, 16 }
 0x1af   : > { %3304 = vst.msk [vmem:[#allocation2] sm:$0xff] %vm841_vm7, %v12334_v11  ;;  %4268 = vrot.lane.b32.xlu1 %v4259_v10, %s17695_s11  ;;  %11838 = vmatprep.mubr.msk.bf16.mxu0 %vm17599_vm6, %v17610_v37  ;;  %v14060_v10 = vld [vmem:[%s13313_s20 + $0x10] sm:$0xff]   ;;  %v12357_v11 = vld [vmem:[%s13313_s20 + $0x8] sm:$0xfc]  }
 0x1b0   : > { %v3021_v49 = vld [vmem:[#allocation2 + $0x8] sm:$0xff]  ;;  %v3393_v50 = vpop.permute.xlu0 %3392  ;;  %v4576_v25 = vshrl.u32 %v12357_v11, 16  ;;  %v4579_v26 = vshll.u32 %v12357_v11, 16  ;;  %v4506_v29 = vrot.slane %v14060_v10, 2  ;;  %v4595_v57 = vrot.slane %v4593_v46, 2 }
 0x1b1   : > { %v3395_v41 = vpop.permute.xlu1 %3394  ;;  %v3022_v43 = vld [vmem:[#allocation2 + $0x10] sm:$0xff]  ;;  %3305 = vst.msk [vmem:[#allocation2 + $0x8] sm:$0xff] %vm841_vm7, %v12333_v22  ;;  %v4439_v22 = vsel %vm17597_vm3, %v4436_v1, %v4438_v6  ;;  %v4598_v60 = vrot.slane %v4596_v48, 3  ;;  %v4611_v1 = vshrl.u32 %v12362_v53, 16  ;;  %v12375_v48 = vld [vmem:[%s13869_s2 + $0x8] sm:$0xff]  }
 0x1b2   : > { %3306 = vst.msk [vmem:[#allocation2 + $0x10] sm:$0xff] %vm841_vm7, %v12338_v19  ;;  %4270 = vrot.lane.b32.xlu0 %v4261_v42, %s17695_s11  ;;  %v4578_v39 = vrot.slane %v4576_v25, 2  ;;  %v4581_v40 = vrot.slane %v4579_v26, 3  ;;  %v4587_v42 = vshll.u32 %v12358_v24, 16 }
 0x1b3   : > { %3407 = vst.msk [vmem:[#allocation2] sm:$0xff] %vm17596_vm8, %v3393_v50  ;;  %4272 = vrot.lane.b32.xlu1 %v4263_v32, %s17695_s11  ;;  %3408 = vst.msk [vmem:[#allocation2 + $0x8] sm:$0xff] %vm17596_vm8, %v3395_v41  ;;  %v4505_v32 = vrot.slane %v12354_v17, 2  ;;  %v4584_v41 = vshrl.u32 %v12358_v24, 16  ;;  %v4605_v50 = vshll.u32 %v12361_v33, 16  ;;  %v4613_v11 = vrot.slane %v4611_v1, 2 }
 0x1b4   : > { %v14040_v61 = vld [vmem:[#allocation2 + $0x18] sm:$0xff]  ;;  %v3397_v62 = vpop.permute.xlu0 %3396  ;;  %v4589_v51 = vrot.slane %v4587_v42, 3  ;;  %v4582_v5 = vor.u32 %v4581_v40, %v4578_v39  ;;  %v12371_v1 = vld [vmem:[%s13869_s2 + $0x10] sm:$0xff]  }
 0x1b5   : > { %v3399_v55 = vpop.permute.xlu1 %3398  ;;  %v14037_v58 = vld [vmem:[#allocation2 + $0x20] sm:$0xff]  ;;  %3307 = vst.msk [vmem:[#allocation2 + $0x18] sm:$0xff] %vm841_vm7, %v12337_v47  ;;  %v4586_v45 = vrot.slane %v4584_v41, 2  ;;  %v12365_v24 = vld [vmem:[%s13313_s20 + $0x18] sm:$0xff]  }
 0x1b6   : > { %11839 = vmatmul.mubr.bf16.gmra.mrb[4].mxu0 %v3021_v49  ;;  %3308 = vst.msk [vmem:[#allocation2 + $0x20] sm:$0xff] %vm841_vm7, %v12342_v44  ;;  %4376 = vrot.lane.b32.xlu0 %v4339_v56, %s17696_s25  ;;  %v4602_v49 = vshrl.u32 %v12361_v33, 16  ;;  %v4507_v56 = vsel %vm17597_vm3, %v4505_v32, %v4506_v29  ;;  %v4690_v32 = vrot.slane %v12365_v24, 3  ;;  %v12368_v33 = vld [vmem:[%s13313_s20 + $0x28] sm:$0xff]   ;;  %v12380_v24 = vld [vmem:[%s13869_s2] sm:$0xfe]  }
 0x1b7   : > { %3409 = vst.msk [vmem:[#allocation2 + $0x10] sm:$0xff] %vm17596_vm8, %v3397_v62  ;;  %4378 = vrot.lane.b32.xlu1 %v4348_v52, %s17696_s25  ;;  %11842 = vmatprep.mubr.msk.bf16.mxu0 %vm17599_vm6, %v17610_v37  ;;  %3410 = vst.msk [vmem:[#allocation2 + $0x18] sm:$0xff] %vm17596_vm8, %v3399_v55  ;;  %v12359_v52 = vld [vmem:[%s13313_s20 + $0x30] ss:$0 sps:$4 sm:$0x33]   ;;  %v4509_v55 = vsel %vm17597_vm3, %v4506_v29, %v4508_v30  ;;  %v4607_v62 = vrot.slane %v4605_v50, 3  ;;  %v4590_v6 = vor.u32 %v4589_v51, %v4586_v45 }
 0x1b8   : > { %v3401_v8 = vpop.permute.xlu0 %3400  ;;  %v4514_v9 = vrot.slane %v12359_v52, 2  ;;  %v12366_v29 = vld [vmem:[%s13313_s20 + $0x8] sm:$0xf8]   ;;  %v4694_v42 = vrot.slane %v12368_v33, 3  ;;  %v4915_v33 = vrot.slane %v12380_v24, 1 }
 0x1b9   : > { %v3463_v0 = vpop.permute.xlu1 %3462  ;;  %3411 = vst.msk [vmem:[#allocation2 + $0x20] sm:$0xff] %vm17596_vm8, %v3401_v8  ;;  %v4511_v8 = vsel %vm17597_vm3, %v4508_v30, %v4510_v35  ;;  %v12397_v24 = vld [vmem:[%s13869_s2 + $0x24] sm:$0xff]  }
 0x1ba   : > { %3477 = vst.msk [vmem:[#allocation2] sm:$0xff] %vm17595_vm9, %v3463_v0  ;;  %4380 = vrot.lane.b32.xlu0 %v4357_v4, %s17696_s25  ;;  %v4623_v0 = vshll.u32 %v12363_v54, 16  ;;  %v4513_v4 = vsel %vm17597_vm3, %v4510_v35, %v4512_v36  ;;  %v4515_v18 = vsel %vm17597_vm3, %v4512_v36, %v4514_v9  ;;  %v4687_v36 = vrot.slane %v12366_v29, 3 }
 0x1bb   : > { %4382 = vrot.lane.b32.xlu1 %v4366_v3, %s17696_s25  ;;  %v4620_v3 = vshrl.u32 %v12363_v54, 16  ;;  %v12369_v54 = vld [vmem:[%s13869_s2] sm:$0xff]  }
 0x1bc   : > { %v3465_v20 = vpop.permute.xlu0 %3464  ;;  %v4625_v14 = vrot.slane %v4623_v0, 3  ;;  %v4824_v0 = vshrl.u32 %v12375_v48, 16 }
 0x1bd   : > { %v3467_v15 = vpop.permute.xlu1 %3466  ;;  %3478 = vst.msk [vmem:[#allocation2 + $0x8] sm:$0xff] %vm17595_vm9, %v3465_v20  ;;  %v4622_v13 = vrot.slane %v4620_v3, 2 }
 0x1be   : > { %3479 = vst.msk [vmem:[#allocation2 + $0x10] sm:$0xff] %vm17595_vm9, %v3467_v15  ;;  %11843 = vmatmul.mubr.bf16.gmra.mrb[8].mxu0 %v3022_v43  ;;  %4384 = vrot.lane.b32.xlu0 %v4375_v16, %s17696_s25  ;;  %v4445_v43 = vsel %vm17597_vm3, %v4442_v23, %v4444_v28  ;;  %v4591_v15 = vsel %vm1391_vm4, %v4582_v5, %v4590_v6  ;;  %v12364_v23 = vld [vmem:[%s13313_s20 + $0x10] sm:$0xff]  }
 0x1bf   : > { %4446 = vrot.lane.b32.xlu1 %v4437_v12, %s17697_s10  ;;  %11846 = vmatprep.mubr.msk.bf16.mxu0 %vm17599_vm6, %v17610_v37  ;;  %v4616_v12 = vrot.slane %v4614_v2, 3  ;;  %v4599_v16 = vor.u32 %v4598_v60, %v4595_v57  ;;  %v4688_v31 = vrot.slane %v12364_v23, 3  ;;  %v12379_v60 = vld [vmem:[%s13869_s2 + $0x20] sm:$0xff]   ;;  %v12372_v2 = vld [vmem:[%s13869_s2 + $0x8] sm:$0xff]  }
 0x1c0   : > { %v3469_v34 = vpop.permute.xlu0 %3468 }
 0x1c1   : > { %v3471_v19 = vpop.permute.xlu1 %3470  ;;  %3480 = vst.msk [vmem:[#allocation2 + $0x18] sm:$0xff] %vm17595_vm9, %v3469_v34  ;;  %v4617_v26 = vor.u32 %v4616_v12, %v4613_v11  ;;  %v4600_v28 = vsel %vm1391_vm4, %v4590_v6, %v4599_v16  ;;  %v4691_v40 = vsel %vm1505_vm5, %v4688_v31, %v4690_v32  ;;  %v4844_v11 = vshll.u32 %v12379_v60, 16 }
 0x1c2   : > { %3481 = vst.msk [vmem:[#allocation2 + $0x20] sm:$0xff] %vm17595_vm9, %v3471_v19  ;;  %4448 = vrot.lane.b32.xlu0 %v4439_v22, %s17697_s10  ;;  %v12367_v19 = vld [vmem:[%s13313_s20 + $0x20] sm:$0xff]  }
 0x1c3   : > { %4450 = vrot.lane.b32.xlu1 %v4441_v27, %s17697_s10  ;;  %v4626_v27 = vor.u32 %v4625_v14, %v4622_v13  ;;  %v4692_v41 = vrot.slane %v12367_v19, 3  ;;  %v12374_v13 = vld [vmem:[%s13869_s2 + $0x18] sm:$0xff]   ;;  %v4846_v23 = vrot.slane %v4844_v11, 1 }
 0x1c4   : > { %v3533_v47 = vpop.permute.xlu0 %3532 }
 0x1c5   : > { %v3535_v44 = vpop.permute.xlu1 %3534  ;;  %3547 = vst.msk [vmem:[#allocation2] sm:$0xff] %vm17575_vm10, %v3533_v47  ;;  %v4627_v22 = vsel %vm1391_vm4, %v4617_v26, %v4626_v27  ;;  %v4695_v50 = vsel %vm1505_vm5, %v4692_v41, %v4694_v42  ;;  %v12377_v47 = vld [vmem:[%s13869_s2] sm:$0xff]   ;;  %v4693_v51 = vsel %vm1505_vm5, %v4690_v32, %v4692_v41 }
 0x1c6   : > { %3548 = vst.msk [vmem:[#allocation2 + $0x8] sm:$0xff] %vm17575_vm10, %v3535_v44  ;;  %11847 = vmatmul.mubr.bf16.gmra.mrb[12].mxu0 %v14040_v61  ;;  %4452 = vrot.lane.b32.xlu0 %v4443_v38, %s17697_s10  ;;  %v4604_v61 = vrot.slane %v4602_v49, 2  ;;  %v4689_v38 = vsel %vm1505_vm5, %v4687_v36, %v4688_v31  ;;  %v12370_v44 = vld [vmem:[%s13313_s20 + $0x30] ss:$0 sps:$4 sm:$0x77]   ;;  %v4815_v57 = vshll.u32 %v12377_v47, 16 }
 0x1c7   : > { %4454 = vrot.lane.b32.xlu1 %v4445_v43, %s17697_s10  ;;  %11850 = vmatprep.mubr.msk.bf16.mxu0 %vm17599_vm6, %v17610_v37  ;;  %v12376_v49 = vld [vmem:[%s13869_s2 + $0x10] sm:$0xff]   ;;  %v4696_v52 = vrot.slane %v12370_v44, 3 }
 0x1c8   : > { %v3537_v63 = vpop.permute.xlu0 %3536  ;;  %v4817_v9 = vrot.slane %v4815_v57, 1 }
 0x1c9   : > { %v3539_v59 = vpop.permute.xlu1 %3538  ;;  %3549 = vst.msk [vmem:[#allocation2 + $0x10] sm:$0xff] %vm17575_vm10, %v3537_v63 }
 0x1ca   : > { %3550 = vst.msk [vmem:[#allocation2 + $0x18] sm:$0xff] %vm17575_vm10, %v3539_v59  ;;  %4516 = vrot.lane.b32.xlu0 %v4507_v56, %s17698_s23  ;;  %v4828_v56 = vshll.u32 %v12376_v49, 16  ;;  %v12378_v59 = vld [vmem:[%s13869_s2 + $0x18] sm:$0xff]  }
 0x1cb   : > { %4518 = vrot.lane.b32.xlu1 %v4509_v55, %s17698_s23  ;;  %v4820_v55 = vshll.u32 %v12375_v48, 16  ;;  %v4836_v5 = vshll.u32 %v12378_v59, 16  ;;  %v12386_v48 = vld [vmem:[%s13869_s2 + $0x28] ss:$0 sps:$4 sm:$0x11]  }
 0x1cc   : > { %v3541_v10 = vpop.permute.xlu0 %3540 }
 0x1cd   : > { %v3645_v7 = vpop.permute.xlu1 %3644  ;;  %3551 = vst.msk [vmem:[#allocation2 + $0x20] sm:$0xff] %vm17575_vm10, %v3541_v10  ;;  %v4822_v3 = vrot.slane %v4820_v55, 1  ;;  %v4840_v10 = vshrl.u32 %v12378_v59, 16  ;;  %v4838_v14 = vrot.slane %v4836_v5, 1  ;;  %v4924_v55 = vrot.slane %v12386_v48, 1  ;;  %v12396_v5 = vld [vmem:[%s13869_s2 + $0x1c] sm:$0xff]  }
 0x1ce   : > { %3659 = vst.msk [vmem:[#allocation2] sm:$0xff] %vm17574_vm11, %v3645_v7  ;;  %11851 = vmatmul.mubr.bf16.gmra.mrb[16].mxu0 %v14037_v58  ;;  %4520 = vrot.lane.b32.xlu0 %v4511_v8, %s17698_s23  ;;  %v4608_v58 = vor.u32 %v4607_v62, %v4604_v61  ;;  %v4697_v62 = vsel %vm1505_vm5, %v4694_v42, %v4696_v52  ;;  %v12373_v7 = vld [vmem:[%s13869_s2 + $0x20] sm:$0xff]   ;;  %v4830_v8 = vrot.slane %v4828_v56, 1  ;;  %v14215_v56 = vld [vmem:[%s13869_s2 + $0x14] sm:$0xff]  }
 0x1cf   : > { %4522 = vrot.lane.b32.xlu1 %v4513_v4, %s17698_s23  ;;  %11906 = vmatprep.mubr.msk.bf16.mxu0 %vm17599_vm6, %v17610_v37  ;;  %v4813_v4 = vshrl.u32 %v12377_v47, 16  ;;  %v4842_v27 = vor.u32 %v4840_v10, %v4838_v14  ;;  %v12393_v47 = vld [vmem:[%s13869_s2 + $0xc] sm:$0xff]   ;;  %v12389_v59 = vld [vmem:[%s13869_s2 + $0x4] sm:$0xfe]  }
 0x1d0   : > { %v3647_v20 = vpop.permute.xlu0 %3646  ;;  %v4609_v25 = vsel %vm1391_vm4, %v4599_v16, %v4608_v58  ;;  %v4618_v35 = vsel %vm1391_vm4, %v4608_v58, %v4617_v26  ;;  %v4826_v16 = vor.u32 %v4824_v0, %v4822_v3  ;;  %v4985_v11 = vrot.slane %v12389_v59, 1 }
 0x1d1   : > { %v3649_v17 = vpop.permute.xlu1 %3648  ;;  %3660 = vst.msk [vmem:[#allocation2 + $0x8] sm:$0xff] %vm17574_vm11, %v3647_v20  ;;  %v4847_v32 = vsel %vm886_vm1, %v4842_v27, %v4846_v23  ;;  %v12398_v27 = vld [vmem:[%s13869_s2 + $0x2c] ss:$0 sps:$4 sm:$0x33]  }
 0x1d2   : > { %3661 = vst.msk [vmem:[#allocation2 + $0x10] sm:$0xff] %vm17574_vm11, %v3649_v17  ;;  %4524 = vrot.lane.b32.xlu0 %v4515_v18, %s17698_s23  ;;  %v4818_v17 = vor.u32 %v4817_v9, %v4813_v4  ;;  %v4832_v18 = vshrl.u32 %v12376_v49, 16  ;;  %v4831_v26 = vsel %vm886_vm1, %v4826_v16, %v4830_v8  ;;  %v12395_v4 = vld [vmem:[%s13869_s2 + $0x14] sm:$0xff]  }
 0x1d3   : > { %4628 = vrot.lane.b32.xlu1 %v4591_v15, %s17699_s29  ;;  %v12382_v15 = vld [vmem:[%s13869_s2 + $0x28] ss:$0 sps:$4 sm:$0x11]  }
 0x1d4   : > { %v3651_v30 = vpop.permute.xlu0 %3650  ;;  %v4834_v29 = vor.u32 %v4832_v18, %v4830_v8  ;;  %v4852_v31 = vshll.u32 %v12382_v15, 16  ;;  %v4988_v8 = vrot.slane %v14215_v56, 1  ;;  %v5073_v18 = vshrl.u32 %v12395_v4, 16 }
 0x1d5   : > { %v3653_v21 = vpop.permute.xlu1 %3652  ;;  %3662 = vst.msk [vmem:[#allocation2 + $0x18] sm:$0xff] %vm17574_vm11, %v3651_v30  ;;  %v4848_v30 = vshrl.u32 %v12379_v60, 16 }
 0x1d6   : > { %3663 = vst.msk [vmem:[#allocation2 + $0x20] sm:$0xff] %vm17574_vm11, %v3653_v21  ;;  %4630 = vrot.lane.b32.xlu0 %v4600_v28, %s17699_s29  ;;  %vm17701_vm11 = vcmask 228544   ;;  %v4823_v28 = vsel %vm886_vm1, %v4818_v17, %v4822_v3  ;;  %v4854_v41 = vrot.slane %v4852_v31, 1 }
 0x1d7   : > { %4632 = vrot.lane.b32.xlu1 %v4609_v25, %s17699_s29  ;;  %vm17702_vm10 = vmmov %vm17701_vm11  ;;  %v12381_v25 = vld [vmem:[%s13869_s2 + $0x8] sm:$0xff]  }
 0x1d8   : > { %v3715_v39 = vpop.permute.xlu0 %3714 }
 0x1d9   : > { %v3717_v34 = vpop.permute.xlu1 %3716  ;;  %3729 = vst.msk [vmem:[#allocation2] sm:$0xff] %vm17577_vm12, %v3715_v39  ;;  %v4839_v39 = vsel %vm886_vm1, %v4834_v29, %v4838_v14  ;;  %v12394_v29 = vld [vmem:[%s13869_s2 + $0x2c] ss:$0 sps:$4 sm:$0x11]  }
 0x1da   : > { %3730 = vst.msk [vmem:[#allocation2 + $0x8] sm:$0xff] %vm17577_vm12, %v3717_v34  ;;  %4634 = vrot.lane.b32.xlu0 %v4618_v35, %s17699_s29  ;;  %v4916_v34 = vrot.slane %v12381_v25, 1  ;;  %v12384_v35 = vld [vmem:[%s13869_s2 + $0x18] sm:$0xff]  }
 0x1db   : > { %4636 = vrot.lane.b32.xlu1 %v4627_v22, %s17699_s29  ;;  %v12383_v22 = vld [vmem:[%s13869_s2 + $0x10] sm:$0xff]  }
 0x1dc   : > { %v3719_v46 = vpop.permute.xlu0 %3718  ;;  %v4917_v44 = vsel %vm991_vm0, %v4915_v33, %v4916_v34 }
 0x1dd   : > { %v3721_v43 = vpop.permute.xlu1 %3720  ;;  %3731 = vst.msk [vmem:[#allocation2 + $0x10] sm:$0xff] %vm17577_vm12, %v3719_v46  ;;  %v4920_v46 = vrot.slane %v12384_v35, 1  ;;  %v5094_v35 = vshll.u32 %v12397_v24, 16 }
 0x1de   : > { %3732 = vst.msk [vmem:[#allocation2 + $0x18] sm:$0xff] %vm17577_vm12, %v3721_v43  ;;  %4698 = vrot.lane.b32.xlu0 %v4689_v38, %s17700_s19  ;;  %v4918_v43 = vrot.slane %v12383_v22, 1  ;;  %v12385_v38 = vld [vmem:[%s13869_s2 + $0x20] sm:$0xff]  }
 0x1df   : > { %4700 = vrot.lane.b32.xlu1 %v4691_v40, %s17700_s19  ;;  %v4850_v40 = vor.u32 %v4848_v30, %v4846_v23  ;;  %v4922_v52 = vrot.slane %v12385_v38, 1  ;;  %v5082_v23 = vshrl.u32 %v12396_v5, 16  ;;  %v4994_v38 = vrot.slane %v12394_v29, 1  ;;  %v14307_v29 = vld [vmem:[%s13869_s2 + $0x20] sm:$0xff]  }
 0x1e0   : > { %v3723_v53 = vpop.permute.xlu0 %3722  ;;  %v4919_v60 = vsel %vm991_vm0, %v4916_v34, %v4918_v43  ;;  %v5091_v34 = vshrl.u32 %v12397_v24, 16  ;;  %v12412_v24 = vld [vmem:[%s13869_s2 + $0x18] sm:$0xff]  }
 0x1e1   : > { %v3785_v45 = vpop.permute.xlu1 %3784  ;;  %3733 = vst.msk [vmem:[#allocation2 + $0x20] sm:$0xff] %vm17577_vm12, %v3723_v53  ;;  %vm17705_vm12 = vcmask 261344   ;;  %v12387_v53 = vld [vmem:[%s13869_s2 + $0xc] sm:$0xff]   ;;  %v4923_v10 = vsel %vm991_vm0, %v4920_v46, %v4922_v52 }
 0x1e2   : > { %3799 = vst.msk [vmem:[#allocation2] sm:$0xff] %vm17701_vm11, %v3785_v45  ;;  %4702 = vrot.lane.b32.xlu0 %v4693_v51, %s17700_s19  ;;  %v12392_v51 = vld [vmem:[%s13869_s2 + $0x4] sm:$0xfe]  }
 0x1e3   : > { %4704 = vrot.lane.b32.xlu1 %v4695_v50, %s17700_s19  ;;  %v4855_v50 = vsel %vm886_vm1, %v4850_v40, %v4854_v41  ;;  %v5056_v3 = vshrl.u32 %v12392_v51, 16  ;;  %v5059_v0 = vshll.u32 %v12392_v51, 16  ;;  %v5100_v40 = vshrl.u32 %v12398_v27, 16 }
 0x1e4   : > { %v3787_v63 = vpop.permute.xlu0 %3786  ;;  %v5103_v41 = vshll.u32 %v12398_v27, 16  ;;  %v12407_v27 = vld [vmem:[%s13869_s2 + $0x18] sm:$0xff]  }
 0x1e5   : > { %v3789_v61 = vpop.permute.xlu1 %3788  ;;  %3800 = vst.msk [vmem:[#allocation2 + $0x8] sm:$0xff] %vm17702_vm10, %v3787_v63  ;;  %v5064_v63 = vshrl.u32 %v12393_v47, 16  ;;  %v5058_v15 = vrot.slane %v5056_v3, 1  ;;  %v5061_v16 = vrot.slane %v5059_v0, 2 }
 0x1e6   : > { %3801 = vst.msk [vmem:[#allocation2 + $0x10] sm:$0xff] %vm17701_vm11, %v3789_v61  ;;  %4706 = vrot.lane.b32.xlu0 %v4697_v62, %s17700_s19  ;;  %vm17704_vm11 = vmmov %vm17702_vm10  ;;  %v12390_v61 = vld [vmem:[%s13869_s2 + $0x1c] sm:$0xff]   ;;  %v14221_v62 = vld [vmem:[%s13869_s2 + $0x24] sm:$0xff]   ;;  %v5105_v51 = vrot.slane %v5103_v41, 2  ;;  %v5240_v41 = vrot.slane %v12407_v27, 2 }
 0x1e7   : > { %4753 = vrot.lane.b32.xlu1 %v12369_v54, %s17703_s27  ;;  %v4921_v54 = vsel %vm991_vm0, %v4918_v43, %v4920_v46  ;;  %v14378_v27 = vld [vmem:[%s13869_s2 + $0x30] ss:$0 sps:$4 sm:$0x77]  }
 0x1e8   : > { %v3791_v12 = vpop.permute.xlu0 %3790 }
 0x1e9   : > { %v3793_v6 = vpop.permute.xlu1 %3792  ;;  %3802 = vst.msk [vmem:[#allocation2 + $0x18] sm:$0xff] %vm17702_vm10, %v3791_v12  ;;  %v4990_v12 = vrot.slane %v12390_v61, 1 }
 0x1ea   : > { %3803 = vst.msk [vmem:[#allocation2 + $0x20] sm:$0xff] %vm17704_vm11, %v3793_v6  ;;  %4755 = vrot.lane.b32.xlu0 %v12372_v2, %s17703_s27  ;;  %vm17706_vm11 = vmmov %vm17705_vm12  ;;  %v4925_v6 = vsel %vm991_vm0, %v4922_v52, %v4924_v55  ;;  %v12399_v55 = vld [vmem:[%s13869_s2 + $0xc] sm:$0xff]  }
 0x1eb   : > { %4757 = vrot.lane.b32.xlu1 %v12371_v1, %s17703_s27  ;;  %vm17708_vm10 = vmmov %vm17706_vm11  ;;  %v5067_v1 = vshll.u32 %v12393_v47, 16  ;;  %v4991_v43 = vsel %vm991_vm0, %v4988_v8, %v4990_v12  ;;  %v5096_v47 = vrot.slane %v5094_v35, 2  ;;  %v5168_v0 = vrot.slane %v12399_v55, 2  ;;  %v12410_v35 = vld [vmem:[%s13869_s2 + $0x30] ss:$0 sps:$4 sm:$0x33]  }
 0x1ec   : > { %v3897_v20 = vpop.permute.xlu0 %3896 }
 0x1ed   : > { %v3899_v58 = vpop.permute.xlu1 %3898  ;;  %3911 = vst.msk [vmem:[#allocation2] sm:$0xff] %vm17706_vm11, %v3897_v20  ;;  %v5069_v17 = vrot.slane %v5067_v1, 2  ;;  %v5076_v20 = vshll.u32 %v12395_v4, 16 }
 0x1ee   : > { %3912 = vst.msk [vmem:[#allocation2 + $0x8] sm:$0xff] %vm17705_vm12, %v3899_v58  ;;  %4759 = vrot.lane.b32.xlu0 %v12374_v13, %s17703_s27  ;;  %vm17707_vm12 = vmmov %vm17706_vm11  ;;  %vm17710_vm11 = vcmask 294144   ;;  %v4992_v13 = vrot.slane %v14221_v62, 1  ;;  %v5066_v58 = vrot.slane %v5064_v63, 1  ;;  %v12401_v63 = vld [vmem:[%s13869_s2 + $0x4] sm:$0xfc]  }
 0x1ef   : > { %4761 = vrot.lane.b32.xlu1 %v12373_v7, %s17703_s27  ;;  %v4986_v7 = vrot.slane %v12387_v53, 1  ;;  %v5078_v33 = vrot.slane %v5076_v20, 2  ;;  %v12411_v20 = vld [vmem:[%s13869_s2 + $0x10] sm:$0xff]  }
 0x1f0   : > { %v3901_v19 = vpop.permute.xlu0 %3900  ;;  %v4993_v31 = vsel %vm991_vm0, %v4990_v12, %v4992_v13  ;;  %v5070_v22 = vor.u32 %v5069_v17, %v5066_v58  ;;  %v4995_v53 = vsel %vm991_vm0, %v4992_v13, %v4994_v38  ;;  %v12404_v12 = vld [vmem:[%s13869_s2 + $0x8] sm:$0xfc]  }
 0x1f1   : > { %v3903_v21 = vpop.permute.xlu1 %3902  ;;  %3913 = vst.msk [vmem:[#allocation2 + $0x10] sm:$0xff] %vm17708_vm10, %v3901_v19  ;;  %v4989_v25 = vsel %vm991_vm0, %v4986_v7, %v4988_v8  ;;  %v5062_v19 = vor.u32 %v5061_v16, %v5058_v15  ;;  %v14288_v16 = vld [vmem:[%s13869_s2 + $0x10] sm:$0xff]  }
 0x1f2   : > { %3914 = vst.msk [vmem:[#allocation2 + $0x18] sm:$0xff] %vm17707_vm12, %v3903_v21  ;;  %4856 = vrot.lane.b32.xlu0 %v4823_v28, %s17709_s12  ;;  %vm17711_vm12 = vmmov %vm17708_vm10  ;;  %v4987_v28 = vsel %vm991_vm0, %v4985_v11, %v4986_v7  ;;  %v12474_v11 = vld [vmem:[%s17683_s6 + $0x8] sm:$0xff]  }
 0x1f3   : > { %4858 = vrot.lane.b32.xlu1 %v4831_v26, %s17709_s12  ;;  %vm17712_vm10 = vmmov %vm17710_vm11  ;;  %v5085_v26 = vshll.u32 %v12396_v5, 16  ;;  %v5071_v46 = vsel %vm17598_vm2, %v5062_v19, %v5070_v22  ;;  %v12402_v5 = vld [vmem:[%s13869_s2 + $0x1c] sm:$0xff]  }
 0x1f4   : > { %v3905_v42 = vpop.permute.xlu0 %3904 }
 0x1f5   : > { %v3967_v36 = vpop.permute.xlu1 %3966  ;;  %3915 = vst.msk [vmem:[#allocation2 + $0x20] sm:$0xff] %vm17711_vm12, %v3905_v42  ;;  %vm17715_vm12 = vmmov %vm17712_vm10 }
 0x1f6   : > { %3981 = vst.msk [vmem:[#allocation2] sm:$0xff] %vm17710_vm11, %v3967_v36  ;;  %4860 = vrot.lane.b32.xlu0 %v4839_v39, %s17709_s12  ;;  %vm17713_vm11 = vmmov %vm17712_vm10  ;;  %v5084_v36 = vrot.slane %v5082_v23, 1  ;;  %v5087_v39 = vrot.slane %v5085_v26, 2  ;;  %v5237_v26 = vrot.slane %v12404_v12, 2 }
 0x1f7   : > { %4862 = vrot.lane.b32.xlu1 %v4847_v32, %s17709_s12  ;;  %v5075_v32 = vrot.slane %v5073_v18, 1  ;;  %v12406_v18 = vld [vmem:[%s13869_s2 + $0x2c] ss:$0 sps:$4 sm:$0x33]  }
 0x1f8   : > { %v3969_v45 = vpop.permute.xlu0 %3968 }
 0x1f9   : > { %v3971_v49 = vpop.permute.xlu1 %3970  ;;  %3982 = vst.msk [vmem:[#allocation2 + $0x8] sm:$0xff] %vm17713_vm11, %v3969_v45  ;;  %vm17716_vm11 = vcmask 326944   ;;  %v5079_v48 = vor.u32 %v5078_v33, %v5075_v32  ;;  %v5102_v45 = vrot.slane %v5100_v40, 1  ;;  %v5316_v32 = vshrl.u32 %v12411_v20, 16  ;;  %v12481_v40 = vld [vmem:[%s17683_s6 + $0x18] sm:$0xff]  }
 0x1fa   : > { %3983 = vst.msk [vmem:[#allocation2 + $0x10] sm:$0xff] %vm17712_vm10, %v3971_v49  ;;  %4864 = vrot.lane.b32.xlu0 %v4855_v50, %s17709_s12  ;;  %v5093_v49 = vrot.slane %v5091_v34, 1  ;;  %v5088_v50 = vor.u32 %v5087_v39, %v5084_v36  ;;  %v5319_v33 = vshll.u32 %v12411_v20, 16  ;;  %v5325_v36 = vshrl.u32 %v12412_v24, 16  ;;  %v12414_v39 = vld [vmem:[%s13869_s2 + $0x20] sm:$0xff]  }
 0x1fb   : > { %4926 = vrot.lane.b32.xlu1 %v4917_v44, %s17714_s8  ;;  %v5080_v62 = vsel %vm17598_vm2, %v5070_v22, %v5079_v48  ;;  %v5176_v22 = vrot.slane %v12406_v18, 2  ;;  %v5337_v55 = vshll.u32 %v12414_v39, 16  ;;  %v14368_v18 = vld [vmem:[%s13869_s2 + $0x18] sm:$0xff]   ;;  %v14371_v20 = vld [vmem:[%s13869_s2 + $0x20] sm:$0xff]  }
 0x1fc   : > { %v3973_v2 = vpop.permute.xlu0 %3972  ;;  %v5089_v56 = vsel %vm17598_vm2, %v5079_v48, %v5088_v50  ;;  %v5097_v59 = vor.u32 %v5096_v47, %v5093_v49 }
 0x1fd   : > { %v3975_v57 = vpop.permute.xlu1 %3974  ;;  %3984 = vst.msk [vmem:[#allocation2 + $0x18] sm:$0xff] %vm17712_vm10, %v3973_v2  ;;  %vm17718_vm10 = vmmov %vm17716_vm11  ;;  %v12471_v2 = vld [vmem:[%s17683_s6] sm:$0xff]  }
 0x1fe   : > { %3985 = vst.msk [vmem:[#allocation2 + $0x20] sm:$0xff] %vm17715_vm12, %v3975_v57  ;;  %4928 = vrot.lane.b32.xlu0 %v4919_v60, %s17714_s8  ;;  %vm17717_vm12 = vmmov %vm17716_vm11  ;;  %v5106_v57 = vor.u32 %v5105_v51, %v5102_v45  ;;  %v12400_v60 = vld [vmem:[%s13869_s2 + $0x14] sm:$0xff]   ;;  %11855 = vmatpush3.bf16.msra.mxu1 %v12471_v2  ;;  %v5098_v8 = vsel %vm17598_vm2, %v5088_v50, %v5097_v59  ;;  %v5318_v45 = vrot.slane %v5316_v32, 2  ;;  %v5321_v51 = vrot.slane %v5319_v33, 3 }
 0x1ff   : > { %4930 = vrot.lane.b32.xlu1 %v4921_v54, %s17714_s8  ;;  %v5170_v4 = vrot.slane %v12400_v60, 2  ;;  %11856 = vmatprep.subr.bf16.mxu1 %v17610_v37 }
 0x200   : > { %v4022_v14 = vpop.permute.xlu0 %4021  ;;  %v5107_v3 = vsel %vm17598_vm2, %v5097_v59, %v5106_v57 }
 0x201   : > { %v4024_v9 = vpop.permute.xlu1 %4023  ;;  %4036 = vst.msk [vmem:[#allocation2] sm:$0xff] %vm17717_vm12, %v4022_v14  ;;  %vm17721_vm12 = vcmask 359744   ;;  %v5171_v13 = vsel %vm17597_vm3, %v5168_v0, %v5170_v4  ;;  %v5172_v14 = vrot.slane %v12402_v5, 2 }
 0x202   : > { %4037 = vst.msk [vmem:[#allocation2 + $0x8] sm:$0xff] %vm17716_vm11, %v4024_v9  ;;  %4932 = vrot.lane.b32.xlu0 %v4923_v10, %s17714_s8  ;;  %vm17719_vm11 = vmmov %vm17718_vm10  ;;  %v5167_v9 = vrot.slane %v12401_v63, 2  ;;  %11857 = vmatpush3.bf16.msra.mxu1 %v12474_v11 }
 0x203   : > { %4934 = vrot.lane.b32.xlu1 %v4925_v6, %s17714_s8  ;;  %v14273_v6 = vld [vmem:[%s13869_s2 + $0x24] sm:$0xff]   ;;  %11858 = vmatprep.subr.bf16.mxu1 %v17610_v37  ;;  %v5173_v19 = vsel %vm17597_vm3, %v5170_v4, %v5172_v14 }
 0x204   : > { %v4026_v30 = vpop.permute.xlu0 %4025  ;;  %v5174_v15 = vrot.slane %v14273_v6, 2  ;;  %v5169_v17 = vsel %vm17597_vm3, %v5167_v9, %v5168_v0  ;;  %v5322_v9 = vor.u32 %v5321_v51, %v5318_v45 }
 0x205   : > { %v4028_v21 = vpop.permute.xlu1 %4027  ;;  %4038 = vst.msk [vmem:[#allocation2 + $0x10] sm:$0xff] %vm17719_vm11, %v4026_v30  ;;  %vm17722_vm11 = vmmov %vm17721_vm12  ;;  %v12413_v30 = vld [vmem:[%s13869_s2 + $0x8] sm:$0xfc]  }
 0x206   : > { %4039 = vst.msk [vmem:[#allocation2 + $0x18] sm:$0xff] %vm17718_vm10, %v4028_v21  ;;  %4996 = vrot.lane.b32.xlu0 %v4987_v28, %s17720_s7  ;;  %v5175_v21 = vsel %vm17597_vm3, %v5172_v14, %v5174_v15  ;;  %v5238_v28 = vrot.slane %v14288_v16, 2  ;;  %v5308_v48 = vshrl.u32 %v12413_v30, 16  ;;  %v5311_v49 = vshll.u32 %v12413_v30, 16  ;;  %v14360_v14 = vld [vmem:[%s13869_s2 + $0x10] sm:$0xff]  }
 0x207   : > { %4998 = vrot.lane.b32.xlu1 %v4989_v25, %s17720_s7  ;;  %v12477_v25 = vld [vmem:[%s17683_s6 + $0x10] sm:$0xff]   ;;  %v5177_v47 = vsel %vm17597_vm3, %v5174_v15, %v5176_v22  ;;  %v14363_v15 = vld [vmem:[%s13313_s20 + $0x8] sm:$0xff]  }
 0x208   : > { %v4030_v44 = vpop.permute.xlu0 %4029  ;;  %11859 = vmatpush3.bf16.msra.mxu1 %v12477_v25  ;;  %v5239_v38 = vsel %vm17597_vm3, %v5237_v26, %v5238_v28  ;;  %v5310_v0 = vrot.slane %v5308_v48, 2  ;;  %v5313_v4 = vrot.slane %v5311_v49, 3  ;;  %v14375_v26 = vld [vmem:[%s13869_s2 + $0x28] sm:$0xff]   ;;  %v14389_v30 = vld [vmem:[%s13313_s20 + $0x10] sm:$0xff]   ;;  %v12494_v48 = vld [vmem:[%s17683_s6 + $0x38] sm:$0xff]  }
 0x209   : > { %v4125_v42 = vpop.permute.xlu1 %4124  ;;  %4040 = vst.msk [vmem:[#allocation2 + $0x20] sm:$0xff] %vm17718_vm10, %v4030_v44  ;;  %vm17725_vm10 = vmmov %vm17722_vm11  ;;  %11860 = vmatprep.subr.bf16.mxu1 %v17610_v37  ;;  %v5242_v44 = vrot.slane %v14307_v29, 2 }
 0x20a   : > { %4139 = vst.msk [vmem:[#allocation2] sm:$0xff] %vm17721_vm12, %v4125_v42  ;;  %5000 = vrot.lane.b32.xlu0 %v4991_v43, %s17720_s7  ;;  %vm17723_vm12 = vmmov %vm17722_vm11  ;;  %v5328_v42 = vshll.u32 %v12412_v24, 16  ;;  %v12415_v43 = vld [vmem:[%s13869_s2 + $0x28] sm:$0xff]   ;;  %v5314_v25 = vor.u32 %v5313_v4, %v5310_v0  ;;  %v14449_v4 = vld [vmem:[%s13313_s20 + $0x18] sm:$0xff]  }
 0x20b   : > { %5002 = vrot.lane.b32.xlu1 %v4993_v31, %s17720_s7  ;;  %v5343_v57 = vshrl.u32 %v12415_v43, 16  ;;  %v5346_v60 = vshll.u32 %v12415_v43, 16 }
 0x20c   : > { %v4127_v54 = vpop.permute.xlu0 %4126  ;;  %11861 = vmatpush3.bf16.msra.mxu1 %v12481_v40  ;;  %v5330_v59 = vrot.slane %v5328_v42, 3  ;;  %v5420_v40 = vrot.slane %v14360_v14, 3  ;;  %v14402_v42 = vld [vmem:[%s13313_s20 + $0x18] sm:$0xff]  }
 0x20d   : > { %v4129_v52 = vpop.permute.xlu1 %4128  ;;  %4140 = vst.msk [vmem:[#allocation2 + $0x8] sm:$0xff] %vm17723_vm12, %v4127_v54  ;;  %vm17727_vm12 = vcmask 392544   ;;  %11862 = vmatprep.subr.bf16.mxu1 %v17610_v37  ;;  %v5334_v54 = vshrl.u32 %v12414_v39, 16  ;;  %v5345_v11 = vrot.slane %v5343_v57, 2  ;;  %v5348_v12 = vrot.slane %v5346_v60, 3 }
 0x20e   : > { %4141 = vst.msk [vmem:[#allocation2 + $0x10] sm:$0xff] %vm17722_vm11, %v4129_v52  ;;  %5004 = vrot.lane.b32.xlu0 %v4995_v53, %s17720_s7  ;;  %vm17726_vm11 = vmmov %vm17725_vm10  ;;  %s17731_s7 = smov 92   ;;  %v5327_v53 = vrot.slane %v5325_v36, 2  ;;  %v5323_v36 = vsel %vm1391_vm4, %v5314_v25, %v5322_v9  ;;  %v12430_v57 = vld [vmem:[%s13313_s20 + $0x28] ss:$0 sps:$4 sm:$0x11]  }
 0x20f   : > { %5108 = vrot.lane.b32.xlu1 %v5071_v46, %s17724_s18  ;;  %v12409_v46 = vld [vmem:[%s13869_s2 + $0x28] sm:$0xff]   ;;  %v5336_v6 = vrot.slane %v5334_v54, 2  ;;  %v5349_v32 = vor.u32 %v5348_v12, %v5345_v11  ;;  %v14469_v12 = vld [vmem:[%s13313_s20 + $0x14] sm:$0xff]  }
 0x210   : > { %v4131_v1 = vpop.permute.xlu0 %4130  ;;  %v5244_v63 = vrot.slane %v12409_v46, 2  ;;  %v5428_v46 = vrot.slane %v14378_v27, 3  ;;  %v14466_v11 = vld [vmem:[%s13313_s20 + $0xc] sm:$0xff]   ;;  %v14488_v25 = vld [vmem:[%s13313_s20 + $0x24] sm:$0xff]  }
 0x211   : > { %v4133_v61 = vpop.permute.xlu1 %4132  ;;  %4142 = vst.msk [vmem:[#allocation2 + $0x18] sm:$0xff] %vm17726_vm11, %v4131_v1  ;;  %v5246_v1 = vrot.slane %v12410_v35, 2 }
 0x212   : > { %4143 = vst.msk [vmem:[#allocation2 + $0x20] sm:$0xff] %vm17725_vm10, %v4133_v61  ;;  %5110 = vrot.lane.b32.xlu0 %v5080_v62, %s17724_s18  ;;  %vm17728_vm10 = vmmov %vm17727_vm12  ;;  %v12418_v61 = vld [vmem:[%s13869_s2 + $0x30] ss:$0 sps:$4 sm:$0x77]   ;;  %v5243_v62 = vsel %vm17597_vm3, %v5240_v41, %v5242_v44  ;;  %v5245_v24 = vsel %vm17597_vm3, %v5242_v44, %v5244_v63  ;;  %v5426_v44 = vrot.slane %v14375_v26, 3 }
 0x213   : > { %5112 = vrot.lane.b32.xlu1 %v5089_v56, %s17724_s18  ;;  %vm17729_vm11 = vmmov %vm17728_vm10  ;;  %v12484_v56 = vld [vmem:[%s17683_s6 + $0x20] sm:$0xff]   ;;  %v5247_v16 = vsel %vm17597_vm3, %v5244_v63, %v5246_v1  ;;  %v14440_v1 = vld [vmem:[%s13313_s20 + $0x8] sm:$0xff]  }
 0x214   : > { %v4195_v10 = vpop.permute.xlu0 %4194  ;;  %11863 = vmatpush3.bf16.msra.mxu1 %v12484_v56  ;;  %v14437_v63 = vld [vmem:[%s13313_s20] sm:$0xfe]  }
 0x215   : > { %v4197_v7 = vpop.permute.xlu1 %4196  ;;  %4209 = vst.msk [vmem:[#allocation2] sm:$0xff] %vm17728_vm10, %v4195_v10  ;;  %11864 = vmatprep.subr.bf16.mxu1 %v17610_v37  ;;  %v5331_v10 = vor.u32 %v5330_v59, %v5327_v53  ;;  %v14423_v53 = vld [vmem:[%s13313_s20 + $0x20] sm:$0xff]   ;;  %v5803_v59 = vshll.u32 %v14402_v42, 16 }
 0x216   : > { %4210 = vst.msk [vmem:[#allocation2 + $0x8] sm:$0xff] %vm17727_vm12, %v4197_v7  ;;  %5114 = vrot.lane.b32.xlu0 %v5098_v8, %s17724_s18  ;;  %vm17730_vm12 = vmmov %vm17728_vm10  ;;  %vm17732_vm10 = vcmask 425344   ;;  %v5339_v7 = vrot.slane %v5337_v55, 3  ;;  %v12487_v8 = vld [vmem:[%s17683_s6 + $0x28] sm:$0xff]   ;;  %v5811_v0 = vshll.u32 %v14423_v53, 16 }
 0x217   : > { %5116 = vrot.lane.b32.xlu1 %v5107_v3, %s17724_s18  ;;  %v5241_v3 = vsel %vm17597_vm3, %v5238_v28, %v5240_v41  ;;  %v12491_v28 = vld [vmem:[%s17683_s6 + $0x30] sm:$0xff]   ;;  %v5332_v29 = vsel %vm1391_vm4, %v5322_v9, %v5331_v10  ;;  %v5422_v41 = vrot.slane %v14368_v18, 3  ;;  %v14463_v9 = vrot.slane %v5803_v59, 1 }
 0x218   : > { %v4199_v23 = vpop.permute.xlu0 %4198  ;;  %11865 = vmatpush3.bf16.msra.mxu1 %v12487_v8  ;;  %v5340_v22 = vor.u32 %v5339_v7, %v5336_v6  ;;  %v14455_v6 = vld [vmem:[%s13313_s20 + $0x28] ss:$0 sps:$4 sm:$0x11]   ;;  %v5807_v18 = vshrl.u32 %v14402_v42, 16  ;;  %v5955_v42 = vrot.slane %v14469_v12, 1 }
 0x219   : > { %v4201_v58 = vpop.permute.xlu1 %4200  ;;  %4211 = vst.msk [vmem:[#allocation2 + $0x10] sm:$0xff] %vm17730_vm12, %v4199_v23  ;;  %vm17734_vm12 = vmmov %vm17732_vm10  ;;  %11866 = vmatprep.subr.bf16.mxu1 %v17610_v37 }
 0x21a   : > { %4212 = vst.msk [vmem:[#allocation2 + $0x18] sm:$0xff] %vm17729_vm11, %v4201_v58  ;;  %5178 = vrot.lane.b32.xlu0 %v5169_v17, %s17731_s7  ;;  %v5352_v58 = vshrl.u32 %v12418_v61, 16  ;;  %v5355_v17 = vshll.u32 %v12418_v61, 16  ;;  %v5350_v51 = vsel %vm1391_vm4, %v5340_v22, %v5349_v32  ;;  %v5341_v55 = vsel %vm1391_vm4, %v5331_v10, %v5340_v22  ;;  %v14496_v22 = vld [vmem:[%s13313_s20 + $0xc] sm:$0xff]  }
 0x21b   : > { %5180 = vrot.lane.b32.xlu1 %v5171_v13, %s17731_s7  ;;  %v14357_v13 = vld [vmem:[%s13869_s2 + $0x8] sm:$0xf8]   ;;  %v5819_v10 = vshll.u32 %v12430_v57, 16 }
 0x21c   : > { %v4203_v34 = vpop.permute.xlu0 %4202  ;;  %v5354_v33 = vrot.slane %v5352_v58, 2  ;;  %11867 = vmatpush3.bf16.msra.mxu1 %v12491_v28  ;;  %v5419_v39 = vrot.slane %v14357_v13, 3  ;;  %v12440_v13 = vld [vmem:[%s13313_s20 + $0x4] sm:$0xfe]   ;;  %v5882_v28 = vrot.slane %v14437_v63, 1 }
 0x21d   : > { %v4265_v31 = vpop.permute.xlu1 %4264  ;;  %4213 = vst.msk [vmem:[#allocation2 + $0x20] sm:$0xff] %vm17729_vm11, %v4203_v34  ;;  %vm17737_vm11 = vmmov %vm17732_vm10  ;;  %v5357_v34 = vrot.slane %v5355_v17, 3  ;;  %11868 = vmatprep.subr.bf16.mxu1 %v17610_v37  ;;  %v5423_v17 = vsel %vm1505_vm5, %v5420_v40, %v5422_v41 }
 0x21e   : > { %4279 = vst.msk [vmem:[#allocation2] sm:$0xff] %vm17732_vm10, %v4265_v31  ;;  %5182 = vrot.lane.b32.xlu0 %v5173_v19, %s17731_s7  ;;  %v5787_v31 = vshll.u32 %v14363_v15, 16  ;;  %v14393_v19 = vld [vmem:[%s13313_s20] sm:$0xff]  }
 0x21f   : > { %5184 = vrot.lane.b32.xlu1 %v5175_v21, %s17731_s7  ;;  %v5782_v45 = vshll.u32 %v14393_v19, 16  ;;  %v5358_v56 = vor.u32 %v5357_v34, %v5354_v33  ;;  %v14498_v33 = vrot.slane %v5819_v10, 1  ;;  %v5887_v34 = vrot.slane %v14449_v4, 1  ;;  %v14557_v10 = vld [vmem:[%s13313_s20 + $0x2c] ss:$0 sps:$4 sm:$0x11]  }
 0x220   : > { %v4267_v52 = vpop.permute.xlu0 %4266  ;;  %v14414_v49 = vrot.slane %v5787_v31, 1  ;;  %11869 = vmatpush3.bf16.msra.mxu1 %v12494_v48  ;;  %v5815_v31 = vshrl.u32 %v14423_v53, 16  ;;  %v5429_v53 = vsel %vm1505_vm5, %v5426_v44, %v5428_v46 }
 0x221   : > { %v4269_v50 = vpop.permute.xlu1 %4268  ;;  %4280 = vst.msk [vmem:[#allocation2 + $0x8] sm:$0xff] %vm17732_vm10, %v4267_v52  ;;  %v5780_v52 = vshrl.u32 %v14393_v19, 16  ;;  %11926 = vmatprep.subr.bf16.mxu1 %v17610_v37  ;;  %v5359_v8 = vsel %vm1391_vm4, %v5349_v32, %v5358_v56  ;;  %v6034_v56 = vshll.u32 %v14496_v22, 16  ;;  %v600_v19 = vlaneseq }
 0x222   : > { %4281 = vst.msk [vmem:[#allocation2 + $0x10] sm:$0xff] %vm17734_vm12, %v4269_v50  ;;  %5186 = vrot.lane.b32.xlu0 %v5177_v47, %s17731_s7  ;;  %vm17738_vm12 = vmmov %vm17732_vm10  ;;  %vm17739_vm10 = vcmask 458144   ;;  %v5791_v50 = vshrl.u32 %v14363_v15, 16  ;;  %v5795_v47 = vshll.u32 %v14389_v30, 16  ;;  %s17745_s7 = smul.u32 14, %s18237_s30  ;;  %s17748_s30 = smov 104  }
 0x223   : > { %5248 = vrot.lane.b32.xlu1 %v5239_v38, %s17735_s5  ;;  %v5424_v38 = vrot.slane %v14371_v20, 3 }
 0x224   : > { %v4271_v5 = vpop.permute.xlu0 %4270  ;;  %v14432_v61 = vrot.slane %v5795_v47, 1  ;;  %s14460_s18 = sadd.s32 %s17745_s7, %s13047_s13  ;;  %v5959_v47 = vrot.slane %v14488_v25, 1  ;;  %s17755_s13 = smov 4  }
 0x225   : > { %v4273_v2 = vpop.permute.xlu1 %4272  ;;  %4282 = vst.msk [vmem:[#allocation2 + $0x18] sm:$0xff] %vm17738_vm12, %v4271_v5  ;;  %vm17741_vm12 = vmmov %vm17739_vm10  ;;  %v14452_v5 = vld [vmem:[%s13313_s20 + $0x20] sm:$0xff]   ;;  %v5425_v58 = vsel %vm1505_vm5, %v5422_v41, %v5424_v38  ;;  %s10848_s7 = sshll.u32 %s14460_s18, 2  ;;  %v5953_v41 = vrot.slane %v14466_v11, 1  ;;  %v5427_v57 = vsel %vm1505_vm5, %v5424_v38, %v5426_v44 }
 0x226   : > { %4283 = vst.msk [vmem:[#allocation2 + $0x20] sm:$0xff] %vm17737_vm11, %v4273_v2  ;;  %5250 = vrot.lane.b32.xlu0 %v5241_v3, %s17735_s5  ;;  %vm17740_vm11 = vmmov %vm17739_vm10  ;;  %v14443_v2 = vld [vmem:[%s13313_s20 + $0x10] sm:$0xff]   ;;  %v5421_v3 = vsel %vm1505_vm5, %v5419_v39, %v5420_v40  ;;  %v5889_v39 = vrot.slane %v14452_v5, 1  ;;  %v5891_v40 = vrot.slane %v14455_v6, 1  ;;  %v14668_v6 = vld [vmem:[%s13313_s20 + $0x20] sm:$0xff]  }
 0x227   : > { %5252 = vrot.lane.b32.xlu1 %v5243_v62, %s17735_s5  ;;  %v14434_v62 = vrot.slane %v5782_v45, 1  ;;  %v6026_v45 = vshll.u32 %v12440_v13, 16  ;;  %v5956_v4 = vsel %vm991_vm0, %v5953_v41, %v5955_v42 }
 0x228   : > { %v4377_v21 = vpop.permute.xlu0 %4376 }
 0x229   : > { %v4379_v23 = vpop.permute.xlu1 %4378  ;;  %4391 = vst.msk [vmem:[#allocation2] sm:$0xff] %vm17740_vm11, %v4377_v21  ;;  %vm17743_vm11 = vcmask 490944   ;;  %v5813_v21 = vrot.slane %v5811_v0, 1  ;;  %v5785_v27 = vor.u32 %v14434_v62, %v5780_v52  ;;  %v14543_v26 = vrot.slane %v6026_v45, 2 }
 0x22a   : > { %4392 = vst.msk [vmem:[#allocation2 + $0x8] sm:$0xff] %vm17739_vm10, %v4379_v23  ;;  %5254 = vrot.lane.b32.xlu0 %v5245_v24, %s17735_s5  ;;  %v5799_v23 = vshrl.u32 %v14389_v30, 16  ;;  %v14485_v24 = vld [vmem:[%s13313_s20 + $0x1c] sm:$0xff]   ;;  %v5885_v30 = vrot.slane %v14443_v2, 1  ;;  %v14642_v2 = vld [vmem:[%s13313_s20 + $0x24] sm:$0xff]  }
 0x22b   : > { %5256 = vrot.lane.b32.xlu1 %v5247_v16, %s17735_s5  ;;  %v14474_v16 = vld [vmem:[%s13313_s20 + $0x4] sm:$0xfe]   ;;  %v5957_v48 = vrot.slane %v14485_v24, 1  ;;  %v5790_v62 = vsel %vm886_vm1, %v5785_v27, %v14414_v49 }
 0x22c   : > { %v4381_v43 = vpop.permute.xlu0 %4380 }
 0x22d   : > { %v4383_v35 = vpop.permute.xlu1 %4382  ;;  %4393 = vst.msk [vmem:[#allocation2 + $0x10] sm:$0xff] %vm17739_vm10, %v4381_v43  ;;  %v5952_v43 = vrot.slane %v14474_v16, 1 }
 0x22e   : > { %4394 = vst.msk [vmem:[#allocation2 + $0x18] sm:$0xff] %vm17741_vm12, %v4383_v35  ;;  %5360 = vrot.lane.b32.xlu0 %v5323_v36, %s17742_s9  ;;  %vm17744_vm12 = vmmov %vm17739_vm10  ;;  %v6023_v35 = vshrl.u32 %v12440_v13, 16  ;;  %v12446_v13 = vld [vmem:[%s13313_s20 + $0x2c] ss:$0 sps:$4 sm:$0x33]  }
 0x22f   : > { %5362 = vrot.lane.b32.xlu1 %v5332_v29, %s17742_s9  ;;  %vm17746_vm10 = vmmov %vm17743_vm11  ;;  %v5883_v29 = vrot.slane %v14440_v1, 1  ;;  %v6070_v63 = vshll.u32 %v12446_v13, 16  ;;  %v14645_v1 = vld [vmem:[%s13313_s20 + $0x10] sm:$0xff]  }
 0x230   : > { %v4385_v60 = vpop.permute.xlu0 %4384  ;;  %v14537_v46 = vrot.slane %v6023_v35, 1  ;;  %v6067_v35 = vshrl.u32 %v12446_v13, 16  ;;  %v14637_v13 = vld [vmem:[%s13313_s20 + $0x8] sm:$0xfc]  }
 0x231   : > { %v4447_v54 = vpop.permute.xlu1 %4446  ;;  %4395 = vst.msk [vmem:[#allocation2 + $0x20] sm:$0xff] %vm17744_vm12, %v4385_v60  ;;  %vm17749_vm12 = vmmov %vm17746_vm10  ;;  %v12444_v60 = vld [vmem:[%s13313_s20 + $0x1c] sm:$0xff]   ;;  %v6204_v16 = vrot.slane %v14637_v13, 2 }
 0x232   : > { %4461 = vst.msk [vmem:[#allocation2] sm:$0xff] %vm17743_vm11, %v4447_v54  ;;  %5364 = vrot.lane.b32.xlu0 %v5341_v55, %s17742_s9  ;;  %vm17747_vm11 = vmmov %vm17746_vm10  ;;  %v5793_v54 = vor.u32 %v5791_v50, %v14414_v49  ;;  %v6031_v55 = vshrl.u32 %v14496_v22, 16  ;;  %v5809_v50 = vor.u32 %v5807_v18, %v14463_v9  ;;  %v6049_v0 = vshrl.u32 %v12444_v60, 16 }
 0x233   : > { %5366 = vrot.lane.b32.xlu1 %v5350_v51, %s17742_s9  ;;  %v12443_v51 = vld [vmem:[%s13313_s20 + $0x14] sm:$0xff]   ;;  %v6052_v18 = vshll.u32 %v12444_v60, 16  ;;  %v6029_v11 = vor.u32 %v14543_v26, %v14537_v46 }
 0x234   : > { %v4449_v14 = vpop.permute.xlu0 %4448  ;;  %v6040_v20 = vshrl.u32 %v12443_v51, 16  ;;  %v6043_v38 = vshll.u32 %v12443_v51, 16  ;;  %v5798_v44 = vsel %vm886_vm1, %v5793_v54, %v14432_v61  ;;  %v5814_v49 = vsel %vm886_vm1, %v5809_v50, %v5813_v21 }
 0x235   : > { %v4451_v7 = vpop.permute.xlu1 %4450  ;;  %4462 = vst.msk [vmem:[#allocation2 + $0x8] sm:$0xff] %vm17747_vm11, %v4449_v14  ;;  %vm17751_vm11 = vcmask 523744   ;;  %v14560_v14 = vshrl.u32 %v600_v19, 7  ;;  %v14586_v54 = vrot.slane %v6034_v56, 2  ;;  %v14598_v56 = vrot.slane %v6052_v18, 2 }
 0x236   : > { %4463 = vst.msk [vmem:[#allocation2 + $0x10] sm:$0xff] %vm17746_vm10, %v4451_v7  ;;  %5368 = vrot.lane.b32.xlu0 %v5359_v8, %s17742_s9  ;;  %s14516_s9 = scalar_lea.vmem %s17750_s4, %s10848_s7  ;;  %v12445_v7 = vld [vmem:[%s13313_s20 + $0x24] sm:$0xff]   ;;  %v5888_v19 = vsel %vm991_vm0, %v5885_v30, %v5887_v34  ;;  %s14950_s7 = sand.u32 1, %s12867_s28  }
 0x237   : > { %5430 = vrot.lane.b32.xlu1 %v5421_v3, %s17748_s30  ;;  %v5801_v3 = vor.u32 %v5799_v23, %v14432_v61  ;;  %v6058_v23 = vshrl.u32 %v12445_v7, 16  ;;  %v14584_v51 = vadd.s32 8, %v14560_v14  ;;  %17781 = sst [smem:[#allocation24_spill]] %s14950_s7  ;;  %s11962_s18 = smul.u32 160, %s14950_s7 }
 0x238   : > { %v4453_v36 = vpop.permute.xlu0 %4452  ;;  %s17862_s28 = smov 88   ;;  %s17863_s7 = smov 84  }
 0x239   : > { %v4455_v32 = vpop.permute.xlu1 %4454  ;;  %4464 = vst.msk [vmem:[#allocation2 + $0x18] sm:$0xff] %vm17746_vm10, %v4453_v36  ;;  %vm17753_vm10 = vmmov %vm17751_vm11  ;;  %v14570_v36 = vmul.u32.u64.low 3435973837, %v14560_v14  ;;  %v14571_v45 = vmul.u32.u64.high 3435973837, %v14560_v14, %v14570_v36  ;;  %v14600_v27 = vrot.slane %v6058_v23, 1  ;;  %v14665_v23 = vld [vmem:[%s13313_s20 + $0x18] sm:$0xff]   ;;  %s15118_s4 = scalar_lea.vmem [#allocation3], %s11962_s18 }
 0x23a   : > { %4465 = vst.msk [vmem:[#allocation2 + $0x20] sm:$0xff] %vm17749_vm12, %v4455_v32  ;;  %5432 = vrot.lane.b32.xlu0 %v5423_v17, %s17748_s30  ;;  %vm17752_vm12 = vmmov %vm17751_vm11  ;;  %v5806_v17 = vsel %vm886_vm1, %v5801_v3, %v14463_v9  ;;  %v6061_v32 = vshll.u32 %v12445_v7, 16  ;;  %v5884_v9 = vsel %vm991_vm0, %v5882_v28, %v5883_v29  ;;  %v5886_v3 = vsel %vm991_vm0, %v5883_v29, %v5885_v30  ;;  %v14633_v7 = vld [vmem:[%s13313_s20 + $0x1c] sm:$0xff]   ;;  %v14648_v29 = vld [vmem:[%s13313_s20 + $0x2c] ss:$0 sps:$4 sm:$0x33]  }
 0x23b   : > { %5434 = vrot.lane.b32.xlu1 %v5425_v58, %s17748_s30  ;;  %v5817_v58 = vor.u32 %v5815_v31, %v5813_v21  ;;  %v14581_v31 = vrot.slane %v6031_v55, 1  ;;  %v14594_v55 = vrot.slane %v6049_v0, 1  ;;  %v14630_v0 = vrot.slane %v6070_v63, 2  ;;  %v14695_v36 = vld [vmem:[%s13313_s20 + $0x30] ss:$0 sps:$4 sm:$0x33]  }
 0x23c   : > { %v4517_v15 = vpop.permute.xlu0 %4516  ;;  %v14602_v60 = vrot.slane %v6061_v32, 2  ;;  %v617_v30 = vshrl.u32 %v14571_v45, 3  ;;  %v6139_v32 = vrot.slane %v14633_v7, 2  ;;  %v12459_v45 = vld [vmem:[%s13313_s20 + $0x10] sm:$0xff]   ;;  %v6143_v63 = vrot.slane %v14648_v29, 2  ;;  %17800 = sst [smem:[#allocation25_spill]] %s15118_s4 }
 0x23d   : > { %v4519_v59 = vpop.permute.xlu1 %4518  ;;  %4531 = vst.msk [vmem:[#allocation2] sm:$0xff] %vm17752_vm12, %v4517_v15  ;;  %vm17756_vm12 = vmmov %vm17753_vm10  ;;  %v5822_v21 = vsel %vm886_vm1, %v5817_v58, %v14498_v33  ;;  %v14592_v33 = vrot.slane %v6043_v38, 2  ;;  %v14604_v15 = vrot.slane %v6067_v35, 1  ;;  %v14610_v38 = vld [vmem:[%s13313_s20 + $0x14] sm:$0xff]   ;;  %v6141_v35 = vrot.slane %v14642_v2, 2  ;;  %s580_s18 = sadd.s32 5, %s13041_s24 }
 0x23e   : > { %4532 = vst.msk [vmem:[#allocation2 + $0x8] sm:$0xff] %vm17751_vm11, %v4519_v59  ;;  %5436 = vrot.lane.b32.xlu0 %v5427_v57, %s17748_s30  ;;  %vm17754_vm11 = vmmov %vm17753_vm10  ;;  %v5961_v59 = vrot.slane %v14557_v10, 1  ;;  %v14589_v57 = vrot.slane %v6040_v20, 1  ;;  %v14607_v20 = vld [vmem:[%s13313_s20 + $0xc] sm:$0xff]   ;;  %v6137_v18 = vrot.slane %v14610_v38, 2  ;;  %v6037_v26 = vor.u32 %v14586_v54, %v14581_v31  ;;  %p583_p5 = scmp.lt.s32.totalorder %s580_s18, 9 }
 0x23f   : > { %5438 = vrot.lane.b32.xlu1 %v5429_v53, %s17748_s30  ;;  %v6283_v31 = vshrl.u32 %v12459_v45, 16  ;;  %v6286_v54 = vshll.u32 %v12459_v45, 16  ;;  %v14919_v38 = vld [vmem:[%s13313_s20 + $0x28] sm:$0xff]   ;;  %s17877_s24 = sld [smem:[#allocation22_spill]] }
 0x240   : > { %v4521_v8 = vpop.permute.xlu0 %4520  ;;  %v6038_v45 = vsel %vm17598_vm2, %v6029_v11, %v6037_v26  ;;  %v6393_v2 = vrot.slane %v14919_v38, 3  ;;  %s18239_s18 = smov (!%p583_p5, %s580_s18), 9 }
 0x241   : > { %v4523_v52 = vpop.permute.xlu1 %4522  ;;  %4533 = vst.msk [vmem:[#allocation2 + $0x10] sm:$0xff] %vm17754_vm11, %v4521_v8  ;;  %v14757_v10 = vrot.slane %v6286_v54, 3 }
 0x242   : > { %4534 = vst.msk [vmem:[#allocation2 + $0x18] sm:$0xff] %vm17753_vm10, %v4523_v52  ;;  %5823 = vrot.lane.b32.xlu0 %v5790_v62, %s17755_s13  ;;  %v14622_v50 = vmul.u32.u64.low 3435973837, %v14584_v51  ;;  %v14623_v52 = vmul.u32.u64.high 3435973837, %v14584_v51, %v14622_v50  ;;  %vm17757_vm10 = vcmask 589344  }
 0x243   : > { %5825 = vrot.lane.b32.xlu1 %v5798_v44, %s17755_s13  ;;  %v14619_v44 = vld [vmem:[%s13313_s20 + $0x4] sm:$0xfc]   ;;  %vm17758_vm11 = vmmov %vm17757_vm10  ;;  %v6046_v50 = vor.u32 %v14592_v33, %v14589_v57 }
 0x244   : > { %v4525_v22 = vpop.permute.xlu0 %4524  ;;  %v6134_v5 = vrot.slane %v14619_v44, 2 }
 0x245   : > { %v4629_v61 = vpop.permute.xlu1 %4628  ;;  %4535 = vst.msk [vmem:[#allocation2 + $0x20] sm:$0xff] %vm17756_vm12, %v4525_v22  ;;  %v5960_v22 = vsel %vm991_vm0, %v5957_v48, %v5959_v47  ;;  %vm17759_vm12 = vmmov %vm17757_vm10  ;;  %v6047_v11 = vsel %vm17598_vm2, %v6037_v26, %v6046_v50 }
 0x246   : > { %4643 = vst.msk [vmem:[#allocation2] sm:$0xff] %vm17594_vm14, %v4629_v61  ;;  %5827 = vrot.lane.b32.xlu0 %v5806_v17, %s17755_s13  ;;  %v5890_v61 = vsel %vm991_vm0, %v5887_v34, %v5889_v39  ;;  %v6135_v17 = vrot.slane %v14607_v20, 2  ;;  %v14678_v34 = vld [vmem:[%s13313_s20 + $0x28] sm:$0xff]   ;;  %v14878_v20 = vadd.s32 48, %v14560_v14 }
 0x247   : > { %5829 = vrot.lane.b32.xlu1 %v5814_v49, %s17755_s13  ;;  %v5892_v49 = vsel %vm991_vm0, %v5889_v39, %v5891_v40  ;;  %v5954_v39 = vsel %vm991_vm0, %v5952_v43, %v5953_v41  ;;  %v12460_v41 = vld [vmem:[%s13313_s20 + $0x18] sm:$0xff]   ;;  %v618_v43 = vmul.u32 10, %v617_v30  ;;  %v6213_v30 = vrot.slane %v14695_v36, 2 }
 0x248   : > { %v4631_v28 = vpop.permute.xlu0 %4630  ;;  %v6292_v57 = vshrl.u32 %v12460_v41, 16  ;;  %v6295_v33 = vshll.u32 %v12460_v41, 16  ;;  %v5962_v41 = vsel %vm991_vm0, %v5959_v47, %v5961_v59  ;;  %v14755_v47 = vrot.slane %v6283_v31, 2 }
 0x249   : > { %v4633_v53 = vpop.permute.xlu1 %4632  ;;  %4644 = vst.msk [vmem:[#allocation2 + $0x8] sm:$0xff] %vm17594_vm14, %v4631_v28  ;;  %v6207_v28 = vrot.slane %v14665_v23, 2  ;;  %v6073_v31 = vor.u32 %v14630_v0, %v14604_v15  ;;  %v14796_v0 = vadd.s32 32, %v14560_v14  ;;  %v14994_v36 = vadd.s32 64, %v14560_v14 }
 0x24a   : > { %4645 = vst.msk [vmem:[#allocation2 + $0x10] sm:$0xff] %vm17594_vm14, %v4633_v53  ;;  %5831 = vrot.lane.b32.xlu0 %v5822_v21, %s17755_s13  ;;  %v6205_v53 = vrot.slane %v14645_v1, 2  ;;  %v14765_v26 = vrot.slane %v6292_v57, 2  ;;  %v14775_v54 = vrot.slane %v6295_v33, 3 }
 0x24b   : > { %5893 = vrot.lane.b32.xlu1 %v5884_v9, %s17684_s16  ;;  %v628_v9 = vshrl.u32 %v14623_v52, 3  ;;  %v6209_v52 = vrot.slane %v14668_v6, 2 }
 0x24c   : > { %v4635_v8 = vpop.permute.xlu0 %4634 }
 0x24d   : > { %v4637_v62 = vpop.permute.xlu1 %4636  ;;  %4646 = vst.msk [vmem:[#allocation2 + $0x18] sm:$0xff] %vm17594_vm14, %v4635_v8  ;;  %v14722_v8 = vor.u32 %v14598_v56, %v14594_v55  ;;  %v5958_v55 = vsel %vm991_vm0, %v5955_v42, %v5957_v48 }
 0x24e   : > { %4647 = vst.msk [vmem:[#allocation2 + $0x20] sm:$0xff] %vm17594_vm14, %v4637_v62  ;;  %5895 = vrot.lane.b32.xlu0 %v5886_v3, %s17684_s16  ;;  %v6211_v62 = vrot.slane %v14678_v34, 2  ;;  %v12461_v3 = vld [vmem:[%s13313_s20 + $0x8] sm:$0xfc]  }
 0x24f   : > { %5897 = vrot.lane.b32.xlu1 %v5888_v19, %s17684_s16  ;;  %v14708_v19 = vadd.s32 16, %v14560_v14  ;;  %v6275_v12 = vshrl.u32 %v12461_v3, 16  ;;  %v6278_v24 = vshll.u32 %v12461_v3, 16 }
 0x250   : > { %v4699_v40 = vpop.permute.xlu0 %4698  ;;  %v6214_v1 = vsel %vm17597_vm3, %v6211_v62, %v6213_v30  ;;  %v6212_v30 = vsel %vm17597_vm3, %v6209_v52, %v6211_v62 }
 0x251   : > { %v4701_v58 = vpop.permute.xlu1 %4700  ;;  %4713 = vst.msk [vmem:[#allocation2] sm:$0xff] %vm17758_vm11, %v4699_v40  ;;  %v629_v40 = vmul.u32 10, %v628_v9  ;;  %vm17760_vm11 = vcmask 622144   ;;  %v14789_v57 = vrot.slane %v6278_v24, 3  ;;  %v14817_v24 = vadd.s32 40, %v14560_v14 }
 0x252   : > { %4714 = vst.msk [vmem:[#allocation2 + $0x8] sm:$0xff] %vm17757_vm10, %v4701_v58  ;;  %5899 = vrot.lane.b32.xlu0 %v5890_v61, %s17684_s16  ;;  %v14728_v58 = vsub.s32 %v14560_v14, %v618_v43  ;;  %v12463_v61 = vld [vmem:[%s13313_s20 + $0x28] sm:$0xff]   ;;  %v6056_v43 = vsel %vm17598_vm2, %v6046_v50, %v14722_v8 }
 0x253   : > { %5901 = vrot.lane.b32.xlu1 %v5892_v49, %s17684_s16  ;;  %v12462_v49 = vld [vmem:[%s13313_s20 + $0x20] sm:$0xff]   ;;  %v6310_v59 = vshrl.u32 %v12463_v61, 16  ;;  %v14769_v3 = vsub.s32 %v14584_v51, %v629_v40  ;;  %v6313_v51 = vshll.u32 %v12463_v61, 16 }
 0x254   : > { %v4703_v46 = vpop.permute.xlu0 %4702  ;;  %v6301_v42 = vshrl.u32 %v12462_v49, 16  ;;  %v6304_v48 = vshll.u32 %v12462_v49, 16  ;;  %v751_v50 = vadd.s32 10, %v14728_v58  ;;  %v14777_v49 = vrot.slane %v6275_v12, 2 }
 0x255   : > { %v4705_v21 = vpop.permute.xlu1 %4704  ;;  %4715 = vst.msk [vmem:[#allocation2 + $0x10] sm:$0xff] %vm17757_vm10, %v4703_v46  ;;  %v6064_v46 = vor.u32 %v14602_v60, %v14600_v27  ;;  %v12466_v60 = vld [vmem:[%s13313_s20 + $0x30] ss:$0 sps:$4 sm:$0x77]  }
 0x256   : > { %4716 = vst.msk [vmem:[#allocation2 + $0x18] sm:$0xff] %vm17759_vm12, %v4705_v21  ;;  %5963 = vrot.lane.b32.xlu0 %v5954_v39, %s17685_s26  ;;  %vm17761_vm12 = vmmov %vm17757_vm10  ;;  %vm721_vm10 = vcmp.ne.s32.totalorder %v14728_v58, 0  ;;  %v14791_v40 = vrot.slane %v6301_v42, 2  ;;  %v14793_v15 = vrot.slane %v6304_v48, 3  ;;  %v6319_v12 = vshrl.u32 %v12466_v60, 16  ;;  %v14825_v48 = vld [vmem:[%s13313_s20 + $0x10] sm:$0xff]  }
 0x257   : > { %5965 = vrot.lane.b32.xlu1 %v5956_v4, %s17685_s26  ;;  %v14737_v56 = vmul.u32.u64.low 3435973837, %v14708_v19  ;;  %v14738_v4 = vmul.u32.u64.high 3435973837, %v14708_v19, %v14737_v56  ;;  %v14822_v42 = vld [vmem:[%s13313_s20 + $0x8] sm:$0xf8]  }
 0x258   : > { %v4707_v39 = vpop.permute.xlu0 %4706 }
 0x259   : > { %v4754_v21 = vpop.permute.xlu1 %4753  ;;  %4717 = vst.msk [vmem:[#allocation2 + $0x20] sm:$0xff] %vm17761_vm12, %v4707_v39  ;;  %vm17762_vm12 = vcmask 622144  }
 0x25a   : > { %4768 = vst.msk [vmem:[#allocation2] sm:$0xff] %vm17760_vm11, %v4754_v21  ;;  %5967 = vrot.lane.b32.xlu0 %v5958_v55, %s17685_s26  ;;  %vm731_vm11 = vcmp.lt.s32.totalorder %v14728_v58, 0  ;;  %vm17763_vm14 = vmmov %vm17762_vm12  ;;  %v14798_v21 = vrot.slane %v6310_v59, 2  ;;  %v639_v55 = vshrl.u32 %v14738_v4, 3  ;;  %v14813_v4 = vrot.slane %v6313_v51, 3 }
 0x25b   : > { %5969 = vrot.lane.b32.xlu1 %v5960_v22, %s17685_s26  ;;  %v14760_v22 = vadd.s32 24, %v14560_v14  ;;  %vm17766_vm9 = vmmov %vm17763_vm14 }
 0x25c   : > { %v4756_v9 = vpop.permute.xlu0 %4755 }
 0x25d   : > { %v4758_v25 = vpop.permute.xlu1 %4757  ;;  %4769 = vst.msk [vmem:[#allocation2 + $0x8] sm:$0xff] %vm17763_vm14, %v4756_v9  ;;  %v14802_v61 = vmul.u32.u64.low 3435973837, %v14760_v22  ;;  %v14803_v56 = vmul.u32.u64.high 3435973837, %v14760_v22, %v14802_v61  ;;  %v6065_v9 = vsel %vm17598_vm2, %v14722_v8, %v6064_v46  ;;  %v6322_v8 = vshll.u32 %v12466_v60, 16 }
 0x25e   : > { %4770 = vst.msk [vmem:[#allocation2 + $0x10] sm:$0xff] %vm17762_vm12, %v4758_v25  ;;  %vm14783_vm12 = vmand %vm731_vm11, %vm721_vm10  ;;  %5971 = vrot.lane.b32.xlu0 %v5962_v41, %s17685_s26  ;;  %vm722_vm10 = vcmp.ne.s32.totalorder %v14769_v3, 0  ;;  %vm732_vm11 = vcmp.lt.s32.totalorder %v14769_v3, 0  ;;  %v752_v41 = vadd.s32 10, %v14769_v3  ;;  %v6136_v60 = vsel %vm17597_vm3, %v6134_v5, %v6135_v17 }
 0x25f   : > { %6075 = vrot.lane.b32.xlu1 %v6038_v45, %s17686_s14  ;;  %v761_v45 = vsel %vm14783_vm12, %v751_v50, %v14728_v58  ;;  %v6074_v58 = vsel %vm17598_vm2, %v6064_v46, %v6073_v31  ;;  %vm14841_vm12 = vmand %vm732_vm11, %vm722_vm10  ;;  %v640_v31 = vmul.u32 10, %v639_v55  ;;  %v14849_v46 = vld [vmem:[%s13313_s20 + $0x18] sm:$0xff]   ;;  %v6138_v55 = vsel %vm17597_vm3, %v6135_v17, %v6137_v18 }
 0x260   : > { %v4760_v39 = vpop.permute.xlu0 %4759  ;;  %v762_v61 = vsel %vm14841_vm12, %v752_v41, %v14769_v3  ;;  %v6386_v17 = vrot.slane %v14822_v42, 3  ;;  %v6387_v5 = vrot.slane %v14825_v48, 3 }
 0x261   : > { %v4762_v33 = vpop.permute.xlu1 %4761  ;;  %4771 = vst.msk [vmem:[#allocation2 + $0x18] sm:$0xff] %vm17766_vm9, %v4760_v39  ;;  %vm14833_vm9 = vcmp.lt.s32.totalorder %v761_v45, 8  ;;  %v641_v3 = vsub.s32 %v14708_v19, %v640_v31  ;;  %vm14886_vm11 = vcmp.lt.s32.totalorder %v762_v61, 8  ;;  %v6142_v19 = vsel %vm17597_vm3, %v6139_v32, %v6141_v35  ;;  %v14908_v31 = vld [vmem:[%s13313_s20 + $0x30] ss:$0 sps:$4 sm:$0x77]  }
 0x262   : > { %4772 = vst.msk [vmem:[#allocation2 + $0x20] sm:$0xff] %vm17763_vm14, %v4762_v33  ;;  %6077 = vrot.lane.b32.xlu0 %v6047_v11, %s17686_s14  ;;  %vm17771_vm14 = vcmask 654944   ;;  %v14852_v51 = vmul.u32.u64.low 3435973837, %v14817_v24  ;;  %v14853_v33 = vmul.u32.u64.high 3435973837, %v14817_v24, %v14852_v51  ;;  %v14872_v45 = vsel %vm14833_vm9, 1.0, %v17610_v37 }
 0x263   : > { %6079 = vrot.lane.b32.xlu1 %v6056_v43, %s17686_s14  ;;  %v14828_v25 = vmul.u32.u64.low 3435973837, %v14796_v0  ;;  %v14829_v43 = vmul.u32.u64.high 3435973837, %v14796_v0, %v14828_v25  ;;  %vm17772_vm8 = vmmov %vm17771_vm14  ;;  %vm17776_vm9 = vcmask 687744   ;;  %vm723_vm12 = vcmp.ne.s32.totalorder %v641_v3, 0 }
 0x264   : > { %v4857_v27 = vpop.permute.xlu0 %4856  ;;  %v650_v25 = vshrl.u32 %v14803_v56, 3  ;;  %vm17773_vm10 = vmmov %vm17772_vm8  ;;  %v14890_v56 = vrot.slane %v6322_v8, 3  ;;  %v14912_v8 = vmul.u32.u64.low 3435973837, %v14878_v20  ;;  %v14913_v51 = vmul.u32.u64.high 3435973837, %v14878_v20, %v14912_v8 }
 0x265   : > { %v4859_v59 = vpop.permute.xlu1 %4858  ;;  %4871 = vst.msk [vmem:[#allocation2] sm:$0xff] %vm17772_vm8, %v4857_v27  ;;  %v661_v27 = vshrl.u32 %v14829_v43, 3  ;;  %v672_v7 = vshrl.u32 %v14853_v33, 3  ;;  %v6144_v61 = vsel %vm17597_vm3, %v6141_v35, %v6143_v63  ;;  %v14937_v33 = vsel %vm14886_vm11, 1.0, %v17610_v37 }
 0x266   : > { %4872 = vst.msk [vmem:[#allocation2 + $0x8] sm:$0xff] %vm17771_vm14, %v4859_v59  ;;  %6081 = vrot.lane.b32.xlu0 %v6065_v9, %s17686_s14  ;;  %v6389_v59 = vrot.slane %v14849_v46, 3  ;;  %v6140_v9 = vsel %vm17597_vm3, %v6137_v18, %v6139_v32  ;;  %v651_v11 = vmul.u32 10, %v650_v25  ;;  %vm733_vm14 = vcmp.lt.s32.totalorder %v641_v3, 0  ;;  %17777 = vst [vmem:[#allocation23_spill] sm:$0xff] %v14937_v33 }
 0x267   : > { %6083 = vrot.lane.b32.xlu1 %v6074_v58, %s17686_s14  ;;  %v14874_v58 = vrot.slane %v6319_v12, 2  ;;  %v14893_v12 = vld [vmem:[%s13313_s20 + $0x20] sm:$0xff]   ;;  %v6206_v18 = vsel %vm17597_vm3, %v6204_v16, %v6205_v53  ;;  %v753_v32 = vadd.s32 10, %v641_v3  ;;  %v662_v16 = vmul.u32 10, %v661_v27 }
 0x268   : > { %v4861_v44 = vpop.permute.xlu0 %4860  ;;  %v6391_v43 = vrot.slane %v14893_v12, 3  ;;  %v14944_v13 = vsub.s32 %v14760_v22, %v651_v11  ;;  %v6395_v35 = vrot.slane %v14908_v31, 3  ;;  %v673_v63 = vmul.u32 10, %v672_v7 }
 0x269   : > { %v4863_v39 = vpop.permute.xlu1 %4862  ;;  %4873 = vst.msk [vmem:[#allocation2 + $0x10] sm:$0xff] %vm17773_vm10, %v4861_v44  ;;  %vm14939_vm10 = vmand %vm733_vm14, %vm723_vm12  ;;  %v14955_v25 = vadd.s32 56, %v14560_v14  ;;  %v6210_v22 = vsel %vm17597_vm3, %v6207_v28, %v6209_v52  ;;  %v6208_v44 = vsel %vm17597_vm3, %v6205_v53, %v6207_v28  ;;  %v6281_v11 = vor.u32 %v14789_v57, %v14777_v49 }
 0x26a   : > { %4874 = vst.msk [vmem:[#allocation2 + $0x18] sm:$0xff] %vm17772_vm8, %v4863_v39  ;;  %6145 = vrot.lane.b32.xlu0 %v6136_v60, %s17687_s17  ;;  %v763_v41 = vsel %vm14939_vm10, %v753_v32, %v641_v3  ;;  %vm724_vm11 = vcmp.ne.s32.totalorder %v14944_v13, 0  ;;  %vm734_vm12 = vcmp.lt.s32.totalorder %v14944_v13, 0  ;;  %v14990_v28 = vsub.s32 %v14817_v24, %v673_v63  ;;  %v15066_v32 = vld [vmem:[%s13869_s2] sm:$0xff]  }
 0x26b   : > { %6147 = vrot.lane.b32.xlu1 %v6138_v55, %s17687_s17  ;;  %v6289_v3 = vor.u32 %v14757_v10, %v14755_v47  ;;  %v6298_v24 = vor.u32 %v14775_v54, %v14765_v26  ;;  %v15011_v34 = vmul.u32.u64.low 3435973837, %v14955_v25  ;;  %v15012_v8 = vmul.u32.u64.high 3435973837, %v14955_v25, %v15011_v34  ;;  %vm15021_vm2 = vmand %vm734_vm12, %vm724_vm11 }
 0x26c   : > { %v4865_v55 = vpop.permute.xlu0 %4864  ;;  %vm726_vm6 = vcmp.ne.s32.totalorder %v14990_v28, 0  ;;  %v15027_v47 = vmul.u32.u64.low 3435973837, %v14994_v36  ;;  %v15028_v10 = vmul.u32.u64.high 3435973837, %v14994_v36, %v15027_v47  ;;  %v6307_v54 = vor.u32 %v14793_v15, %v14791_v40 }
 0x26d   : > { %v4927_v50 = vpop.permute.xlu1 %4926  ;;  %4875 = vst.msk [vmem:[#allocation2 + $0x20] sm:$0xff] %vm17772_vm8, %v4865_v55  ;;  %vm17780_vm8 = vmmov %vm17776_vm9  ;;  %v6299_v26 = vsel %vm1391_vm4, %v6289_v3, %v6298_v24  ;;  %v6316_v49 = vor.u32 %v14813_v4, %v14798_v21  ;;  %v15039_v55 = vadd.s32 72, %v14560_v14  ;;  %v756_v21 = vadd.s32 10, %v14990_v28 }
 0x26e   : > { %4941 = vst.msk [vmem:[#allocation2] sm:$0xff] %vm17776_vm9, %v4927_v50  ;;  %6149 = vrot.lane.b32.xlu0 %v6140_v9, %s17687_s17  ;;  %v754_v9 = vadd.s32 10, %v14944_v13  ;;  %v14974_v50 = vsub.s32 %v14796_v0, %v662_v16  ;;  %vm17782_vm14 = vmmov %vm17780_vm8  ;;  %v683_v0 = vshrl.u32 %v14913_v51, 3  ;;  %v6290_v51 = vsel %vm1391_vm4, %v6281_v11, %v6289_v3 }
 0x26f   : > { %6151 = vrot.lane.b32.xlu1 %v6142_v19, %s17687_s17  ;;  %vm17783_vm10 = vmmov %vm17780_vm8  ;;  %v6325_v39 = vor.u32 %v14890_v56, %v14874_v58  ;;  %v694_v63 = vshrl.u32 %v15012_v8, 3  ;;  %v6514_v42 = vshll.u32 %v15066_v32, 16  ;;  %v6394_v31 = vsel %vm1505_vm5, %v6391_v43, %v6393_v2 }
 0x270   : > { %v4929_v29 = vpop.permute.xlu0 %4928  ;;  %v684_v62 = vmul.u32 10, %v683_v0  ;;  %v755_v15 = vadd.s32 10, %v14974_v50 }
 0x271   : > { %v4931_v60 = vpop.permute.xlu1 %4930  ;;  %4942 = vst.msk [vmem:[#allocation2 + $0x8] sm:$0xff] %vm17780_vm8, %v4929_v29  ;;  %vm725_vm8 = vcmp.ne.s32.totalorder %v14974_v50, 0  ;;  %v695_v11 = vmul.u32 10, %v694_v63  ;;  %v12472_v63 = vld [vmem:[%s13869_s2 + $0x8] sm:$0xff]  }
 0x272   : > { %4943 = vst.msk [vmem:[#allocation2 + $0x10] sm:$0xff] %vm17776_vm9, %v4931_v60  ;;  %6153 = vrot.lane.b32.xlu0 %v6144_v61, %s17687_s17  ;;  %vm14985_vm9 = vcmp.lt.s32.totalorder %v763_v41, 8  ;;  %v15063_v4 = vsub.s32 %v14878_v20, %v684_v62  ;;  %v6317_v60 = vsel %vm1391_vm4, %v6307_v54, %v6316_v49  ;;  %v6308_v61 = vsel %vm1391_vm4, %v6298_v24, %v6307_v54  ;;  %v15147_v54 = vld [vmem:[%s13869_s2 + $0x10] sm:$0xff]  }
 0x273   : > { %6215 = vrot.lane.b32.xlu1 %v6206_v18, %s17688_s0  ;;  %v764_v18 = vsel %vm15021_vm2, %v754_v9, %v14944_v13  ;;  %v15050_v40 = vsel %vm14985_vm9, 1.0, %v17610_v37  ;;  %v15098_v9 = vld [vmem:[%s13869_s2 + $0x8] sm:$0xff]   ;;  %v6326_v24 = vsel %vm1391_vm4, %v6316_v49, %v6325_v39 }
 0x274   : > { %v4933_v23 = vpop.permute.xlu0 %4932  ;;  %vm15073_vm2 = vcmp.lt.s32.totalorder %v764_v18, 8  ;;  %v757_v3 = vadd.s32 10, %v15063_v4 }
 0x275   : > { %v4935_v19 = vpop.permute.xlu1 %4934  ;;  %4944 = vst.msk [vmem:[#allocation2 + $0x18] sm:$0xff] %vm17783_vm10, %v4933_v23  ;;  %vm17786_vm10 = vcmask 720544   ;;  %v15127_v52 = vsel %vm15073_vm2, 1.0, %v17610_v37 }
 0x276   : > { %4945 = vst.msk [vmem:[#allocation2 + $0x20] sm:$0xff] %vm17782_vm14, %v4935_v19  ;;  %6217 = vrot.lane.b32.xlu0 %v6208_v44, %s17688_s0  ;;  %vm735_vm14 = vcmp.lt.s32.totalorder %v14974_v50, 0  ;;  %vm17787_vm3 = vmmov %vm17786_vm10  ;;  %v6388_v19 = vsel %vm1505_vm5, %v6386_v17, %v6387_v5 }
 0x277   : > { %6219 = vrot.lane.b32.xlu1 %v6210_v22, %s17688_s0  ;;  %vm17790_vm11 = vmmov %vm17786_vm10  ;;  %v15087_v22 = vmul.u32.u64.low 3435973837, %v15039_v55  ;;  %v15088_v44 = vmul.u32.u64.high 3435973837, %v15039_v55, %v15087_v22  ;;  %17803 = vst [vmem:[#allocation26_spill] sm:$0xff] %v15127_v52 }
 0x278   : > { %v4997_v6 = vpop.permute.xlu0 %4996  ;;  %vm17791_vm12 = vmmov %vm17786_vm10 }
 0x279   : > { %v4999_v27 = vpop.permute.xlu1 %4998  ;;  %5011 = vst.msk [vmem:[#allocation2] sm:$0xff] %vm17787_vm3, %v4997_v6  ;;  %vm736_vm3 = vcmp.lt.s32.totalorder %v14990_v28, 0  ;;  %v716_v46 = vshrl.u32 %v15088_v44, 3 }
 0x27a   : > { %5012 = vst.msk [vmem:[#allocation2 + $0x8] sm:$0xff] %vm17786_vm10, %v4999_v27  ;;  %6221 = vrot.lane.b32.xlu0 %v6212_v30, %s17688_s0  ;;  %vm15056_vm10 = vmand %vm735_vm14, %vm725_vm8  ;;  %vm17798_vm8 = vcmask 753344   ;;  %vm727_vm14 = vcmp.ne.s32.totalorder %v15063_v4, 0  ;;  %v705_v27 = vshrl.u32 %v15028_v10, 3 }
 0x27b   : > { %6223 = vrot.lane.b32.xlu1 %v6214_v1, %s17688_s0  ;;  %vm15081_vm9 = vmand %vm736_vm3, %vm726_vm6  ;;  %v765_v1 = vsel %vm15056_vm10, %v755_v15, %v14974_v50  ;;  %vm737_vm3 = vcmp.lt.s32.totalorder %v15063_v4, 0  ;;  %v6512_v15 = vshrl.u32 %v15066_v32, 16  ;;  %v717_v44 = vmul.u32 10, %v716_v46 }
 0x27c   : > { %v5001_v7 = vpop.permute.xlu0 %5000  ;;  %vm17799_vm6 = vmmov %vm17790_vm11  ;;  %v766_v30 = vsel %vm15081_vm9, %v756_v21, %v14990_v28  ;;  %vm15129_vm10 = vcmp.lt.s32.totalorder %v765_v1, 8  ;;  %v6516_v21 = vrot.slane %v6514_v42, 1  ;;  %v15213_v1 = vld [vmem:[%s13869_s2 + $0x20] sm:$0xff]  }
 0x27d   : > { %v5003_v57 = vpop.permute.xlu1 %5002  ;;  %5013 = vst.msk [vmem:[#allocation2 + $0x10] sm:$0xff] %vm17791_vm12, %v5001_v7  ;;  %vm17802_vm12 = vmmov %vm17798_vm8  ;;  %vm15133_vm9 = vcmp.lt.s32.totalorder %v766_v30, 8  ;;  %v6396_v7 = vsel %vm1505_vm5, %v6393_v2, %v6395_v35  ;;  %v6527_v2 = vshll.u32 %v15147_v54, 16 }
 0x27e   : > { %5014 = vst.msk [vmem:[#allocation2 + $0x18] sm:$0xff] %vm17790_vm11, %v5003_v57  ;;  %6327 = vrot.lane.b32.xlu0 %v6290_v51, %s17690_s1  ;;  %vm17801_vm11 = vmmov %vm17798_vm8  ;;  %v6392_v57 = vsel %vm1505_vm5, %v6389_v59, %v6391_v43  ;;  %v6390_v51 = vsel %vm1505_vm5, %v6387_v5, %v6389_v59  ;;  %v15190_v12 = vsel %vm15133_vm9, 1.0, %v17610_v37  ;;  %v15195_v43 = vld [vmem:[%s13869_s2 + $0x18] sm:$0xff]  }
 0x27f   : > { %6329 = vrot.lane.b32.xlu1 %v6299_v26, %s17690_s1  ;;  %v6519_v26 = vshll.u32 %v15098_v9, 16  ;;  %vm17810_vm2 = vmmov %vm17801_vm11  ;;  %v15229_v30 = vrot.slane %v6527_v2, 1 }
 0x280   : > { %v5005_v58 = vpop.permute.xlu0 %5004 }
 0x281   : > { %v5109_v13 = vpop.permute.xlu1 %5108  ;;  %v3123_v16 = vpop.f32.mrb[0].mxu0  ;;  %5015 = vst.msk [vmem:[#allocation2 + $0x20] sm:$0xff] %vm17799_vm6, %v5005_v58  ;;  %vm17811_vm6 = vmmov %vm17810_vm2  ;;  %v15192_v38 = vrot.slane %v6519_v26, 1 }
 0x282   : > { %5123 = vst.msk [vmem:[#allocation2] sm:$0xff] %vm17798_vm8, %v5109_v13  ;;  %v3162_v56 = vmul.f32 %v14872_v45, %v3123_v16  ;;  %v11836_v41 = vpop.f32.mrb[1].mxu0  ;;  %6331 = vrot.lane.b32.xlu0 %v6308_v61, %s17690_s1  ;;  %vm15141_vm8 = vmand %vm737_vm3, %vm727_vm14  ;;  %v15185_v61 = vsel %vm15129_vm10, 1.0, %v17610_v37 }
 0x283   : > { %6333 = vrot.lane.b32.xlu1 %v6317_v60, %s17690_s1  ;;  %v3126_v23 = vpop.f32.mrb[2].mxu0  ;;  %v15167_v60 = vsub.s32 %v14955_v25, %v695_v11  ;;  %v767_v35 = vsel %vm15141_vm8, %v757_v3, %v15063_v4  ;;  %v706_v25 = vmul.u32 10, %v705_v27  ;;  %17812 = vst [vmem:[#allocation27_spill] sm:$0xff] %v15185_v61  ;;  %v6531_v3 = vshrl.u32 %v15147_v54, 16 }
 0x284   : > { %v3163_v17 = vmul.f32 %v14937_v33, %v3126_v23  ;;  %v11650_v53 = vpack.c.bf16 %v3126_v23, %v3123_v16  ;;  %v11837_v0 = vpop.f32.mrb[3].mxu0  ;;  %v3188_v34 = vmul.f32 %v3162_v56, %v3123_v16  ;;  %v5111_v28 = vpop.permute.xlu0 %5110  ;;  %vm15201_vm14 = vcmp.lt.s32.totalorder %v767_v35, 8  ;;  %v12480_v35 = vld [vmem:[%s13869_s2 + $0x20] sm:$0xff]  }
 0x285   : > { %v5113_v50 = vpop.permute.xlu1 %5112  ;;  %5124 = vst.msk [vmem:[#allocation2 + $0x8] sm:$0xff] %vm17802_vm12, %v5111_v28  ;;  %vm728_vm3 = vcmp.ne.s32.totalorder %v15167_v60, 0  ;;  %vm17815_vm12 = vcmask 786144   ;;  %v758_v42 = vadd.s32 10, %v15167_v60  ;;  %v12473_v0 = vld [vmem:[%s13869_s2] sm:$0xff]   ;;  %v6517_v27 = vor.u32 %v6516_v21, %v6512_v15  ;;  %v12476_v15 = vld [vmem:[%s13869_s2 + $0x10] sm:$0xff]  }
 0x286   : > { %v3172_v8 = vadd.f32 %v3163_v17, %v3162_v56  ;;  %v3189_v6 = vmul.f32 %v3163_v17, %v3126_v23  ;;  %11651 = vst [vmem:[%s15118_s4] sm:$0xff] %v11650_v53   ;;  %5125 = vst.msk [vmem:[#allocation2 + $0x10] sm:$0xff] %vm17801_vm11, %v5113_v50  ;;  %6335 = vrot.lane.b32.xlu0 %v6326_v24, %s17690_s1  ;;  %vm738_vm11 = vcmp.lt.s32.totalorder %v15167_v60, 0  ;;  %v6535_v17 = vshll.u32 %v15195_v43, 16 }
 0x287   : > { %6397 = vrot.lane.b32.xlu1 %v6388_v19, %s17691_s22  ;;  %v15210_v23 = vsub.s32 %v14994_v36, %v706_v25  ;;  %vm17816_vm10 = vmmov %vm17815_vm12  ;;  %v6523_v50 = vshrl.u32 %v15098_v9, 16  ;;  %v15244_v47 = vsel %vm15201_vm14, 1.0, %v17610_v37  ;;  %v12475_v9 = vld [vmem:[%s13869_s2 + $0x18] sm:$0xff]   ;;  %v6533_v46 = vor.u32 %v6531_v3, %v15229_v30 }
 0x288   : > { %v3198_v49 = vadd.f32 %v3189_v6, %v3188_v34  ;;  %v5115_v48 = vpop.permute.xlu0 %5114  ;;  %vm15225_vm9 = vmand %vm738_vm11, %vm728_vm3  ;;  %v15234_v34 = vld [vmem:[%s13869_s2 + $0x28] ss:$0 sps:$4 sm:$0x11]   ;;  %v6537_v26 = vrot.slane %v6535_v17, 1 }
 0x289   : > { %v5117_v18 = vpop.permute.xlu1 %5116  ;;  %v3131_v14 = vpop.f32.mrb[4].mxu0  ;;  %5126 = vst.msk [vmem:[#allocation2 + $0x18] sm:$0xff] %vm17811_vm6, %v5115_v48  ;;  %vm17819_vm8 = vmmov %vm17816_vm10  ;;  %vm739_vm6 = vcmp.lt.s32.totalorder %v15210_v23, 0  ;;  %v768_v10 = vsel %vm15225_vm9, %v758_v42, %v15167_v60  ;;  %v759_v54 = vadd.s32 10, %v15210_v23  ;;  %v6551_v2 = vshll.u32 %v15234_v34, 16 }
 0x28a   : > { %5127 = vst.msk [vmem:[#allocation2 + $0x20] sm:$0xff] %vm17810_vm2, %v5117_v18  ;;  %v3164_v5 = vmul.f32 %v15050_v40, %v3131_v14  ;;  %v11840_v59 = vpop.f32.mrb[5].mxu0  ;;  %6399 = vrot.lane.b32.xlu0 %v6390_v51, %s17691_s22  ;;  %vm729_vm2 = vcmp.ne.s32.totalorder %v15210_v23, 0  ;;  %vm17820_vm3 = vmmov %vm17819_vm8  ;;  %vm778_vm9 = vcmp.lt.s32.totalorder %v768_v10, 8 }
 0x28b   : > { %6401 = vrot.lane.b32.xlu1 %v6392_v57, %s17691_s22  ;;  %v3134_v32 = vpop.f32.mrb[6].mxu0  ;;  %vm15264_vm14 = vmand %vm739_vm6, %vm729_vm2  ;;  %v15293_v22 = vsel %vm778_vm9, 1.0, %v17610_v37  ;;  %vm17833_vm9 = vmmov 0  }
 0x28c   : > { %v3173_v4 = vadd.f32 %v3172_v8, %v3164_v5  ;;  %v3190_v39 = vmul.f32 %v3164_v5, %v3131_v14  ;;  %v3165_v13 = vmul.f32 %v15127_v52, %v3134_v32  ;;  %v11655_v16 = vpack.c.bf16 %v3134_v32, %v3131_v14  ;;  %v11841_v29 = vpop.f32.mrb[7].mxu0  ;;  %v5179_v19 = vpop.permute.xlu0 %5178 }
 0x28d   : > { %v5181_v20 = vpop.permute.xlu1 %5180  ;;  %5193 = vst.msk [vmem:[#allocation2] sm:$0xff] %vm17816_vm10, %v5179_v19  ;;  %v15237_v8 = vsub.s32 %v15039_v55, %v717_v44  ;;  %vm17823_vm10 = vcmask 818944   ;;  %v6525_v44 = vor.u32 %v6523_v50, %v15192_v38 }
 0x28e   : > { %v3199_v58 = vadd.f32 %v3198_v49, %v3190_v39  ;;  %v3174_v56 = vadd.f32 %v3173_v4, %v3165_v13  ;;  %v3191_v41 = vmul.f32 %v3165_v13, %v3134_v32  ;;  %11747 = vst [vmem:[%s15118_s4 + $0x8] sm:$0xff] %v11655_v16   ;;  %5194 = vst.msk [vmem:[#allocation2 + $0x8] sm:$0xff] %vm17815_vm12, %v5181_v20  ;;  %6403 = vrot.lane.b32.xlu0 %v6394_v31, %s17691_s22 }
 0x28f   : > { %6405 = vrot.lane.b32.xlu1 %v6396_v7, %s17691_s22  ;;  %v6543_v49 = vshll.u32 %v15213_v1, 16  ;;  %vm730_vm11 = vcmp.ne.s32.totalorder %v15237_v8, 0  ;;  %vm740_vm12 = vcmp.lt.s32.totalorder %v15237_v8, 0  ;;  %v6547_v32 = vshrl.u32 %v15213_v1, 16  ;;  %vm17827_vm6 = vmmov %vm17823_vm10 }
 0x290   : > { %v3200_v53 = vadd.f32 %v3199_v58, %v3191_v41  ;;  %v5183_v6 = vpop.permute.xlu0 %5182  ;;  %v760_v4 = vadd.s32 10, %v15237_v8  ;;  %v6522_v13 = vsel %vm886_vm1, %v6517_v27, %v15192_v38  ;;  %v769_v16 = vsel %vm15264_vm14, %v759_v54, %v15210_v23  ;;  %vm15288_vm2 = vmand %vm740_vm12, %vm730_vm11  ;;  %v12492_v54 = vld [vmem:[%s13869_s2 + $0x18] sm:$0xff]  }
 0x291   : > { %v5185_v24 = vpop.permute.xlu1 %5184  ;;  %v3139_v11 = vpop.f32.mrb[8].mxu0  ;;  %5195 = vst.msk [vmem:[#allocation2 + $0x10] sm:$0xff] %vm17820_vm3, %v5183_v6  ;;  %v6545_v25 = vrot.slane %v6543_v49, 1  ;;  %v6539_v58 = vshrl.u32 %v15195_v43, 16  ;;  %v6538_v23 = vsel %vm886_vm1, %v6533_v46, %v6537_v26  ;;  %vm15302_vm14 = vcmp.lt.s32.totalorder %v769_v16, 8  ;;  %v15330_v49 = vld [vmem:[%s13869_s2 + $0x20] sm:$0xff]  }
 0x292   : > { %5196 = vst.msk [vmem:[#allocation2 + $0x18] sm:$0xff] %vm17819_vm8, %v5185_v24  ;;  %v3166_v28 = vmul.f32 %v15185_v61, %v3139_v11  ;;  %v11844_v62 = vpop.f32.mrb[9].mxu0  ;;  %6452 = vrot.lane.b32.xlu0 %v12473_v0, %s17692_s21  ;;  %vm17824_vm8 = vmmov %vm17820_vm3  ;;  %v6553_v43 = vrot.slane %v6551_v2, 1  ;;  %v770_v17 = vsel %vm15288_vm2, %v760_v4, %v15237_v8  ;;  %v15311_v0 = vld [vmem:[%s13869_s2 + $0x10] sm:$0xff]   ;;  %v6530_v34 = vsel %vm886_vm1, %v6525_v44, %v15229_v30  ;;  %v12490_v8 = vld [vmem:[%s13869_s2] sm:$0xfe]  }
 0x293   : > { %6454 = vrot.lane.b32.xlu1 %v12472_v63, %s17692_s21  ;;  %v3142_v55 = vpop.f32.mrb[10].mxu0  ;;  %vm17828_vm3 = vmmov %vm17827_vm6  ;;  %v6549_v38 = vor.u32 %v6547_v32, %v6545_v25  ;;  %v6541_v6 = vor.u32 %v6539_v58, %v6537_v26  ;;  %vm780_vm12 = vcmp.lt.s32.totalorder %v770_v17, 8  ;;  %v15325_v30 = vsel %vm15302_vm14, 1.0, %v17610_v37  ;;  %v12495_v46 = vld [vmem:[%s13869_s2 + $0x4] sm:$0xfe]   ;;  %v12506_v4 = vld [vmem:[%s13869_s2 + $0xc] sm:$0xff]  }
 0x294   : > { %v3175_v57 = vadd.f32 %v3174_v56, %v3166_v28  ;;  %v3192_v51 = vmul.f32 %v3166_v28, %v3139_v11  ;;  %v3167_v7 = vmul.f32 %v15190_v12, %v3142_v55  ;;  %v11660_v18 = vpack.c.bf16 %v3142_v55, %v3139_v11  ;;  %v11845_v14 = vpop.f32.mrb[11].mxu0  ;;  %v5187_v31 = vpop.permute.xlu0 %5186  ;;  %vm17831_vm11 = vmmov %vm17828_vm3  ;;  %v12497_v2 = vld [vmem:[%s13869_s2 + $0x28] ss:$0 sps:$4 sm:$0x11]  }
 0x295   : > { %v5249_v21 = vpop.permute.xlu1 %5248  ;;  %5197 = vst.msk [vmem:[#allocation2 + $0x20] sm:$0xff] %vm17824_vm8, %v5187_v31  ;;  %v6617_v26 = vrot.slane %v15311_v0, 1  ;;  %v6546_v14 = vsel %vm886_vm1, %v6541_v6, %v6545_v25  ;;  %v6619_v25 = vrot.slane %v12492_v54, 1  ;;  %v6621_v32 = vrot.slane %v15330_v49, 1  ;;  %v12501_v49 = vld [vmem:[%s13313_s20] sm:$0xff]  }
 0x296   : > { %v3201_v48 = vadd.f32 %v3200_v53, %v3192_v51  ;;  %v3176_v5 = vadd.f32 %v3175_v57, %v3167_v7  ;;  %v3193_v59 = vmul.f32 %v3167_v7, %v3142_v55  ;;  %11748 = vst [vmem:[%s15118_s4 + $0x10] sm:$0xff] %v11660_v18   ;;  %5263 = vst.msk [vmem:[#allocation2] sm:$0xff] %vm17823_vm10, %v5249_v21  ;;  %6456 = vrot.lane.b32.xlu0 %v12476_v15, %s17692_s21  ;;  %v12488_v53 = vld [vmem:[%s13869_s2 + $0x8] sm:$0xff]   ;;  %vm17834_vm8 = vcmask 64544  }
 0x297   : > { %6458 = vrot.lane.b32.xlu1 %v12475_v9, %s17692_s21  ;;  %vm17832_vm10 = vmmov %vm17828_vm3  ;;  %v6615_v10 = vrot.slane %v12488_v53, 1  ;;  %v6554_v51 = vsel %vm886_vm1, %v6549_v38, %v6553_v43  ;;  %v15336_v15 = vsel %vm780_vm12, 1.0, %v17610_v37  ;;  %v6614_v21 = vrot.slane %v12490_v8, 1  ;;  %v15365_v43 = vld [vmem:[%s13869_s2 + $0x24] sm:$0xff]   ;;  %v12507_v53 = vld [vmem:[%s13869_s2 + $0x14] sm:$0xff]  }
 0x298   : > { %v3202_v39 = vadd.f32 %v3201_v48, %v3193_v59  ;;  %v5251_v56 = vpop.permute.xlu0 %5250  ;;  %v15342_v59 = vld [vmem:[%s13869_s2 + $0xc] sm:$0xff]   ;;  %v6763_v0 = vshrl.u32 %v12506_v4, 16  ;;  %v6772_v54 = vshrl.u32 %v12507_v53, 16  ;;  %vm17835_vm2 = vmmov %vm17834_vm8 }
 0x299   : > { %v5253_v20 = vpop.permute.xlu1 %5252  ;;  %v3147_v63 = vpop.f32.mrb[12].mxu0  ;;  %5264 = vst.msk [vmem:[#allocation2 + $0x8] sm:$0xff] %vm17828_vm3, %v5251_v56  ;;  %v6616_v58 = vsel %vm991_vm0, %v6614_v21, %v6615_v10  ;;  %v6684_v56 = vrot.slane %v12495_v46, 1  ;;  %v6685_v38 = vrot.slane %v15342_v59, 1  ;;  %vm17838_vm14 = vmmov %vm17835_vm2 }
 0x29a   : > { %5265 = vst.msk [vmem:[#allocation2 + $0x10] sm:$0xff] %vm17827_vm6, %v5253_v20  ;;  %v3168_v41 = vmul.f32 %v15244_v47, %v3147_v63  ;;  %v11848_v19 = vpop.f32.mrb[13].mxu0  ;;  %6460 = vrot.lane.b32.xlu0 %v12480_v35, %s17692_s21  ;;  %v6618_v35 = vsel %vm991_vm0, %v6615_v10, %v6617_v26  ;;  %v15370_v17 = vld [vmem:[%s13869_s2 + $0x2c] ss:$0 sps:$4 sm:$0x11]  }
 0x29b   : > { %6555 = vrot.lane.b32.xlu1 %v6522_v13, %s17693_s3  ;;  %v3150_v1 = vpop.f32.mrb[14].mxu0  ;;  %v6686_v10 = vsel %vm991_vm0, %v6684_v56, %v6685_v38  ;;  %vm17836_vm6 = vsmask.f32 6400 }
 0x29c   : > { %v3177_v36 = vadd.f32 %v3176_v5, %v3168_v41  ;;  %v3194_v3 = vmul.f32 %v3168_v41, %v3147_v63  ;;  %v3169_v50 = vmul.f32 %v15293_v22, %v3150_v1  ;;  %v11665_v24 = vpack.c.bf16 %v3150_v1, %v3147_v63  ;;  %v11849_v11 = vpop.f32.mrb[15].mxu0  ;;  %v5255_v9 = vpop.permute.xlu0 %5254  ;;  %v15353_v63 = vld [vmem:[%s13869_s2 + $0x14] sm:$0xff]   ;;  %v15357_v41 = vld [vmem:[%s13869_s2 + $0x1c] sm:$0xff]   ;;  %vm17837_vm3 = vmmov %vm17836_vm6 }
 0x29d   : > { %v5257_v27 = vpop.permute.xlu1 %5256  ;;  %5266 = vst.msk [vmem:[#allocation2 + $0x18] sm:$0xff] %vm17832_vm10, %v5255_v9  ;;  %v6687_v6 = vrot.slane %v15353_v63, 1  ;;  %v6689_v8 = vrot.slane %v15357_v41, 1  ;;  %v12511_v9 = vld [vmem:[%s13869_s2 + $0x24] sm:$0xff]   ;;  %vm17840_vm12 = vmmov %vm17837_vm3 }
 0x29e   : > { %v3203_v28 = vadd.f32 %v3202_v39, %v3194_v3  ;;  %v3178_v62 = vadd.f32 %v3177_v36, %v3169_v50  ;;  %v3195_v55 = vmul.f32 %v3169_v50, %v3150_v1  ;;  %11749 = vst [vmem:[%s15118_s4 + $0x18] sm:$0xff] %v11665_v24   ;;  %5267 = vst.msk [vmem:[#allocation2 + $0x20] sm:$0xff] %vm17831_vm11, %v5257_v27  ;;  %6557 = vrot.lane.b32.xlu0 %v6530_v34, %s17693_s3  ;;  %v12508_v24 = vld [vmem:[%s13869_s2 + $0x4] sm:$0xfe]  }
 0x29f   : > { %6559 = vrot.lane.b32.xlu1 %v6538_v23, %s17693_s3  ;;  %v6766_v36 = vshll.u32 %v12506_v4, 16  ;;  %v6622_v50 = vsel %vm991_vm0, %v6619_v25, %v6621_v32  ;;  %v6620_v27 = vsel %vm991_vm0, %v6617_v26, %v6619_v25  ;;  %v6623_v34 = vrot.slane %v12497_v2, 1  ;;  %vm17839_vm11 = vmmov %vm17835_vm2 }
 0x2a0   : > { %v3204_v57 = vadd.f32 %v3203_v28, %v3195_v55  ;;  %v5361_v60 = vpop.permute.xlu0 %5360  ;;  %v12510_v28 = vld [vmem:[%s13869_s2 + $0x1c] sm:$0xff]   ;;  %v6691_v55 = vrot.slane %v15365_v43, 1  ;;  %v6693_v26 = vrot.slane %v15370_v17, 1  ;;  %v6758_v46 = vshll.u32 %v12508_v24, 16  ;;  %vm17841_vm10 = vmmov %vm17837_vm3 }
 0x2a1   : > { %v5363_v7 = vpop.permute.xlu1 %5362  ;;  %v3155_v18 = vpop.f32.mrb[16].mxu0  ;;  %5375 = vst.msk [vmem:[#allocation2] sm:$0xff] %vm2943_vm13, %v5361_v60  ;;  %v6624_v21 = vsel %vm991_vm0, %v6621_v32, %v6623_v34  ;;  %v6781_v60 = vshrl.u32 %v12510_v28, 16  ;;  %v6790_v59 = vshrl.u32 %v12511_v9, 16  ;;  %v6690_v25 = vsel %vm991_vm0, %v6687_v6, %v6689_v8  ;;  %v12509_v17 = vld [vmem:[%s13313_s20 + $0x20] sm:$0xff]  }
 0x2a2   : > { %5376 = vst.msk [vmem:[#allocation2 + $0x8] sm:$0xff] %vm2943_vm13, %v5363_v7  ;;  %v3170_v48 = vmul.f32 %v15325_v30, %v3155_v18  ;;  %v11852_v5 = vpop.f32.mrb[17].mxu0  ;;  %6561 = vrot.lane.b32.xlu0 %v6546_v14, %s17693_s3  ;;  %v6775_v7 = vshll.u32 %v12507_v53, 16  ;;  %v6774_v32 = vrot.slane %v6772_v54, 1 }
 0x2a3   : > { %6563 = vrot.lane.b32.xlu1 %v6554_v51, %s17693_s3  ;;  %v3158_v31 = vpop.f32.mrb[18].mxu0  ;;  %v6768_v51 = vrot.slane %v6766_v36, 2  ;;  %v6784_v5 = vshll.u32 %v12510_v28, 16  ;;  %v6792_v41 = vrot.slane %v6790_v59, 1 }
 0x2a4   : > { %v3179_v39 = vadd.f32 %v3178_v62, %v3170_v48  ;;  %v3196_v13 = vmul.f32 %v3170_v48, %v3155_v18  ;;  %v3171_v16 = vmul.f32 %v15336_v15, %v3158_v31  ;;  %v11670_v29 = vpack.c.bf16 %v3158_v31, %v3155_v18  ;;  %v11853_v20 = vpop.f32.mrb[19].mxu0  ;;  %v5365_v42 = vpop.permute.xlu0 %5364 }
 0x2a5   : > { %v5367_v44 = vpop.permute.xlu1 %5366  ;;  %5377 = vst.msk [vmem:[#allocation2 + $0x10] sm:$0xff] %vm2943_vm13, %v5365_v42  ;;  %v6755_v18 = vshrl.u32 %v12508_v24, 16  ;;  %v6777_v2 = vrot.slane %v6775_v7, 2  ;;  %v6760_v20 = vrot.slane %v6758_v46, 2  ;;  %v6786_v56 = vrot.slane %v6784_v5, 2  ;;  %v12520_v5 = vld [vmem:[%s13869_s2 + $0x10] sm:$0xff]  }
 0x2a6   : > { %v3205_v19 = vadd.f32 %v3204_v57, %v3196_v13  ;;  %v15359_v23 = vadd.f32 %v3179_v39, %v3171_v16  ;;  %v3197_v1 = vmul.f32 %v3171_v16, %v3158_v31  ;;  %11750 = vst [vmem:[%s15118_s4 + $0x20] sm:$0xff] %v11670_v29   ;;  %5378 = vst.msk [vmem:[#allocation2 + $0x18] sm:$0xff] %vm2943_vm13, %v5367_v44  ;;  %6625 = vrot.lane.b32.xlu0 %v6616_v58, %s17694_s15  ;;  %v12500_v16 = vld [vmem:[%s13313_s20 + $0x8] sm:$0xff]   ;;  %v12505_v44 = vld [vmem:[%s13313_s20 + $0x10] sm:$0xff]   ;;  %s17868_s4 = smov 92  }
 0x2a7   : > { %6627 = vrot.lane.b32.xlu1 %v6618_v35, %s17694_s15  ;;  %v6765_v57 = vrot.slane %v6763_v0, 1  ;;  %v6793_v31 = vshll.u32 %v12511_v9, 16  ;;  %v12514_v35 = vld [vmem:[%s13869_s2 + $0x2c] ss:$0 sps:$4 sm:$0x33]   ;;  %v6688_v13 = vsel %vm991_vm0, %v6685_v38, %v6687_v6  ;;  %v6757_v29 = vrot.slane %v6755_v18, 1 }
 0x2a8   : > { %v15373_v3 = vadd.f32 %v3205_v19, %v3197_v1  ;;  %v5369_v62 = vpop.permute.xlu0 %5368  ;;  %v6783_v58 = vrot.slane %v6781_v60, 1  ;;  %v6799_v1 = vshrl.u32 %v12514_v35, 16  ;;  %v6694_v42 = vsel %vm991_vm0, %v6691_v55, %v6693_v26  ;;  %v12512_v24 = vld [vmem:[%s13869_s2 + $0x4] sm:$0xfc]   ;;  %v12504_v6 = vld [vmem:[%s13313_s20 + $0x18] sm:$0xff]   ;;  %s17874_s20 = smov 100  }
 0x2a9   : > { %v5431_v11 = vpop.permute.xlu1 %5430  ;;  %5379 = vst.msk [vmem:[#allocation2 + $0x20] sm:$0xff] %vm2943_vm13, %v5369_v62  ;;  %v6795_v19 = vrot.slane %v6793_v31, 2  ;;  %v6769_v38 = vor.u32 %v6768_v51, %v6765_v57  ;;  %v6778_v43 = vor.u32 %v6777_v2, %v6774_v32  ;;  %v6692_v0 = vsel %vm991_vm0, %v6689_v8, %v6691_v55  ;;  %v15420_v8 = vld [vmem:[%s13869_s2 + $0xc] sm:$0xff]   ;;  %v12515_v9 = vld [vmem:[%s13869_s2 + $0x14] sm:$0xff]   ;;  %v15430_v51 = vld [vmem:[%s13869_s2 + $0x1c] sm:$0xff]  }
 0x2aa   : > { %5445 = vst.msk [vmem:[#allocation2] sm:$0xff] %vm3014_vm15, %v5431_v11  ;;  %6629 = vrot.lane.b32.xlu0 %v6620_v27, %s17694_s15  ;;  %v6802_v11 = vshll.u32 %v12514_v35, 16  ;;  %v6787_v62 = vor.u32 %v6786_v56, %v6783_v58  ;;  %v12519_v7 = vld [vmem:[%s13869_s2 + $0x8] sm:$0xfc]   ;;  %v6867_v46 = vrot.slane %v15420_v8, 2  ;;  %v12603_v8 = vld [vmem:[%s17683_s6] sm:$0xff]  }
 0x2ab   : > { %6631 = vrot.lane.b32.xlu1 %v6622_v50, %s17694_s15  ;;  %v6761_v50 = vor.u32 %v6760_v20, %v6757_v29  ;;  %v6779_v28 = vsel %vm17836_vm6, %v6769_v38, %v6778_v43  ;;  %v6796_v55 = vor.u32 %v6795_v19, %v6792_v41  ;;  %v15443_v60 = vld [vmem:[%s13869_s2 + $0x24] sm:$0xff]   ;;  %v7007_v32 = vshrl.u32 %v12519_v7, 16  ;;  %11891 = vmatpush3.bf16.msra.mxu0 %v12603_v8 }
 0x2ac   : > { %v5433_v48 = vpop.permute.xlu0 %5432  ;;  %v6804_v57 = vrot.slane %v6802_v11, 2  ;;  %v6788_v35 = vsel %vm17841_vm10, %v6778_v43, %v6787_v62  ;;  %v7010_v29 = vshll.u32 %v12519_v7, 16  ;;  %vm17843_vm6 = vcmask 1045504   ;;  %v15460_v19 = vld [vmem:[%s14516_s9] sm:$0xff]   ;;  %v15470_v43 = vld [vmem:[%s13869_s2 + $0x10] sm:$0xff]   ;;  %11892 = vmatprep.subr.bf16.mxu0 %v17610_v37 }
 0x2ad   : > { %v5435_v14 = vpop.permute.xlu1 %5434  ;;  %5446 = vst.msk [vmem:[#allocation2 + $0x8] sm:$0xff] %vm3014_vm15, %v5433_v48  ;;  %v6770_v26 = vsel %vm17837_vm3, %v6761_v50, %v6769_v38  ;;  %v12518_v48 = vld [vmem:[%s13869_s2 + $0x2c] ss:$0 sps:$4 sm:$0x33]   ;;  %v6797_v59 = vsel %vm17840_vm12, %v6787_v62, %v6796_v55  ;;  %v7009_v41 = vrot.slane %v7007_v32, 2  ;;  %vm17846_vm12 = vmmov %vm17843_vm6  ;;  %v15479_v11 = vld [vmem:[%s13869_s2 + $0x10] sm:$0xff]  }
 0x2ae   : > { %5447 = vst.msk [vmem:[#allocation2 + $0x10] sm:$0xff] %vm3014_vm15, %v5435_v14  ;;  %6633 = vrot.lane.b32.xlu0 %v6624_v21, %s17694_s15  ;;  %v6866_v21 = vrot.slane %v12512_v24, 2  ;;  %v12521_v38 = vld [vmem:[%s13869_s2 + $0x8] sm:$0xfc]   ;;  %vm17847_vm10 = vmmov %vm17843_vm6  ;;  %v6937_v62 = vrot.slane %v15470_v43, 2  ;;  %v15634_v43 = vld [vmem:[%s14516_s9 + $0x10] sm:$0xff]  }
 0x2af   : > { %6695 = vrot.lane.b32.xlu1 %v6686_v10, %s17695_s11 }
 0x2b0   : > { %v5437_v63 = vpop.permute.xlu0 %5436  ;;  %v6868_v20 = vsel %vm17843_vm6, %v6866_v21, %v6867_v46  ;;  %v7119_v21 = vrot.slane %v15479_v11, 3  ;;  %v15681_v11 = vld [vmem:[%s14516_s9 + $0x14] sm:$0xff]  }
 0x2b1   : > { %v5439_v4 = vpop.permute.xlu1 %5438  ;;  %v5450_v39 = vld [vmem:[#allocation2] sm:$0xff]  ;;  %5448 = vst.msk [vmem:[#allocation2 + $0x18] sm:$0xff] %vm3014_vm15, %v5437_v63  ;;  %v7015_v63 = vshrl.u32 %v12520_v5, 16 }
 0x2b2   : > { %5449 = vst.msk [vmem:[#allocation2 + $0x20] sm:$0xff] %vm3014_vm15, %v5439_v4  ;;  %11871 = vmatmul.mubr.bf16.vlgmr.msra.gmra.mrb[0].mxu1 %v5450_v39  ;;  %6697 = vrot.lane.b32.xlu0 %v6688_v13, %s17695_s11  ;;  %v6869_v4 = vrot.slane %v12515_v9, 2  ;;  %v6871_v39 = vrot.slane %v15430_v51, 2  ;;  %v6873_v13 = vrot.slane %v15443_v60, 2  ;;  %v12530_v9 = vld [vmem:[%s14516_s9 + $0x4] sm:$0xfe]  }
 0x2b3   : > { %5735 = vst.msk [vmem:[#allocation2] sm:$0xff] %vm841_vm7, %v12501_v49  ;;  %6699 = vrot.lane.b32.xlu1 %v6690_v25, %s17695_s11  ;;  %11874 = vmatprep.mubr.msk.bf16.mxu1 %vm17833_vm9, %v17610_v37  ;;  %v6801_v49 = vrot.slane %v6799_v1, 1  ;;  %v15500_v51 = vld [vmem:[%s14516_s9] sm:$0xfe]   ;;  %v7244_v60 = vshrl.u32 %v15460_v19, 16 }
 0x2b4   : > { %v5451_v27 = vld [vmem:[#allocation2 + $0x8] sm:$0xff]  ;;  %v5824_v34 = vpop.permute.xlu0 %5823  ;;  %v6870_v24 = vsel %vm17847_vm10, %v6867_v46, %v6869_v4 }
 0x2b5   : > { %v5826_v53 = vpop.permute.xlu1 %5825  ;;  %v15411_v36 = vld [vmem:[#allocation2 + $0x10] sm:$0xff]  ;;  %5736 = vst.msk [vmem:[#allocation2 + $0x8] sm:$0xff] %vm841_vm7, %v12500_v16  ;;  %v6805_v25 = vor.u32 %v6804_v57, %v6801_v49  ;;  %v6875_v16 = vrot.slane %v12518_v48, 2  ;;  %v15505_v46 = vld [vmem:[%s14516_s9 + $0x8] sm:$0xff]  }
 0x2b6   : > { %5737 = vst.msk [vmem:[#allocation2 + $0x10] sm:$0xff] %vm841_vm7, %v12505_v44  ;;  %6701 = vrot.lane.b32.xlu0 %v6692_v0, %s17695_s11  ;;  %v7018_v44 = vshll.u32 %v12520_v5, 16  ;;  %v7017_v0 = vrot.slane %v7015_v63, 2  ;;  %v15534_v63 = vld [vmem:[%s13869_s2 + $0x18] sm:$0xff]  }
 0x2b7   : > { %5838 = vst.msk [vmem:[#allocation2] sm:$0xff] %vm17834_vm8, %v5824_v34  ;;  %6703 = vrot.lane.b32.xlu1 %v6694_v42, %s17695_s11  ;;  %vm17842_vm8 = vcmask 97344   ;;  %v6806_v56 = vsel %vm17837_vm3, %v6796_v55, %v6805_v25  ;;  %v7012_v42 = vrot.slane %v7010_v29, 3  ;;  %vm17849_vm3 = vmmov %vm17843_vm6  ;;  %v7490_v25 = vshll.u32 %v12530_v9, 16  ;;  %v12523_v29 = vld [vmem:[%s14516_s9] sm:$0xff]  }
 0x2b8   : > { %5839 = vst.msk [vmem:[#allocation2 + $0x8] sm:$0xff] %vm17835_vm2, %v5826_v53  ;;  %v15433_v18 = vld [vmem:[#allocation2 + $0x18] sm:$0xff]  ;;  %v5828_v14 = vpop.permute.xlu0 %5827  ;;  %v6872_v53 = vsel %vm17846_vm12, %v6869_v4, %v6871_v39  ;;  %v15523_v4 = vld [vmem:[%s14516_s9 + $0x4] sm:$0xfe]   ;;  %vm17852_vm12 = vmmov %vm17849_vm3 }
 0x2b9   : > { %v5830_v10 = vpop.permute.xlu1 %5829  ;;  %v15427_v54 = vld [vmem:[#allocation2 + $0x20] sm:$0xff]  ;;  %5738 = vst.msk [vmem:[#allocation2 + $0x18] sm:$0xff] %vm841_vm7, %v12504_v6  ;;  %v15484_v6 = vld [vmem:[%s14516_s9 + $0x8] sm:$0xff]   ;;  %v7013_v49 = vor.u32 %v7012_v42, %v7009_v41 }
 0x2ba   : > { %11875 = vmatmul.mubr.bf16.gmra.mrb[4].mxu1 %v5451_v27  ;;  %5739 = vst.msk [vmem:[#allocation2 + $0x20] sm:$0xff] %vm841_vm7, %v12509_v17  ;;  %6807 = vrot.lane.b32.xlu0 %v6770_v26, %s17696_s25  ;;  %v15473_v17 = vld [vmem:[%s13869_s2 + $0x8] sm:$0xf8]   ;;  %v7246_v27 = vshll.u32 %v15460_v19, 16  ;;  %v6876_v26 = vsel %vm17843_vm6, %v6873_v13, %v6875_v16  ;;  %v7492_v19 = vrot.slane %v7490_v25, 2 }
 0x2bb   : > { %5840 = vst.msk [vmem:[#allocation2 + $0x10] sm:$0xff] %vm17838_vm14, %v5828_v14  ;;  %6809 = vrot.lane.b32.xlu1 %v6779_v28, %s17696_s25  ;;  %11878 = vmatprep.mubr.msk.bf16.mxu1 %vm17833_vm9, %v17610_v37  ;;  %vm17844_vm14 = vmmov %vm17842_vm8  ;;  %v6936_v28 = vrot.slane %v12521_v38, 2  ;;  %v7118_v55 = vrot.slane %v15473_v17, 3  ;;  %v6874_v14 = vsel %vm17849_vm3, %v6871_v39, %v6873_v13  ;;  %v15526_v39 = vld [vmem:[%s14516_s9 + $0xc] sm:$0xff]   ;;  %v15545_v42 = vld [vmem:[%s14516_s9 + $0x4] sm:$0xfc]  }
 0x2bc   : > { %5841 = vst.msk [vmem:[#allocation2 + $0x18] sm:$0xff] %vm17839_vm11, %v5830_v10  ;;  %v5832_v2 = vpop.permute.xlu0 %5831  ;;  %vm17845_vm11 = vmmov %vm17842_vm8  ;;  %v12531_v10 = vld [vmem:[%s14516_s9 + $0xc] sm:$0xff]   ;;  %v7248_v48 = vrot.slane %v7246_v27, 1  ;;  %v7417_v8 = vrot.slane %v15526_v39, 1 }
 0x2bd   : > { %v5894_v31 = vpop.permute.xlu1 %5893  ;;  %5842 = vst.msk [vmem:[#allocation2 + $0x20] sm:$0xff] %vm17835_vm2, %v5832_v2  ;;  %vm17848_vm2 = vmmov %vm17842_vm8  ;;  %v7495_v32 = vshrl.u32 %v12531_v10, 16  ;;  %v7498_v2 = vshll.u32 %v12531_v10, 16  ;;  %v6938_v16 = vsel %vm17852_vm12, %v6936_v28, %v6937_v62  ;;  %v15548_v38 = vld [vmem:[%s14516_s9 + $0xc] sm:$0xff]   ;;  %v7024_v28 = vshrl.u32 %v15534_v63, 16 }
 0x2be   : > { %5908 = vst.msk [vmem:[#allocation2] sm:$0xff] %vm17842_vm8, %v5894_v31  ;;  %6811 = vrot.lane.b32.xlu0 %v6788_v35, %s17696_s25  ;;  %v12607_v31 = vld [vmem:[%s17683_s6 + $0x8] sm:$0xff]   ;;  %v7487_v35 = vshrl.u32 %v12530_v9, 16  ;;  %v7598_v9 = vrot.slane %v15545_v42, 2 }
 0x2bf   : > { %6813 = vrot.lane.b32.xlu1 %v6797_v59, %s17696_s25  ;;  %v7251_v59 = vshll.u32 %v15484_v6, 16  ;;  %11893 = vmatpush3.bf16.msra.mxu0 %v12607_v31  ;;  %v7500_v17 = vrot.slane %v7498_v2, 2  ;;  %v12540_v10 = vld [vmem:[%s14516_s9 + $0x8] sm:$0xfc]   ;;  %v7027_v31 = vshll.u32 %v15534_v63, 16  ;;  %v7026_v25 = vrot.slane %v7024_v28, 2 }
 0x2c0   : > { %v5896_v1 = vpop.permute.xlu0 %5895  ;;  %11894 = vmatprep.subr.bf16.mxu0 %v17610_v37  ;;  %v7489_v41 = vrot.slane %v7487_v35, 1  ;;  %v7739_v2 = vshrl.u32 %v12540_v10, 16  ;;  %v15623_v28 = vld [vmem:[%s13869_s2 + $0x18] sm:$0xff]  }
 0x2c1   : > { %v5898_v58 = vpop.permute.xlu1 %5897  ;;  %5909 = vst.msk [vmem:[#allocation2 + $0x8] sm:$0xff] %vm17845_vm11, %v5896_v1  ;;  %v7497_v1 = vrot.slane %v7495_v32, 1  ;;  %v12617_v32 = vld [vmem:[%s17683_s6 + $0x20] sm:$0xff]  }
 0x2c2   : > { %5910 = vst.msk [vmem:[#allocation2 + $0x10] sm:$0xff] %vm17844_vm14, %v5898_v58  ;;  %11879 = vmatmul.mubr.bf16.gmra.mrb[8].mxu1 %v15411_v36  ;;  %6815 = vrot.lane.b32.xlu0 %v6806_v56, %s17696_s25  ;;  %v7020_v36 = vrot.slane %v7018_v44, 3  ;;  %vm17850_vm14 = vcmask 130144   ;;  %v7347_v58 = vrot.slane %v15505_v46, 1  ;;  %v12610_v56 = vld [vmem:[%s17683_s6 + $0x10] sm:$0xff]   ;;  %s17881_s25 = sld [smem:[#allocation33_spill]] }
 0x2c3   : > { %6877 = vrot.lane.b32.xlu1 %v6868_v20, %s17697_s10  ;;  %11882 = vmatprep.mubr.msk.bf16.mxu1 %vm17833_vm9, %v17610_v37  ;;  %vm17851_vm11 = vmmov %vm17850_vm14  ;;  %v7346_v20 = vrot.slane %v15500_v51, 1  ;;  %v15579_v51 = vor.u32 %v7500_v17, %v7497_v1  ;;  %v7741_v1 = vrot.slane %v7739_v2, 2  ;;  %v15659_v2 = vld [vmem:[%s14516_s9 + $0x10] sm:$0xff]  }
 0x2c4   : > { %v5900_v34 = vpop.permute.xlu0 %5899  ;;  %v15497_v57 = vor.u32 %v7020_v36, %v7017_v0  ;;  %vm17853_vm10 = vmmov %vm17851_vm11  ;;  %11895 = vmatpush3.bf16.msra.mxu0 %v12610_v56  ;;  %v7120_v36 = vsel %vm1505_vm5, %v7118_v55, %v7119_v21  ;;  %v12614_v55 = vld [vmem:[%s17683_s6 + $0x18] sm:$0xff]  }
 0x2c5   : > { %v5902_v50 = vpop.permute.xlu1 %5901  ;;  %5911 = vst.msk [vmem:[#allocation2 + $0x18] sm:$0xff] %vm17848_vm2, %v5900_v34  ;;  %11896 = vmatprep.subr.bf16.mxu0 %v17610_v37  ;;  %vm17855_vm2 = vcmask 162944   ;;  %v7416_v34 = vrot.slane %v15523_v4, 1 }
 0x2c6   : > { %5912 = vst.msk [vmem:[#allocation2 + $0x20] sm:$0xff] %vm17842_vm8, %v5902_v50  ;;  %6879 = vrot.lane.b32.xlu0 %v6870_v24, %s17697_s10  ;;  %vm17854_vm8 = vmmov %vm17853_vm10  ;;  %v7249_v50 = vor.u32 %v7248_v48, %v7244_v60  ;;  %v15557_v24 = vrot.slane %v7251_v59, 1  ;;  %v15587_v59 = vld [vmem:[%s14516_s9 + $0x10] sm:$0xff]  }
 0x2c7   : > { %6881 = vrot.lane.b32.xlu1 %v6872_v53, %s17697_s10  ;;  %v15552_v53 = vld [vmem:[%s13869_s2 + $0x18] sm:$0xff]   ;;  %vm17856_vm6 = vmmov %vm17854_vm8 }
 0x2c8   : > { %v5964_v5 = vpop.permute.xlu0 %5963  ;;  %11897 = vmatpush3.bf16.msra.mxu0 %v12614_v55  ;;  %v7254_v48 = vsel %vm886_vm1, %v7249_v50, %v15557_v24  ;;  %vm17857_vm3 = vmmov %vm17855_vm2 }
 0x2c9   : > { %v5966_v7 = vpop.permute.xlu1 %5965  ;;  %5978 = vst.msk [vmem:[#allocation2] sm:$0xff] %vm17851_vm11, %v5964_v5  ;;  %v12537_v5 = vld [vmem:[%s14516_s9 + $0x8] sm:$0xfc]   ;;  %11898 = vmatprep.subr.bf16.mxu0 %v17610_v37  ;;  %vm17859_vm11 = vsmask.f32 6400  ;;  %vm17860_vm12 = vmmov %vm17855_vm2 }
 0x2ca   : > { %5979 = vst.msk [vmem:[#allocation2 + $0x8] sm:$0xff] %vm17850_vm14, %v5966_v7  ;;  %11883 = vmatmul.mubr.bf16.gmra.mrb[12].mxu1 %v15433_v18  ;;  %6883 = vrot.lane.b32.xlu0 %v6874_v14, %s17697_s10  ;;  %v7022_v18 = vsel %vm1391_vm4, %v7013_v49, %v15497_v57  ;;  %v7493_v49 = vor.u32 %v7492_v19, %v7489_v41  ;;  %v7599_v7 = vrot.slane %v15548_v38, 2  ;;  %v6939_v14 = vrot.slane %v15552_v53, 2  ;;  %vm17858_vm14 = vmmov %vm17855_vm2  ;;  %v12621_v19 = vld [vmem:[%s17683_s6 + $0x28] sm:$0xff]  }
 0x2cb   : > { %6885 = vrot.lane.b32.xlu1 %v6876_v26, %s17697_s10  ;;  %11886 = vmatprep.mubr.msk.bf16.mxu1 %vm17833_vm9, %v17610_v37  ;;  %v12541_v26 = vld [vmem:[%s14516_s9 + $0x10] sm:$0xff]   ;;  %v7668_v63 = vrot.slane %v12537_v5, 2  ;;  %v7669_v41 = vrot.slane %v15587_v59, 2  ;;  %v7121_v5 = vrot.slane %v15623_v28, 3 }
 0x2cc   : > { %v5968_v44 = vpop.permute.xlu0 %5967  ;;  %v7747_v4 = vshrl.u32 %v12541_v26, 16  ;;  %11899 = vmatpush3.bf16.msra.mxu0 %v12617_v32  ;;  %v7851_v32 = vrot.slane %v15634_v43, 3 }
 0x2cd   : > { %v5970_v13 = vpop.permute.xlu1 %5969  ;;  %5980 = vst.msk [vmem:[#allocation2 + $0x10] sm:$0xff] %vm17854_vm8, %v5968_v44  ;;  %v7029_v44 = vrot.slane %v7027_v31, 3  ;;  %11900 = vmatprep.subr.bf16.mxu0 %v17610_v37  ;;  %vm17864_vm8 = vcmask 1045504   ;;  %v15648_v31 = vld [vmem:[%s14516_s9 + $0x10] sm:$0xff]  }
 0x2ce   : > { %5981 = vst.msk [vmem:[#allocation2 + $0x18] sm:$0xff] %vm17853_vm10, %v5970_v13  ;;  %6947 = vrot.lane.b32.xlu0 %v6938_v16, %s17698_s23  ;;  %v7750_v13 = vshll.u32 %v12541_v26, 16  ;;  %v7502_v16 = vsel %vm17859_vm11, %v7493_v49, %v15579_v51  ;;  %vm17861_vm10 = vmmov %vm17855_vm2  ;;  %v7749_v17 = vrot.slane %v7747_v4, 2  ;;  %v7263_v59 = vshrl.u32 %v15648_v31, 16 }
 0x2cf   : > { %7059 = vrot.lane.b32.xlu1 %v7022_v18, %s17699_s29  ;;  %v7742_v18 = vshll.u32 %v12540_v10, 16 }
 0x2d0   : > { %v5972_v27 = vpop.permute.xlu0 %5971  ;;  %11901 = vmatpush3.bf16.msra.mxu0 %v12621_v19  ;;  %v12545_v19 = vld [vmem:[%s14516_s9 + $0x8] sm:$0xff]  }
 0x2d1   : > { %v6076_v0 = vpop.permute.xlu1 %6075  ;;  %5982 = vst.msk [vmem:[#allocation2 + $0x20] sm:$0xff] %vm17856_vm6, %v5972_v27  ;;  %v7744_v42 = vrot.slane %v7742_v18, 3  ;;  %11902 = vmatprep.subr.bf16.mxu0 %v17610_v37  ;;  %vm17866_vm6 = vcmask 195744  }
 0x2d2   : > { %6090 = vst.msk [vmem:[#allocation2] sm:$0xff] %vm17855_vm2, %v6076_v0  ;;  %11887 = vmatmul.mubr.bf16.gmra.mrb[16].mxu1 %v15427_v54  ;;  %v7348_v54 = vsel %vm991_vm0, %v7346_v20, %v7347_v58  ;;  %7129 = vrot.lane.b32.xlu0 %v7120_v36, %s17700_s19  ;;  %v7418_v20 = vsel %vm991_vm0, %v7416_v34, %v7417_v8  ;;  %v7752_v0 = vrot.slane %v7750_v13, 3  ;;  %vm17865_vm2 = vmmov %vm17864_vm8  ;;  %v7255_v13 = vshrl.u32 %v15484_v6, 16 }
 0x2d3   : > { %7184 = vrot.lane.b32.xlu1 %v12523_v29, %s17703_s27  ;;  %11942 = vmatprep.mubr.msk.bf16.mxu1 %vm17833_vm9, %v17610_v37  ;;  %v7600_v36 = vsel %vm17864_vm8, %v7598_v9, %v7599_v7  ;;  %v6940_v27 = vsel %vm17865_vm2, %v6937_v62, %v6939_v14  ;;  %v15620_v34 = vor.u32 %v7029_v44, %v7026_v25  ;;  %v12624_v9 = vld [vmem:[%s17683_s6 + $0x30] sm:$0xff]   ;;  %v12628_v25 = vld [vmem:[%s17683_s6 + $0x38] sm:$0xff]   ;;  %v12553_v44 = vld [vmem:[%s13869_s2 + $0x20] sm:$0xff]   ;;  %v7349_v6 = vrot.slane %v15659_v2, 1  ;;  %s11969_s6 = smul.u32 14, %s18239_s18 }
 0x2d4   : > { %v6078_v35 = vpop.permute.xlu0 %6077  ;;  %v12548_v62 = vld [vmem:[%s14516_s9 + $0x14] sm:$0xff]   ;;  %v7745_v26 = vor.u32 %v7744_v42, %v7741_v1  ;;  %v15641_v49 = vor.u32 %v7752_v0, %v7749_v17  ;;  %11903 = vmatpush3.bf16.msra.mxu0 %v12624_v9  ;;  %v12573_v2 = vld [vmem:[%s13869_s2 + $0x4] sm:$0xfc]  }
 0x2d5   : > { %v6080_v60 = vpop.permute.xlu1 %6079  ;;  %6091 = vst.msk [vmem:[#allocation2 + $0x8] sm:$0xff] %vm17858_vm14, %v6078_v35  ;;  %vm17869_vm14 = vmmov %vm17865_vm2  ;;  %11904 = vmatprep.subr.bf16.mxu0 %v17610_v37  ;;  %v7504_v18 = vshrl.u32 %v12548_v62, 16  ;;  %v15678_v42 = vld [vmem:[%s14516_s9 + $0x14] sm:$0xff]   ;;  %s587_s10 = sadd.s32 %s11969_s6, %s17877_s24  ;;  %v15979_v37 = vld [vmem:[%s14516_s9 + $0x20] sm:$0xff]   ;;  %s18004_s6 = sld [smem:[#allocation25_spill]] }
 0x2d6   : > { %6092 = vst.msk [vmem:[#allocation2 + $0x10] sm:$0xff] %vm17857_vm3, %v6080_v60  ;;  %7287 = vrot.lane.b32.xlu0 %v7254_v48, %s17709_s12  ;;  %vm17867_vm3 = vmmov %vm17866_vm6  ;;  %v7670_v10 = vsel %vm17869_vm14, %v7668_v63, %v7669_v41  ;;  %v7031_v48 = vsel %vm1391_vm4, %v15497_v57, %v15620_v34  ;;  %v7754_v4 = vsel %vm1391_vm4, %v7745_v26, %v15641_v49  ;;  %v7259_v63 = vshll.u32 %v15648_v31, 16  ;;  %s10850_s18 = sshll.u32 %s587_s10, 2  ;;  %s17939_s10 = smov 48  }
 0x2d7   : > { %7357 = vrot.lane.b32.xlu1 %v7348_v54, %s17714_s8  ;;  %v12543_v54 = vld [vmem:[%s14516_s9 + $0x8] sm:$0xf8]   ;;  %vm17870_vm11 = vmmov %vm17867_vm3  ;;  %v7506_v1 = vrot.slane %v7504_v18, 1  ;;  %v7419_v9 = vrot.slane %v15678_v42, 1  ;;  %v7350_v26 = vsel %vm991_vm0, %v7347_v58, %v7349_v6  ;;  %s15736_s11 = scalar_lea.vmem %s17881_s25, %s10850_s18  ;;  %s17952_s25 = smov 52  }
 0x2d8   : > { %v6082_v56 = vpop.permute.xlu0 %6081  ;;  %v7850_v57 = vrot.slane %v12543_v54, 3  ;;  %11905 = vmatpush3.bf16.msra.mxu0 %v12628_v25  ;;  %vm17873_vm8 = vmmov %vm17867_vm3  ;;  %v15711_v25 = vld [vmem:[%s14516_s9 + $0x18] sm:$0xff]   ;;  %s17964_s18 = smov 56  }
 0x2d9   : > { %v6084_v29 = vpop.permute.xlu1 %6083  ;;  %6093 = vst.msk [vmem:[#allocation2 + $0x18] sm:$0xff] %vm17861_vm10, %v6082_v56  ;;  %vm17872_vm10 = vcmask 228544  }
 0x2da   : > { %6094 = vst.msk [vmem:[#allocation2 + $0x20] sm:$0xff] %vm17860_vm12, %v6084_v29  ;;  %7427 = vrot.lane.b32.xlu0 %v7418_v20, %s17863_s7  ;;  %vm17871_vm12 = vmmov %vm17867_vm3  ;;  %v7122_v20 = vsel %vm1505_vm5, %v7119_v21, %v7121_v5  ;;  %v7852_v21 = vsel %vm1505_vm5, %v7850_v57, %v7851_v32 }
 0x2db   : > { %7539 = vrot.lane.b32.xlu1 %v7502_v16, %s17862_s28  ;;  %v7507_v16 = vshll.u32 %v12548_v62, 16  ;;  %vm17875_vm2 = vmmov %vm17872_vm10  ;;  %v7601_v62 = vrot.slane %v15681_v11, 2 }
 0x2dc   : > { %v6146_v55 = vpop.permute.xlu0 %6145  ;;  %vm17879_vm14 = vmmov %vm17875_vm2 }
 0x2dd   : > { %v6148_v50 = vpop.permute.xlu1 %6147  ;;  %6160 = vst.msk [vmem:[#allocation2] sm:$0xff] %vm17867_vm3, %v6146_v55  ;;  %v7509_v17 = vrot.slane %v7507_v16, 2  ;;  %v7036_v55 = vshll.u32 %v12553_v44, 16  ;;  %vm17878_vm3 = vmmov %vm17875_vm2  ;;  %v15722_v16 = vld [vmem:[%s13869_s2] sm:$0xff]  }
 0x2de   : > { %6161 = vst.msk [vmem:[#allocation2 + $0x8] sm:$0xff] %vm17866_vm6, %v6148_v50  ;;  %6949 = vrot.lane.b32.xlu0 %v6940_v27, %s17698_s23  ;;  %v15689_v50 = vrot.slane %v7259_v63, 1  ;;  %v7033_v27 = vshrl.u32 %v12553_v44, 16  ;;  %vm17876_vm6 = vmmov %vm17875_vm2  ;;  %v15731_v44 = vld [vmem:[%s13869_s2 + $0x8] sm:$0xff]  }
 0x2df   : > { %7609 = vrot.lane.b32.xlu1 %v7600_v36, %s17868_s4  ;;  %v7257_v36 = vor.u32 %v7255_v13, %v15557_v24  ;;  %v12554_v24 = vld [vmem:[%s14516_s9 + $0x18] sm:$0xff]   ;;  %v7038_v18 = vrot.slane %v7036_v55, 3  ;;  %v8213_v55 = vshll.u32 %v15722_v16, 16 }
 0x2e0   : > { %v6150_v35 = vpop.permute.xlu0 %6149  ;;  %v7035_v57 = vrot.slane %v7033_v27, 2  ;;  %v7756_v46 = vshrl.u32 %v12554_v24, 16  ;;  %v7759_v58 = vshll.u32 %v12554_v24, 16  ;;  %v15762_v27 = vld [vmem:[%s14516_s9 + $0x18] sm:$0xff]  }
 0x2e1   : > { %v6152_v60 = vpop.permute.xlu1 %6151  ;;  %6162 = vst.msk [vmem:[#allocation2 + $0x10] sm:$0xff] %vm17871_vm12, %v6150_v35  ;;  %v7262_v35 = vsel %vm886_vm1, %v7257_v36, %v15689_v50  ;;  %vm17882_vm12 = vcmask 261344  }
 0x2e2   : > { %6163 = vst.msk [vmem:[#allocation2 + $0x18] sm:$0xff] %vm17870_vm11, %v6152_v60  ;;  %7061 = vrot.lane.b32.xlu0 %v7031_v48, %s17699_s29  ;;  %v15706_v60 = vor.u32 %v7509_v17, %v7506_v1  ;;  %vm17880_vm11 = vsmask.f32 6400  ;;  %v7758_v39 = vrot.slane %v7756_v46, 2  ;;  %v15746_v1 = vld [vmem:[%s14516_s9 + $0x18] sm:$0xff]   ;;  %v15754_v17 = vor.u32 %v7038_v18, %v7035_v57  ;;  %v15790_v46 = vld [vmem:[%s13869_s2 + $0x8] sm:$0xff]  }
 0x2e3   : > { %7679 = vrot.lane.b32.xlu1 %v7670_v10, %s17735_s5  ;;  %v15697_v10 = vld [vmem:[%s13869_s2 + $0x20] sm:$0xff]   ;;  %v8211_v57 = vshrl.u32 %v15722_v16, 16  ;;  %v8215_v18 = vrot.slane %v8213_v55, 1  ;;  %v7265_v55 = vor.u32 %v7263_v59, %v15689_v50 }
 0x2e4   : > { %v6154_v56 = vpop.permute.xlu0 %6153  ;;  %v7511_v13 = vsel %vm17880_vm11, %v15579_v51, %v15706_v60  ;;  %v6941_v63 = vrot.slane %v15697_v10, 2  ;;  %vm17889_vm11 = vcmask 294144   ;;  %v15804_v16 = vld [vmem:[%s13869_s2 + $0x4] sm:$0xfe]  }
 0x2e5   : > { %v6216_v29 = vpop.permute.xlu1 %6215  ;;  %6164 = vst.msk [vmem:[#allocation2 + $0x20] sm:$0xff] %vm17873_vm8, %v6154_v56  ;;  %v7671_v56 = vrot.slane %v15711_v25, 2  ;;  %vm17884_vm8 = vcmask 1045504  }
 0x2e6   : > { %6230 = vst.msk [vmem:[#allocation2] sm:$0xff] %vm17872_vm10, %v6216_v29  ;;  %7131 = vrot.lane.b32.xlu0 %v7122_v20, %s17700_s19  ;;  %v7420_v20 = vsel %vm991_vm0, %v7417_v8, %v7419_v9  ;;  %vm17883_vm10 = vmmov %vm17882_vm12  ;;  %v7761_v8 = vrot.slane %v7759_v58, 3 }
 0x2e7   : > { %7791 = vrot.lane.b32.xlu1 %v7754_v4, %s17874_s20 }
 0x2e8   : > { %v6218_v54 = vpop.permute.xlu0 %6217  ;;  %v15779_v24 = vor.u32 %v7761_v8, %v7758_v39  ;;  %v12557_v39 = vld [vmem:[%s14516_s9 + $0x10] sm:$0xff]   ;;  %v8314_v8 = vrot.slane %v15790_v46, 1 }
 0x2e9   : > { %v6220_v0 = vpop.permute.xlu1 %6219  ;;  %6231 = vst.msk [vmem:[#allocation2 + $0x8] sm:$0xff] %vm17876_vm6, %v6218_v54  ;;  %v8218_v54 = vshll.u32 %v15731_v44, 16  ;;  %vm17886_vm6 = vmmov %vm17883_vm10 }
 0x2ea   : > { %6232 = vst.msk [vmem:[#allocation2 + $0x10] sm:$0xff] %vm17875_vm2, %v6220_v0  ;;  %7186 = vrot.lane.b32.xlu0 %v12545_v19, %s17703_s27  ;;  %v15743_v19 = vld [vmem:[%s13869_s2 + $0x20] sm:$0xff]   ;;  %vm17885_vm2 = vmmov %vm17884_vm8  ;;  %v7763_v31 = vsel %vm1391_vm4, %v15641_v49, %v15779_v24 }
 0x2eb   : > { %7861 = vrot.lane.b32.xlu1 %v7852_v21, %s17748_s30  ;;  %v7602_v21 = vsel %vm17884_vm8, %v7599_v7, %v7601_v62  ;;  %v6942_v36 = vsel %vm17885_vm2, %v6939_v14, %v6941_v63  ;;  %v7267_v7 = vshll.u32 %v15746_v1, 16  ;;  %v7040_v14 = vsel %vm1391_vm4, %v15620_v34, %v15754_v17  ;;  %v12561_v34 = vld [vmem:[%s13869_s2] sm:$0xfe]  }
 0x2ec   : > { %v6222_v4 = vpop.permute.xlu0 %6221  ;;  %v8313_v49 = vrot.slane %v12561_v34, 1 }
 0x2ed   : > { %v6224_v48 = vpop.permute.xlu1 %6223  ;;  %6233 = vst.msk [vmem:[#allocation2 + $0x18] sm:$0xff] %vm17879_vm14, %v6222_v4  ;;  %vm17888_vm14 = vmmov %vm17885_vm2  ;;  %v15786_v4 = vrot.slane %v8218_v54, 1  ;;  %v15794_v58 = vrot.slane %v7267_v7, 1  ;;  %v8383_v7 = vrot.slane %v15804_v16, 1 }
 0x2ee   : > { %6234 = vst.msk [vmem:[#allocation2 + $0x20] sm:$0xff] %vm17878_vm3, %v6224_v48  ;;  %7289 = vrot.lane.b32.xlu0 %v7262_v35, %s17709_s12  ;;  %vm17887_vm3 = vmmov %vm17886_vm6  ;;  %v7672_v53 = vsel %vm17888_vm14, %v7669_v41, %v7671_v56  ;;  %v7853_v35 = vrot.slane %v15762_v27, 3 }
 0x2ef   : > { %7359 = vrot.lane.b32.xlu1 %v7350_v26, %s17714_s8  ;;  %v7123_v26 = vrot.slane %v15743_v19, 3  ;;  %v7270_v59 = vsel %vm886_vm1, %v7265_v55, %v15794_v58 }
 0x2f0   : > { %v6328_v51 = vpop.permute.xlu0 %6327  ;;  %v7854_v28 = vsel %vm1505_vm5, %v7851_v32, %v7853_v35 }
 0x2f1   : > { %v6330_v29 = vpop.permute.xlu1 %6329  ;;  %6342 = vst.msk [vmem:[#allocation2] sm:$0xff] %vm17883_vm10, %v6328_v51  ;;  %vm17891_vm10 = vmmov %vm17889_vm11 }
 0x2f2   : > { %6343 = vst.msk [vmem:[#allocation2 + $0x8] sm:$0xff] %vm17882_vm12, %v6330_v29  ;;  %7429 = vrot.lane.b32.xlu0 %v7420_v20, %s17863_s7  ;;  %vm17890_vm12 = vmmov %vm17887_vm3  ;;  %v7124_v20 = vsel %vm1505_vm5, %v7121_v5, %v7123_v26  ;;  %v8216_v5 = vor.u32 %v8215_v18, %v8211_v57 }
 0x2f3   : > { %7541 = vrot.lane.b32.xlu1 %v7511_v13, %s17862_s28  ;;  %v15797_v13 = vld [vmem:[%s14516_s9 + $0x18] sm:$0xff]   ;;  %vm17892_vm8 = vmmov %vm17891_vm10 }
 0x2f4   : > { %v6332_v38 = vpop.permute.xlu0 %6331  ;;  %vm17893_vm2 = vmmov %vm17892_vm8  ;;  %v8221_v50 = vsel %vm886_vm1, %v8216_v5, %v15786_v4  ;;  %v8315_v5 = vsel %vm991_vm0, %v8313_v49, %v8314_v8  ;;  %v15861_v49 = vld [vmem:[%s14516_s9 + $0x1c] sm:$0xff]  }
 0x2f5   : > { %v6334_v0 = vpop.permute.xlu1 %6333  ;;  %6344 = vst.msk [vmem:[#allocation2 + $0x10] sm:$0xff] %vm17887_vm3, %v6332_v38  ;;  %v7351_v38 = vrot.slane %v15797_v13, 1  ;;  %vm17895_vm3 = vcmask 326944  }
 0x2f6   : > { %6345 = vst.msk [vmem:[#allocation2 + $0x18] sm:$0xff] %vm17886_vm6, %v6334_v0  ;;  %6951 = vrot.lane.b32.xlu0 %v6942_v36, %s17698_s23  ;;  %v12567_v0 = vld [vmem:[%s13869_s2 + $0x4] sm:$0xfe]   ;;  %v12568_v36 = vld [vmem:[%s13869_s2 + $0xc] sm:$0xff]   ;;  %vm17894_vm6 = vmmov %vm17893_vm2 }
 0x2f7   : > { %7611 = vrot.lane.b32.xlu1 %v7602_v21, %s17868_s4  ;;  %v15817_v21 = vld [vmem:[%s13869_s2 + $0xc] sm:$0xff]   ;;  %v8454_v43 = vshrl.u32 %v12567_v0, 16  ;;  %v8457_v32 = vshll.u32 %v12567_v0, 16  ;;  %v8462_v57 = vshrl.u32 %v12568_v36, 16  ;;  %v8465_v18 = vshll.u32 %v12568_v36, 16  ;;  %vm17896_vm14 = vmmov %vm17895_vm3 }
 0x2f8   : > { %v6336_v41 = vpop.permute.xlu0 %6335  ;;  %v8384_v34 = vrot.slane %v15817_v21, 1 }
 0x2f9   : > { %v6398_v48 = vpop.permute.xlu1 %6397  ;;  %6346 = vst.msk [vmem:[#allocation2 + $0x20] sm:$0xff] %vm17890_vm12, %v6336_v41  ;;  %v8464_v0 = vrot.slane %v8462_v57, 1  ;;  %v8467_v36 = vrot.slane %v8465_v18, 2  ;;  %vm17898_vm12 = vmmov %vm17895_vm3 }
 0x2fa   : > { %6412 = vst.msk [vmem:[#allocation2] sm:$0xff] %vm17889_vm11, %v6398_v48  ;;  %7063 = vrot.lane.b32.xlu0 %v7040_v14, %s17699_s29  ;;  %v12569_v14 = vld [vmem:[%s14516_s9 + $0x1c] sm:$0xff]   ;;  %vm17897_vm11 = vmmov %vm17895_vm3 }
 0x2fb   : > { %7681 = vrot.lane.b32.xlu1 %v7672_v53, %s17735_s5  ;;  %v15831_v53 = vld [vmem:[%s14516_s9 + $0x1c] sm:$0xff]   ;;  %v7513_v16 = vshrl.u32 %v12569_v14, 16 }
 0x2fc   : > { %v6400_v51 = vpop.permute.xlu0 %6399 }
 0x2fd   : > { %v6402_v29 = vpop.permute.xlu1 %6401  ;;  %6413 = vst.msk [vmem:[#allocation2 + $0x8] sm:$0xff] %vm17892_vm8, %v6400_v51  ;;  %v8456_v51 = vrot.slane %v8454_v43, 1  ;;  %vm17900_vm8 = vmmov %vm17895_vm3 }
 0x2fe   : > { %6414 = vst.msk [vmem:[#allocation2 + $0x10] sm:$0xff] %vm17891_vm10, %v6402_v29  ;;  %7133 = vrot.lane.b32.xlu0 %v7124_v20, %s17700_s19  ;;  %v7516_v29 = vshll.u32 %v12569_v14, 16  ;;  %v7515_v14 = vrot.slane %v7513_v16, 1  ;;  %vm17899_vm10 = vcmask 359744  }
 0x2ff   : > { %7793 = vrot.lane.b32.xlu1 %v7763_v31, %s17874_s20  ;;  %v17621_v31 = vrot.slane %v15831_v53, 1 }
 0x300   : > { %v6404_v48 = vpop.permute.xlu0 %6403 }
 0x301   : > { %v6406_v54 = vpop.permute.xlu1 %6405  ;;  %6415 = vst.msk [vmem:[#allocation2 + $0x18] sm:$0xff] %vm17894_vm6, %v6404_v48  ;;  %v7518_v48 = vrot.slane %v7516_v29, 2  ;;  %v7422_v29 = vsel %vm991_vm0, %v7419_v9, %v17621_v31 }
 0x302   : > { %6416 = vst.msk [vmem:[#allocation2 + $0x20] sm:$0xff] %vm17893_vm2, %v6406_v54  ;;  %7188 = vrot.lane.b32.xlu0 %v12557_v39, %s17703_s27  ;;  %v8459_v39 = vrot.slane %v8457_v32, 2  ;;  %v7352_v54 = vsel %vm991_vm0, %v7349_v6, %v7351_v38  ;;  %v15864_v32 = vld [vmem:[%s13869_s2 + $0x28] sm:$0xff]   ;;  %v8385_v6 = vsel %vm991_vm0, %v8383_v7, %v8384_v34  ;;  %vm17901_vm2 = vsmask.f32 6400 }
 0x303   : > { %7863 = vrot.lane.b32.xlu1 %v7854_v28, %s17748_s30  ;;  %v12572_v28 = vld [vmem:[%s13869_s2 + $0x28] sm:$0xff]   ;;  %vm17902_vm6 = vmmov %vm17901_vm2 }
 0x304   : > { %v6453_v20 = vpop.permute.xlu0 %6452  ;;  %v7042_v57 = vshrl.u32 %v12572_v28, 16  ;;  %v8460_v18 = vor.u32 %v8459_v39, %v8456_v51  ;;  %v17619_v51 = vrot.slane %v15861_v49, 2  ;;  %v17618_v39 = vrot.slane %v15864_v32, 2 }
 0x305   : > { %v6455_v41 = vpop.permute.xlu1 %6454  ;;  %6467 = vst.msk [vmem:[#allocation2] sm:$0xff] %vm17896_vm14, %v6453_v20  ;;  %v15879_v20 = vor.u32 %v7518_v48, %v7515_v14  ;;  %v8565_v48 = vrot.slane %v12573_v2, 2 }
 0x306   : > { %6468 = vst.msk [vmem:[#allocation2 + $0x8] sm:$0xff] %vm17895_vm3, %v6455_v41  ;;  %7291 = vrot.lane.b32.xlu0 %v7270_v59, %s17709_s12  ;;  %v7045_v59 = vshll.u32 %v12572_v28, 16  ;;  %v12578_v41 = vld [vmem:[%s14516_s9 + $0x20] sm:$0xff]   ;;  %v7044_v9 = vrot.slane %v7042_v57, 2  ;;  %vm17903_vm3 = vmmov %vm17899_vm10 }
 0x307   : > { %8254 = vrot.lane.b32.xlu1 %v8221_v50, %s17755_s13  ;;  %v15871_v50 = vor.u32 %v8467_v36, %v8464_v0  ;;  %v15894_v36 = vld [vmem:[%s13869_s2 + $0x10] sm:$0xff]   ;;  %v7765_v28 = vshrl.u32 %v12578_v41, 16  ;;  %v7520_v14 = vsel %vm17902_vm6, %v15706_v60, %v15879_v20  ;;  %vm17904_vm14 = vmmov %vm17903_vm3  ;;  %v15905_v57 = vld [vmem:[%s14516_s9 + $0x20] sm:$0xff]   ;;  %vm17910_vm6 = vcmask 392544  }
 0x308   : > { %v6457_v43 = vpop.permute.xlu0 %6456  ;;  %v7047_v0 = vrot.slane %v7045_v59, 3  ;;  %v12582_v59 = vld [vmem:[%s13869_s2 + $0x10] sm:$0xff]  }
 0x309   : > { %v6459_v55 = vpop.permute.xlu1 %6458  ;;  %6469 = vst.msk [vmem:[#allocation2 + $0x10] sm:$0xff] %vm17898_vm12, %v6457_v43  ;;  %v8469_v42 = vsel %vm17901_vm2, %v8460_v18, %v15871_v50  ;;  %v7768_v18 = vshll.u32 %v12578_v41, 16 }
 0x30a   : > { %6470 = vst.msk [vmem:[#allocation2 + $0x18] sm:$0xff] %vm17897_vm11, %v6459_v55  ;;  %7361 = vrot.lane.b32.xlu0 %v7352_v54, %s17714_s8  ;;  %v12575_v55 = vld [vmem:[%s13869_s2 + $0x8] sm:$0xfc]   ;;  %vm17905_vm11 = vcmask 1045504   ;;  %v15914_v2 = vor.u32 %v7047_v0, %v7044_v9 }
 0x30b   : > { %8324 = vrot.lane.b32.xlu1 %v8315_v5, %s17684_s16  ;;  %v15882_v5 = vld [vmem:[%s13869_s2 + $0xc] sm:$0xff]   ;;  %v7604_v60 = vsel %vm17905_vm11, %v7601_v62, %v17619_v51  ;;  %vm17906_vm12 = vmmov %vm17905_vm11  ;;  %v7770_v11 = vrot.slane %v7768_v18, 3  ;;  %v8717_v18 = vshll.u32 %v12582_v59, 16 }
 0x30c   : > { %v6461_v7 = vpop.permute.xlu0 %6460  ;;  %v17615_v43 = vrot.slane %v15882_v5, 2  ;;  %v6944_v41 = vsel %vm17906_vm12, %v6941_v63, %v17618_v39  ;;  %v15926_v62 = vld [vmem:[%s13869_s2 + $0x28] sm:$0xff]   ;;  %v7049_v10 = vsel %vm1391_vm4, %v15754_v17, %v15914_v2  ;;  %vm17909_vm2 = vmmov %vm17905_vm11 }
 0x30d   : > { %v6556_v16 = vpop.permute.xlu1 %6555  ;;  %6471 = vst.msk [vmem:[#allocation2 + $0x20] sm:$0xff] %vm17900_vm8, %v6461_v7  ;;  %v7767_v7 = vrot.slane %v7765_v28, 2  ;;  %vm17908_vm8 = vmmov %vm17903_vm3  ;;  %v8714_v28 = vshrl.u32 %v12582_v59, 16  ;;  %v16059_v39 = vld [vmem:[%s14516_s9 + $0x8] sm:$0xff]  }
 0x30e   : > { %6570 = vst.msk [vmem:[#allocation2] sm:$0xff] %vm17899_vm10, %v6556_v16  ;;  %7431 = vrot.lane.b32.xlu0 %v7422_v29, %s17863_s7  ;;  %v12581_v29 = vld [vmem:[%s13869_s2 + $0x8] sm:$0xfc]   ;;  %vm17907_vm10 = vmmov %vm17903_vm3 }
 0x30f   : > { %8394 = vrot.lane.b32.xlu1 %v8385_v6, %s17685_s26  ;;  %v8635_v6 = vrot.slane %v12575_v55, 2  ;;  %v17613_v55 = vrot.slane %v15894_v36, 2  ;;  %v8706_v9 = vshrl.u32 %v12581_v29, 16  ;;  %v8709_v0 = vshll.u32 %v12581_v29, 16  ;;  %vm17913_vm11 = vmmov %vm17909_vm2 }
 0x310   : > { %v6558_v16 = vpop.permute.xlu0 %6557 }
 0x311   : > { %v6560_v54 = vpop.permute.xlu1 %6559  ;;  %6571 = vst.msk [vmem:[#allocation2 + $0x8] sm:$0xff] %vm17904_vm14, %v6558_v16  ;;  %v17614_v16 = vrot.slane %v15905_v57, 2  ;;  %v8708_v17 = vrot.slane %v8706_v9, 2  ;;  %vm17912_vm14 = vmmov %vm17909_vm2 }
 0x312   : > { %6572 = vst.msk [vmem:[#allocation2 + $0x10] sm:$0xff] %vm17903_vm3, %v6560_v54  ;;  %7543 = vrot.lane.b32.xlu0 %v7520_v14, %s17862_s28  ;;  %v8567_v14 = vsel %vm17909_vm2, %v8565_v48, %v17615_v43  ;;  %vm17911_vm3 = vmmov %vm17910_vm6  ;;  %v12629_v48 = vld [vmem:[%s13869_s2 + $0x18] sm:$0xff]   ;;  %v8637_v59 = vsel %vm17912_vm14, %v8635_v6, %v17613_v55  ;;  %v15960_v6 = vld [vmem:[%s13869_s2 + $0x10] sm:$0xff]  }
 0x313   : > { %8506 = vrot.lane.b32.xlu1 %v8469_v42, %s17686_s14  ;;  %v7674_v9 = vsel %vm17913_vm11, %v7671_v56, %v17614_v16  ;;  %vm17914_vm12 = vmmov %vm17911_vm3  ;;  %v8234_v25 = vshll.u32 %v12629_v48, 16 }
 0x314   : > { %v6562_v42 = vpop.permute.xlu0 %6561  ;;  %vm17917_vm2 = vmmov %vm17911_vm3 }
 0x315   : > { %v6564_v54 = vpop.permute.xlu1 %6563  ;;  %6573 = vst.msk [vmem:[#allocation2 + $0x18] sm:$0xff] %vm17908_vm8, %v6562_v42  ;;  %v15945_v42 = vor.u32 %v7770_v11, %v7767_v7  ;;  %v15963_v7 = vld [vmem:[%s14516_s9 + $0x20] sm:$0xff]   ;;  %vm17916_vm8 = vcmask 425344  }
 0x316   : > { %6574 = vst.msk [vmem:[#allocation2 + $0x20] sm:$0xff] %vm17907_vm10, %v6564_v54  ;;  %6953 = vrot.lane.b32.xlu0 %v6944_v41, %s17698_s23  ;;  %v8711_v54 = vrot.slane %v8709_v0, 3  ;;  %v8716_v41 = vrot.slane %v8714_v28, 2  ;;  %v8719_v0 = vrot.slane %v8717_v18, 3  ;;  %v15954_v28 = vld [vmem:[%s13869_s2 + $0x10] sm:$0xff]   ;;  %vm17915_vm10 = vmmov %vm17911_vm3 }
 0x317   : > { %7613 = vrot.lane.b32.xlu1 %v7604_v60, %s17868_s4  ;;  %v17612_v60 = vrot.slane %v15926_v62, 3  ;;  %v7772_v56 = vsel %vm1391_vm4, %v15779_v24, %v15945_v42  ;;  %v8222_v24 = vshrl.u32 %v15731_v44, 16 }
 0x318   : > { %v6626_v29 = vpop.permute.xlu0 %6625  ;;  %v8712_v18 = vor.u32 %v8711_v54, %v8708_v17  ;;  %v7275_v17 = vshll.u32 %v15963_v7, 16  ;;  %v12590_v54 = vld [vmem:[%s14516_s9] sm:$0xff]  }
 0x319   : > { %v6628_v63 = vpop.permute.xlu1 %6627  ;;  %6640 = vst.msk [vmem:[#allocation2] sm:$0xff] %vm17911_vm3, %v6626_v29  ;;  %v7126_v11 = vsel %vm1505_vm5, %v7123_v26, %v17612_v60  ;;  %v8226_v26 = vshll.u32 %v15960_v6, 16  ;;  %v15999_v60 = vld [vmem:[%s14516_s9 + $0x20] sm:$0xff]  }
 0x31a   : > { %6641 = vst.msk [vmem:[#allocation2 + $0x8] sm:$0xff] %vm17910_vm6, %v6628_v63  ;;  %8576 = vrot.lane.b32.xlu0 %v8567_v14, %s17687_s17  ;;  %vm17918_vm6 = vmmov %vm17916_vm8  ;;  %v16018_v16 = vrot.slane %v7275_v17, 1  ;;  %v17620_v43 = vrot.slane %v15999_v60, 1  ;;  %v16038_v17 = vld [vmem:[%s13869_s2 + $0x14] sm:$0xff]  }
 0x31b   : > { %7065 = vrot.lane.b32.xlu1 %v7049_v10, %s17699_s29  ;;  %v12583_v10 = vld [vmem:[%s13869_s2 + $0x8] sm:$0xf8]   ;;  %vm17919_vm3 = vmmov %vm17918_vm6 }
 0x31c   : > { %v6630_v14 = vpop.permute.xlu0 %6629  ;;  %vm17920_vm14 = vmmov %vm17919_vm3 }
 0x31d   : > { %v6632_v63 = vpop.permute.xlu1 %6631  ;;  %6642 = vst.msk [vmem:[#allocation2 + $0x10] sm:$0xff] %vm17915_vm10, %v6630_v14  ;;  %v8817_v14 = vrot.slane %v12583_v10, 3  ;;  %v8238_v10 = vshrl.u32 %v12629_v48, 16  ;;  %v8945_v48 = vshll.u32 %v12590_v54, 16  ;;  %vm17921_vm11 = vmmov %vm17919_vm3 }
 0x31e   : > { %6643 = vst.msk [vmem:[#allocation2 + $0x18] sm:$0xff] %vm17914_vm12, %v6632_v63  ;;  %7683 = vrot.lane.b32.xlu0 %v7674_v9, %s17735_s5  ;;  %v15975_v63 = vor.u32 %v8719_v0, %v8716_v41  ;;  %v17616_v9 = vrot.slane %v15954_v28, 3  ;;  %v15989_v41 = vld [vmem:[%s14516_s9 + $0x8] sm:$0xff]   ;;  %v15991_v0 = vrot.slane %v8234_v25, 1  ;;  %vm17922_vm12 = vcmask 458144  }
 0x31f   : > { %8646 = vrot.lane.b32.xlu1 %v8637_v59, %s17688_s0  ;;  %v12580_v59 = vld [vmem:[%s14516_s9 + $0x18] sm:$0xff]   ;;  %vm17923_vm10 = vmmov %vm17922_vm12 }
 0x320   : > { %v6634_v19 = vpop.permute.xlu0 %6633  ;;  %v16002_v55 = vor.u32 %v8238_v10, %v15991_v0  ;;  %v8224_v10 = vor.u32 %v8222_v24, %v15786_v4  ;;  %v8943_v24 = vshrl.u32 %v12590_v54, 16 }
 0x321   : > { %v6696_v29 = vpop.permute.xlu1 %6695  ;;  %6644 = vst.msk [vmem:[#allocation2 + $0x20] sm:$0xff] %vm17917_vm2, %v6634_v19  ;;  %v17617_v19 = vrot.slane %v15979_v37, 3 }
 0x322   : > { %6710 = vst.msk [vmem:[#allocation2] sm:$0xff] %vm17916_vm8, %v6696_v29  ;;  %7135 = vrot.lane.b32.xlu0 %v7126_v11, %s17700_s19  ;;  %v8721_v29 = vsel %vm1391_vm4, %v8712_v18, %v15975_v63  ;;  %v8950_v11 = vshll.u32 %v15989_v41, 16  ;;  %v16009_v18 = vld [vmem:[%s13869_s2 + $0x10] sm:$0xff]   ;;  %vm17924_vm8 = vmmov %vm17923_vm10 }
 0x323   : > { %7795 = vrot.lane.b32.xlu1 %v7772_v56, %s17874_s20  ;;  %v7271_v56 = vshrl.u32 %v15746_v1, 16  ;;  %v8819_v1 = vsel %vm1505_vm5, %v8817_v14, %v17616_v9  ;;  %v12595_v14 = vld [vmem:[%s14516_s9 + $0x24] sm:$0xff]   ;;  %vm17925_vm2 = vmmov %vm17924_vm8 }
 0x324   : > { %v6698_v25 = vpop.permute.xlu0 %6697  ;;  %v16031_v27 = vrot.slane %v8950_v11, 1  ;;  %v12600_v11 = vld [vmem:[%s13869_s2 + $0x14] sm:$0xff]   ;;  %v12642_v9 = vld [vmem:[%s15736_s11 + $0x8] sm:$0xff]  }
 0x325   : > { %v6700_v44 = vpop.permute.xlu1 %6699  ;;  %6711 = vst.msk [vmem:[#allocation2 + $0x8] sm:$0xff] %vm17919_vm3, %v6698_v25  ;;  %v8471_v51 = vshrl.u32 %v12600_v11, 16  ;;  %vm17927_vm3 = vmmov %vm17925_vm2 }
 0x326   : > { %6712 = vst.msk [vmem:[#allocation2 + $0x10] sm:$0xff] %vm17918_vm6, %v6700_v44  ;;  %8758 = vrot.lane.b32.xlu0 %v8721_v29, %s17690_s1  ;;  %v16016_v44 = vrot.slane %v8226_v26, 1  ;;  %v7273_v29 = vor.u32 %v7271_v56, %v15794_v58  ;;  %v8947_v26 = vrot.slane %v8945_v48, 1  ;;  %v16041_v56 = vld [vmem:[%s14516_s9 + $0x24] sm:$0xff]   ;;  %v7522_v48 = vshrl.u32 %v12595_v14, 16 }
 0x327   : > { %7190 = vrot.lane.b32.xlu1 %v12580_v59, %s17703_s27  ;;  %v7856_v59 = vsel %vm1505_vm5, %v7853_v35, %v17617_v19  ;;  %v17622_v35 = vrot.slane %v16009_v18, 1  ;;  %vm17926_vm6 = vcmask 490944   ;;  %v17928_v21 = vrot.slane %v16041_v56, 1 }
 0x328   : > { %v6702_v4 = vpop.permute.xlu0 %6701  ;;  %v8229_v58 = vsel %vm886_vm1, %v8224_v10, %v16016_v44  ;;  %v7278_v54 = vsel %vm886_vm1, %v7273_v29, %v16018_v16  ;;  %v7525_v10 = vshll.u32 %v12595_v14, 16  ;;  %v7354_v29 = vsel %vm991_vm0, %v7351_v38, %v17620_v43 }
 0x329   : > { %v6704_v25 = vpop.permute.xlu1 %6703  ;;  %6713 = vst.msk [vmem:[#allocation2 + $0x18] sm:$0xff] %vm17921_vm11, %v6702_v4  ;;  %v12589_v4 = vld [vmem:[%s14516_s9] sm:$0xff]   ;;  %v8948_v19 = vor.u32 %v8947_v26, %v8943_v24  ;;  %v17623_v14 = vrot.slane %v16038_v17, 1  ;;  %v7524_v13 = vrot.slane %v7522_v48, 1  ;;  %v8474_v24 = vshll.u32 %v12600_v11, 16  ;;  %vm17931_vm11 = vmmov %vm17926_vm6 }
 0x32a   : > { %6714 = vst.msk [vmem:[#allocation2 + $0x20] sm:$0xff] %vm17920_vm14, %v6704_v25  ;;  %7865 = vrot.lane.b32.xlu0 %v7856_v59, %s17748_s30  ;;  %v12596_v59 = vld [vmem:[%s14516_s9] sm:$0xfe]   ;;  %v7527_v38 = vrot.slane %v7525_v10, 2  ;;  %vm17930_vm14 = vmmov %vm17926_vm6 }
 0x32b   : > { %8828 = vrot.lane.b32.xlu1 %v8819_v1, %s17691_s22  ;;  %v12604_v26 = vld [vmem:[%s14516_s9 + $0x4] sm:$0xfe]   ;;  %v9045_v48 = vrot.slane %v12596_v59, 1  ;;  %v8387_v46 = vsel %vm991_vm0, %v8384_v34, %v17623_v14  ;;  %v17929_v34 = vrot.slane %v15831_v53, 1 }
 0x32c   : > { %v6808_v1 = vpop.permute.xlu0 %6807  ;;  %v12598_v10 = vld [vmem:[%s14516_s9 + $0x4] sm:$0xfe]  }
 0x32d   : > { %v6810_v25 = vpop.permute.xlu1 %6809  ;;  %6822 = vst.msk [vmem:[#allocation2] sm:$0xff] %vm17923_vm10, %v6808_v1  ;;  %v9682_v1 = vshll.u32 %v12642_v9, 16  ;;  %v16091_v59 = vld [vmem:[%s14516_s9 + $0x24] sm:$0xff]   ;;  %vm17934_vm10 = vmmov %vm17926_vm6 }
 0x32e   : > { %6823 = vst.msk [vmem:[#allocation2 + $0x8] sm:$0xff] %vm17922_vm12, %v6810_v25  ;;  %7293 = vrot.lane.b32.xlu0 %v7278_v54, %s17709_s12  ;;  %vm17932_vm12 = vsmask.f32 6400 }
 0x32f   : > { %8256 = vrot.lane.b32.xlu1 %v8229_v58, %s17755_s13  ;;  %v16096_v11 = vrot.slane %v9682_v1, 1 }
 0x330   : > { %v6812_v58 = vpop.permute.xlu0 %6811 }
 0x331   : > { %v6814_v25 = vpop.permute.xlu1 %6813  ;;  %6824 = vst.msk [vmem:[#allocation2 + $0x10] sm:$0xff] %vm17925_vm2, %v6812_v58  ;;  %v16078_v58 = vld [vmem:[%s14516_s9 + $0xc] sm:$0xff]   ;;  %vm17937_vm2 = vmmov %vm17932_vm12 }
 0x332   : > { %6825 = vst.msk [vmem:[#allocation2 + $0x18] sm:$0xff] %vm17924_vm8, %v6814_v25  ;;  %8883 = vrot.lane.b32.xlu0 %v12589_v4, %s17692_s21  ;;  %v8953_v25 = vsel %vm886_vm1, %v8948_v19, %v16031_v27  ;;  %v8473_v4 = vrot.slane %v8471_v51, 1  ;;  %v8476_v19 = vrot.slane %v8474_v24, 2  ;;  %v12605_v51 = vld [vmem:[%s14516_s9 + $0xc] sm:$0xff]   ;;  %v9115_v24 = vrot.slane %v12598_v10, 1  ;;  %vm17935_vm8 = vmmov %vm17926_vm6 }
 0x333   : > { %7363 = vrot.lane.b32.xlu1 %v7354_v29, %s17714_s8  ;;  %v8317_v29 = vsel %vm991_vm0, %v8314_v8, %v17622_v35  ;;  %v16088_v8 = vor.u32 %v7527_v38, %v7524_v13  ;;  %v12602_v35 = vld [vmem:[%s13869_s2 + $0x30] ss:$0 sps:$4 sm:$0x33]   ;;  %v7424_v13 = vsel %vm991_vm0, %v17929_v34, %v17928_v21  ;;  %v9197_v1 = vshll.u32 %v12605_v51, 16 }
 0x334   : > { %v6816_v31 = vpop.permute.xlu0 %6815  ;;  %v6945_v34 = vrot.slane %v12602_v35, 2 }
 0x335   : > { %v6878_v43 = vpop.permute.xlu1 %6877  ;;  %6826 = vst.msk [vmem:[#allocation2 + $0x20] sm:$0xff] %vm17927_vm3, %v6816_v31  ;;  %v9189_v31 = vshll.u32 %v12604_v26, 16  ;;  %v7529_v53 = vsel %vm17932_vm12, %v15879_v20, %v16088_v8  ;;  %vm17940_vm3 = vcmask 556544   ;;  %vm17945_vm12 = vcmask 589344  }
 0x336   : > { %6892 = vst.msk [vmem:[#allocation2] sm:$0xff] %vm17926_vm6, %v6878_v43  ;;  %8326 = vrot.lane.b32.xlu0 %v8317_v29, %s17684_s16  ;;  %v9186_v43 = vshrl.u32 %v12604_v26, 16  ;;  %v9194_v26 = vshrl.u32 %v12605_v51, 16  ;;  %v12609_v29 = vld [vmem:[%s13869_s2 + $0x30] ss:$0 sps:$4 sm:$0x77]  }
 0x337   : > { %8986 = vrot.lane.b32.xlu1 %v8953_v25, %s17693_s3  ;;  %v9686_v25 = vshrl.u32 %v12642_v9, 16  ;;  %v9199_v9 = vrot.slane %v9197_v1, 2  ;;  %vm17938_vm6 = vcmask 523744  }
 0x338   : > { %v6880_v38 = vpop.permute.xlu0 %6879  ;;  %v9188_v51 = vrot.slane %v9186_v43, 1  ;;  %v9196_v20 = vrot.slane %v9194_v26, 1 }
 0x339   : > { %v6882_v54 = vpop.permute.xlu1 %6881  ;;  %v16105_v14 = vor.u32 %v9686_v25, %v16096_v11  ;;  %6893 = vst.msk [vmem:[#allocation2 + $0x8] sm:$0xff] %vm17931_vm11, %v6880_v38  ;;  %v16118_v25 = vor.u32 %v8476_v19, %v8473_v4  ;;  %v9191_v38 = vrot.slane %v9189_v31, 2  ;;  %v7051_v4 = vshrl.u32 %v12609_v29, 16 }
 0x33a   : > { %6894 = vst.msk [vmem:[#allocation2 + $0x10] sm:$0xff] %vm17930_vm14, %v6882_v54  ;;  %7433 = vrot.lane.b32.xlu0 %v7424_v13, %s17863_s7  ;;  %v17933_v54 = vrot.slane %v16059_v39, 1  ;;  %v17936_v19 = vrot.slane %v16078_v58, 1  ;;  %vm17942_vm14 = vcmask 1045504  }
 0x33b   : > { %8396 = vrot.lane.b32.xlu1 %v8387_v46, %s17685_s26  ;;  %v17624_v46 = vrot.slane %v16091_v59, 2  ;;  %v8478_v31 = vsel %vm17937_vm2, %v15871_v50, %v16118_v25  ;;  %v17941_v50 = vrot.slane %v15861_v49, 2  ;;  %vm17944_vm11 = vmmov %vm17942_vm14  ;;  %v16158_v49 = vld [vmem:[%s14516_s9 + $0xc] sm:$0xff]  }
 0x33c   : > { %v9047_v10 = vsel %vm991_vm0, %v9045_v48, %v17933_v54  ;;  %v6884_v13 = vpop.permute.xlu0 %6883  ;;  %v16125_v48 = vld [vmem:[%s13869_s2 + $0x14] sm:$0xff]   ;;  %v9117_v35 = vsel %vm991_vm0, %v9115_v24, %v17936_v19  ;;  %v16135_v54 = vld [vmem:[%s14516_s9 + $0x28] sm:$0xff]  }
 0x33d   : > { %v6886_v21 = vpop.permute.xlu1 %6885  ;;  %6895 = vst.msk [vmem:[#allocation2 + $0x18] sm:$0xff] %vm17935_vm8, %v6884_v13  ;;  %v12615_v24 = vld [vmem:[%s14516_s9 + $0x28] sm:$0xff]   ;;  %v16148_v13 = vor.u32 %v9199_v9, %v9196_v20  ;;  %vm17947_vm8 = vmmov %vm17937_vm2  ;;  %v17948_v20 = vrot.slane %v16125_v48, 2 }
 0x33e   : > { %6896 = vst.msk [vmem:[#allocation2 + $0x20] sm:$0xff] %vm17934_vm10, %v6886_v21  ;;  %9056 = vrot.lane.b32.xlu0 %v9047_v10, %s17694_s15  ;;  %v7053_v10 = vrot.slane %v7051_v4, 2  ;;  %v9192_v21 = vor.u32 %v9191_v38, %v9188_v51  ;;  %v16161_v51 = vld [vmem:[%s13869_s2 + $0x18] sm:$0xff]   ;;  %v7774_v9 = vshrl.u32 %v12615_v24, 16  ;;  %v7777_v38 = vshll.u32 %v12615_v24, 16  ;;  %vm17950_vm2 = vmmov %vm17944_vm11 }
 0x33f   : > { %7545 = vrot.lane.b32.xlu1 %v7529_v53, %s17862_s28  ;;  %v7054_v53 = vshll.u32 %v12609_v29, 16  ;;  %v7606_v29 = vsel %vm17942_vm14, %v17941_v50, %v17624_v46  ;;  %vm17946_vm10 = vcmask 622144   ;;  %v17635_v24 = vrot.slane %v16158_v49, 2  ;;  %vm17956_vm14 = vmmov %vm17950_vm2 }
 0x340   : > { %v6948_v26 = vpop.permute.xlu0 %6947 }
 0x341   : > { %v7060_v43 = vpop.permute.xlu1 %7059  ;;  %6962 = vst.msk [vmem:[#allocation2] sm:$0xff] %vm17938_vm6, %v6948_v26  ;;  %v7056_v1 = vrot.slane %v7054_v53, 3  ;;  %v17949_v53 = vrot.slane %v15882_v5, 2  ;;  %vm17951_vm6 = vcmask 654944   ;;  %v17954_v5 = vrot.slane %v16135_v54, 2 }
 0x342   : > { %7074 = vst.msk [vmem:[#allocation2] sm:$0xff] %vm17940_vm3, %v7060_v43  ;;  %8508 = vrot.lane.b32.xlu0 %v8478_v31, %s17686_s14  ;;  %v12611_v43 = vld [vmem:[%s14516_s9 + $0x4] sm:$0xfc]   ;;  %v12616_v26 = vld [vmem:[%s13869_s2 + $0x30] ss:$0 sps:$4 sm:$0x77]  }
 0x343   : > { %9126 = vrot.lane.b32.xlu1 %v9117_v35, %s17939_s10  ;;  %v17943_v35 = vrot.slane %v15864_v32, 2  ;;  %v9201_v32 = vsel %vm17947_vm8, %v9192_v21, %v16148_v13  ;;  %v8569_v50 = vsel %vm17950_vm2, %v17949_v53, %v17948_v20  ;;  %v17636_v21 = vrot.slane %v16161_v51, 2  ;;  %v12618_v20 = vld [vmem:[%s14516_s9 + $0x8] sm:$0xfc]   ;;  %v16193_v53 = vld [vmem:[%s14516_s9 + $0x10] sm:$0xff]   ;;  %vm17961_vm8 = vmmov %vm17950_vm2 }
 0x344   : > { %v7130_v31 = vpop.permute.xlu0 %7129  ;;  %vm17953_vm3 = vcmask 687744  }
 0x345   : > { %v7185_v19 = vpop.permute.xlu1 %7184  ;;  %v6946_v4 = vsel %vm17944_vm11, %v17943_v35, %v6945_v34  ;;  %7144 = vst.msk [vmem:[#allocation2] sm:$0xff] %vm17945_vm12, %v7130_v31  ;;  %v9297_v35 = vrot.slane %v12611_v43, 2  ;;  %v12620_v31 = vld [vmem:[%s13869_s2 + $0x18] sm:$0xff]   ;;  %vm17957_vm11 = vcmask 720544   ;;  %vm17958_vm12 = vcmask 753344  }
 0x346   : > { %7199 = vst.msk [vmem:[#allocation2] sm:$0xff] %vm17946_vm10, %v7185_v19  ;;  %6955 = vrot.lane.b32.xlu0 %v6946_v4, %s17698_s23  ;;  %v7776_v19 = vrot.slane %v7774_v9, 2  ;;  %v7779_v4 = vrot.slane %v7777_v38, 3  ;;  %v8726_v9 = vshll.u32 %v12620_v31, 16  ;;  %vm17959_vm10 = vmmov %vm17950_vm2  ;;  %vm17962_vm2 = vcmask 786144  }
 0x347   : > { %7615 = vrot.lane.b32.xlu1 %v7606_v29, %s17868_s4  ;;  %v7057_v29 = vor.u32 %v7056_v1, %v7053_v10 }
 0x348   : > { %v7288_v46 = vpop.permute.xlu0 %7287 }
 0x349   : > { %v7358_v34 = vpop.permute.xlu1 %7357  ;;  %7302 = vst.msk [vmem:[#allocation2] sm:$0xff] %vm17951_vm6, %v7288_v46  ;;  %v17955_v46 = vrot.slane %v15905_v57, 2  ;;  %v7058_v43 = vsel %vm1391_vm4, %v15914_v2, %v7057_v29  ;;  %v9299_v57 = vsel %vm17959_vm10, %v9297_v35, %v17635_v24  ;;  %v12625_v2 = vld [vmem:[%s14516_s9 + $0x8] sm:$0xfc]   ;;  %vm17963_vm6 = vcmask 523744  }
 0x34a   : > { %7372 = vst.msk [vmem:[#allocation2] sm:$0xff] %vm17953_vm3, %v7358_v34  ;;  %8578 = vrot.lane.b32.xlu0 %v8569_v50, %s17687_s17  ;;  %v16189_v34 = vor.u32 %v7779_v4, %v7776_v19  ;;  %v12626_v50 = vld [vmem:[%s14516_s9 + $0x10] sm:$0xff]   ;;  %v7127_v4 = vrot.slane %v12616_v26, 3  ;;  %v9438_v26 = vshrl.u32 %v12625_v2, 16  ;;  %vm17966_vm3 = vcmask 818944  }
 0x34b   : > { %9238 = vrot.lane.b32.xlu1 %v9201_v32, %s17952_s25  ;;  %v7676_v1 = vsel %vm17956_vm14, %v17955_v46, %v17954_v5  ;;  %v8723_v32 = vshrl.u32 %v12620_v31, 16  ;;  %v17960_v31 = vrot.slane %v15894_v36, 2  ;;  %v8728_v46 = vrot.slane %v8726_v9, 3  ;;  %v16215_v36 = vld [vmem:[%s14516_s9 + $0x28] sm:$0xff]  }
 0x34c   : > { %v7428_v38 = vpop.permute.xlu0 %7427  ;;  %v7781_v35 = vsel %vm1391_vm4, %v15945_v42, %v16189_v34  ;;  %v9446_v9 = vshrl.u32 %v12626_v50, 16  ;;  %vm17967_vm14 = vcmask 556544   ;;  %vm17971_vm10 = vcmask 622144  }
 0x34d   : > { %v7540_v10 = vpop.permute.xlu1 %7539  ;;  %7442 = vst.msk [vmem:[#allocation2] sm:$0xff] %vm17957_vm11, %v7428_v38  ;;  %v8639_v19 = vsel %vm17961_vm8, %v17960_v31, %v17636_v21  ;;  %v8725_v5 = vrot.slane %v8723_v32, 2  ;;  %v9441_v32 = vshll.u32 %v12625_v2, 16  ;;  %v9449_v38 = vshll.u32 %v12626_v50, 16  ;;  %vm17968_vm11 = vmmov %vm17961_vm8 }
 0x34e   : > { %7554 = vst.msk [vmem:[#allocation2] sm:$0xff] %vm17958_vm12, %v7540_v10  ;;  %7067 = vrot.lane.b32.xlu0 %v7058_v43, %s17699_s29  ;;  %v9367_v10 = vrot.slane %v12618_v20, 2  ;;  %v17634_v43 = vrot.slane %v16193_v53, 2  ;;  %v17965_v31 = vrot.slane %v15926_v62, 3  ;;  %v17631_v2 = vrot.slane %v16215_v36, 3 }
 0x34f   : > { %7685 = vrot.lane.b32.xlu1 %v7676_v1, %s17735_s5  ;;  %v9440_v62 = vrot.slane %v9438_v26, 2  ;;  %v9443_v50 = vrot.slane %v9441_v32, 3  ;;  %vm17969_vm12 = vcmask 589344   ;;  %v17970_v26 = vrot.slane %v15979_v37, 3 }
 0x350   : > { %v6950_v1 = vpop.permute.xlu0 %6949  ;;  %v9369_v20 = vsel %vm17968_vm11, %v9367_v10, %v17634_v43  ;;  %vm17973_vm8 = vcmask 654944   ;;  %vm17979_vm11 = vcmask 523744  }
 0x351   : > { %v7610_v29 = vpop.permute.xlu1 %7609  ;;  %6963 = vst.msk [vmem:[#allocation2 + $0x8] sm:$0xff] %vm17963_vm6, %v6950_v1  ;;  %v16221_v1 = vor.u32 %v8728_v46, %v8725_v5  ;;  %v7858_v32 = vsel %vm1505_vm5, %v17970_v26, %v17631_v2  ;;  %vm17975_vm6 = vcmask 720544  }
 0x352   : > { %7624 = vst.msk [vmem:[#allocation2] sm:$0xff] %vm17962_vm2, %v7610_v29  ;;  %8648 = vrot.lane.b32.xlu0 %v8639_v19, %s17688_s0  ;;  %v9448_v19 = vrot.slane %v9446_v9, 2  ;;  %v9444_v9 = vor.u32 %v9443_v50, %v9440_v62  ;;  %v12631_v50 = vld [vmem:[%s14516_s9 + $0x8] sm:$0xf8]   ;;  %vm17974_vm2 = vcmask 687744  }
 0x353   : > { %9308 = vrot.lane.b32.xlu1 %v9299_v57, %s17964_s18  ;;  %v7128_v57 = vsel %vm1505_vm5, %v17965_v31, %v7127_v4  ;;  %v9451_v4 = vrot.slane %v9449_v38, 3  ;;  %v8730_v46 = vsel %vm1391_vm4, %v15975_v63, %v16221_v1  ;;  %v12623_v63 = vld [vmem:[%s14516_s9 + $0x20] sm:$0xff]   ;;  %v8230_v31 = vshrl.u32 %v15960_v6, 16 }
 0x354   : > { %v7062_v42 = vpop.permute.xlu0 %7061 }
 0x355   : > { %v7680_v29 = vpop.permute.xlu1 %7679  ;;  %7075 = vst.msk [vmem:[#allocation2 + $0x8] sm:$0xff] %vm17967_vm14, %v7062_v42  ;;  %v16248_v38 = vor.u32 %v9451_v4, %v9448_v19  ;;  %v8232_v6 = vor.u32 %v8230_v31, %v16016_v44  ;;  %v17972_v4 = vrot.slane %v15954_v28, 3  ;;  %v9549_v28 = vrot.slane %v12631_v50, 3 }
 0x356   : > { %7694 = vst.msk [vmem:[#allocation2] sm:$0xff] %vm17966_vm3, %v7680_v29  ;;  %7137 = vrot.lane.b32.xlu0 %v7128_v57, %s17700_s19  ;;  %v16235_v29 = vld [vmem:[%s13869_s2 + $0x18] sm:$0xff]   ;;  %vm17977_vm3 = vcmask 753344   ;;  %vm17978_vm14 = vcmask 786144  }
 0x357   : > { %7797 = vrot.lane.b32.xlu1 %v7781_v35, %s17874_s20  ;;  %v12630_v35 = vld [vmem:[%s14516_s9 + $0x28] ss:$0 sps:$4 sm:$0x11]   ;;  %v17633_v42 = vrot.slane %v16235_v29, 3  ;;  %v9453_v62 = vsel %vm1391_vm4, %v9444_v9, %v16248_v38  ;;  %v8237_v44 = vsel %vm886_vm1, %v8232_v6, %v15991_v0  ;;  %v16282_v9 = vld [vmem:[%s14516_s9 + $0x10] sm:$0xff]   ;;  %v17976_v0 = vmov 0.0  }
 0x358   : > { %v7132_v10 = vpop.permute.xlu0 %7131  ;;  %v12633_v6 = vld [vmem:[%s14516_s9 + $0x8] sm:$0xff]  }
 0x359   : > { %v7792_v5 = vpop.permute.xlu1 %7791  ;;  %7145 = vst.msk [vmem:[#allocation2 + $0x8] sm:$0xff] %vm17969_vm12, %v7132_v10  ;;  %vm17982_vm12 = vcmask 818944  }
 0x35a   : > { %7806 = vst.msk [vmem:[#allocation2] sm:$0xff] %vm2943_vm13, %v7792_v5  ;;  %8760 = vrot.lane.b32.xlu0 %v8730_v46, %s17690_s1  ;;  %v7283_v5 = vshll.u32 %v12630_v35, 16  ;;  %v8821_v46 = vsel %vm1505_vm5, %v17972_v4, %v17633_v42  ;;  %v12641_v4 = vld [vmem:[%s15736_s11] sm:$0xff]  }
 0x35b   : > { %9378 = vrot.lane.b32.xlu1 %v9369_v20, %s17698_s23  ;;  %v7279_v20 = vshrl.u32 %v15963_v7, 16  ;;  %v16262_v7 = vld [vmem:[%s14516_s9 + $0x10] sm:$0xff]  }
 0x35c   : > { %v7187_v37 = vpop.permute.xlu0 %7186  ;;  %v7285_v10 = vrot.slane %v7283_v5, 1  ;;  %v12635_v5 = vld [vmem:[%s14516_s9 + $0x28] ss:$0 sps:$4 sm:$0x11]  }
 0x35d   : > { %v7862_v57 = vpop.permute.xlu1 %7861  ;;  %7200 = vst.msk [vmem:[#allocation2 + $0x8] sm:$0xff] %vm17971_vm10, %v7187_v37  ;;  %v7281_v35 = vor.u32 %v7279_v20, %v16018_v16  ;;  %v16279_v16 = vld [vmem:[%s13869_s2 + $0x18] sm:$0xff]   ;;  %vm17983_vm10 = vcmask 556544  }
 0x35e   : > { %7876 = vst.msk [vmem:[#allocation2] sm:$0xff] %vm3014_vm15, %v7862_v57  ;;  %7192 = vrot.lane.b32.xlu0 %v12623_v63, %s17703_s27  ;;  %v17626_v63 = vrot.slane %v16262_v7, 3  ;;  %v17625_v50 = vrot.slane %v16279_v16, 1 }
 0x35f   : > { %7867 = vrot.lane.b32.xlu1 %v7858_v32, %s17748_s30  ;;  %v12640_v32 = vld [vmem:[%s13869_s2] sm:$0xff]   ;;  %v7286_v20 = vsel %vm886_vm1, %v7281_v35, %v7285_v10  ;;  %v7355_v35 = vrot.slane %v12635_v5, 1  ;;  %v8954_v10 = vshrl.u32 %v15989_v41, 16  ;;  %v9677_v41 = vshll.u32 %v12641_v4, 16 }
 0x360   : > { %v7290_v26 = vpop.permute.xlu0 %7289  ;;  %v17981_v5 = vrot.slane %v15999_v60, 1  ;;  %v9675_v60 = vshrl.u32 %v12641_v4, 16  ;;  %v17985_v4 = vrot.slane %v16038_v17, 1 }
 0x361   : > { %v7360_v19 = vpop.permute.xlu1 %7359  ;;  %7303 = vst.msk [vmem:[#allocation2 + $0x8] sm:$0xff] %vm17973_vm8, %v7290_v26  ;;  %vm17984_vm8 = vcmask 589344  }
 0x362   : > { %7373 = vst.msk [vmem:[#allocation2 + $0x8] sm:$0xff] %vm17974_vm2, %v7360_v19  ;;  %8830 = vrot.lane.b32.xlu0 %v8821_v46, %s17691_s22  ;;  %v8958_v19 = vshll.u32 %v16282_v9, 16  ;;  %vm17987_vm2 = vcmask 622144  }
 0x363   : > { %9490 = vrot.lane.b32.xlu1 %v9453_v62, %s17699_s29  ;;  %v9551_v62 = vsel %vm1505_vm5, %v9549_v28, %v17626_v63 }
 0x364   : > { %v7430_v37 = vpop.permute.xlu0 %7429 }
 0x365   : > { %v7542_v31 = vpop.permute.xlu1 %7541  ;;  %v7881_v57 = vld [vmem:[#allocation2] sm:$0xff]  ;;  %7443 = vst.msk [vmem:[#allocation2 + $0x8] sm:$0xff] %vm17975_vm6, %v7430_v37  ;;  %v7356_v37 = vsel %vm991_vm0, %v17981_v5, %v7355_v35  ;;  %vm17989_vm6 = vcmask 64544  }
 0x366   : > { %11907 = vmatmul.mubr.bf16.vlgmr.msra.gmra.mrb[20].mxu0 %v7881_v57  ;;  %8166 = vst.msk [vmem:[#allocation2] sm:$0xff] %vm841_vm7, %v12640_v32  ;;  %7295 = vrot.lane.b32.xlu0 %v7286_v20, %s17709_s12  ;;  %v16305_v32 = vld [vmem:[%s13869_s2 + $0x1c] sm:$0xff]  }
 0x367   : > { %8258 = vrot.lane.b32.xlu1 %v8237_v44, %s17755_s13  ;;  %11910 = vmatprep.mubr.msk.bf16.mxu0 %vm17833_vm9, %v17976_v0  ;;  %7555 = vst.msk [vmem:[#allocation2 + $0x8] sm:$0xff] %vm17977_vm3, %v7542_v31  ;;  %v17980_v44 = vrot.slane %v16009_v18, 1  ;;  %v16313_v31 = vrot.slane %v8958_v19, 1  ;;  %v12644_v57 = vld [vmem:[%s13869_s2 + $0x1c] sm:$0xff]   ;;  %v17628_v19 = vrot.slane %v16305_v32, 1  ;;  %vm17990_vm3 = vcmask 654944  }
 0x368   : > { %v6952_v26 = vpop.permute.xlu0 %6951  ;;  %v12636_v18 = vld [vmem:[%s15736_s11] sm:$0xff]   ;;  %v8480_v35 = vshrl.u32 %v12644_v57, 16  ;;  %v8483_v5 = vshll.u32 %v12644_v57, 16 }
 0x369   : > { %v7612_v46 = vpop.permute.xlu1 %7611  ;;  %6964 = vst.msk [vmem:[#allocation2 + $0x10] sm:$0xff] %vm17979_vm11, %v6952_v26  ;;  %v8319_v28 = vsel %vm991_vm0, %v17980_v44, %v17625_v50  ;;  %v9679_v44 = vrot.slane %v9677_v41, 1  ;;  %v8389_v41 = vsel %vm991_vm0, %v17985_v4, %v17628_v19 }
 0x36a   : > { %7625 = vst.msk [vmem:[#allocation2 + $0x8] sm:$0xff] %vm17978_vm14, %v7612_v46  ;;  %8885 = vrot.lane.b32.xlu0 %v12633_v6, %s17692_s21  ;;  %v12639_v46 = vld [vmem:[%s14516_s9 + $0x2c] ss:$0 sps:$4 sm:$0x11]   ;;  %vm17991_vm14 = vsmask.f32 6400 }
 0x36b   : > { %9560 = vrot.lane.b32.xlu1 %v9551_v62, %s17700_s19  ;;  %v8956_v62 = vor.u32 %v8954_v10, %v16031_v27  ;;  %v12645_v6 = vld [vmem:[%s14516_s9 + $0x2c] ss:$0 sps:$4 sm:$0x33]   ;;  %v7425_v50 = vrot.slane %v12639_v46, 1  ;;  %v9680_v57 = vor.u32 %v9679_v44, %v9675_v60  ;;  %vm17992_vm11 = vmmov %vm17991_vm14 }
 0x36c   : > { %v7064_v26 = vpop.permute.xlu0 %7063  ;;  %v7531_v63 = vshrl.u32 %v12645_v6, 16  ;;  %v16356_v44 = vld [vmem:[%s15736_s11 + $0x8] sm:$0xff]  }
 0x36d   : > { %v7682_v20 = vpop.permute.xlu1 %7681  ;;  %7076 = vst.msk [vmem:[#allocation2 + $0x10] sm:$0xff] %vm17983_vm10, %v7064_v26  ;;  %v8961_v10 = vsel %vm886_vm1, %v8956_v62, %v16313_v31  ;;  %v7534_v26 = vshll.u32 %v12645_v6, 16  ;;  %v8485_v62 = vrot.slane %v8483_v5, 2  ;;  %v17986_v6 = vrot.slane %v16041_v56, 1 }
 0x36e   : > { %7695 = vst.msk [vmem:[#allocation2 + $0x8] sm:$0xff] %vm17982_vm12, %v7682_v20  ;;  %7365 = vrot.lane.b32.xlu0 %v7356_v37, %s17714_s8  ;;  %v16331_v20 = vld [vmem:[%s14516_s9 + $0x10] sm:$0xff]   ;;  %v8482_v37 = vrot.slane %v8480_v35, 1  ;;  %v9685_v56 = vsel %vm886_vm1, %v9680_v57, %v16096_v11  ;;  %v17988_v5 = vrot.slane %v16059_v39, 1  ;;  %v12666_v57 = vld [vmem:[%s13869_s2 + $0x8] sm:$0xff]   ;;  %vm17993_vm12 = vcmask 97344  }
 0x36f   : > { %8328 = vrot.lane.b32.xlu1 %v8319_v28, %s17684_s16  ;;  %vm17994_vm10 = vcmask 687744  }
 0x370   : > { %v7134_v28 = vpop.permute.xlu0 %7133  ;;  %v16352_v60 = vor.u32 %v8485_v62, %v8482_v37  ;;  %v17627_v62 = vrot.slane %v16356_v44, 1 }
 0x371   : > { %v7794_v27 = vpop.permute.xlu1 %7793  ;;  %7146 = vst.msk [vmem:[#allocation2 + $0x10] sm:$0xff] %vm17984_vm8, %v7134_v28  ;;  %v7536_v28 = vrot.slane %v7534_v26, 2  ;;  %vm17996_vm8 = vcmask 130144  }
 0x372   : > { %7807 = vst.msk [vmem:[#allocation2 + $0x8] sm:$0xff] %vm2943_vm13, %v7794_v27  ;;  %8988 = vrot.lane.b32.xlu0 %v8961_v10, %s17693_s3  ;;  %v7426_v27 = vsel %vm991_vm0, %v17986_v6, %v7425_v50  ;;  %v7533_v10 = vrot.slane %v7531_v63, 1  ;;  %v12646_v50 = vld [vmem:[%s15736_s11] sm:$0xfe]   ;;  %v16359_v63 = vld [vmem:[%s14516_s9 + $0x14] sm:$0xff]   ;;  %v8487_v39 = vsel %vm17991_vm14, %v16118_v25, %v16352_v60  ;;  %vm18002_vm14 = vcmask 162944  }
 0x373   : > { %9615 = vrot.lane.b32.xlu1 %v12636_v18, %s17703_s27  ;;  %v17629_v18 = vrot.slane %v16331_v20, 1  ;;  %v9777_v37 = vrot.slane %v12646_v50, 1  ;;  %v16378_v6 = vld [vmem:[%s13869_s2 + $0x1c] sm:$0xff]   ;;  %v12656_v50 = vld [vmem:[%s15736_s11 + $0x4] sm:$0xfe]  }
 0x374   : > { %v7189_v17 = vpop.permute.xlu0 %7188  ;;  %v7537_v4 = vor.u32 %v7536_v28, %v7533_v10 }
 0x375   : > { %v7864_v46 = vpop.permute.xlu1 %7863  ;;  %7201 = vst.msk [vmem:[#allocation2 + $0x10] sm:$0xff] %vm17987_vm2, %v7189_v17  ;;  %v9049_v26 = vsel %vm991_vm0, %v17988_v5, %v17629_v18  ;;  %v12650_v17 = vld [vmem:[%s14516_s9 + $0x2c] ss:$0 sps:$4 sm:$0x33]   ;;  %vm17997_vm2 = vcmask 720544  }
 0x376   : > { %7877 = vst.msk [vmem:[#allocation2 + $0x8] sm:$0xff] %vm3014_vm15, %v7864_v46  ;;  %7435 = vrot.lane.b32.xlu0 %v7426_v27, %s17863_s7  ;;  %v17630_v46 = vrot.slane %v16359_v63, 1  ;;  %v7538_v28 = vsel %vm17992_vm11, %v16088_v8, %v7537_v4  ;;  %v12657_v5 = vld [vmem:[%s15736_s11 + $0xc] sm:$0xff]   ;;  %v9779_v8 = vsel %vm991_vm0, %v9777_v37, %v17627_v62  ;;  %v12651_v4 = vld [vmem:[%s15736_s11 + $0x4] sm:$0xfe]   ;;  %v9921_v62 = vshll.u32 %v12656_v50, 16 }
 0x377   : > { %8398 = vrot.lane.b32.xlu1 %v8389_v41, %s17685_s26  ;;  %v12653_v41 = vld [vmem:[%s14516_s9 + $0x14] sm:$0xff]   ;;  %v9926_v19 = vshrl.u32 %v12657_v5, 16  ;;  %v9929_v18 = vshll.u32 %v12657_v5, 16  ;;  %vm18003_vm11 = vcmask 753344  }
 0x378   : > { %v7292_v11 = vpop.permute.xlu0 %7291  ;;  %v9923_v42 = vrot.slane %v9921_v62, 2 }
 0x379   : > { %v8255_v35 = vpop.permute.xlu1 %8254  ;;  %7304 = vst.msk [vmem:[#allocation2 + $0x10] sm:$0xff] %vm17990_vm3, %v7292_v11  ;;  %v9931_v24 = vrot.slane %v9929_v18, 2 }
 0x37a   : > { %8269 = vst.msk [vmem:[#allocation2] sm:$0xff] %vm17989_vm6, %v8255_v35  ;;  %9058 = vrot.lane.b32.xlu0 %v9049_v26, %s17694_s15  ;;  %v9206_v35 = vshll.u32 %v12653_v41, 16  ;;  %v17632_v26 = vrot.slane %v16378_v6, 2  ;;  %vm17999_vm6 = vcmask 1045504  }
 0x37b   : > { %9718 = vrot.lane.b32.xlu1 %v9685_v56, %s17709_s12  ;;  %v9203_v56 = vshrl.u32 %v12653_v41, 16  ;;  %v16398_v41 = vld [vmem:[%s15736_s11 + $0xc] sm:$0xff]   ;;  %vm18001_vm3 = vmmov %vm17999_vm6 }
 0x37c   : > { %v7362_v25 = vpop.permute.xlu0 %7361 }
 0x37d   : > { %v8325_v27 = vpop.permute.xlu1 %8324  ;;  %v7882_v10 = vld [vmem:[#allocation2 + $0x8] sm:$0xff]  ;;  %7374 = vst.msk [vmem:[#allocation2 + $0x10] sm:$0xff] %vm17994_vm10, %v7362_v25  ;;  %v9918_v25 = vshrl.u32 %v12656_v50, 16  ;;  %v16417_v50 = vld [vmem:[%s13869_s2 + $0x20] sm:$0xff]   ;;  %vm18006_vm10 = vcmask 786144  }
 0x37e   : > { %8339 = vst.msk [vmem:[#allocation2] sm:$0xff] %vm17993_vm12, %v8325_v27  ;;  %11911 = vmatmul.mubr.bf16.gmra.mrb[24].mxu0 %v7882_v10  ;;  %7547 = vrot.lane.b32.xlu0 %v7538_v28, %s17862_s28  ;;  %v7607_v27 = vrot.slane %v12650_v17, 2  ;;  %v9205_v10 = vrot.slane %v9203_v56, 1  ;;  %v9208_v28 = vrot.slane %v9206_v35, 2  ;;  %v17998_v17 = vrot.slane %v16125_v48, 2 }
 0x37f   : > { %8167 = vst.msk [vmem:[#allocation2 + $0x8] sm:$0xff] %vm841_vm7, %v12666_v57  ;;  %8510 = vrot.lane.b32.xlu1 %v8487_v39, %s17686_s14  ;;  %11914 = vmatprep.mubr.msk.bf16.mxu0 %vm17833_vm9, %v17976_v0  ;;  %v17995_v57 = vrot.slane %v16078_v58, 1  ;;  %v12659_v58 = vld [vmem:[%s13869_s2 + $0x20] sm:$0xff]   ;;  %v9847_v35 = vrot.slane %v12651_v4, 1  ;;  %vm18005_vm12 = vsmask.f32 6400 }
 0x380   : > { %v7432_v37 = vpop.permute.xlu0 %7431  ;;  %v8571_v56 = vsel %vm17999_vm6, %v17998_v17, %v17632_v26  ;;  %v16423_v2 = vor.u32 %v9208_v28, %v9205_v10  ;;  %v9920_v26 = vrot.slane %v9918_v25, 1  ;;  %v8735_v10 = vshll.u32 %v12659_v58, 16 }
 0x381   : > { %v8395_v11 = vpop.permute.xlu1 %8394  ;;  %v9119_v39 = vsel %vm991_vm0, %v17995_v57, %v17630_v46  ;;  %7444 = vst.msk [vmem:[#allocation2 + $0x10] sm:$0xff] %vm17997_vm2, %v7432_v37  ;;  %v12655_v57 = vld [vmem:[%s14516_s9 + $0x30] ss:$0 sps:$4 sm:$0x33]   ;;  %vm18010_vm2 = vmmov %vm18001_vm3 }
 0x382   : > { %8409 = vst.msk [vmem:[#allocation2] sm:$0xff] %vm17996_vm8, %v8395_v11  ;;  %9128 = vrot.lane.b32.xlu0 %v9119_v39, %s17939_s10  ;;  %v17639_v11 = vrot.slane %v16398_v41, 1  ;;  %v12660_v39 = vld [vmem:[%s14516_s9 + $0x30] ss:$0 sps:$4 sm:$0x77]   ;;  %v7677_v18 = vrot.slane %v12655_v57, 2  ;;  %vm18012_vm6 = vmmov %vm18010_vm2 }
 0x383   : > { %9788 = vrot.lane.b32.xlu1 %v9779_v8, %s17714_s8  ;;  %v18000_v8 = vrot.slane %v16091_v59, 2  ;;  %v9928_v59 = vrot.slane %v9926_v19, 1  ;;  %v9210_v19 = vsel %vm18005_vm12, %v16148_v13, %v16423_v2  ;;  %vm18007_vm8 = vcmask 523744  }
 0x384   : > { %v7544_v48 = vpop.permute.xlu0 %7543  ;;  %v9849_v62 = vsel %vm991_vm0, %v9847_v35, %v17639_v11  ;;  %v9924_v35 = vor.u32 %v9923_v42, %v9920_v26  ;;  %v8737_v57 = vrot.slane %v8735_v10, 3 }
 0x385   : > { %v8507_v37 = vpop.permute.xlu1 %8506  ;;  %v5553_v46 = vpop.f32.mrb[0].mxu1  ;;  %v7608_v5 = vsel %vm18001_vm3, %v18000_v8, %v7607_v27  ;;  %7556 = vst.msk [vmem:[#allocation2 + $0x10] sm:$0xff] %vm18003_vm11, %v7544_v48  ;;  %v8732_v27 = vshrl.u32 %v12659_v58, 16  ;;  %v16440_v58 = vld [vmem:[%s14516_s9 + $0x14] sm:$0xff]   ;;  %v16446_v11 = vor.u32 %v9931_v24, %v9928_v59  ;;  %vm18013_vm3 = vcmask 556544   ;;  %vm18016_vm11 = vmmov %vm18005_vm12 }
 0x386   : > { %8521 = vst.msk [vmem:[#allocation2] sm:$0xff] %vm18002_vm14, %v8507_v37  ;;  %v5592_v17 = vmul.f32 %v14872_v45, %v5553_v46  ;;  %v11872_v4 = vpop.f32.mrb[1].mxu1  ;;  %7617 = vrot.lane.b32.xlu0 %v7608_v5, %s17868_s4  ;;  %v7786_v5 = vshll.u32 %v12660_v39, 16  ;;  %v17643_v42 = vrot.slane %v16440_v58, 2  ;;  %vm18015_vm14 = vcmask 195744   ;;  %vm18018_vm12 = vmmov %vm18010_vm2 }
 0x387   : > { %8580 = vrot.lane.b32.xlu1 %v8571_v56, %s17687_s17  ;;  %v5556_v43 = vpop.f32.mrb[2].mxu1  ;;  %v7783_v56 = vshrl.u32 %v12660_v39, 16  ;;  %v8734_v13 = vrot.slane %v8732_v27, 2  ;;  %s18014_s17 = sld [smem:[#allocation34_spill]] }
 0x388   : > { %v5593_v28 = vmul.f32 %v14937_v33, %v5556_v43  ;;  %v11675_v37 = vpack.c.bf16 %v5556_v43, %v5553_v46  ;;  %v11873_v8 = vpop.f32.mrb[3].mxu1  ;;  %v5618_v4 = vmul.f32 %v5592_v17, %v5553_v46  ;;  %v18008_v46 = vrot.slane %v16417_v50, 2 }
 0x389   : > { %v7614_v48 = vpop.permute.xlu1 %7613  ;;  %v6954_v8 = vpop.permute.xlu0 %6953  ;;  %v7788_v26 = vrot.slane %v7786_v5, 3 }
 0x38a   : > { %v5602_v21 = vadd.f32 %v5593_v28, %v5592_v17  ;;  %v5619_v33 = vmul.f32 %v5593_v28, %v5556_v43  ;;  %11751 = vst [vmem:[%s18004_s6 + $0x28] sm:$0xff] %v11675_v37   ;;  %7626 = vst.msk [vmem:[#allocation2 + $0x10] sm:$0xff] %vm18006_vm10, %v7614_v48  ;;  %9240 = vrot.lane.b32.xlu0 %v9210_v19, %s17952_s25  ;;  %v18009_v43 = vrot.slane %v16161_v51, 2  ;;  %v18011_v37 = vrot.slane %v16135_v54, 2  ;;  %v12661_v19 = vld [vmem:[%s15736_s11 + $0x4] sm:$0xfc]  }
 0x38b   : > { %6965 = vst.msk [vmem:[#allocation2 + $0x18] sm:$0xff] %vm18007_vm8, %v6954_v8  ;;  %9858 = vrot.lane.b32.xlu1 %v9849_v62, %s17863_s7  ;;  %v9933_v62 = vsel %vm18016_vm11, %v9924_v35, %v16446_v11  ;;  %v16467_v48 = vor.u32 %v8737_v57, %v8734_v13  ;;  %v18017_v35 = vrot.slane %v16158_v49, 2  ;;  %vm18019_vm10 = vcmask 228544   ;;  %s18065_s7 = smov 84  }
 0x38c   : > { %v5628_v25 = vadd.f32 %v5619_v33, %v5618_v4  ;;  %v8641_v39 = vsel %vm18010_vm2, %v18009_v43, %v18008_v46  ;;  %v7678_v24 = vsel %vm18012_vm6, %v18011_v37, %v7677_v18  ;;  %v7785_v33 = vrot.slane %v7783_v56, 2  ;;  %v16471_v18 = vld [vmem:[%s15736_s11 + $0xc] sm:$0xff]   ;;  %v16474_v56 = vld [vmem:[%s14516_s9 + $0x18] sm:$0xff]  }
 0x38d   : > { %v7066_v17 = vpop.permute.xlu1 %7065  ;;  %v5561_v28 = vpop.f32.mrb[4].mxu1  ;;  %v12727_v10 = vld [vmem:[%s18014_s17] sm:$0xff]   ;;  %v9301_v13 = vsel %vm18018_vm12, %v18017_v35, %v17643_v42  ;;  %v12730_v49 = vld [vmem:[%s18014_s17 + $0x8] sm:$0xff]   ;;  %vm18020_vm8 = vcmask 818944   ;;  %v16508_v35 = vld [vmem:[%s15736_s11 + $0x10] sm:$0xff]   ;;  %vm18021_vm2 = vcmask 589344  }
 0x38e   : > { %7077 = vst.msk [vmem:[#allocation2 + $0x18] sm:$0xff] %vm18013_vm3, %v7066_v17  ;;  %v8577_v59 = vpop.permute.xlu0 %8576  ;;  %v5594_v51 = vmul.f32 %v15050_v40, %v5561_v28  ;;  %v11876_v27 = vpop.f32.mrb[5].mxu1  ;;  %7687 = vrot.lane.b32.xlu0 %v7678_v24, %s17735_s5  ;;  %v7789_v57 = vor.u32 %v7788_v26, %v7785_v33  ;;  %v12669_v17 = vld [vmem:[%s14516_s9 + $0x18] sm:$0xff]   ;;  %11927 = vmatpush3.bf16.msra.mxu1 %v12727_v10  ;;  %v10029_v24 = vrot.slane %v12661_v19, 2  ;;  %v17648_v33 = vrot.slane %v16474_v56, 2  ;;  %v16495_v26 = vld [vmem:[%s13869_s2 + $0x20] sm:$0xff]   ;;  %vm18023_vm3 = vmmov %vm18012_vm6 }
 0x38f   : > { %8591 = vst.msk [vmem:[#allocation2] sm:$0xff] %vm18015_vm14, %v8577_v59  ;;  %8650 = vrot.lane.b32.xlu1 %v8641_v39, %s17688_s0  ;;  %v5564_v54 = vpop.f32.mrb[6].mxu1  ;;  %11928 = vmatprep.subr.bf16.mxu1 %v17976_v0  ;;  %v8739_v27 = vsel %vm1391_vm4, %v16221_v1, %v16467_v48  ;;  %v12665_v10 = vld [vmem:[%s14516_s9 + $0x30] ss:$0 sps:$4 sm:$0x77]   ;;  %vm18024_vm14 = vcmask 622144  }
 0x390   : > { %v5603_v5 = vadd.f32 %v5602_v21, %v5594_v51  ;;  %v5620_v4 = vmul.f32 %v5594_v51, %v5561_v28  ;;  %v5595_v8 = vmul.f32 %v15127_v52, %v5564_v54  ;;  %v11680_v46 = vpack.c.bf16 %v5564_v54, %v5561_v28  ;;  %v11877_v43 = vpop.f32.mrb[7].mxu1  ;;  %v12667_v19 = vld [vmem:[%s15736_s11 + $0x8] sm:$0xfc]   ;;  %v16530_v52 = vld [vmem:[%s13869_s2 + $0x20] sm:$0xff]  }
 0x391   : > { %v8647_v39 = vpop.permute.xlu1 %8646  ;;  %v10099_v42 = vrot.slane %v12667_v19, 2  ;;  %vm18025_vm11 = vcmask 261344   ;;  %vm18029_vm12 = vcmask 294144  }
 0x392   : > { %v5629_v37 = vadd.f32 %v5628_v25, %v5620_v4  ;;  %v5604_v21 = vadd.f32 %v5603_v5, %v5595_v8  ;;  %v5621_v59 = vmul.f32 %v5595_v8, %v5564_v54  ;;  %11752 = vst [vmem:[%s18004_s6 + $0x30] sm:$0xff] %v11680_v46   ;;  %8661 = vst.msk [vmem:[#allocation2] sm:$0xff] %vm18019_vm10, %v8647_v39  ;;  %v7684_v28 = vpop.permute.xlu0 %7683  ;;  %v17642_v25 = vrot.slane %v16471_v18, 2 }
 0x393   : > { %7696 = vst.msk [vmem:[#allocation2 + $0x10] sm:$0xff] %vm18020_vm8, %v7684_v28  ;;  %9970 = vrot.lane.b32.xlu1 %v9933_v62, %s17862_s28  ;;  %9310 = vrot.lane.b32.xlu0 %v9301_v13, %s17964_s18  ;;  %v7790_v62 = vsel %vm1391_vm4, %v16189_v34, %v7789_v57  ;;  %v9455_v4 = vshrl.u32 %v12669_v17, 16  ;;  %v9458_v8 = vshll.u32 %v12669_v17, 16  ;;  %v12733_v34 = vld [vmem:[%s18014_s17 + $0x10] sm:$0xff]   ;;  %v18022_v57 = vrot.slane %v16193_v53, 2  ;;  %vm18030_vm10 = vmmov %vm18023_vm3 }
 0x394   : > { %v5630_v51 = vadd.f32 %v5629_v37, %v5621_v59  ;;  %11929 = vmatpush3.bf16.msra.mxu1 %v12730_v49  ;;  %v10031_v13 = vsel %vm18012_vm6, %v10029_v24, %v17642_v25  ;;  %v12672_v59 = vld [vmem:[%s15736_s11 + $0x8] sm:$0xfc]   ;;  %v12673_v28 = vld [vmem:[%s15736_s11 + $0x10] sm:$0xff]   ;;  %v7859_v25 = vrot.slane %v12665_v10, 3  ;;  %v12737_v10 = vld [vmem:[%s18014_s17 + $0x18] sm:$0xff]   ;;  %vm18031_vm8 = vcmask 64544  }
 0x395   : > { %v7796_v54 = vpop.permute.xlu1 %7795  ;;  %v5569_v5 = vpop.f32.mrb[8].mxu1  ;;  %11930 = vmatprep.subr.bf16.mxu1 %v17976_v0  ;;  %v9371_v17 = vsel %vm18023_vm3, %v18022_v57, %v17648_v33  ;;  %v9457_v53 = vrot.slane %v9455_v4, 2  ;;  %v10178_v19 = vshrl.u32 %v12673_v28, 16  ;;  %v10181_v4 = vshll.u32 %v12673_v28, 16 }
 0x396   : > { %7808 = vst.msk [vmem:[#allocation2 + $0x10] sm:$0xff] %vm2943_vm13, %v7796_v54  ;;  %v7136_v46 = vpop.permute.xlu0 %7135  ;;  %v5596_v43 = vmul.f32 %v15185_v61, %v5569_v5  ;;  %v11880_v39 = vpop.f32.mrb[9].mxu1  ;;  %v9460_v61 = vrot.slane %v9458_v8, 3  ;;  %vm18033_vm6 = vcmask 687744   ;;  %vm18034_vm3 = vcmask 326944  }
 0x397   : > { %7147 = vst.msk [vmem:[#allocation2 + $0x18] sm:$0xff] %vm18021_vm2, %v7136_v46  ;;  %8762 = vrot.lane.b32.xlu1 %v8739_v27, %s17690_s1  ;;  %v5572_v1 = vpop.f32.mrb[10].mxu1  ;;  %7799 = vrot.lane.b32.xlu0 %v7790_v62, %s17874_s20  ;;  %v10100_v62 = vrot.slane %v16508_v35, 2  ;;  %vm18032_vm2 = vcmask 654944  }
 0x398   : > { %v5605_v49 = vadd.f32 %v5604_v21, %v5596_v43  ;;  %v5622_v54 = vmul.f32 %v5596_v43, %v5569_v5  ;;  %v5597_v27 = vmul.f32 %v15190_v12, %v5572_v1  ;;  %v11685_v46 = vpack.c.bf16 %v5572_v1, %v5569_v5  ;;  %v11881_v24 = vpop.f32.mrb[11].mxu1  ;;  %11931 = vmatpush3.bf16.msra.mxu1 %v12733_v34 }
 0x399   : > { %v7191_v39 = vpop.permute.xlu1 %7190  ;;  %11932 = vmatprep.subr.bf16.mxu1 %v17976_v0  ;;  %v10170_v5 = vshrl.u32 %v12672_v59, 16  ;;  %v18026_v43 = vrot.slane %v16495_v26, 3  ;;  %v18027_v34 = vrot.slane %v16235_v29, 3  ;;  %v10101_v28 = vsel %vm18030_vm10, %v10099_v42, %v10100_v62 }
 0x39a   : > { %v5631_v57 = vadd.f32 %v5630_v51, %v5622_v54  ;;  %v5606_v33 = vadd.f32 %v5605_v49, %v5597_v27  ;;  %v5623_v37 = vmul.f32 %v5597_v27, %v5572_v1  ;;  %11753 = vst [vmem:[%s18004_s6 + $0x38] sm:$0xff] %v11685_v46   ;;  %7202 = vst.msk [vmem:[#allocation2 + $0x18] sm:$0xff] %vm18024_vm14, %v7191_v39  ;;  %v8759_v21 = vpop.permute.xlu0 %8758  ;;  %v10173_v51 = vshll.u32 %v12672_v59, 16 }
 0x39b   : > { %8773 = vst.msk [vmem:[#allocation2] sm:$0xff] %vm18025_vm11, %v8759_v21  ;;  %10040 = vrot.lane.b32.xlu1 %v10031_v13, %s17868_s4  ;;  %9380 = vrot.lane.b32.xlu0 %v9371_v17, %s17698_s23  ;;  %v8823_v1 = vsel %vm1505_vm5, %v18027_v34, %v18026_v43  ;;  %v18028_v27 = vrot.slane %v16215_v36, 3  ;;  %v16550_v13 = vor.u32 %v9460_v61, %v9457_v53  ;;  %v8242_v59 = vshll.u32 %v16530_v52, 16  ;;  %v12740_v61 = vld [vmem:[%s18014_s17 + $0x20] sm:$0xff]  }
 0x39c   : > { %v5632_v8 = vadd.f32 %v5631_v57, %v5623_v37  ;;  %11933 = vmatpush3.bf16.msra.mxu1 %v12737_v10  ;;  %v10175_v24 = vrot.slane %v10173_v51, 3  ;;  %v10180_v39 = vrot.slane %v10178_v19, 2  ;;  %v10183_v53 = vrot.slane %v10181_v4, 3  ;;  %v16565_v57 = vld [vmem:[%s14516_s9 + $0x18] sm:$0xff]  }
 0x39d   : > { %v8829_v49 = vpop.permute.xlu1 %8828  ;;  %v5577_v54 = vpop.f32.mrb[12].mxu1  ;;  %v7860_v46 = vsel %vm1505_vm5, %v18028_v27, %v7859_v25  ;;  %11934 = vmatprep.subr.bf16.mxu1 %v17976_v0  ;;  %v10172_v25 = vrot.slane %v10170_v5, 2  ;;  %v9462_v5 = vsel %vm1391_vm4, %v16248_v38, %v16550_v13  ;;  %v16573_v51 = vrot.slane %v8242_v59, 1  ;;  %v16576_v19 = vld [vmem:[%s14516_s9 + $0x18] sm:$0xff]   ;;  %v12743_v38 = vld [vmem:[%s18014_s17 + $0x28] sm:$0xff]   ;;  %v12670_v59 = vld [vmem:[%s14516_s9 + $0x10] sm:$0xff]  }
 0x39e   : > { %8843 = vst.msk [vmem:[#allocation2] sm:$0xff] %vm18029_vm12, %v8829_v49  ;;  %v7866_v17 = vpop.permute.xlu0 %7865  ;;  %v5598_v37 = vmul.f32 %v15244_v47, %v5577_v54  ;;  %v11884_v29 = vpop.f32.mrb[13].mxu1  ;;  %v3181_v49 = vrot.slane %v15359_v23, 4  ;;  %vm18036_vm14 = vcmask 359744   ;;  %vm18037_vm11 = vcmask 97344  }
 0x39f   : > { %7878 = vst.msk [vmem:[#allocation2 + $0x10] sm:$0xff] %vm3014_vm15, %v7866_v17  ;;  %8832 = vrot.lane.b32.xlu1 %v8823_v1, %s17691_s22  ;;  %v5580_v36 = vpop.f32.mrb[14].mxu1  ;;  %7869 = vrot.lane.b32.xlu0 %v7860_v46, %s17748_s30  ;;  %v10176_v17 = vor.u32 %v10175_v24, %v10172_v25  ;;  %v8966_v29 = vshll.u32 %v16565_v57, 16  ;;  %vm18039_vm12 = vcmask 130144   ;;  %vm18040_vm10 = vcmask 720544  }
 0x3a0   : > { %v5607_v21 = vadd.f32 %v5606_v33, %v5598_v37  ;;  %v5624_v42 = vmul.f32 %v5598_v37, %v5577_v54  ;;  %v5599_v10 = vmul.f32 %v15293_v22, %v5580_v36  ;;  %v11690_v43 = vpack.c.bf16 %v5580_v36, %v5577_v54  ;;  %v11885_v34 = vpop.f32.mrb[15].mxu1  ;;  %11935 = vmatpush3.bf16.msra.mxu1 %v12740_v61  ;;  %v12698_v61 = vld [vmem:[%s13869_s2 + $0x10] sm:$0xff]  }
 0x3a1   : > { %v8257_v1 = vpop.permute.xlu1 %8256  ;;  %v3207_v33 = vrot.slane %v15373_v3, 4  ;;  %11936 = vmatprep.subr.bf16.mxu1 %v17976_v0  ;;  %v8962_v37 = vshrl.u32 %v16282_v9, 16  ;;  %v3182_v25 = vadd.f32 %v3181_v49, %v15359_v23 }
 0x3a2   : > { %v5633_v4 = vadd.f32 %v5632_v8, %v5624_v42  ;;  %v5608_v27 = vadd.f32 %v5607_v21, %v5599_v10  ;;  %v5625_v54 = vmul.f32 %v5599_v10, %v5580_v36  ;;  %11754 = vst [vmem:[%s18004_s6 + $0x40] sm:$0xff] %v11690_v43   ;;  %8270 = vst.msk [vmem:[#allocation2 + $0x8] sm:$0xff] %vm18031_vm8, %v8257_v1  ;;  %v7294_v46 = vpop.permute.xlu0 %7293  ;;  %v16599_v43 = vld [vmem:[%s13869_s2 + $0x20] sm:$0xff]   ;;  %vm18041_vm8 = vcmask 753344  }
 0x3a3   : > { %7305 = vst.msk [vmem:[#allocation2 + $0x18] sm:$0xff] %vm18032_vm2, %v7294_v46  ;;  %10110 = vrot.lane.b32.xlu1 %v10101_v28, %s17735_s5  ;;  %v16588_v8 = vor.u32 %v10183_v53, %v10180_v39  ;;  %9492 = vrot.lane.b32.xlu0 %v9462_v5, %s17699_s29  ;;  %v8245_v10 = vsel %vm886_vm1, %v16002_v55, %v16573_v51  ;;  %v9552_v28 = vrot.slane %v16576_v19, 3  ;;  %v12746_v55 = vld [vmem:[%s18014_s17 + $0x30] sm:$0xff]   ;;  %v16614_v5 = vrot.slane %v8966_v29, 1  ;;  %v16896_v19 = vld [vmem:[%s14516_s9 + $0x20] sm:$0xff]  }
 0x3a4   : > { %v5634_v36 = vadd.f32 %v5633_v4, %v5625_v54  ;;  %11937 = vmatpush3.bf16.msra.mxu1 %v12743_v38  ;;  %v3208_v34 = vadd.f32 %v3207_v33, %v15373_v3  ;;  %v8964_v1 = vor.u32 %v8962_v37, %v16313_v31  ;;  %v12682_v4 = vld [vmem:[%s13869_s2 + $0x24] sm:$0xff]   ;;  %v18035_v31 = vrot.slane %v16262_v7, 3  ;;  %v12749_v7 = vld [vmem:[%s18014_s17 + $0x38] sm:$0xff]   ;;  %s18059_s17 = smov 20  }
 0x3a5   : > { %v7364_v21 = vpop.permute.xlu1 %7363  ;;  %v5585_v42 = vpop.f32.mrb[16].mxu1  ;;  %11938 = vmatprep.subr.bf16.mxu1 %v17976_v0  ;;  %v10185_v49 = vsel %vm1391_vm4, %v10176_v17, %v16588_v8  ;;  %v3183_v29 = vrot.slane %v3182_v25, 2  ;;  %vm18042_vm2 = vcmask 392544  }
 0x3a6   : > { %7375 = vst.msk [vmem:[#allocation2 + $0x18] sm:$0xff] %vm18033_vm6, %v7364_v21  ;;  %v8884_v9 = vpop.permute.xlu0 %8883  ;;  %v5600_v24 = vmul.f32 %v15325_v30, %v5585_v42  ;;  %v11888_v39 = vpop.f32.mrb[17].mxu1  ;;  %v7883_v53 = vld [vmem:[#allocation2 + $0x10] sm:$0xff]  ;;  %v9553_v37 = vsel %vm1505_vm5, %v18035_v31, %v9552_v28  ;;  %vm18045_vm6 = vcmask 425344  }
 0x3a7   : > { %8898 = vst.msk [vmem:[#allocation2] sm:$0xff] %vm18034_vm3, %v8884_v9  ;;  %11915 = vmatmul.mubr.bf16.gmra.mrb[28].mxu0 %v7883_v53  ;;  %8887 = vrot.lane.b32.xlu1 %v12670_v59, %s17692_s21  ;;  %v5588_v23 = vpop.f32.mrb[18].mxu1  ;;  %v12677_v59 = vld [vmem:[%s15736_s11 + $0x8] sm:$0xf8]   ;;  %v16622_v21 = vld [vmem:[%s15736_s11 + $0x10] sm:$0xff]   ;;  %v16643_v39 = vld [vmem:[%s14516_s9 + $0x18] sm:$0xff]  }
 0x3a8   : > { %8168 = vst.msk [vmem:[#allocation2 + $0x10] sm:$0xff] %vm841_vm7, %v12698_v61  ;;  %v5609_v54 = vadd.f32 %v5608_v27, %v5600_v24  ;;  %v5626_v3 = vmul.f32 %v5600_v24, %v5585_v42  ;;  %8260 = vrot.lane.b32.xlu0 %v8245_v10, %s17755_s13  ;;  %v5601_v33 = vmul.f32 %v15336_v15, %v5588_v23  ;;  %v11889_v38 = vpop.f32.mrb[19].mxu1  ;;  %v17649_v27 = vrot.slane %v16599_v43, 1 }
 0x3a9   : > { %v11695_v46 = vpack.c.bf16 %v5588_v23, %v5585_v42  ;;  %v8987_v17 = vpop.permute.xlu1 %8986  ;;  %11918 = vmatprep.mubr.msk.bf16.mxu0 %vm17833_vm9, %v17976_v0  ;;  %11939 = vmatpush3.bf16.msra.mxu1 %v12746_v55  ;;  %v3209_v24 = vrot.slane %v3208_v34, 2  ;;  %v8489_v53 = vshrl.u32 %v12682_v4, 16  ;;  %v8492_v55 = vshll.u32 %v12682_v4, 16 }
 0x3aa   : > { %v5635_v61 = vadd.f32 %v5634_v36, %v5626_v3  ;;  %v5610_v42 = vadd.f32 %v5609_v54, %v5601_v33  ;;  %v5627_v10 = vmul.f32 %v5601_v33, %v5588_v23  ;;  %9001 = vst.msk [vmem:[#allocation2] sm:$0xff] %vm18036_vm14, %v8987_v17  ;;  %v8327_v9 = vpop.permute.xlu0 %8326  ;;  %11940 = vmatprep.subr.bf16.mxu1 %v17976_v0  ;;  %v10281_v3 = vrot.slane %v12677_v59, 3  ;;  %v16653_v17 = vld [vmem:[%s13869_s2 + $0x24] sm:$0xff]  }
 0x3ab   : > { %11755 = vst [vmem:[%s18004_s6 + $0x48] sm:$0xff] %v11695_v46   ;;  %8340 = vst.msk [vmem:[#allocation2 + $0x8] sm:$0xff] %vm18037_vm11, %v8327_v9  ;;  %10222 = vrot.lane.b32.xlu1 %v10185_v49, %s17874_s20  ;;  %v8969_v36 = vsel %vm886_vm1, %v8964_v1, %v16614_v5  ;;  %v17650_v33 = vrot.slane %v16622_v21, 3  ;;  %v18038_v38 = vrot.slane %v16279_v16, 1  ;;  %v16656_v1 = vld [vmem:[%s15736_s11 + $0x10] sm:$0xff]   ;;  %v3184_v4 = vadd.f32 %v3183_v29, %v3182_v25  ;;  %v12679_v29 = vld [vmem:[%s15736_s11 + $0x8] sm:$0xff]  }
 0x3ac   : > { %v5611_v23 = vrot.slane %v5610_v42, 4  ;;  %v5636_v54 = vadd.f32 %v5635_v61, %v5627_v10  ;;  %9562 = vrot.lane.b32.xlu0 %v9553_v37, %s17700_s19  ;;  %v3210_v61 = vadd.f32 %v3209_v24, %v3208_v34  ;;  %v17651_v16 = vrot.slane %v16643_v39, 1 }
 0x3ad   : > { %v8397_v46 = vpop.permute.xlu1 %8396  ;;  %v8321_v49 = vsel %vm991_vm0, %v18038_v38, %v17649_v27  ;;  %11941 = vmatpush3.bf16.msra.mxu1 %v12749_v7  ;;  %v8491_v10 = vrot.slane %v8489_v53, 1  ;;  %v8494_v9 = vrot.slane %v8492_v55, 2  ;;  %v10283_v25 = vsel %vm1505_vm5, %v10281_v3, %v17650_v33 }
 0x3ae   : > { %v5612_v31 = vadd.f32 %v5611_v23, %v5610_v42  ;;  %v5637_v37 = vrot.slane %v5636_v54, 4  ;;  %8410 = vst.msk [vmem:[#allocation2 + $0x8] sm:$0xff] %vm18039_vm12, %v8397_v46  ;;  %v7434_v59 = vpop.permute.xlu0 %7433  ;;  %v12686_v42 = vld [vmem:[%s14516_s9 + $0x1c] sm:$0xff]   ;;  %v8390_v7 = vrot.slane %v16653_v17, 1  ;;  %v9690_v24 = vshll.u32 %v16656_v1, 16 }
 0x3af   : > { %7445 = vst.msk [vmem:[#allocation2 + $0x18] sm:$0xff] %vm18040_vm10, %v7434_v59  ;;  %8990 = vrot.lane.b32.xlu1 %v8969_v36, %s17693_s3  ;;  %v3185_v36 = vrot.slane %v3184_v4, 1  ;;  %v18043_v3 = vrot.slane %v16331_v20, 1  ;;  %vm18046_vm3 = vcmask 162944   ;;  %vm18047_vm14 = vsmask.f32 6400 }
 0x3b0   : > { %v5613_v38 = vrot.slane %v5612_v31, 2  ;;  %v5638_v27 = vadd.f32 %v5637_v37, %v5636_v54  ;;  %8330 = vrot.lane.b32.xlu0 %v8321_v49, %s17684_s16  ;;  %v3211_v54 = vrot.slane %v3210_v61, 1  ;;  %v16678_v49 = vor.u32 %v8494_v9, %v8491_v10  ;;  %v16681_v37 = vld [vmem:[%s15736_s11 + $0x10] sm:$0xff]   ;;  %v16692_v10 = vld [vmem:[%s14516_s9 + $0x1c] sm:$0xff]  }
 0x3b1   : > { %v7546_v34 = vpop.permute.xlu1 %7545  ;;  %v9051_v46 = vsel %vm991_vm0, %v18043_v3, %v17651_v16  ;;  %v16689_v20 = vrot.slane %v9690_v24, 1  ;;  %v3186_v9 = vadd.f32 %v3185_v36, %v3184_v4  ;;  %vm18048_vm11 = vcmask 786144  }
 0x3b2   : > { %v5614_v23 = vadd.f32 %v5613_v38, %v5612_v31  ;;  %v5639_v53 = vrot.slane %v5638_v27, 2  ;;  %7557 = vst.msk [vmem:[#allocation2 + $0x18] sm:$0xff] %vm18041_vm8, %v7546_v34  ;;  %v9057_v55 = vpop.permute.xlu0 %9056  ;;  %v9212_v38 = vshrl.u32 %v12686_v42, 16  ;;  %v9215_v34 = vshll.u32 %v12686_v42, 16 }
 0x3b3   : > { %9071 = vst.msk [vmem:[#allocation2] sm:$0xff] %vm18042_vm2, %v9057_v55  ;;  %10292 = vrot.lane.b32.xlu1 %v10283_v25, %s17748_s30  ;;  %v18044_v25 = vrot.slane %v16305_v32, 1  ;;  %v8496_v32 = vsel %vm18047_vm14, %v16352_v60, %v16678_v49  ;;  %v9780_v42 = vrot.slane %v16681_v37, 1  ;;  %v16710_v60 = vld [vmem:[%s13869_s2 + $0x24] sm:$0xff]   ;;  %vm18049_vm12 = vcmask 523744   ;;  %vm18054_vm2 = vmmov %vm18047_vm14 }
 0x3b4   : > { %v5615_v31 = vrot.slane %v5614_v23, 1  ;;  %v5640_v59 = vadd.f32 %v5639_v53, %v5638_v27  ;;  %9617 = vrot.lane.b32.xlu0 %v12679_v29, %s17703_s27  ;;  %v3212_v29 = vadd.f32 %v3211_v54, %v3210_v61  ;;  %v9214_v4 = vrot.slane %v9212_v38, 1  ;;  %v16726_v38 = vld [vmem:[%s13869_s2 + $0x28] sm:$0xff]  }
 0x3b5   : > { %v9127_v33 = vpop.permute.xlu1 %9126  ;;  %v8391_v55 = vsel %vm991_vm0, %v18044_v25, %v8390_v7  ;;  %v9217_v36 = vrot.slane %v9215_v34, 2  ;;  %v9693_v53 = vsel %vm886_vm1, %v16105_v14, %v16689_v20  ;;  %v9120_v54 = vrot.slane %v16692_v10, 1 }
 0x3b6   : > { %v5616_v3 = vadd.f32 %v5615_v31, %v5614_v23  ;;  %v5641_v16 = vrot.slane %v5640_v59, 1  ;;  %9141 = vst.msk [vmem:[#allocation2] sm:$0xff] %vm18045_vm6, %v9127_v33  ;;  %v8509_v27 = vpop.permute.xlu0 %8508  ;;  %v12690_v33 = vld [vmem:[%s15736_s11 + $0x14] sm:$0xff]   ;;  %v18050_v14 = vrot.slane %v16356_v44, 1  ;;  %v12693_v44 = vld [vmem:[%s13869_s2 + $0x28] sm:$0xff]   ;;  %vm18052_vm10 = vcmask 458144  }
 0x3b7   : > { %8522 = vst.msk [vmem:[#allocation2 + $0x8] sm:$0xff] %vm18046_vm3, %v8509_v27  ;;  %9060 = vrot.lane.b32.xlu1 %v9051_v46, %s17694_s15  ;;  %v9935_v34 = vshrl.u32 %v12690_v33, 16  ;;  %v9938_v25 = vshll.u32 %v12690_v33, 16  ;;  %v8572_v27 = vrot.slane %v16710_v60, 2  ;;  %vm18053_vm8 = vcmask 195744  }
 0x3b8   : > { %v5642_v24 = vadd.f32 %v5641_v16, %v5640_v59  ;;  %8400 = vrot.lane.b32.xlu0 %v8391_v55, %s17685_s26  ;;  %v16703_v23 = vadd.f32 %v5616_v3, %v3186_v9  ;;  %v9781_v31 = vsel %vm991_vm0, %v18050_v14, %v9780_v42  ;;  %v16723_v59 = vor.u32 %v9217_v36, %v9214_v4  ;;  %v16753_v14 = vld [vmem:[%s14516_s9 + $0x1c] sm:$0xff]  }
 0x3b9   : > { %v7616_v61 = vpop.permute.xlu1 %7615  ;;  %v18051_v9 = vrot.slane %v16359_v63, 1  ;;  %v9937_v4 = vrot.slane %v9935_v34, 1  ;;  %v9940_v36 = vrot.slane %v9938_v25, 2  ;;  %vm18056_vm6 = vcmask 1045504  }
 0x3ba   : > { %7627 = vst.msk [vmem:[#allocation2 + $0x18] sm:$0xff] %vm18048_vm11, %v7616_v61  ;;  %v6956_v16 = vpop.permute.xlu0 %6955  ;;  %v16713_v46 = vadd.f32 %v5642_v24, %v3212_v29  ;;  %v16735_v29 = vld [vmem:[%s15736_s11 + $0x14] sm:$0xff]   ;;  %v9219_v63 = vsel %vm18054_vm2, %v16423_v2, %v16723_v59  ;;  %v8642_v24 = vrot.slane %v16726_v38, 2  ;;  %v18055_v61 = vrot.slane %v16378_v6, 2  ;;  %vm18061_vm11 = vmmov %vm18056_vm6  ;;  %v12724_v38 = vld [vmem:[%s14516_s9 + $0x28] sm:$0xff]  }
 0x3bb   : > { %6966 = vst.msk [vmem:[#allocation2 + $0x20] sm:$0xff] %vm18049_vm12, %v6956_v16  ;;  %8512 = vrot.lane.b32.xlu1 %v8496_v32, %s17686_s14  ;;  %v9121_v3 = vsel %vm991_vm0, %v18051_v9, %v9120_v54  ;;  %v9850_v16 = vrot.slane %v16735_v29, 1  ;;  %vm18057_vm3 = vcmask 818944   ;;  %vm18058_vm14 = vcmask 556544   ;;  %v16767_v9 = vld [vmem:[%s14516_s9 + $0x20] sm:$0xff]  }
 0x3bc   : > { %9720 = vrot.lane.b32.xlu0 %v9693_v53, %s17709_s12  ;;  %v8573_v53 = vsel %vm18056_vm6, %v18055_v61, %v8572_v27  ;;  %v18060_v6 = vrot.slane %v16417_v50, 2  ;;  %v16764_v25 = vor.u32 %v9940_v36, %v9937_v4  ;;  %v12697_v50 = vld [vmem:[%s14516_s9 + $0x20] sm:$0xff]   ;;  %vm18063_vm12 = vcmask 490944   ;;  %v16785_v36 = vld [vmem:[%s13869_s2 + $0x28] sm:$0xff]  }
 0x3bd   : > { %v9239_v55 = vpop.permute.xlu1 %9238  ;;  %v17652_v4 = vrot.slane %v16767_v9, 2 }
 0x3be   : > { %9253 = vst.msk [vmem:[#allocation2] sm:$0xff] %vm18052_vm10, %v9239_v55  ;;  %v8579_v32 = vpop.permute.xlu0 %8578  ;;  %v8744_v55 = vshll.u32 %v12693_v44, 16  ;;  %v8643_v34 = vsel %vm18061_vm11, %v18060_v6, %v8642_v24  ;;  %vm18064_vm10 = vcmask 228544   ;;  %vm18073_vm11 = vcmask 261344  }
 0x3bf   : > { %8592 = vst.msk [vmem:[#allocation2 + $0x8] sm:$0xff] %vm18053_vm8, %v8579_v32  ;;  %9790 = vrot.lane.b32.xlu1 %v9781_v31, %s17714_s8  ;;  %v8741_v31 = vshrl.u32 %v12693_v44, 16  ;;  %v18062_v44 = vrot.slane %v16398_v41, 1  ;;  %vm18066_vm8 = vmmov %vm18054_vm2 }
 0x3c0   : > { %9130 = vrot.lane.b32.xlu0 %v9121_v3, %s17939_s10  ;;  %v8746_v61 = vrot.slane %v8744_v55, 3  ;;  %v9942_v41 = vsel %vm18066_vm8, %v16446_v11, %v16764_v25  ;;  %v18067_v55 = vrot.slane %v16440_v58, 2  ;;  %vm18068_vm2 = vmmov %vm18056_vm6  ;;  %v9467_v11 = vshll.u32 %v12697_v50, 16 }
 0x3c1   : > { %v7686_v33 = vpop.permute.xlu1 %7685  ;;  %v9851_v32 = vsel %vm991_vm0, %v18062_v44, %v9850_v16  ;;  %vm18069_vm6 = vcmask 589344   ;;  %v18070_v58 = vrot.slane %v16474_v56, 2  ;;  %vm18078_vm8 = vmmov %vm18068_vm2 }
 0x3c2   : > { %7697 = vst.msk [vmem:[#allocation2 + $0x18] sm:$0xff] %vm18057_vm3, %v7686_v33  ;;  %v7068_v2 = vpop.permute.xlu0 %7067  ;;  %v8743_v33 = vrot.slane %v8741_v31, 2  ;;  %vm18071_vm3 = vmmov %vm18068_vm2 }
 0x3c3   : > { %7078 = vst.msk [vmem:[#allocation2 + $0x20] sm:$0xff] %vm18058_vm14, %v7068_v2  ;;  %9242 = vrot.lane.b32.xlu1 %v9219_v63, %s17952_s25  ;;  %v17653_v63 = vrot.slane %v16753_v14, 2  ;;  %vm18072_vm14 = vcmask 523744  }
 0x3c4   : > { %8582 = vrot.lane.b32.xlu0 %v8573_v53, %s18059_s17  ;;  %v16792_v6 = vor.u32 %v8746_v61, %v8743_v33  ;;  %v8824_v33 = vrot.slane %v16785_v36, 3  ;;  %v16808_v61 = vld [vmem:[%s15736_s11 + $0x18] sm:$0xff]  }
 0x3c5   : > { %v9309_v3 = vpop.permute.xlu1 %9308  ;;  %v9303_v2 = vsel %vm18068_vm2, %v18067_v55, %v17653_v63 }
 0x3c6   : > { %9323 = vst.msk [vmem:[#allocation2] sm:$0xff] %vm18063_vm12, %v9309_v3  ;;  %v8649_v53 = vpop.permute.xlu0 %8648  ;;  %v9464_v3 = vshrl.u32 %v12697_v50, 16  ;;  %v12701_v50 = vld [vmem:[%s15736_s11 + $0x18] sm:$0xff]   ;;  %vm18076_vm12 = vmmov %vm18068_vm2  ;;  %vm18079_vm2 = vcmask 556544  }
 0x3c7   : > { %8662 = vst.msk [vmem:[#allocation2 + $0x8] sm:$0xff] %vm18064_vm10, %v8649_v53  ;;  %8652 = vrot.lane.b32.xlu1 %v8643_v34, %s17688_s0  ;;  %v16795_v34 = vld [vmem:[%s15736_s11 + $0x14] sm:$0xff]   ;;  %vm18077_vm10 = vcmask 622144  }
 0x3c8   : > { %9860 = vrot.lane.b32.xlu0 %v9851_v32, %s18065_s7  ;;  %v9373_v32 = vsel %vm18071_vm3, %v18070_v58, %v17652_v4  ;;  %v9466_v55 = vrot.slane %v9464_v3, 2  ;;  %v18074_v58 = vrot.slane %v16495_v26, 3  ;;  %v10102_v4 = vrot.slane %v16808_v61, 2  ;;  %v12726_v61 = vld [vmem:[%s14516_s9 + $0x20] sm:$0xff]  }
 0x3c9   : > { %v7798_v31 = vpop.permute.xlu1 %7797  ;;  %v10187_v3 = vshrl.u32 %v12701_v50, 16  ;;  %vm18081_vm3 = vcmask 64544  }
 0x3ca   : > { %7809 = vst.msk [vmem:[#allocation2 + $0x18] sm:$0xff] %vm2943_vm13, %v7798_v31  ;;  %v7138_v44 = vpop.permute.xlu0 %7137  ;;  %v8748_v31 = vsel %vm1391_vm4, %v16467_v48, %v16792_v6  ;;  %v8825_v48 = vsel %vm1505_vm5, %v18074_v58, %v8824_v33 }
 0x3cb   : > { %7148 = vst.msk [vmem:[#allocation2 + $0x20] sm:$0xff] %vm18069_vm6, %v7138_v44  ;;  %9972 = vrot.lane.b32.xlu1 %v9942_v41, %s17862_s28  ;;  %v10032_v41 = vrot.slane %v16795_v34, 2  ;;  %v12700_v44 = vld [vmem:[%s13869_s2 + $0x28] ss:$0 sps:$4 sm:$0x11]   ;;  %vm18080_vm6 = vcmask 294144  }
 0x3cc   : > { %9312 = vrot.lane.b32.xlu0 %v9303_v2, %s17964_s18  ;;  %v9469_v2 = vrot.slane %v9467_v11, 3  ;;  %v10190_v11 = vshll.u32 %v12701_v50, 16  ;;  %v8250_v26 = vshll.u32 %v12700_v44, 16  ;;  %v10189_v50 = vrot.slane %v10187_v3, 2 }
 0x3cd   : > { %v9379_v53 = vpop.permute.xlu1 %9378 }
 0x3ce   : > { %9393 = vst.msk [vmem:[#allocation2] sm:$0xff] %vm18072_vm14, %v9379_v53  ;;  %v8761_v56 = vpop.permute.xlu0 %8760  ;;  %v18075_v53 = vrot.slane %v16471_v18, 2  ;;  %v10103_v18 = vsel %vm18078_vm8, %v10100_v62, %v10102_v4  ;;  %v12699_v62 = vld [vmem:[%s14516_s9 + $0x18] sm:$0xff]   ;;  %vm18082_vm14 = vcmask 654944   ;;  %vm18087_vm8 = vcmask 687744  }
 0x3cf   : > { %8774 = vst.msk [vmem:[#allocation2 + $0x8] sm:$0xff] %vm18073_vm11, %v8761_v56  ;;  %9382 = vrot.lane.b32.xlu1 %v9373_v32, %s17698_s23  ;;  %v16831_v56 = vor.u32 %v9469_v2, %v9466_v55  ;;  %v16844_v55 = vld [vmem:[%s14516_s9 + $0x20] sm:$0xff]   ;;  %vm18083_vm11 = vcmask 589344  }
 0x3d0   : > { %8764 = vrot.lane.b32.xlu0 %v8748_v31, %s17690_s1  ;;  %v10033_v32 = vsel %vm18076_vm12, %v18075_v53, %v10032_v41  ;;  %v8246_v31 = vshrl.u32 %v16530_v52, 16  ;;  %v10192_v52 = vrot.slane %v10190_v11, 3  ;;  %v16851_v53 = vld [vmem:[%s14516_s9 + $0x20] sm:$0xff]   ;;  %vm18084_vm12 = vcmask 326944  }
 0x3d1   : > { %v7868_v63 = vpop.permute.xlu1 %7867  ;;  %v9471_v2 = vsel %vm1391_vm4, %v16550_v13, %v16831_v56  ;;  %v8970_v13 = vshrl.u32 %v16565_v57, 16 }
 0x3d2   : > { %7879 = vst.msk [vmem:[#allocation2 + $0x18] sm:$0xff] %vm3014_vm15, %v7868_v63  ;;  %v7193_v58 = vpop.permute.xlu0 %7192  ;;  %v8248_v44 = vor.u32 %v8246_v31, %v16573_v51  ;;  %v16859_v3 = vor.u32 %v10192_v52, %v10189_v50  ;;  %v8974_v51 = vshll.u32 %v16844_v55, 16 }
 0x3d3   : > { %7203 = vst.msk [vmem:[#allocation2 + $0x20] sm:$0xff] %vm18077_vm10, %v7193_v58  ;;  %8834 = vrot.lane.b32.xlu1 %v8825_v48, %s17691_s22  ;;  %v8252_v48 = vrot.slane %v8250_v26, 1  ;;  %v9554_v58 = vrot.slane %v16851_v53, 3  ;;  %v8972_v50 = vor.u32 %v8970_v13, %v16614_v5  ;;  %vm18086_vm10 = vcmask 97344  }
 0x3d4   : > { %10042 = vrot.lane.b32.xlu0 %v10033_v32, %s17868_s4  ;;  %v12734_v32 = vld [vmem:[%s13869_s2 + $0x18] sm:$0xff]   ;;  %v10194_v57 = vsel %vm1391_vm4, %v16588_v8, %v16859_v3  ;;  %v16877_v52 = vrot.slane %v8974_v51, 1 }
 0x3d5   : > { %v9491_v63 = vpop.permute.xlu1 %9490  ;;  %v8253_v26 = vsel %vm886_vm1, %v8248_v44, %v8252_v48  ;;  %v12709_v44 = vld [vmem:[%s13869_s2 + $0x2c] ss:$0 sps:$4 sm:$0x33]  }
 0x3d6   : > { %9505 = vst.msk [vmem:[#allocation2] sm:$0xff] %vm18079_vm2, %v9491_v63  ;;  %v8831_v35 = vpop.permute.xlu0 %8830  ;;  %v12704_v63 = vld [vmem:[%s13869_s2 + $0x28] ss:$0 sps:$4 sm:$0x11]   ;;  %v8977_v5 = vsel %vm886_vm1, %v8972_v50, %v16877_v52  ;;  %v8498_v13 = vshrl.u32 %v12709_v44, 16  ;;  %v12706_v50 = vld [vmem:[%s15736_s11 + $0x10] sm:$0xff]  }
 0x3d7   : > { %8844 = vst.msk [vmem:[#allocation2 + $0x8] sm:$0xff] %vm18080_vm6, %v8831_v35  ;;  %10112 = vrot.lane.b32.xlu1 %v10103_v18, %s17735_s5  ;;  %v9555_v35 = vsel %vm1505_vm5, %v9552_v28, %v9554_v58  ;;  %v8501_v28 = vshll.u32 %v12709_v44, 16  ;;  %v9052_v44 = vrot.slane %v16896_v19, 1  ;;  %vm18089_vm2 = vcmask 622144  }
 0x3d8   : > { %9494 = vrot.lane.b32.xlu0 %v9471_v2, %s17699_s29  ;;  %v16880_v2 = vld [vmem:[%s15736_s11 + $0x18] sm:$0xff]   ;;  %vm18090_vm6 = vcmask 359744  }
 0x3d9   : > { %v8259_v11 = vpop.permute.xlu1 %8258  ;;  %v7884_v31 = vld [vmem:[#allocation2 + $0x18] sm:$0xff] }
 0x3da   : > { %8271 = vst.msk [vmem:[#allocation2 + $0x10] sm:$0xff] %vm18081_vm3, %v8259_v11  ;;  %v7296_v18 = vpop.permute.xlu0 %7295  ;;  %11919 = vmatmul.mubr.bf16.gmra.mrb[32].mxu0 %v7884_v31  ;;  %v18085_v11 = vrot.slane %v16599_v43, 1  ;;  %vm18092_vm3 = vcmask 130144  }
 0x3db   : > { %8169 = vst.msk [vmem:[#allocation2 + $0x18] sm:$0xff] %vm841_vm7, %v12734_v32  ;;  %8889 = vrot.lane.b32.xlu1 %v12699_v62, %s17692_s21  ;;  %11922 = vmatprep.mubr.msk.bf16.mxu0 %vm17833_vm9, %v17976_v0  ;;  %v8322_v32 = vrot.slane %v12704_v63, 1  ;;  %v10284_v62 = vrot.slane %v16880_v2, 3  ;;  %v16903_v63 = vld [vmem:[%s15736_s11 + $0x18] sm:$0xff]  }
 0x3dc   : > { %7306 = vst.msk [vmem:[#allocation2 + $0x20] sm:$0xff] %vm18082_vm14, %v7296_v18  ;;  %8262 = vrot.lane.b32.xlu0 %v8253_v26, %s17755_s13  ;;  %v12708_v26 = vld [vmem:[%s13869_s2 + $0x2c] ss:$0 sps:$4 sm:$0x11]   ;;  %vm18093_vm14 = vcmask 720544  }
 0x3dd   : > { %v9561_v48 = vpop.permute.xlu1 %9560  ;;  %v8323_v31 = vsel %vm991_vm0, %v18085_v11, %v8322_v32  ;;  %v12713_v32 = vld [vmem:[%s14516_s9 + $0x24] sm:$0xff]   ;;  %v9694_v11 = vshrl.u32 %v16656_v1, 16  ;;  %v16929_v1 = vld [vmem:[%s15736_s11 + $0x18] sm:$0xff]  }
 0x3de   : > { %9575 = vst.msk [vmem:[#allocation2] sm:$0xff] %vm18083_vm11, %v9561_v48  ;;  %v8886_v8 = vpop.permute.xlu0 %8885  ;;  %v8500_v48 = vrot.slane %v8498_v13, 1  ;;  %vm18094_vm11 = vsmask.f32 6400 }
 0x3df   : > { %8899 = vst.msk [vmem:[#allocation2 + $0x8] sm:$0xff] %vm18084_vm12, %v8886_v8  ;;  %10224 = vrot.lane.b32.xlu1 %v10194_v57, %s17874_s20  ;;  %v18088_v57 = vrot.slane %v16622_v21, 3  ;;  %v18091_v21 = vrot.slane %v16643_v39, 1  ;;  %vm18095_vm12 = vcmask 654944  }
 0x3e0   : > { %9564 = vrot.lane.b32.xlu0 %v9555_v35, %s17700_s19  ;;  %v8503_v35 = vrot.slane %v8501_v28, 2 }
 0x3e1   : > { %v8329_v51 = vpop.permute.xlu1 %8328  ;;  %v10285_v43 = vsel %vm1505_vm5, %v18088_v57, %v10284_v62  ;;  %v9053_v13 = vsel %vm991_vm0, %v18091_v21, %v9052_v44 }
 0x3e2   : > { %8341 = vst.msk [vmem:[#allocation2 + $0x10] sm:$0xff] %vm18086_vm10, %v8329_v51  ;;  %v7366_v18 = vpop.permute.xlu0 %7365  ;;  %v8392_v51 = vrot.slane %v12708_v26, 1  ;;  %v8504_v28 = vor.u32 %v8503_v35, %v8500_v48  ;;  %v9221_v26 = vshrl.u32 %v12713_v32, 16  ;;  %v12717_v35 = vld [vmem:[%s15736_s11 + $0x1c] sm:$0xff]   ;;  %vm18096_vm10 = vcmask 392544  }
 0x3e3   : > { %7376 = vst.msk [vmem:[#allocation2 + $0x20] sm:$0xff] %vm18087_vm8, %v7366_v18  ;;  %8992 = vrot.lane.b32.xlu1 %v8977_v5, %s17693_s3  ;;  %v9698_v5 = vshll.u32 %v16903_v63, 16  ;;  %v9224_v18 = vshll.u32 %v12713_v32, 16  ;;  %vm18097_vm8 = vcmask 162944  }
 0x3e4   : > { %8332 = vrot.lane.b32.xlu0 %v8323_v31, %s17684_s16  ;;  %v8505_v17 = vsel %vm18094_vm11, %v16678_v49, %v8504_v28  ;;  %v12715_v28 = vld [vmem:[%s13869_s2 + $0x30] ss:$0 sps:$4 sm:$0x33]  }
 0x3e5   : > { %v9616_v8 = vpop.permute.xlu1 %9615  ;;  %v9226_v48 = vrot.slane %v9224_v18, 2  ;;  %v9947_v18 = vshll.u32 %v12717_v35, 16 }
 0x3e6   : > { %9630 = vst.msk [vmem:[#allocation2] sm:$0xff] %vm18089_vm2, %v9616_v8  ;;  %v8989_v31 = vpop.permute.xlu0 %8988  ;;  %v8393_v8 = vsel %vm991_vm0, %v8390_v7, %v8392_v51  ;;  %v9782_v7 = vrot.slane %v16929_v1, 1  ;;  %vm18098_vm2 = vcmask 753344  }
 0x3e7   : > { %9002 = vst.msk [vmem:[#allocation2 + $0x8] sm:$0xff] %vm18090_vm6, %v8989_v31  ;;  %10294 = vrot.lane.b32.xlu1 %v10285_v43, %s17748_s30  ;;  %v9696_v43 = vor.u32 %v9694_v11, %v16689_v20  ;;  %v16938_v31 = vld [vmem:[%s14516_s9 + $0x24] sm:$0xff]   ;;  %v9223_v20 = vrot.slane %v9221_v26, 1  ;;  %v9944_v26 = vshrl.u32 %v12717_v35, 16  ;;  %vm18099_vm6 = vmmov %vm18094_vm11  ;;  %vm18102_vm11 = vcmask 425344  }
 0x3e8   : > { %9619 = vrot.lane.b32.xlu0 %v12706_v50, %s17703_s27  ;;  %v16935_v50 = vrot.slane %v9698_v5, 1  ;;  %v9122_v11 = vrot.slane %v16938_v31, 1  ;;  %v12714_v5 = vld [vmem:[%s13869_s2 + $0x2c] ss:$0 sps:$4 sm:$0x33]   ;;  %v9783_v49 = vsel %vm991_vm0, %v9780_v42, %v9782_v7  ;;  %v8644_v42 = vrot.slane %v12715_v28, 2 }
 0x3e9   : > { %v8399_v57 = vpop.permute.xlu1 %8398 }
 0x3ea   : > { %8411 = vst.msk [vmem:[#allocation2 + $0x10] sm:$0xff] %vm18092_vm3, %v8399_v57  ;;  %v7436_v39 = vpop.permute.xlu0 %7435  ;;  %v9701_v51 = vsel %vm886_vm1, %v9696_v43, %v16935_v50  ;;  %v8574_v43 = vrot.slane %v12714_v5, 2  ;;  %vm18100_vm3 = vcmask 1045504  }
 0x3eb   : > { %7446 = vst.msk [vmem:[#allocation2 + $0x20] sm:$0xff] %vm18093_vm14, %v7436_v39  ;;  %9062 = vrot.lane.b32.xlu1 %v9053_v13, %s17694_s15  ;;  %v16961_v13 = vor.u32 %v9226_v48, %v9223_v20  ;;  %v16970_v39 = vld [vmem:[%s15736_s11 + $0x1c] sm:$0xff]   ;;  %v9949_v20 = vrot.slane %v9947_v18, 2  ;;  %vm18101_vm14 = vcmask 687744  }
 0x3ec   : > { %8402 = vrot.lane.b32.xlu0 %v8393_v8, %s17685_s26  ;;  %v9123_v8 = vsel %vm991_vm0, %v9120_v54, %v9122_v11  ;;  %v9946_v54 = vrot.slane %v9944_v26, 1  ;;  %v8575_v35 = vsel %vm18100_vm3, %v8572_v27, %v8574_v43  ;;  %v16997_v27 = vld [vmem:[%s14516_s9 + $0x28] sm:$0xff]   ;;  %v12721_v43 = vld [vmem:[%s13869_s2 + $0x30] ss:$0 sps:$4 sm:$0x77]  }
 0x3ed   : > { %v9719_v32 = vpop.permute.xlu1 %9718  ;;  %v9228_v10 = vsel %vm18099_vm6, %v16723_v59, %v16961_v13 }
 0x3ee   : > { %9733 = vst.msk [vmem:[#allocation2] sm:$0xff] %vm18095_vm12, %v9719_v32  ;;  %v9059_v21 = vpop.permute.xlu0 %9058  ;;  %v9852_v32 = vrot.slane %v16970_v39, 1  ;;  %vm18103_vm12 = vmmov %vm18100_vm3  ;;  %v16994_v59 = vor.u32 %v9949_v20, %v9946_v54  ;;  %v17021_v54 = vld [vmem:[%s15736_s11 + $0x1c] sm:$0xff]   ;;  %v9473_v20 = vshrl.u32 %v12724_v38, 16 }
 0x3ef   : > { %9072 = vst.msk [vmem:[#allocation2 + $0x8] sm:$0xff] %vm18096_vm10, %v9059_v21  ;;  %8514 = vrot.lane.b32.xlu1 %v8505_v17, %s17686_s14  ;;  %v12720_v17 = vld [vmem:[%s13869_s2 + $0x30] ss:$0 sps:$4 sm:$0x77]   ;;  %v8645_v60 = vsel %vm18103_vm12, %v8642_v24, %v8644_v42  ;;  %vm18104_vm10 = vcmask 195744   ;;  %vm18113_vm12 = vcmask 228544  }
 0x3f0   : > { %9722 = vrot.lane.b32.xlu0 %v9701_v51, %s17709_s12  ;;  %v16985_v51 = vld [vmem:[%s14516_s9 + $0x24] sm:$0xff]   ;;  %v8750_v5 = vshrl.u32 %v12720_v17, 16  ;;  %v8753_v21 = vshll.u32 %v12720_v17, 16  ;;  %v9853_v26 = vsel %vm991_vm0, %v9850_v16, %v9852_v32  ;;  %v9374_v16 = vrot.slane %v16997_v27, 2 }
 0x3f1   : > { %v8511_v57 = vpop.permute.xlu1 %8510  ;;  %v9304_v18 = vrot.slane %v16985_v51, 2 }
 0x3f2   : > { %8523 = vst.msk [vmem:[#allocation2 + $0x10] sm:$0xff] %vm18097_vm8, %v8511_v57  ;;  %v7548_v37 = vpop.permute.xlu0 %7547  ;;  %v8752_v57 = vrot.slane %v8750_v5, 2  ;;  %vm18105_vm8 = vcmask 786144   ;;  %v8826_v5 = vrot.slane %v12721_v43, 3 }
 0x3f3   : > { %7558 = vst.msk [vmem:[#allocation2 + $0x20] sm:$0xff] %vm18098_vm2, %v7548_v37  ;;  %9792 = vrot.lane.b32.xlu1 %v9783_v49, %s17714_s8  ;;  %vm18106_vm2 = vmmov %vm18099_vm6  ;;  %v18107_v37 = vrot.slane %v16753_v14, 2  ;;  %v18111_v14 = vrot.slane %v16767_v9, 2 }
 0x3f4   : > { %9132 = vrot.lane.b32.xlu0 %v9123_v8, %s17939_s10  ;;  %v8755_v8 = vrot.slane %v8753_v21, 3  ;;  %v9951_v29 = vsel %vm18106_vm2, %v16764_v25, %v16994_v59  ;;  %vm18108_vm6 = vmmov %vm18100_vm3  ;;  %vm18109_vm3 = vcmask 720544   ;;  %v17033_v21 = vld [vmem:[%s15736_s11 + $0x20] sm:$0xff]   ;;  %v8827_v9 = vsel %vm1505_vm5, %v8824_v33, %v8826_v5 }
 0x3f5   : > { %v9789_v48 = vpop.permute.xlu1 %9788  ;;  %vm18116_vm2 = vcmask 753344  }
 0x3f6   : > { %9803 = vst.msk [vmem:[#allocation2] sm:$0xff] %vm18101_vm14, %v9789_v48  ;;  %v9129_v49 = vpop.permute.xlu0 %9128  ;;  %v8756_v42 = vor.u32 %v8755_v8, %v8752_v57  ;;  %v9476_v48 = vshll.u32 %v12724_v38, 16  ;;  %vm18110_vm14 = vcmask 458144   ;;  %v12729_v8 = vld [vmem:[%s15736_s11 + $0x20] sm:$0xff]  }
 0x3f7   : > { %9142 = vst.msk [vmem:[#allocation2 + $0x8] sm:$0xff] %vm18102_vm11, %v9129_v49  ;;  %9244 = vrot.lane.b32.xlu1 %v9228_v10, %s17952_s25  ;;  %v9305_v10 = vsel %vm18108_vm6, %v18107_v37, %v9304_v18  ;;  %vm18112_vm11 = vmmov %vm18108_vm6 }
 0x3f8   : > { %8584 = vrot.lane.b32.xlu0 %v8575_v35, %s18059_s17  ;;  %v9375_v35 = vsel %vm18112_vm11, %v18111_v14, %v9374_v16  ;;  %v9478_v57 = vrot.slane %v9476_v48, 3  ;;  %vm18120_vm11 = vcmask 786144  }
 0x3f9   : > { %v8581_v28 = vpop.permute.xlu1 %8580 }
 0x3fa   : > { %8593 = vst.msk [vmem:[#allocation2 + $0x10] sm:$0xff] %vm18104_vm10, %v8581_v28  ;;  %v7618_v24 = vpop.permute.xlu0 %7617  ;;  %v10034_v28 = vrot.slane %v17021_v54, 2  ;;  %vm18114_vm10 = vcmask 818944  }
 0x3fb   : > { %7628 = vst.msk [vmem:[#allocation2 + $0x20] sm:$0xff] %vm18105_vm8, %v7618_v24  ;;  %8654 = vrot.lane.b32.xlu1 %v8645_v60, %s17688_s0  ;;  %v8757_v60 = vsel %vm1391_vm4, %v16792_v6, %v8756_v42  ;;  %v10104_v6 = vrot.slane %v17033_v21, 2  ;;  %v17048_v24 = vld [vmem:[%s14516_s9 + $0x28] sm:$0xff]   ;;  %vm18115_vm8 = vmmov %vm18108_vm6  ;;  %v10199_v42 = vshll.u32 %v12729_v8, 16  ;;  %vm18117_vm6 = vcmask 490944   ;;  %s12922_s0 = smov [#allocation3]  }
 0x3fc   : > { %9862 = vrot.lane.b32.xlu0 %v9853_v26, %s18065_s7  ;;  %v9475_v26 = vrot.slane %v9473_v20, 2  ;;  %v9556_v33 = vrot.slane %v17048_v24, 3 }
 0x3fd   : > { %v9859_v17 = vpop.permute.xlu1 %9858 }
 0x3fe   : > { %9873 = vst.msk [vmem:[#allocation2] sm:$0xff] %vm18109_vm3, %v9859_v17  ;;  %v9241_v25 = vpop.permute.xlu0 %9240  ;;  %v10035_v17 = vsel %vm18115_vm8, %v10032_v41, %v10034_v28  ;;  %v17056_v37 = vor.u32 %v9478_v57, %v9475_v26  ;;  %vm18118_vm3 = vmmov %vm18115_vm8  ;;  %v8978_v41 = vshrl.u32 %v16844_v55, 16  ;;  %vm18123_vm8 = vcmask 818944  }
 0x3ff   : > { %9254 = vst.msk [vmem:[#allocation2 + $0x8] sm:$0xff] %vm18110_vm14, %v9241_v25  ;;  %9974 = vrot.lane.b32.xlu1 %v9951_v29, %s17862_s28  ;;  %v12728_v29 = vld [vmem:[%s14516_s9 + $0x28] ss:$0 sps:$4 sm:$0x11]   ;;  %v10105_v34 = vsel %vm18118_vm3, %v10102_v4, %v10104_v6  ;;  %vm18119_vm14 = vcmask 261344   ;;  %v9557_v4 = vsel %vm1505_vm5, %v9554_v58, %v9556_v33  ;;  %vm18126_vm3 = vcmask 64544  }
 0x400   : > { %9314 = vrot.lane.b32.xlu0 %v9305_v10, %s17964_s18  ;;  %v10196_v10 = vshrl.u32 %v12729_v8, 16  ;;  %v8982_v20 = vshll.u32 %v12728_v29, 16  ;;  %v9480_v25 = vsel %vm1391_vm4, %v16831_v56, %v17056_v37  ;;  %v8980_v56 = vor.u32 %v8978_v41, %v16877_v52  ;;  %v12744_v41 = vld [vmem:[%s15736_s11 + $0x24] sm:$0xff]  }
 0x401   : > { %v8651_v49 = vpop.permute.xlu1 %8650  ;;  %v9702_v52 = vshrl.u32 %v16903_v63, 16 }
 0x402   : > { %8663 = vst.msk [vmem:[#allocation2 + $0x10] sm:$0xff] %vm18113_vm12, %v8651_v49  ;;  %v7688_v38 = vpop.permute.xlu0 %7687  ;;  %v10198_v14 = vrot.slane %v10196_v10, 2  ;;  %v8984_v55 = vrot.slane %v8982_v20, 1  ;;  %v17084_v49 = vld [vmem:[%s15736_s11 + $0x20] sm:$0xff]   ;;  %vm18121_vm12 = vcmask 523744  }
 0x403   : > { %7698 = vst.msk [vmem:[#allocation2 + $0x20] sm:$0xff] %vm18114_vm10, %v7688_v38  ;;  %9384 = vrot.lane.b32.xlu1 %v9375_v35, %s17698_s23  ;;  %v10201_v35 = vrot.slane %v10199_v42, 3  ;;  %v10286_v58 = vrot.slane %v17084_v49, 3  ;;  %vm18122_vm10 = vcmask 294144   ;;  %v9704_v42 = vor.u32 %v9702_v52, %v16935_v50 }
 0x404   : > { %8766 = vrot.lane.b32.xlu0 %v8757_v60, %s17690_s1  ;;  %v17087_v60 = vld [vmem:[%s15736_s11 + $0x20] sm:$0xff]   ;;  %v8985_v53 = vsel %vm886_vm1, %v8980_v56, %v8984_v55  ;;  %v9956_v56 = vshll.u32 %v12744_v41, 16  ;;  %s12769_s1 = sshll.u32 %s12922_s0, 4  ;;  %s12770_s1 = int_to_ptr.vmem [resolvable:$false] %s12769_s1 }
 0x405   : > { %v9971_v43 = vpop.permute.xlu1 %9970  ;;  %v17089_v57 = vor.u32 %v10201_v35, %v10198_v14  ;;  %v9706_v38 = vshll.u32 %v17087_v60, 16  ;;  %v10287_v63 = vsel %vm1505_vm5, %v10284_v62, %v10286_v58  ;;  %v12764_v62 = vld [vmem:[%s13869_s2 + $0x20] sm:$0xff]   ;;  %s18208_s2 = sld [smem:[#allocation12_spill]] }
 0x406   : > { %9985 = vst.msk [vmem:[#allocation2] sm:$0xff] %vm18116_vm2, %v9971_v43  ;;  %v9311_v36 = vpop.permute.xlu0 %9310  ;;  %v12736_v43 = vld [vmem:[%s14516_s9 + $0x28] ss:$0 sps:$4 sm:$0x11]   ;;  %vm18124_vm2 = vcmask 556544  }
 0x407   : > { %9324 = vst.msk [vmem:[#allocation2 + $0x8] sm:$0xff] %vm18117_vm6, %v9311_v36  ;;  %8836 = vrot.lane.b32.xlu1 %v8827_v9, %s17691_s22  ;;  %v10203_v29 = vsel %vm1391_vm4, %v16859_v3, %v17089_v57  ;;  %v12732_v3 = vld [vmem:[%s15736_s11 + $0x18] sm:$0xff]   ;;  %v17115_v36 = vrot.slane %v9706_v38, 1  ;;  %vm18125_vm6 = vcmask 326944   ;;  %s12771_s22 = scalar_lea.vmem %s12770_s1, 5120 }
 0x408   : > { %10044 = vrot.lane.b32.xlu0 %v10035_v17, %s17868_s4  ;;  %v12742_v17 = vld [vmem:[%s14516_s9 + $0x2c] ss:$0 sps:$4 sm:$0x33]  }
 0x409   : > { %v8763_v48 = vpop.permute.xlu1 %8762  ;;  %v9230_v14 = vshrl.u32 %v12742_v17, 16  ;;  %v9233_v35 = vshll.u32 %v12742_v17, 16  ;;  %v9709_v50 = vsel %vm886_vm1, %v9704_v42, %v17115_v36  ;;  %v12751_v42 = vld [vmem:[%s14516_s9 + $0x30] ss:$0 sps:$4 sm:$0x77]  }
 0x40a   : > { %8775 = vst.msk [vmem:[#allocation2 + $0x10] sm:$0xff] %vm18119_vm14, %v8763_v48  ;;  %v7800_v5 = vpop.permute.xlu0 %7799  ;;  %v9054_v48 = vrot.slane %v12736_v43, 1  ;;  %v9958_v43 = vrot.slane %v9956_v56, 2  ;;  %vm18128_vm14 = vsmask.f32 6400 }
 0x40b   : > { %7810 = vst.msk [vmem:[#allocation2 + $0x20] sm:$0xff] %vm2943_vm13, %v7800_v5  ;;  %10114 = vrot.lane.b32.xlu1 %v10105_v34, %s17735_s5  ;;  %v17118_v34 = vld [vmem:[%s15736_s11 + $0x20] sm:$0xff]   ;;  %v9235_v52 = vrot.slane %v9233_v35, 2  ;;  %v9482_v35 = vshrl.u32 %v12751_v42, 16 }
 0x40c   : > { %9496 = vrot.lane.b32.xlu0 %v9480_v25, %s17699_s29  ;;  %v12739_v25 = vld [vmem:[%s14516_s9 + $0x2c] ss:$0 sps:$4 sm:$0x11]   ;;  %v9784_v5 = vrot.slane %v17118_v34, 1 }
 0x40d   : > { %v10041_v26 = vpop.permute.xlu1 %10040 }
 0x40e   : > { %10055 = vst.msk [vmem:[#allocation2] sm:$0xff] %vm18120_vm11, %v10041_v26  ;;  %v9381_v8 = vpop.permute.xlu0 %9380  ;;  %v9055_v26 = vsel %vm991_vm0, %v9052_v44, %v9054_v48  ;;  %v9785_v19 = vsel %vm991_vm0, %v9782_v7, %v9784_v5  ;;  %vm18129_vm11 = vcmask 359744  }
 0x40f   : > { %9394 = vst.msk [vmem:[#allocation2 + $0x8] sm:$0xff] %vm18121_vm12, %v9381_v8  ;;  %9566 = vrot.lane.b32.xlu1 %v9557_v4, %s17700_s19  ;;  %v17131_v4 = vld [vmem:[%s15736_s11 + $0x24] sm:$0xff]   ;;  %v9124_v8 = vrot.slane %v12739_v25, 1  ;;  %vm18130_vm12 = vcmask 97344  }
 0x410   : > { %8891 = vrot.lane.b32.xlu0 %v12726_v61, %s17692_s21  ;;  %v9953_v61 = vshrl.u32 %v12744_v41, 16  ;;  %v9854_v44 = vrot.slane %v17131_v4, 1  ;;  %v12752_v41 = vld [vmem:[%s15736_s11 + $0x28] sm:$0xff]  }
 0x411   : > { %v8833_v9 = vpop.permute.xlu1 %8832 }
 0x412   : > { %8845 = vst.msk [vmem:[#allocation2 + $0x10] sm:$0xff] %vm18122_vm10, %v8833_v9  ;;  %v7870_v10 = vpop.permute.xlu0 %7869  ;;  %v9855_v31 = vsel %vm991_vm0, %v9852_v32, %v9854_v44  ;;  %vm18131_vm10 = vmmov %vm18128_vm14 }
 0x413   : > { %7880 = vst.msk [vmem:[#allocation2 + $0x20] sm:$0xff] %vm3014_vm15, %v7870_v10  ;;  %8994 = vrot.lane.b32.xlu1 %v8985_v53, %s17693_s3  ;;  %v9232_v53 = vrot.slane %v9230_v14, 1  ;;  %v9125_v10 = vsel %vm991_vm0, %v9122_v11, %v9124_v8  ;;  %v17164_v11 = vld [vmem:[%s15736_s11 + $0x24] sm:$0xff]   ;;  %v12748_v14 = vld [vmem:[%s14516_s9 + $0x30] ss:$0 sps:$4 sm:$0x33]  }
 0x414   : > { %10226 = vrot.lane.b32.xlu0 %v10203_v29, %s17874_s20  ;;  %v9955_v29 = vrot.slane %v9953_v61, 1  ;;  %v10036_v32 = vrot.slane %v17164_v11, 2  ;;  %v10208_v61 = vshll.u32 %v12752_v41, 16  ;;  %v9484_v8 = vrot.slane %v9482_v35, 2  ;;  %s18209_s3 = sld [smem:[#allocation13_spill]] }
 0x415   : > { %v10111_v20 = vpop.permute.xlu1 %10110 }
 0x416   : > { %10125 = vst.msk [vmem:[#allocation2] sm:$0xff] %vm18123_vm8, %v10111_v20  ;;  %v9493_v2 = vpop.permute.xlu0 %9492  ;;  %v17161_v7 = vor.u32 %v9958_v43, %v9955_v29  ;;  %vm18132_vm8 = vcmask 1045504   ;;  %v12753_v43 = vld [vmem:[%s14516_s9 + $0x30] ss:$0 sps:$4 sm:$0x77]  }
 0x417   : > { %9506 = vst.msk [vmem:[#allocation2 + $0x8] sm:$0xff] %vm18124_vm2, %v9493_v2  ;;  %10296 = vrot.lane.b32.xlu1 %v10287_v63, %s17748_s30  ;;  %v9236_v63 = vor.u32 %v9235_v52, %v9232_v53  ;;  %v9485_v2 = vshll.u32 %v12751_v42, 16  ;;  %vm18133_vm2 = vcmask 622144   ;;  %v9558_v42 = vrot.slane %v12753_v43, 3 }
 0x418   : > { %9621 = vrot.lane.b32.xlu0 %v12732_v3, %s17703_s27  ;;  %v12745_v3 = vld [vmem:[%s14516_s9 + $0x2c] ss:$0 sps:$4 sm:$0x33]   ;;  %v9960_v39 = vsel %vm18131_vm10, %v16994_v59, %v17161_v7  ;;  %vm18140_vm10 = vcmask 654944  }
 0x419   : > { %v8888_v55 = vpop.permute.xlu1 %8887  ;;  %v9237_v48 = vsel %vm18128_vm14, %v16961_v13, %v9236_v63  ;;  %v9306_v25 = vrot.slane %v12745_v3, 2  ;;  %v17179_v13 = vld [vmem:[%s15736_s11 + $0x28] sm:$0xff]   ;;  %v9487_v53 = vrot.slane %v9485_v2, 3  ;;  %vm18137_vm14 = vcmask 130144  }
 0x41a   : > { %8900 = vst.msk [vmem:[#allocation2 + $0x10] sm:$0xff] %vm18125_vm6, %v8888_v55  ;;  %v8261_v38 = vpop.permute.xlu0 %8260  ;;  %v7885_v9 = vld [vmem:[#allocation2 + $0x20] sm:$0xff]  ;;  %vm18134_vm6 = vmmov %vm18132_vm8  ;;  %v10106_v59 = vrot.slane %v17179_v13, 2 }
 0x41b   : > { %8272 = vst.msk [vmem:[#allocation2 + $0x18] sm:$0xff] %vm18126_vm3, %v8261_v38  ;;  %11923 = vmatmul.mubr.bf16.gmra.mrb[36].mxu0 %v7885_v9  ;;  %9724 = vrot.lane.b32.xlu1 %v9709_v50, %s17709_s12  ;;  %v10205_v50 = vshrl.u32 %v12752_v41, 16  ;;  %v9307_v55 = vsel %vm18132_vm8, %v9304_v18, %v9306_v25  ;;  %v10037_v51 = vsel %vm18134_vm6, %v10034_v28, %v10036_v32  ;;  %v10210_v38 = vrot.slane %v10208_v61, 3  ;;  %vm18135_vm3 = vmmov %vm18134_vm6  ;;  %v12759_v28 = vld [vmem:[%s15736_s11 + $0x2c] ss:$0 sps:$4 sm:$0x33]  }
 0x41c   : > { %8170 = vst.msk [vmem:[#allocation2 + $0x20] sm:$0xff] %vm841_vm7, %v12764_v62  ;;  %9064 = vrot.lane.b32.xlu0 %v9055_v26, %s17694_s15  ;;  %vm18127_vm7 = vcmask 589344   ;;  %v9376_v26 = vrot.slane %v12748_v14, 2  ;;  %v9488_v29 = vor.u32 %v9487_v53, %v9484_v8  ;;  %v9962_v41 = vshrl.u32 %v12759_v28, 16 }
 0x41d   : > { %v10223_v17 = vpop.permute.xlu1 %10222  ;;  %v10207_v18 = vrot.slane %v10205_v50, 2  ;;  %v9559_v25 = vsel %vm1505_vm5, %v9556_v33, %v9558_v42  ;;  %v9710_v14 = vshrl.u32 %v17087_v60, 16  ;;  %vm18141_vm8 = vcmask 687744   ;;  %v12758_v60 = vld [vmem:[%s15736_s11 + $0x2c] ss:$0 sps:$4 sm:$0x11]  }
 0x41e   : > { %10237 = vst.msk [vmem:[#allocation2] sm:$0xff] %vm2943_vm13, %v10223_v17  ;;  %v9563_v1 = vpop.permute.xlu0 %9562  ;;  %v9489_v3 = vsel %vm1391_vm4, %v17056_v37, %v9488_v29  ;;  %v12757_v37 = vld [vmem:[%s15736_s11 + $0x28] ss:$0 sps:$4 sm:$0x11]   ;;  %vm18143_vm6 = vcmask 458144  }
 0x41f   : > { %9576 = vst.msk [vmem:[#allocation2 + $0x8] sm:$0xff] %vm18127_vm7, %v9563_v1  ;;  %9794 = vrot.lane.b32.xlu1 %v9785_v19, %s17714_s8  ;;  %v9377_v19 = vsel %vm18135_vm3, %v9374_v16, %v9376_v26  ;;  %vm18136_vm7 = vcmask 392544   ;;  %v17207_v54 = vor.u32 %v10210_v38, %v10207_v18  ;;  %v17210_v16 = vld [vmem:[%s15736_s11 + $0x28] sm:$0xff]   ;;  %v9786_v33 = vrot.slane %v12757_v37, 1 }
 0x420   : > { %9134 = vrot.lane.b32.xlu0 %v9125_v10, %s17939_s10  ;;  %v12756_v1 = vld [vmem:[%s15736_s11 + $0x28] ss:$0 sps:$4 sm:$0x11]   ;;  %v9712_v61 = vor.u32 %v9710_v14, %v17115_v36  ;;  %v12761_v53 = vld [vmem:[%s15736_s11 + $0x30] ss:$0 sps:$4 sm:$0x33]  }
 0x421   : > { %v8991_v20 = vpop.permute.xlu1 %8990  ;;  %v10212_v21 = vsel %vm1391_vm4, %v17089_v57, %v17207_v54  ;;  %v9714_v35 = vshll.u32 %v12756_v1, 16  ;;  %v12755_v57 = vld [vmem:[%s15736_s11 + $0x20] sm:$0xff]   ;;  %v9787_v49 = vsel %vm991_vm0, %v9784_v5, %v9786_v33  ;;  %v12760_v18 = vld [vmem:[%s15736_s11 + $0x2c] ss:$0 sps:$4 sm:$0x33]  }
 0x422   : > { %9003 = vst.msk [vmem:[#allocation2 + $0x10] sm:$0xff] %vm18129_vm11, %v8991_v20  ;;  %v8331_v62 = vpop.permute.xlu0 %8330  ;;  %vm18138_vm11 = vmmov %vm18135_vm3  ;;  %v9965_v20 = vshll.u32 %v12759_v28, 16  ;;  %vm18144_vm3 = vcmask 195744   ;;  %v18147_v5 = vld [vmem:[#allocation23_spill] sm:$0xff] }
 0x423   : > { %8342 = vst.msk [vmem:[#allocation2 + $0x18] sm:$0xff] %vm18130_vm12, %v8331_v62  ;;  %9864 = vrot.lane.b32.xlu1 %v9855_v31, %s18065_s7  ;;  %v10107_v27 = vsel %vm18138_vm11, %v10104_v6, %v10106_v59  ;;  %vm18139_vm12 = vcmask 162944   ;;  %v10288_v6 = vrot.slane %v17210_v16, 3  ;;  %v9964_v62 = vrot.slane %v9962_v41, 1 }
 0x424   : > { %9246 = vrot.lane.b32.xlu0 %v9237_v48, %s17952_s25  ;;  %vm18149_vm11 = vcmask 753344  }
 0x425   : > { %v10293_v56 = vpop.permute.xlu1 %10292  ;;  %v10289_v24 = vsel %vm1505_vm5, %v10286_v58, %v10288_v6  ;;  %v9856_v58 = vrot.slane %v12758_v60, 1 }
 0x426   : > { %10307 = vst.msk [vmem:[#allocation2] sm:$0xff] %vm3014_vm15, %v10293_v56  ;;  %v9618_v52 = vpop.permute.xlu0 %9617  ;;  %v9716_v56 = vrot.slane %v9714_v35, 1 }
 0x427   : > { %9631 = vst.msk [vmem:[#allocation2 + $0x8] sm:$0xff] %vm18133_vm2, %v9618_v52  ;;  %9976 = vrot.lane.b32.xlu1 %v9960_v39, %s17862_s28  ;;  %vm18142_vm2 = vcmask 425344   ;;  %v9967_v39 = vrot.slane %v9965_v20, 2  ;;  %v9857_v1 = vsel %vm991_vm0, %v9854_v44, %v9856_v58  ;;  %vm18151_vm0 = vcmask 1045504  }
 0x428   : > { %9316 = vrot.lane.b32.xlu0 %v9307_v55, %s17964_s18  ;;  %v12762_v55 = vld [vmem:[%s15736_s11 + $0x30] ss:$0 sps:$4 sm:$0x77]  }
 0x429   : > { %v9061_v9 = vpop.permute.xlu1 %9060  ;;  %v9968_v8 = vor.u32 %v9967_v39, %v9964_v62  ;;  %v10214_v38 = vshrl.u32 %v12762_v55, 16 }
 0x42a   : > { %9073 = vst.msk [vmem:[#allocation2 + $0x10] sm:$0xff] %vm18136_vm7, %v9061_v9  ;;  %v8401_v17 = vpop.permute.xlu0 %8400  ;;  %v10217_v9 = vshll.u32 %v12762_v55, 16  ;;  %vm18145_vm7 = vcmask 228544  }
 0x42b   : > { %8412 = vst.msk [vmem:[#allocation2 + $0x18] sm:$0xff] %vm18137_vm14, %v8401_v17  ;;  %10046 = vrot.lane.b32.xlu1 %v10037_v51, %s17868_s4  ;;  %v9717_v51 = vsel %vm886_vm1, %v9712_v61, %v9716_v56  ;;  %vm18146_vm14 = vcmask 720544   ;;  %vm18148_vm1 = vsmask.f32 6400 }
 0x42c   : > { %9386 = vrot.lane.b32.xlu0 %v9377_v19, %s17698_s23  ;;  %v10219_v37 = vrot.slane %v10217_v9, 3  ;;  %s18212_s23 = sld [smem:[#allocation35_spill]] }
 0x42d   : > { %v8513_v10 = vpop.permute.xlu1 %8512  ;;  %v10312_v63 = vld [vmem:[#allocation2] sm:$0xff] }
 0x42e   : > { %8524 = vst.msk [vmem:[#allocation2 + $0x18] sm:$0xff] %vm18139_vm12, %v8513_v10  ;;  %v9721_v31 = vpop.permute.xlu0 %9720  ;;  %11943 = vmatmul.mubr.bf16.vlgmr.msra.gmra.mrb[20].mxu1 %v10312_v63  ;;  %v9969_v10 = vsel %vm18148_vm1, %v17161_v7, %v9968_v8  ;;  %v10108_v63 = vrot.slane %v12761_v53, 2  ;;  %vm18150_vm12 = vcmask 490944   ;;  %vm18161_vm1 = vcmask 589344  }
 0x42f   : > { %9734 = vst.msk [vmem:[#allocation2 + $0x8] sm:$0xff] %vm18140_vm10, %v9721_v31  ;;  %10116 = vrot.lane.b32.xlu1 %v10107_v27, %s17735_s5  ;;  %11946 = vmatprep.mubr.msk.bf16.mxu1 %vm17833_vm9, %v17976_v0  ;;  %v10038_v31 = vrot.slane %v12760_v18, 2  ;;  %vm18152_vm10 = vmmov %vm18151_vm0 }
 0x430   : > { %9498 = vrot.lane.b32.xlu0 %v9489_v3, %s17699_s29  ;;  %v12763_v3 = vld [vmem:[%s15736_s11 + $0x30] ss:$0 sps:$4 sm:$0x77]   ;;  %v10109_v4 = vsel %vm18151_vm0, %v10106_v59, %v10108_v63  ;;  %vm18165_vm0 = vcmask 622144   ;;  %s10582_s11 = sshll.u32 %s18004_s6, 4  ;;  %s17397_s11 = int_to_ptr.vmem [resolvable:$true] %s10582_s11 }
 0x431   : > { %v9791_v48 = vpop.permute.xlu1 %9790  ;;  %v10290_v44 = vrot.slane %v12763_v3, 3  ;;  %v10039_v35 = vsel %vm18152_vm10, %v10036_v32, %v10038_v31  ;;  %vm18166_vm10 = vcmask 392544   ;;  %s12765_s26 = scalar_lea.vmem %s17397_s11, 2560  ;;  %p12772_p10 = scmp.lt.s32.totalorder %s17397_s11, %s12770_s1 }
 0x432   : > { %9804 = vst.msk [vmem:[#allocation2 + $0x8] sm:$0xff] %vm18141_vm8, %v9791_v48  ;;  %v9131_v2 = vpop.permute.xlu0 %9130  ;;  %vm18153_vm8 = vcmask 523744   ;;  %p12766_p6 = scmp.ne.s32.totalorder %s17397_s11, %s12765_s26  ;;  %p12773_p11 = scmp.lt.s32.totalorder %s12771_s22, %s12765_s26 }
 0x433   : > { %9143 = vst.msk [vmem:[#allocation2 + $0x10] sm:$0xff] %vm18142_vm2, %v9131_v2  ;;  %10228 = vrot.lane.b32.xlu1 %v10212_v21, %s17874_s20  ;;  %v10216_v21 = vrot.slane %v10214_v38, 2  ;;  %vm18154_vm2 = vcmask 261344   ;;  %v10291_v13 = vsel %vm1505_vm5, %v10288_v6, %v10290_v44  ;;  %vm18159_vm5 = vcmask 326944  }
 0x434   : > { %9568 = vrot.lane.b32.xlu0 %v9559_v25, %s17700_s19  ;;  %p12767_p7 = pnand %p12766_p6, %p13020_p3  ;;  %p12774_p12 = por %p12773_p11, %p12772_p10 }
 0x435   : > { %v9243_v50 = vpop.permute.xlu1 %9242  ;;  %v10220_v2 = vor.u32 %v10219_v37, %v10216_v21 }
 0x436   : > { %9255 = vst.msk [vmem:[#allocation2 + $0x10] sm:$0xff] %vm18143_vm6, %v9243_v50  ;;  %v8583_v26 = vpop.permute.xlu0 %8582  ;;  %vm18155_vm6 = vcmask 294144   ;;  %p12768_p9 = pneg %p12767_p7 }
 0x437   : > { %8594 = vst.msk [vmem:[#allocation2 + $0x18] sm:$0xff] %vm18144_vm3, %v8583_v26  ;;  %10298 = vrot.lane.b32.xlu1 %v10289_v24, %s17748_s30  ;;  %v10221_v11 = vsel %vm1391_vm4, %v17207_v54, %v10220_v2  ;;  %vm18156_vm3 = vcmask 786144   ;;  %vm18160_vm4 = vcmask 64544   ;;  %v18162_v26 = vld [vmem:[#allocation26_spill] sm:$0xff] }
 0x438   : > { %9623 = vrot.lane.b32.xlu0 %v12755_v57, %s17703_s27  ;;  %p12775_p13 = pnand %p12774_p12, %p12768_p9 }
 0x439   : > { %v8653_v52 = vpop.permute.xlu1 %8652  ;;  %v7984_v36 = vpop.f32.mrb[20].mxu0 }
 0x43a   : > { %8664 = vst.msk [vmem:[#allocation2 + $0x18] sm:$0xff] %vm18145_vm7, %v8653_v52  ;;  %v9861_v19 = vpop.permute.xlu0 %9860  ;;  %v8023_v29 = vmul.f32 %v14872_v45, %v7984_v36  ;;  %v11908_v43 = vpop.f32.mrb[21].mxu0  ;;  %vm18157_vm7 = vcmask 818944  }
 0x43b   : > { %9874 = vst.msk [vmem:[#allocation2 + $0x8] sm:$0xff] %vm18146_vm14, %v9861_v19  ;;  %v7987_v34 = vpop.f32.mrb[22].mxu0  ;;  %9796 = vrot.lane.b32.xlu1 %v9787_v49, %s17714_s8  ;;  %vm18158_vm14 = vcmask 556544  }
 0x43c   : > { %9726 = vrot.lane.b32.xlu0 %v9717_v51, %s17709_s12  ;;  %v8024_v17 = vmul.f32 %v18147_v5, %v7987_v34  ;;  %v11700_v27 = vpack.c.bf16 %v7987_v34, %v7984_v36  ;;  %v11909_v28 = vpop.f32.mrb[23].mxu0  ;;  %v8049_v41 = vmul.f32 %v8023_v29, %v7984_v36 }
 0x43d   : > { %v9973_v42 = vpop.permute.xlu1 %9972 }
 0x43e   : > { %v8033_v20 = vadd.f32 %v8024_v17, %v8023_v29  ;;  %v8050_v48 = vmul.f32 %v8024_v17, %v7987_v34  ;;  %11756 = vst [vmem:[%s18004_s6 + $0x50] sm:$0xff] %v11700_v27   ;;  %9986 = vst.msk [vmem:[#allocation2 + $0x8] sm:$0xff] %vm18149_vm11, %v9973_v42  ;;  %v9313_v25 = vpop.permute.xlu0 %9312  ;;  %vm18163_vm11 = vcmask 359744  }
 0x43f   : > { %9325 = vst.msk [vmem:[#allocation2 + $0x10] sm:$0xff] %vm18150_vm12, %v9313_v25  ;;  %9978 = vrot.lane.b32.xlu1 %v9969_v10, %s17862_s28  ;;  %vm18164_vm12 = vcmask 97344   ;;  %s18210_s28 = sld [smem:[#allocation24_spill]] }
 0x440   : > { %v8059_v7 = vadd.f32 %v8050_v48, %v8049_v41  ;;  %9866 = vrot.lane.b32.xlu0 %v9857_v1, %s18065_s7 }
 0x441   : > { %v9383_v14 = vpop.permute.xlu1 %9382 }
 0x442   : > { %9395 = vst.msk [vmem:[#allocation2 + $0x10] sm:$0xff] %vm18153_vm8, %v9383_v14  ;;  %v8765_v57 = vpop.permute.xlu0 %8764  ;;  %vm18167_vm8 = vcmask 130144  }
 0x443   : > { %8776 = vst.msk [vmem:[#allocation2 + $0x18] sm:$0xff] %vm18154_vm2, %v8765_v57  ;;  %10118 = vrot.lane.b32.xlu1 %v10109_v4, %s17735_s5  ;;  %vm18168_vm2 = vcmask 162944   ;;  %s11991_s5 = smul.u32 80, %s18209_s3 }
 0x444   : > { %10048 = vrot.lane.b32.xlu0 %v10039_v35, %s17868_s4  ;;  %s11990_s4 = smul.u32 40, %s18208_s2 }
 0x445   : > { %v8835_v59 = vpop.permute.xlu1 %8834  ;;  %s10561_s16 = scalar_lea.sflag [#allocation4], %s18210_s28 }
 0x446   : > { %8846 = vst.msk [vmem:[#allocation2 + $0x18] sm:$0xff] %vm18155_vm6, %v8835_v59  ;;  %v10043_v32 = vpop.permute.xlu0 %10042  ;;  %vm18169_vm6 = vcmask 654944   ;;  %s10579_s8 = sadd.s32 %s11991_s5, %s11990_s4 }
 0x447   : > { %10056 = vst.msk [vmem:[#allocation2 + $0x8] sm:$0xff] %vm18156_vm3, %v10043_v32  ;;  %10300 = vrot.lane.b32.xlu1 %v10291_v13, %s17748_s30  ;;  %vm18170_vm3 = vcmask 687744   ;;  %s11602_s27 = sshll.u32 %s10579_s8, 6 }
 0x448   : > { %10230 = vrot.lane.b32.xlu0 %v10221_v11, %s17874_s20  ;;  %s17395_s14 = scalar_lea.hbm %s18212_s23, %s11602_s27 }
 0x449   : > { %v10113_v24 = vpop.permute.xlu1 %10112 }
 0x44a   : > { %10126 = vst.msk [vmem:[#allocation2 + $0x8] sm:$0xff] %vm18157_vm7, %v10113_v24  ;;  %v9495_v33 = vpop.permute.xlu0 %9494  ;;  %vm18171_vm7 = vcmask 425344  }
 0x44b   : > { %9507 = vst.msk [vmem:[#allocation2 + $0x10] sm:$0xff] %vm18158_vm14, %v9495_v33  ;;  %vm18172_vm14 = vcmask 458144  }
 0x44d   : > { %v8890_v16 = vpop.permute.xlu1 %8889 }
 0x44e   : > { %8901 = vst.msk [vmem:[#allocation2 + $0x18] sm:$0xff] %vm18159_vm5, %v8890_v16  ;;  %v8263_v6 = vpop.permute.xlu0 %8262  ;;  %vm18173_vm5 = vcmask 195744  }
 0x44f   : > { %8273 = vst.msk [vmem:[#allocation2 + $0x20] sm:$0xff] %vm18160_vm4, %v8263_v6  ;;  %vm18174_vm4 = vcmask 228544  }
 0x451   : > { %v10225_v54 = vpop.permute.xlu1 %10224  ;;  %v7992_v60 = vpop.f32.mrb[24].mxu0 }
 0x452   : > { %10238 = vst.msk [vmem:[#allocation2 + $0x8] sm:$0xff] %vm2943_vm13, %v10225_v54  ;;  %v9565_v62 = vpop.permute.xlu0 %9564  ;;  %v8025_v39 = vmul.f32 %v15050_v40, %v7992_v60  ;;  %v11912_v50 = vpop.f32.mrb[25].mxu0 }
 0x453   : > { %9577 = vst.msk [vmem:[#allocation2 + $0x10] sm:$0xff] %vm18161_vm1, %v9565_v62  ;;  %v7995_v61 = vpop.f32.mrb[26].mxu0  ;;  %vm18175_vm1 = vcmask 720544  }
 0x454   : > { %v8034_v56 = vadd.f32 %v8033_v20, %v8025_v39  ;;  %v8051_v55 = vmul.f32 %v8025_v39, %v7992_v60  ;;  %v8026_v49 = vmul.f32 %v18162_v26, %v7995_v61  ;;  %v11705_v58 = vpack.c.bf16 %v7995_v61, %v7992_v60  ;;  %v11913_v8 = vpop.f32.mrb[27].mxu0 }
 0x455   : > { %v8993_v53 = vpop.permute.xlu1 %8992 }
 0x456   : > { %v8060_v52 = vadd.f32 %v8059_v7, %v8051_v55  ;;  %v8035_v36 = vadd.f32 %v8034_v56, %v8026_v49  ;;  %v8052_v51 = vmul.f32 %v8026_v49, %v7995_v61  ;;  %11757 = vst [vmem:[%s18004_s6 + $0x58] sm:$0xff] %v11705_v58   ;;  %9004 = vst.msk [vmem:[#allocation2 + $0x18] sm:$0xff] %vm18163_vm11, %v8993_v53  ;;  %v8333_v18 = vpop.permute.xlu0 %8332  ;;  %vm18176_vm11 = vcmask 753344   ;;  %v18182_v7 = vld [vmem:[#allocation27_spill] sm:$0xff] }
 0x457   : > { %8343 = vst.msk [vmem:[#allocation2 + $0x20] sm:$0xff] %vm18164_vm12, %v8333_v18  ;;  %vm18177_vm12 = vcmask 490944  }
 0x458   : > { %v8061_v38 = vadd.f32 %v8060_v52, %v8052_v51 }
 0x459   : > { %v10295_v9 = vpop.permute.xlu1 %10294 }
 0x45a   : > { %10308 = vst.msk [vmem:[#allocation2 + $0x8] sm:$0xff] %vm3014_vm15, %v10295_v9  ;;  %v9620_v19 = vpop.permute.xlu0 %9619 }
 0x45b   : > { %9632 = vst.msk [vmem:[#allocation2 + $0x10] sm:$0xff] %vm18165_vm0, %v9620_v19  ;;  %vm18178_vm0 = vcmask 523744  }
 0x45d   : > { %v9063_v29 = vpop.permute.xlu1 %9062 }
 0x45e   : > { %9074 = vst.msk [vmem:[#allocation2 + $0x18] sm:$0xff] %vm18166_vm10, %v9063_v29  ;;  %v8403_v43 = vpop.permute.xlu0 %8402  ;;  %vm18179_vm10 = vcmask 261344  }
 0x45f   : > { %8413 = vst.msk [vmem:[#allocation2 + $0x20] sm:$0xff] %vm18167_vm8, %v8403_v43  ;;  %vm18180_vm8 = vcmask 294144  }
 0x461   : > { %v8515_v34 = vpop.permute.xlu1 %8514  ;;  %v10313_v17 = vld [vmem:[#allocation2 + $0x8] sm:$0xff] }
 0x462   : > { %8525 = vst.msk [vmem:[#allocation2 + $0x20] sm:$0xff] %vm18168_vm2, %v8515_v34  ;;  %v9723_v27 = vpop.permute.xlu0 %9722  ;;  %11947 = vmatmul.mubr.bf16.gmra.mrb[24].mxu1 %v10313_v17  ;;  %vm18181_vm2 = vcmask 786144  }
 0x463   : > { %9735 = vst.msk [vmem:[#allocation2 + $0x10] sm:$0xff] %vm18169_vm6, %v9723_v27  ;;  %11950 = vmatprep.mubr.msk.bf16.mxu1 %vm17833_vm9, %v17976_v0  ;;  %vm18183_vm6 = vcmask 818944  }
 0x465   : > { %v9793_v28 = vpop.permute.xlu1 %9792 }
 0x466   : > { %9805 = vst.msk [vmem:[#allocation2 + $0x10] sm:$0xff] %vm18170_vm3, %v9793_v28  ;;  %v9133_v10 = vpop.permute.xlu0 %9132  ;;  %vm18184_vm3 = vcmask 556544  }
 0x467   : > { %9144 = vst.msk [vmem:[#allocation2 + $0x18] sm:$0xff] %vm18171_vm7, %v9133_v10  ;;  %vm18185_vm7 = vcmask 589344  }
 0x469   : > { %v9245_v63 = vpop.permute.xlu1 %9244 }
 0x46a   : > { %9256 = vst.msk [vmem:[#allocation2 + $0x18] sm:$0xff] %vm18172_vm14, %v9245_v63  ;;  %v8585_v3 = vpop.permute.xlu0 %8584  ;;  %vm18186_vm14 = vcmask 326944  }
 0x46b   : > { %8595 = vst.msk [vmem:[#allocation2 + $0x20] sm:$0xff] %vm18173_vm5, %v8585_v3  ;;  %vm18187_vm5 = vcmask 359744  }
 0x46d   : > { %v8655_v42 = vpop.permute.xlu1 %8654 }
 0x46e   : > { %8665 = vst.msk [vmem:[#allocation2 + $0x20] sm:$0xff] %vm18174_vm4, %v8655_v42  ;;  %v9863_v1 = vpop.permute.xlu0 %9862  ;;  %vm18188_vm4 = vcmask 622144  }
 0x46f   : > { %9875 = vst.msk [vmem:[#allocation2 + $0x10] sm:$0xff] %vm18175_vm1, %v9863_v1  ;;  %vm18189_vm1 = vcmask 654944  }
 0x471   : > { %v9975_v31 = vpop.permute.xlu1 %9974 }
 0x472   : > { %9987 = vst.msk [vmem:[#allocation2 + $0x10] sm:$0xff] %vm18176_vm11, %v9975_v31  ;;  %v9315_v21 = vpop.permute.xlu0 %9314  ;;  %vm18190_vm11 = vcmask 392544  }
 0x473   : > { %9326 = vst.msk [vmem:[#allocation2 + $0x18] sm:$0xff] %vm18177_vm12, %v9315_v21  ;;  %vm18191_vm12 = vcmask 687744  }
 0x475   : > { %v9385_v37 = vpop.permute.xlu1 %9384 }
 0x476   : > { %9396 = vst.msk [vmem:[#allocation2 + $0x18] sm:$0xff] %vm18178_vm0, %v9385_v37  ;;  %v8767_v41 = vpop.permute.xlu0 %8766  ;;  %vm18192_vm0 = vcmask 425344  }
 0x477   : > { %8777 = vst.msk [vmem:[#allocation2 + $0x20] sm:$0xff] %vm18179_vm10, %v8767_v41  ;;  %vm18193_vm10 = vcmask 720544  }
 0x479   : > { %v8837_v20 = vpop.permute.xlu1 %8836 }
 0x47a   : > { %8847 = vst.msk [vmem:[#allocation2 + $0x20] sm:$0xff] %vm18180_vm8, %v8837_v20  ;;  %v10045_v48 = vpop.permute.xlu0 %10044  ;;  %v8000_v25 = vpop.f32.mrb[28].mxu0  ;;  %vm18194_vm8 = vcmask 458144  }
 0x47b   : > { %10057 = vst.msk [vmem:[#allocation2 + $0x10] sm:$0xff] %vm18181_vm2, %v10045_v48  ;;  %v8027_v4 = vmul.f32 %v18182_v7, %v8000_v25  ;;  %v11916_v44 = vpop.f32.mrb[29].mxu0  ;;  %vm18195_vm2 = vcmask 753344  }
 0x47c   : > { %v8003_v14 = vpop.f32.mrb[30].mxu0 }
 0x47d   : > { %v8036_v35 = vadd.f32 %v8035_v36, %v8027_v4  ;;  %v8053_v2 = vmul.f32 %v8027_v4, %v8000_v25  ;;  %v8028_v57 = vmul.f32 %v15190_v12, %v8003_v14  ;;  %v11710_v13 = vpack.c.bf16 %v8003_v14, %v8000_v25  ;;  %v11917_v59 = vpop.f32.mrb[31].mxu0  ;;  %v10115_v11 = vpop.permute.xlu1 %10114 }
 0x47e   : > { %10127 = vst.msk [vmem:[#allocation2 + $0x10] sm:$0xff] %vm18183_vm6, %v10115_v11  ;;  %v9497_v32 = vpop.permute.xlu0 %9496  ;;  %vm18196_vm6 = vcmask 490944  }
 0x47f   : > { %v8062_v24 = vadd.f32 %v8061_v38, %v8053_v2  ;;  %v8037_v33 = vadd.f32 %v8036_v35, %v8028_v57  ;;  %v8054_v16 = vmul.f32 %v8028_v57, %v8003_v14  ;;  %11758 = vst [vmem:[%s18004_s6 + $0x60] sm:$0xff] %v11710_v13   ;;  %9508 = vst.msk [vmem:[#allocation2 + $0x18] sm:$0xff] %vm18184_vm3, %v9497_v32  ;;  %vm18197_vm3 = vcmask 786144  }
 0x481   : > { %v17326_v6 = vadd.f32 %v8062_v24, %v8054_v16  ;;  %v9567_v54 = vpop.permute.xlu1 %9566 }
 0x482   : > { %9578 = vst.msk [vmem:[#allocation2 + $0x18] sm:$0xff] %vm18185_vm7, %v9567_v54  ;;  %v8892_v60 = vpop.permute.xlu0 %8891  ;;  %vm18198_vm7 = vcmask 523744  }
 0x483   : > { %8902 = vst.msk [vmem:[#allocation2 + $0x20] sm:$0xff] %vm18186_vm14, %v8892_v60  ;;  %vm18199_vm14 = vcmask 818944  }
 0x485   : > { %v8995_v62 = vpop.permute.xlu1 %8994 }
 0x486   : > { %9005 = vst.msk [vmem:[#allocation2 + $0x20] sm:$0xff] %vm18187_vm5, %v8995_v62  ;;  %v10227_v39 = vpop.permute.xlu0 %10226  ;;  %vm18200_vm5 = vcmask 556544  }
 0x487   : > { %10239 = vst.msk [vmem:[#allocation2 + $0x10] sm:$0xff] %vm2943_vm13, %v10227_v39 }
 0x489   : > { %v10297_v50 = vpop.permute.xlu1 %10296 }
 0x48a   : > { %10309 = vst.msk [vmem:[#allocation2 + $0x10] sm:$0xff] %vm3014_vm15, %v10297_v50  ;;  %v9622_v61 = vpop.permute.xlu0 %9621 }
 0x48b   : > { %9633 = vst.msk [vmem:[#allocation2 + $0x18] sm:$0xff] %vm18188_vm4, %v9622_v61  ;;  %vm18201_vm4 = vcmask 589344  }
 0x48d   : > { %v9725_v56 = vpop.permute.xlu1 %9724 }
 0x48e   : > { %9736 = vst.msk [vmem:[#allocation2 + $0x18] sm:$0xff] %vm18189_vm1, %v9725_v56  ;;  %v9065_v55 = vpop.permute.xlu0 %9064  ;;  %vm18202_vm1 = vcmask 622144  }
 0x48f   : > { %9075 = vst.msk [vmem:[#allocation2 + $0x20] sm:$0xff] %vm18190_vm11, %v9065_v55  ;;  %vm18203_vm11 = vcmask 654944  }
 0x491   : > { %v9795_v49 = vpop.permute.xlu1 %9794  ;;  %v10314_v58 = vld [vmem:[#allocation2 + $0x10] sm:$0xff] }
 0x492   : > { %9806 = vst.msk [vmem:[#allocation2 + $0x18] sm:$0xff] %vm18191_vm12, %v9795_v49  ;;  %v9135_v8 = vpop.permute.xlu0 %9134  ;;  %11951 = vmatmul.mubr.bf16.gmra.mrb[28].mxu1 %v10314_v58 }
 0x493   : > { %9145 = vst.msk [vmem:[#allocation2 + $0x20] sm:$0xff] %vm18192_vm0, %v9135_v8  ;;  %11954 = vmatprep.mubr.msk.bf16.mxu1 %vm17833_vm9, %v17976_v0  ;;  %vm18204_vm0 = vmmov %vm18193_vm10 }
 0x495   : > { %v9865_v53 = vpop.permute.xlu1 %9864 }
 0x496   : > { %9876 = vst.msk [vmem:[#allocation2 + $0x18] sm:$0xff] %vm18193_vm10, %v9865_v53  ;;  %v9247_v52 = vpop.permute.xlu0 %9246  ;;  %vm18205_vm10 = vmmov %vm18195_vm2 }
 0x497   : > { %9257 = vst.msk [vmem:[#allocation2 + $0x20] sm:$0xff] %vm18194_vm8, %v9247_v52  ;;  %vm18206_vm8 = vmmov %vm18197_vm3 }
 0x499   : > { %v9977_v36 = vpop.permute.xlu1 %9976 }
 0x49a   : > { %9988 = vst.msk [vmem:[#allocation2 + $0x18] sm:$0xff] %vm18195_vm2, %v9977_v36  ;;  %v9317_v51 = vpop.permute.xlu0 %9316  ;;  %vm18207_vm2 = vmmov %vm18199_vm14 }
 0x49b   : > { %9327 = vst.msk [vmem:[#allocation2 + $0x20] sm:$0xff] %vm18196_vm6, %v9317_v51 }
 0x49d   : > { %v10047_v18 = vpop.permute.xlu1 %10046 }
 0x49e   : > { %10058 = vst.msk [vmem:[#allocation2 + $0x18] sm:$0xff] %vm18197_vm3, %v10047_v18  ;;  %v9387_v38 = vpop.permute.xlu0 %9386 }
 0x49f   : > { %9397 = vst.msk [vmem:[#allocation2 + $0x20] sm:$0xff] %vm18198_vm7, %v9387_v38 }
 0x4a1   : > { %v10117_v9 = vpop.permute.xlu1 %10116 }
 0x4a2   : > { %10128 = vst.msk [vmem:[#allocation2 + $0x18] sm:$0xff] %vm18199_vm14, %v10117_v9  ;;  %v9499_v19 = vpop.permute.xlu0 %9498 }
 0x4a3   : > { %9509 = vst.msk [vmem:[#allocation2 + $0x20] sm:$0xff] %vm18200_vm5, %v9499_v19 }
 0x4a5   : > { %v10229_v29 = vpop.permute.xlu1 %10228 }
 0x4a6   : > { %10240 = vst.msk [vmem:[#allocation2 + $0x18] sm:$0xff] %vm2943_vm13, %v10229_v29  ;;  %v9569_v43 = vpop.permute.xlu0 %9568 }
 0x4a7   : > { %9579 = vst.msk [vmem:[#allocation2 + $0x20] sm:$0xff] %vm18201_vm4, %v9569_v43 }
 0x4a9   : > { %v10299_v34 = vpop.permute.xlu1 %10298 }
 0x4aa   : > { %10310 = vst.msk [vmem:[#allocation2 + $0x18] sm:$0xff] %vm3014_vm15, %v10299_v34  ;;  %v9624_v17 = vpop.permute.xlu0 %9623 }
 0x4ab   : > { %9634 = vst.msk [vmem:[#allocation2 + $0x20] sm:$0xff] %vm18202_vm1, %v9624_v17 }
 0x4ad   : > { %v8008_v27 = vpop.f32.mrb[32].mxu0  ;;  %v9797_v28 = vpop.permute.xlu1 %9796 }
 0x4ae   : > { %v9727_v10 = vpop.permute.xlu0 %9726  ;;  %v8029_v63 = vmul.f32 %v15244_v47, %v8008_v27  ;;  %v11920_v3 = vpop.f32.mrb[33].mxu0 }
 0x4af   : > { %9737 = vst.msk [vmem:[#allocation2 + $0x20] sm:$0xff] %vm18203_vm11, %v9727_v10  ;;  %v8011_v42 = vpop.f32.mrb[34].mxu0 }
 0x4b0   : > { %v8038_v1 = vadd.f32 %v8037_v33, %v8029_v63  ;;  %v8055_v31 = vmul.f32 %v8029_v63, %v8008_v27  ;;  %9807 = vst.msk [vmem:[#allocation2 + $0x20] sm:$0xff] %vm18191_vm12, %v9797_v28  ;;  %v8030_v21 = vmul.f32 %v15293_v22, %v8011_v42  ;;  %v11715_v37 = vpack.c.bf16 %v8011_v42, %v8008_v27  ;;  %v11921_v41 = vpop.f32.mrb[35].mxu0 }
 0x4b1   : > { %v9979_v20 = vpop.permute.xlu1 %9978  ;;  %v10315_v48 = vld [vmem:[#allocation2 + $0x18] sm:$0xff] }
 0x4b2   : > { %v8064_v25 = vadd.f32 %v17326_v6, %v8055_v31  ;;  %v8039_v4 = vadd.f32 %v8038_v1, %v8030_v21  ;;  %v8056_v44 = vmul.f32 %v8030_v21, %v8011_v42  ;;  %11759 = vst [vmem:[%s18004_s6 + $0x68] sm:$0xff] %v11715_v37   ;;  %v9867_v14 = vpop.permute.xlu0 %9866  ;;  %11955 = vmatmul.mubr.bf16.gmra.mrb[32].mxu1 %v10315_v48 }
 0x4b3   : > { %9877 = vst.msk [vmem:[#allocation2 + $0x20] sm:$0xff] %vm18204_vm0, %v9867_v14  ;;  %11958 = vmatprep.mubr.msk.bf16.mxu1 %vm17833_vm9, %v17976_v0 }
 0x4b4   : > { %v8065_v35 = vadd.f32 %v8064_v25, %v8056_v44  ;;  %9989 = vst.msk [vmem:[#allocation2 + $0x20] sm:$0xff] %vm18205_vm10, %v9979_v20 }
 0x4b5   : > { %v10119_v2 = vpop.permute.xlu1 %10118 }
 0x4b6   : > { %v10049_v57 = vpop.permute.xlu0 %10048 }
 0x4b7   : > { %10059 = vst.msk [vmem:[#allocation2 + $0x20] sm:$0xff] %vm18206_vm8, %v10049_v57 }
 0x4b8   : > { %10129 = vst.msk [vmem:[#allocation2 + $0x20] sm:$0xff] %vm18207_vm2, %v10119_v2 }
 0x4b9   : > { %v10301_v13 = vpop.permute.xlu1 %10300 }
 0x4ba   : > { %v10231_v59 = vpop.permute.xlu0 %10230 }
 0x4bb   : > { %10241 = vst.msk [vmem:[#allocation2 + $0x20] sm:$0xff] %vm2943_vm13, %v10231_v59 }
 0x4bc   : > { %10311 = vst.msk [vmem:[#allocation2 + $0x20] sm:$0xff] %vm3014_vm15, %v10301_v13 }
 0x4c3   : > { %v10316_v11 = vld [vmem:[#allocation2 + $0x20] sm:$0xff] }
 0x4c4   : > { %11959 = vmatmul.mubr.bf16.gmra.mrb[36].mxu1 %v10316_v11 }
 0x4ee   : > { %v8016_v32 = vpop.f32.mrb[36].mxu0 }
 0x4ef   : > { %v8031_v0 = vmul.f32 %v15325_v30, %v8016_v32  ;;  %v11924_v24 = vpop.f32.mrb[37].mxu0 }
 0x4f0   : > { %v8019_v33 = vpop.f32.mrb[38].mxu0 }
 0x4f1   : > { %v8040_v16 = vadd.f32 %v8039_v4, %v8031_v0  ;;  %v8057_v6 = vmul.f32 %v8031_v0, %v8016_v32  ;;  %v8032_v54 = vmul.f32 %v15336_v15, %v8019_v33  ;;  %v11720_v60 = vpack.c.bf16 %v8019_v33, %v8016_v32  ;;  %v11925_v62 = vpop.f32.mrb[39].mxu0 }
 0x4f3   : > { %v8066_v39 = vadd.f32 %v8065_v35, %v8057_v6  ;;  %v8041_v50 = vadd.f32 %v8040_v16, %v8032_v54  ;;  %v8058_v61 = vmul.f32 %v8032_v54, %v8019_v33  ;;  %11760 = vst [vmem:[%s18004_s6 + $0x70] sm:$0xff] %v11720_v60  }
 0x4f5   : > { %v8042_v56 = vrot.slane %v8041_v50, 4  ;;  %v8067_v55 = vadd.f32 %v8066_v39, %v8058_v61 }
 0x4f7   : > { %v8043_v49 = vadd.f32 %v8042_v56, %v8041_v50  ;;  %v8068_v58 = vrot.slane %v8067_v55, 4 }
 0x4f9   : > { %v8044_v8 = vrot.slane %v8043_v49, 2  ;;  %v8069_v53 = vadd.f32 %v8068_v58, %v8067_v55 }
 0x4fb   : > { %v8045_v52 = vadd.f32 %v8044_v8, %v8043_v49  ;;  %v8070_v36 = vrot.slane %v8069_v53, 2 }
 0x4fd   : > { %v8046_v51 = vrot.slane %v8045_v52, 1  ;;  %v8071_v18 = vadd.f32 %v8070_v36, %v8069_v53 }
 0x4ff   : > { %v8047_v38 = vadd.f32 %v8046_v51, %v8045_v52  ;;  %v8072_v9 = vrot.slane %v8071_v18, 1 }
 0x501   : > { %v8073_v19 = vadd.f32 %v8072_v9, %v8071_v18  ;;  %v10415_v29 = vpop.f32.mrb[20].mxu1  ;;  %v17370_v43 = vadd.f32 %v8047_v38, %v16703_v23 }
 0x502   : > { %v10454_v34 = vmul.f32 %v14872_v45, %v10415_v29  ;;  %v11944_v17 = vpop.f32.mrb[21].mxu1 }
 0x503   : > { %v10418_v27 = vpop.f32.mrb[22].mxu1  ;;  %v17374_v28 = vadd.f32 %v8073_v19, %v16713_v46 }
 0x504   : > { %v10455_v10 = vmul.f32 %v18147_v5, %v10418_v27  ;;  %v11725_v63 = vpack.c.bf16 %v10418_v27, %v10415_v29  ;;  %v11945_v3 = vpop.f32.mrb[23].mxu1  ;;  %v10480_v42 = vmul.f32 %v10454_v34, %v10415_v29 }
 0x506   : > { %v10464_v1 = vadd.f32 %v10455_v10, %v10454_v34  ;;  %v10481_v31 = vmul.f32 %v10455_v10, %v10418_v27  ;;  %11761 = vst [vmem:[%s18004_s6 + $0x78] sm:$0xff] %v11725_v63  }
 0x508   : > { %v10490_v21 = vadd.f32 %v10481_v31, %v10480_v42 }
 0x535   : > { %v10423_v37 = vpop.f32.mrb[24].mxu1 }
 0x536   : > { %v10456_v23 = vmul.f32 %v15050_v40, %v10423_v37  ;;  %v11948_v41 = vpop.f32.mrb[25].mxu1 }
 0x537   : > { %v10426_v45 = vpop.f32.mrb[26].mxu1 }
 0x538   : > { %v10465_v20 = vadd.f32 %v10464_v1, %v10456_v23  ;;  %v10482_v48 = vmul.f32 %v10456_v23, %v10423_v37  ;;  %v10457_v46 = vmul.f32 %v18162_v26, %v10426_v45  ;;  %v11730_v25 = vpack.c.bf16 %v10426_v45, %v10423_v37  ;;  %v11949_v4 = vpop.f32.mrb[27].mxu1 }
 0x53a   : > { %v10491_v5 = vadd.f32 %v10490_v21, %v10482_v48  ;;  %v10466_v44 = vadd.f32 %v10465_v20, %v10457_v46  ;;  %v10483_v14 = vmul.f32 %v10457_v46, %v10426_v45  ;;  %11762 = vst [vmem:[%s18004_s6 + $0x80] sm:$0xff] %v11730_v25  }
 0x53c   : > { %v10492_v35 = vadd.f32 %v10491_v5, %v10483_v14 }
 0x565   : > { %v10431_v2 = vpop.f32.mrb[28].mxu1 }
 0x566   : > { %v10458_v57 = vmul.f32 %v18182_v7, %v10431_v2  ;;  %v11952_v13 = vpop.f32.mrb[29].mxu1 }
 0x567   : > { %v10434_v59 = vpop.f32.mrb[30].mxu1 }
 0x568   : > { %v10467_v40 = vadd.f32 %v10466_v44, %v10458_v57  ;;  %v10484_v11 = vmul.f32 %v10458_v57, %v10431_v2  ;;  %v10459_v32 = vmul.f32 %v15190_v12, %v10434_v59  ;;  %v11735_v0 = vpack.c.bf16 %v10434_v59, %v10431_v2  ;;  %v11953_v24 = vpop.f32.mrb[31].mxu1 }
 0x56a   : > { %v10493_v26 = vadd.f32 %v10492_v35, %v10484_v11  ;;  %v10468_v33 = vadd.f32 %v10467_v40, %v10459_v32  ;;  %v10485_v16 = vmul.f32 %v10459_v32, %v10434_v59  ;;  %11763 = vst [vmem:[%s18004_s6 + $0x88] sm:$0xff] %v11735_v0  }
 0x56c   : > { %v10494_v6 = vadd.f32 %v10493_v26, %v10485_v16 }
 0x585   : > { %v10439_v54 = vpop.f32.mrb[32].mxu1 }
 0x586   : > { %v10460_v60 = vmul.f32 %v15244_v47, %v10439_v54  ;;  %v11956_v7 = vpop.f32.mrb[33].mxu1 }
 0x587   : > { %v10442_v62 = vpop.f32.mrb[34].mxu1 }
 0x588   : > { %v10469_v39 = vadd.f32 %v10468_v33, %v10460_v60  ;;  %v10486_v50 = vmul.f32 %v10460_v60, %v10439_v54  ;;  %v10461_v12 = vmul.f32 %v15293_v22, %v10442_v62  ;;  %v11740_v61 = vpack.c.bf16 %v10442_v62, %v10439_v54  ;;  %v11957_v56 = vpop.f32.mrb[35].mxu1 }
 0x58a   : > { %v10495_v55 = vadd.f32 %v10494_v6, %v10486_v50  ;;  %v10470_v49 = vadd.f32 %v10469_v39, %v10461_v12  ;;  %v10487_v58 = vmul.f32 %v10461_v12, %v10442_v62  ;;  %11764 = vst [vmem:[%s18004_s6 + $0x90] sm:$0xff] %v11740_v61  }
 0x58c   : > { %v10496_v8 = vadd.f32 %v10495_v55, %v10487_v58 }
 0x597   : > { %v10447_v53 = vpop.f32.mrb[36].mxu1 }
 0x598   : > { %v10462_v47 = vmul.f32 %v15325_v30, %v10447_v53  ;;  %v11960_v52 = vpop.f32.mrb[37].mxu1 }
 0x599   : > { %v10450_v22 = vpop.f32.mrb[38].mxu1 }
 0x59a   : > { %v10471_v36 = vadd.f32 %v10470_v49, %v10462_v47  ;;  %v10488_v51 = vmul.f32 %v10462_v47, %v10447_v53  ;;  %v10463_v18 = vmul.f32 %v15336_v15, %v10450_v22  ;;  %v11745_v38 = vpack.c.bf16 %v10450_v22, %v10447_v53  ;;  %v11961_v9 = vpop.f32.mrb[39].mxu1 }
 0x59c   : > { %v10497_v30 = vadd.f32 %v10496_v8, %v10488_v51  ;;  %v10472_v19 = vadd.f32 %v10471_v36, %v10463_v18  ;;  %v10489_v29 = vmul.f32 %v10463_v18, %v10450_v22  ;;  %11765 = vst [vmem:[%s18004_s6 + $0x98] sm:$0xff] %v11745_v38  }
 0x59d   : > { %12778 = shalt.err (!%p12775_p13)
}
 0x59e   : > { %s12779_s21 = scalar_lea.hbm %s17395_s14, 2560  ;;  %s12783_s20 = scalar_lea.hbm %s18212_s23, 10240 }
 0x59f   : > { %p12780_p0 = scmp.ne.s32.totalorder %s17395_s14, %s12779_s21  ;;  %p12784_p4 = scmp.lt.u32.totalorder %s17395_s14, %s18212_s23 }
 0x5a0   : > { %p12785_p5 = scmp.lt.u32.totalorder %s12783_s20, %s12779_s21  ;;  %p12787_p7 = scmp.lt.u32.totalorder %s12779_s21, %s17395_s14 }
 0x5a1   : > { %p12781_p1 = pnand %p12780_p0, %p13020_p3 }
 0x5a2   : > { %p12786_p6 = por %p12785_p5, %p12784_p4 }
 0x5a3   : > { %p12782_p2 = pneg %p12781_p1 }
 0x5a4   : > { %p12788_p9 = por %p12787_p7, %p12786_p6 }
 0x5a6   : > { %p12789_p10 = pnand %p12788_p9, %p12782_p2 }
 0x5a8   : > { %12792 = shalt.err (!%p12789_p10)
}
 0x5a9   : > { %11992 = dma.vmem_to_hbm [thread:$0]  (%p13020_p3), %s17397_s11, 2560, %s17395_s14, %s10561_s16, %s17699_s29, %s17699_s29, %s17755_s13   ;;  %v10473_v15 = vrot.slane %v10472_v19, 4  ;;  %v10498_v34 = vadd.f32 %v10497_v30, %v10489_v29  ;;  %vm10557_vm13 = vcmask 1040384  }
 0x5aa   : > { %s10838_s18 = sshll.u32 %s18210_s28, 1  ;;  %s11603_s6 = sshll.u32 %s18209_s3, 1 }
 0x5ab   : > { %v10474_v17 = vadd.f32 %v10473_v15, %v10472_v19  ;;  %v10499_v27 = vrot.slane %v10498_v34, 4  ;;  %s10596_s24 = sadd.s32 %s18208_s2, %s11603_s6  ;;  %s515_s13 = scalar_lea.vmem [#allocation5], %s10838_s18 }
 0x5ac   : > { %s11604_s29 = sshll.u32 %s10596_s24, 5  ;;  %s10600_s17 = sshll.u32 %s515_s13, 4  ;;  %s17437_s17 = int_to_ptr.vmem [resolvable:$true] %s10600_s17 }
 0x5ad   : > { %v10475_v10 = vrot.slane %v10474_v17, 2  ;;  %v10500_v63 = vadd.f32 %v10499_v27, %v10498_v34  ;;  %s18213_s5 = sld [smem:[#allocation36_spill]]  ;;  %s10566_s2 = scalar_lea.sflag [#allocation6], %s18210_s28 }
 0x5ae   : > { %s12793_s8 = scalar_lea.vmem %s17437_s17, 32  ;;  %s12923_s27 = smov [#allocation5]  }
 0x5af   : > { %v10476_v3 = vadd.f32 %v10475_v10, %v10474_v17  ;;  %v10501_v42 = vrot.slane %v10500_v63, 2  ;;  %p12794_p11 = scmp.ne.s32.totalorder %s17437_s17, %s12793_s8  ;;  %s12797_s11 = sshll.u32 %s12923_s27, 4  ;;  %s12798_s11 = int_to_ptr.vmem [resolvable:$false] %s12797_s11 }
 0x5b0   : > { %s12799_s15 = scalar_lea.vmem %s12798_s11, 64  ;;  %p12800_p0 = scmp.lt.s32.totalorder %s17437_s17, %s12798_s11 }
 0x5b1   : > { %v10477_v1 = vrot.slane %v10476_v3, 1  ;;  %v10502_v31 = vadd.f32 %v10501_v42, %v10500_v63  ;;  %p12795_p12 = pnand %p12794_p11, %p13020_p3  ;;  %p12801_p1 = scmp.lt.s32.totalorder %s12799_s15, %s12793_s8 }
 0x5b3   : > { %v10503_v21 = vrot.slane %v10502_v31, 1  ;;  %v10478_v37 = vadd.f32 %v10477_v1, %v10476_v3  ;;  %s17435_s3 = scalar_lea.hbm %s18213_s5, %s11604_s29  ;;  %p12796_p13 = pneg %p12795_p12 }
 0x5b4   : > { %p12802_p2 = por %p12801_p1, %p12800_p0 }
 0x5b5   : > { %v10479_v23 = vadd.f32 %v10478_v37, %v17370_v43  ;;  %v10504_v41 = vadd.f32 %v10503_v21, %v10502_v31 }
 0x5b6   : > { %p12803_p4 = pnand %p12802_p2, %p12796_p13 }
 0x5b7   : > { %v10505_v45 = vadd.f32 %v10504_v41, %v17374_v28 }
 0x5b9   : > { %v10558_v20 = vsel %vm10557_vm13, %v10479_v23, %v10505_v45 }
 0x5ba   : > { %10559 = vst [vmem:[%s515_s13] sm:$0x3] %v10558_v20 }
 0x5bb   : > { %12806 = shalt.err (!%p12803_p4)
}
 0x5bc   : > { %s12807_s28 = scalar_lea.hbm %s17435_s3, 32  ;;  %s12811_s16 = scalar_lea.hbm %s18213_s5, 128 }
 0x5bd   : > { %p12808_p5 = scmp.ne.s32.totalorder %s17435_s3, %s12807_s28  ;;  %p12812_p9 = scmp.lt.u32.totalorder %s17435_s3, %s18213_s5 }
 0x5be   : > { %p12813_p10 = scmp.lt.u32.totalorder %s12811_s16, %s12807_s28  ;;  %p12815_p12 = scmp.lt.u32.totalorder %s12807_s28, %s17435_s3 }
 0x5bf   : > { %p12809_p6 = pnand %p12808_p5, %p13020_p3 }
 0x5c0   : > { %p12814_p11 = por %p12813_p10, %p12812_p9 }
 0x5c1   : > { %p12810_p7 = pneg %p12809_p6 }
 0x5c2   : > { %p12816_p13 = por %p12815_p12, %p12814_p11 }
 0x5c4   : > { %p12817_p0 = pnand %p12816_p13, %p12810_p7 }
 0x5c6   : > { %12820 = shalt.err (!%p12817_p0)
}
 0x5c7   : > { %11993 = dma.vmem_to_hbm [thread:$0]  (%p13020_p3), %s17437_s17, 32, %s17435_s3, %s10566_s2  }
 0x5c8 PF: > { %s18214_s1 = sld [smem:[#allocation16_spill]]  ;;  %s18215_s22 = sld [smem:[#allocation9_spill]] }
 0x5ce   : > { %p12003_p1 = scmp.ge.s32.totalorder %s18214_s1, 2  ;;  %s10612_s9 = sand.u32 1, %s18215_s22  }
 0x5cf   : > { %s10613_s30 = scalar_lea.sflag [#allocation4], %s10612_s9 }
 0x5d0   : > { %p11997_p2 = pnand %p12003_p1, %p13029_p8 }
 0x5d2   : > { %12854 = dma.done.wait (!%p11997_p2), %s10613_s30, 2560  }
 0x5d3   : > { %12856 = vsyncadd (!%p11997_p2), %s10613_s30, 4294964736  ;;  %s10622_s20 = scalar_lea.sflag [#allocation6], %s10612_s9 }
 0x5d4   : > { %12858 = dma.done.wait (!%p11997_p2), %s10622_s20, 32  }
 0x5d5   : > { %12860 = vsyncadd (!%p11997_p2), %s10622_s20, 4294967264  ;;  %s25_s12 = sadd.s32 1, %s18214_s1   ;;  %s18217_s27 = sld [smem:[#allocation10_spill]] }
 0x5d6   : > { %p22_p4 = scmp.ge.s32.totalorder %s25_s12, 6   ;;  %s18218_s28 = sld [smem:[#allocation11_spill]] }
 0x5d7   : > { %s18219_s29 = sld [smem:[#allocation21_spill]]  ;;  %s18220_s30 = sld [smem:[#allocation14_spill]] }
 0x5d8   : > { %s18221_s9 = sld [smem:[#allocation15_spill]]  ;;  %s18222_s10 = sld [smem:[#allocation17_spill]] }
 0x5d9   : > { %s18223_s11 = sld [smem:[#allocation19_spill]]  ;;  %24 = sbr.rel (!%p22_p4) target bundleno = 17 (0x11), region = 118 }
 0x5e0   :  { %10627 = vsyncpa [#allocation4], 1 }
 0x5e1   :  { %10629 = vsyncpa [#allocation4 + $0x1], 1 }
 0x5e2   :  { %10630 = vsyncpa [#allocation6], 1 }
 0x5e3   :  { %10632 = vsyncpa [#allocation6 + $0x1], 1 }

</bundles_post_ra>
